<compile_context>
chip_gen: v5e
topology: v5e:2x2
jax: 0.10.0
libtpu: 0.0.40
codegen_flags: <defaults>
</compile_context>

<pallas_src>
import math
import jax
import jax.numpy as jnp
from jax.experimental import pallas as pl
from jax.experimental.pallas import tpu as pltpu

INPUT_DIM = 4
D_MODEL = 128
D_HALF = D_MODEL // 2          # 64
NUM_LAYERS = 3
DIM_FF = 512
FINGERS = 5
F_OUT = 9                      # fix_indices=[] -> 9 per finger
TOTAL_OUT = FINGERS * F_OUT    # 45
OUT_PAD = 128                  # lane-dense output slab; wrapper slices [:, :45]
LN_EPS = 1e-5                  # torch nn.LayerNorm default


def _round_up(n, m):
    return (n + m - 1) // m * m


def _gelu_exact(t):
    # exact (erf-based) GELU, matching torch nn.GELU() / activation='gelu'
    return 0.5 * t * (1.0 + jax.lax.erf(t * (1.0 / math.sqrt(2.0))))


def _gelu_tanh(t):
    # tanh approximation: routes through the EUP (own VLIW slot) instead of the VALU.
    c = math.sqrt(2.0 / math.pi)
    return 0.5 * t * (1.0 + jnp.tanh(c * (t + 0.044715 * t * t * t)))


def _layernorm(t, g, b):
    # single-pass moments: mean and mean-of-squares reductions can overlap on the XLU
    mu = jnp.mean(t, axis=-1, keepdims=True)
    ms = jnp.mean(t * t, axis=-1, keepdims=True)
    var = ms - mu * mu
    return (t - mu) * jax.lax.rsqrt(var + LN_EPS) * g + b


# --------------------------------------------------------------------------- kernel

def _make_kernel(ffn_gelu_tanh=False):
    ffn_act = _gelu_tanh if ffn_gelu_tanh else _gelu_exact

    def hand_pose_kernel(
        x_ref,
        eW1_ref, eb1_ref, eW2_ref, eb2_ref, eg_ref, ebt_ref,
        Wa_ref, ba_ref, g1_ref, be1_ref,
        fW1_ref, fb1_ref, fW2_ref, fb2_ref, g2_ref, be2_ref,
        HW1_ref, Hb1_ref, HW2_ref, Hb2_ref,
        out_ref,
    ):
        cdt = eW2_ref.dtype                                    # matmul operand dtype
        x = x_ref[...]                                         # (TB, 4) f32

        # --- input_embedding: Linear(4,64) -> GELU -> Linear(64,128) -> LayerNorm.
        #     K=4 / K=64 matmuls deliberately stay on the MXU (VALU is the hot unit).
        h = _gelu_exact(jnp.dot(x.astype(cdt), eW1_ref[...],
                                preferred_element_type=jnp.float32) + eb1_ref[...])
        h = jnp.dot(h.astype(cdt), eW2_ref[...],
                    preferred_element_type=jnp.float32) + eb2_ref[...]
        # positional encoding (seq_len==1, dropout identity) pre-folded into ebt
        h = _layernorm(h, eg_ref[...], ebt_ref[...])           # (TB, 128) f32

        # --- TransformerEncoder: 3 post-norm (norm_first=False) encoder layers ---
        for l in range(NUM_LAYERS):
            # seq_len == 1: softmax over a single key == 1 -> attention block is the
            # pure linear map out_proj(v_proj(h)); Wv@Wo / biases pre-folded offline.
            attn = jnp.dot(h.astype(cdt), Wa_ref[l],
                           preferred_element_type=jnp.float32) + ba_ref[l]
            h = _layernorm(h + attn, g1_ref[l], be1_ref[l])

            ff = ffn_act(jnp.dot(h.astype(cdt), fW1_ref[l],
                                 preferred_element_type=jnp.float32) + fb1_ref[l])
            ff = jnp.dot(ff.astype(cdt), fW2_ref[l],
                         preferred_element_type=jnp.float32) + fb2_ref[l]
            h = _layernorm(h + ff, g2_ref[l], be2_ref[l])

        # --- five FingerHeads fused into two matmuls (block-diagonal second weight);
        #     output is a lane-dense 128-wide slab, columns 45..127 are zero. ---
        t = _gelu_exact(jnp.dot(h.astype(cdt), HW1_ref[...],
                                preferred_element_type=jnp.float32) + Hb1_ref[...])
        out = jnp.dot(t.astype(cdt), HW2_ref[...],
                      preferred_element_type=jnp.float32) + Hb2_ref[...]
        out_ref[...] = out.astype(out_ref.dtype)
        # TODO(synk): pca_dim != 0 branch (extra Linear(45, pca_dim)) not exercised
        #             (module default pca_dim=0); would be one more jnp.dot here.

    return hand_pose_kernel


# ----------------------------------------------------------------------- parameters

def make_params(key):
    """Module-layout parameters (weights transposed vs PyTorch: (in, out))."""
    keys = iter(jax.random.split(key, 32))

    def nrm(shape, scale=0.05):
        return scale * jax.random.normal(next(keys), shape, dtype=jnp.float32)

    # positional encoding buffer (max_len=1), same recipe as the PyTorch module
    pos = jnp.arange(1, dtype=jnp.float32)[:, None]
    div = jnp.exp(jnp.arange(0, D_MODEL, 2, dtype=jnp.float32)
                  * (-math.log(10000.0) / D_MODEL))
    pe = jnp.zeros((1, D_MODEL), jnp.float32)
    pe = pe.at[:, 0::2].set(jnp.sin(pos * div))
    pe = pe.at[:, 1::2].set(jnp.cos(pos * div))

    L, D, F = NUM_LAYERS, D_MODEL, DIM_FF
    return dict(
        pe=pe,
        # input embedding
        eW1=nrm((INPUT_DIM, D_HALF)), eb1=nrm((1, D_HALF)),
        eW2=nrm((D_HALF, D)),         eb2=nrm((1, D)),
        eg=jnp.ones((1, D), jnp.float32), ebt=jnp.zeros((1, D), jnp.float32),
        # transformer layers (stacked along leading L axis)
        Wv=nrm((L, D, D)), bv=nrm((L, 1, D)),
        Wo=nrm((L, D, D)), bo=nrm((L, 1, D)),
        g1=jnp.ones((L, 1, D), jnp.float32), be1=jnp.zeros((L, 1, D), jnp.float32),
        fW1=nrm((L, D, F)), fb1=nrm((L, 1, F)),
        fW2=nrm((L, F, D)), fb2=nrm((L, 1, D)),
        g2=jnp.ones((L, 1, D), jnp.float32), be2=jnp.zeros((L, 1, D), jnp.float32),
        # finger heads (stacked along leading FINGERS axis)
        hW1=nrm((FINGERS, D, D_HALF)), hb1=nrm((FINGERS, 1, D_HALF)),
        hW2=nrm((FINGERS, D_HALF, F_OUT)), hb2=nrm((FINGERS, 1, F_OUT)),
    )


def fold_params(p, compute_dtype=jnp.bfloat16):
    """Offline folding -- call ONCE, outside the forward, and reuse across calls:
       * Wv@Wo + bias fold per layer (seq_len==1 attention is a pure linear map),
       * block-diagonal fused finger heads (lane-dense 128-wide output),
       * positional encoding folded into the embedding LayerNorm beta,
       * matmul operands cast to compute_dtype (biases / LN params stay f32)."""
    hp = jax.lax.Precision.HIGHEST
    Wattn = jnp.einsum("lij,ljk->lik", p["Wv"], p["Wo"], precision=hp)       # (L,128,128)
    battn = jnp.einsum("lij,ljk->lik", p["bv"], p["Wo"], precision=hp) + p["bo"]

    HW1 = jnp.concatenate([p["hW1"][f] for f in range(FINGERS)], axis=1)      # (128,320)
    Hb1 = jnp.concatenate([p["hb1"][f] for f in range(FINGERS)], axis=1)      # (1,320)
    HW2 = jnp.zeros((FINGERS * D_HALF, OUT_PAD), jnp.float32)
    Hb2 = jnp.zeros((1, OUT_PAD), jnp.float32)
    for f in range(FINGERS):
        HW2 = HW2.at[f * D_HALF:(f + 1) * D_HALF,
                     f * F_OUT:(f + 1) * F_OUT].set(p["hW2"][f])
        Hb2 = Hb2.at[:, f * F_OUT:(f + 1) * F_OUT].set(p["hb2"][f])

    cd = compute_dtype
    return dict(
        eW1=p["eW1"].astype(cd), eb1=p["eb1"],
        eW2=p["eW2"].astype(cd), eb2=p["eb2"],
        eg=p["eg"], ebt=p["ebt"] + p["pe"],          # PE folded into LN beta
        Wa=Wattn.astype(cd), ba=battn,
        g1=p["g1"], be1=p["be1"],
        fW1=p["fW1"].astype(cd), fb1=p["fb1"],
        fW2=p["fW2"].astype(cd), fb2=p["fb2"],
        g2=p["g2"], be2=p["be2"],
        HW1=HW1.astype(cd), Hb1=Hb1,
        HW2=HW2.astype(cd), Hb2=Hb2,
    )


_WEIGHT_ORDER = ("eW1", "eb1", "eW2", "eb2", "eg", "ebt",
                 "Wa", "ba", "g1", "be1",
                 "fW1", "fb1", "fW2", "fb2", "g2", "be2",
                 "HW1", "Hb1", "HW2", "Hb2")


# -------------------------------------------------------------------------- wrapper

def _weight_spec(arr, single_buffer):
    """Whole-array VMEM-resident weight: constant index_map -> no re-DMA per step.
    single_buffer=True drops the (useless) double-buffer for never-changing blocks."""
    zeros = (0,) * arr.ndim
    idx = lambda i, _z=zeros: _z
    if single_buffer:
        try:
            return pl.BlockSpec(arr.shape, idx, pipeline_mode=pl.Buffered(1))
        except Exception:           # pipeline_mode unsupported on this jax version
            pass
    return pl.BlockSpec(arr.shape, idx)


def _choose_tile_b(batch, max_tile_b):
    """Big tiles to amortize ~0.35us/step overhead; multiple of 256 (MXU-friendly);
    >= 2 grid steps when the batch permits (v7x has 2 TensorCores)."""
    bp8 = _round_up(max(batch, 1), 8)
    if bp8 <= 256:
        return bp8                               # tiny batch: one small grid step
    half = _round_up((bp8 + 1) // 2, 256)        # guarantees >= 2 grid steps
    return max(256, min(_round_up(max_tile_b, 256), half))


def hand_pose_transformer(x, folded, *, max_tile_b=1024, ffn_gelu_tanh=False):
    """x: (B, 4) float32, folded = fold_params(...)  ->  (B, 45) float32."""
    B = x.shape[0]
    tile_b = _choose_tile_b(B, max_tile_b)
    Bp = _round_up(B, tile_b)
    xp = jnp.pad(x, ((0, Bp - B), (0, 0))) if Bp != B else x

    weights = [folded[k] for k in _WEIGHT_ORDER]

    def _invoke(single_buffer_weights):
        in_specs = [pl.BlockSpec((tile_b, INPUT_DIM), lambda i: (i, 0))]
        in_specs += [_weight_spec(a, single_buffer_weights) for a in weights]
        return pl.pallas_call(
            _make_kernel(ffn_gelu_tanh),
            out_shape=jax.ShapeDtypeStruct((Bp, OUT_PAD), jnp.float32),
            grid=(Bp // tile_b,),
            in_specs=in_specs,
            out_specs=pl.BlockSpec((tile_b, OUT_PAD), lambda i: (i, 0)),
            compiler_params=pltpu.CompilerParams(
                dimension_semantics=("parallel",),
                vmem_limit_bytes=64 * 1024 * 1024),   # > v5e's 16 MiB scoped default
        )(xp, *weights)

    try:
        out = _invoke(True)
    except Exception:
        out = _invoke(False)       # fall back to default double-buffered weights

    return out[:B, :TOTAL_OUT]


# ----------------------------------------------------------- pure-JAX reference path

def _mm(a, b):
    return jnp.matmul(a, b, precision=jax.lax.Precision.HIGHEST)


def reference_forward(x, p):
    """Unfused reference (mirrors the PyTorch module), for correctness checks."""
    h = _gelu_exact(_mm(x, p["eW1"]) + p["eb1"])
    h = _mm(h, p["eW2"]) + p["eb2"]
    h = _layernorm(h, p["eg"], p["ebt"])
    h = h + p["pe"]
    for l in range(NUM_LAYERS):
        v = _mm(h, p["Wv"][l]) + p["bv"][l]
        attn = _mm(v, p["Wo"][l]) + p["bo"][l]
        h = _layernorm(h + attn, p["g1"][l], p["be1"][l])
        ff = _gelu_exact(_mm(h, p["fW1"][l]) + p["fb1"][l])
        ff = _mm(ff, p["fW2"][l]) + p["fb2"][l]
        h = _layernorm(h + ff, p["g2"][l], p["be2"][l])
    outs = []
    for f in range(FINGERS):
        t = _gelu_exact(_mm(h, p["hW1"][f]) + p["hb1"][f])
        outs.append(_mm(t, p["hW2"][f]) + p["hb2"][f])
    return jnp.concatenate(outs, axis=-1)


if __name__ == "__main__":
    key = jax.random.PRNGKey(0)
    kx, kp = jax.random.split(key)
    params = make_params(kp)

    # Fold once (hoisted out of the forward) in both precisions.
    folded_f32 = fold_params(params, compute_dtype=jnp.float32)    # parity/debug mode
    folded_bf16 = fold_params(params, compute_dtype=jnp.bfloat16)  # fast default mode

    # Small batch: exercises batch padding + single grid step, exact f32 parity.
    B = 6
    x = jax.random.normal(kx, (B, INPUT_DIM), dtype=jnp.float32)
    out = jax.block_until_ready(hand_pose_transformer(x, folded_f32))
    assert out.shape == (B, TOTAL_OUT)
    ref = reference_forward(x, params)
    assert bool(jnp.allclose(out, ref, atol=1e-4, rtol=1e-4)), \
        float(jnp.max(jnp.abs(out - ref)))

    # Larger batch: >= 2 parallel grid steps (v7x megacore path), bf16 MXU operands,
    # checked against the f32 reference with a bf16-appropriate tolerance.
    B2 = 512
    x2 = jax.random.normal(kx, (B2, INPUT_DIM), dtype=jnp.float32)
    out2 = jax.block_until_ready(hand_pose_transformer(x2, folded_bf16))
    assert out2.shape == (B2, TOTAL_OUT)
    assert bool(jnp.all(jnp.isfinite(out2)))
    ref2 = reference_forward(x2, params)
    rel_err = float(jnp.linalg.norm(out2 - ref2) / (jnp.linalg.norm(ref2) + 1e-12))
    assert rel_err < 5e-2, rel_err

    print("KERNEL_OK")
</pallas_src>

<mosaic_0001>
module attributes {stable_mosaic.version = 11 : i64} {
  func.func @hand_pose_kernel(%arg0: i32, %arg1: memref<8x4xf32, #tpu.memory_space<vmem>>, %arg2: memref<4x64xf32, #tpu.memory_space<vmem>>, %arg3: memref<1x64xf32, #tpu.memory_space<vmem>>, %arg4: memref<64x128xf32, #tpu.memory_space<vmem>>, %arg5: memref<1x128xf32, #tpu.memory_space<vmem>>, %arg6: memref<1x128xf32, #tpu.memory_space<vmem>>, %arg7: memref<1x128xf32, #tpu.memory_space<vmem>>, %arg8: memref<3x128x128xf32, #tpu.memory_space<vmem>>, %arg9: memref<3x1x128xf32, #tpu.memory_space<vmem>>, %arg10: memref<3x1x128xf32, #tpu.memory_space<vmem>>, %arg11: memref<3x1x128xf32, #tpu.memory_space<vmem>>, %arg12: memref<3x128x512xf32, #tpu.memory_space<vmem>>, %arg13: memref<3x1x512xf32, #tpu.memory_space<vmem>>, %arg14: memref<3x512x128xf32, #tpu.memory_space<vmem>>, %arg15: memref<3x1x128xf32, #tpu.memory_space<vmem>>, %arg16: memref<3x1x128xf32, #tpu.memory_space<vmem>>, %arg17: memref<3x1x128xf32, #tpu.memory_space<vmem>>, %arg18: memref<128x320xf32, #tpu.memory_space<vmem>>, %arg19: memref<1x320xf32, #tpu.memory_space<vmem>>, %arg20: memref<320x128xf32, #tpu.memory_space<vmem>>, %arg21: memref<1x128xf32, #tpu.memory_space<vmem>>, %arg22: memref<8x128xf32, #tpu.memory_space<vmem>>) attributes {dimension_semantics = [#tpu.dimension_semantics<parallel>], iteration_bounds = array<i64: 1>, scalar_prefetch = 0 : i64, scratch_operands = 0 : i64, tpu.core_type = #tpu.core_type<tc>, window_params = [{transform_indices = @transform_0, window_bounds = array<i64: 8, 4>}, {pipeline_mode = #tpu.pipeline_mode<synchronous>, transform_indices = @transform_1, window_bounds = array<i64: 4, 64>}, {pipeline_mode = #tpu.pipeline_mode<synchronous>, transform_indices = @transform_2, window_bounds = array<i64: 1, 64>}, {pipeline_mode = #tpu.pipeline_mode<synchronous>, transform_indices = @transform_3, window_bounds = array<i64: 64, 128>}, {pipeline_mode = #tpu.pipeline_mode<synchronous>, transform_indices = @transform_4, window_bounds = array<i64: 1, 128>}, {pipeline_mode = #tpu.pipeline_mode<synchronous>, transform_indices = @transform_5, window_bounds = array<i64: 1, 128>}, {pipeline_mode = #tpu.pipeline_mode<synchronous>, transform_indices = @transform_6, window_bounds = array<i64: 1, 128>}, {pipeline_mode = #tpu.pipeline_mode<synchronous>, transform_indices = @transform_7, window_bounds = array<i64: 3, 128, 128>}, {pipeline_mode = #tpu.pipeline_mode<synchronous>, transform_indices = @transform_8, window_bounds = array<i64: 3, 1, 128>}, {pipeline_mode = #tpu.pipeline_mode<synchronous>, transform_indices = @transform_9, window_bounds = array<i64: 3, 1, 128>}, {pipeline_mode = #tpu.pipeline_mode<synchronous>, transform_indices = @transform_10, window_bounds = array<i64: 3, 1, 128>}, {pipeline_mode = #tpu.pipeline_mode<synchronous>, transform_indices = @transform_11, window_bounds = array<i64: 3, 128, 512>}, {pipeline_mode = #tpu.pipeline_mode<synchronous>, transform_indices = @transform_12, window_bounds = array<i64: 3, 1, 512>}, {pipeline_mode = #tpu.pipeline_mode<synchronous>, transform_indices = @transform_13, window_bounds = array<i64: 3, 512, 128>}, {pipeline_mode = #tpu.pipeline_mode<synchronous>, transform_indices = @transform_14, window_bounds = array<i64: 3, 1, 128>}, {pipeline_mode = #tpu.pipeline_mode<synchronous>, transform_indices = @transform_15, window_bounds = array<i64: 3, 1, 128>}, {pipeline_mode = #tpu.pipeline_mode<synchronous>, transform_indices = @transform_16, window_bounds = array<i64: 3, 1, 128>}, {pipeline_mode = #tpu.pipeline_mode<synchronous>, transform_indices = @transform_17, window_bounds = array<i64: 128, 320>}, {pipeline_mode = #tpu.pipeline_mode<synchronous>, transform_indices = @transform_18, window_bounds = array<i64: 1, 320>}, {pipeline_mode = #tpu.pipeline_mode<synchronous>, transform_indices = @transform_19, window_bounds = array<i64: 320, 128>}, {pipeline_mode = #tpu.pipeline_mode<synchronous>, transform_indices = @transform_20, window_bounds = array<i64: 1, 128>}, {transform_indices = @transform_21, window_bounds = array<i64: 8, 128>}]} {
    %c0 = arith.constant 0 : index
    %c0_0 = arith.constant 0 : index
    %0 = vector.load %arg1[%c0, %c0_0] : memref<8x4xf32, #tpu.memory_space<vmem>>, vector<8x4xf32>
    %c0_1 = arith.constant 0 : index
    %c0_2 = arith.constant 0 : index
    %1 = vector.load %arg2[%c0_1, %c0_2] : memref<4x64xf32, #tpu.memory_space<vmem>>, vector<4x64xf32>
    %cst = arith.constant dense<0.000000e+00> : vector<8x64xf32>
    %2 = tpu.matmul %0, %1, %cst {dimension_numbers = #tpu.dot_dimension_numbers<[1], [0], [0], [1], [0, 0, 1, 1], [], []>} : vector<8x4xf32>, vector<4x64xf32>, vector<8x64xf32> -> vector<8x64xf32>
    %c0_3 = arith.constant 0 : index
    %c0_4 = arith.constant 0 : index
    %3 = vector.load %arg3[%c0_3, %c0_4] : memref<1x64xf32, #tpu.memory_space<vmem>>, vector<1x64xf32>
    %4 = vector.broadcast %3 : vector<1x64xf32> to vector<8x64xf32>
    %5 = arith.addf %2, %4 : vector<8x64xf32>
    %cst_5 = arith.constant 5.000000e-01 : f32
    %6 = vector.broadcast %cst_5 : f32 to vector<8x64xf32>
    %7 = arith.mulf %6, %5 : vector<8x64xf32>
    %cst_6 = arith.constant 0.707106769 : f32
    %8 = vector.broadcast %cst_6 : f32 to vector<8x64xf32>
    %9 = arith.mulf %5, %8 : vector<8x64xf32>
    %10 = math.erf %9 : vector<8x64xf32>
    %cst_7 = arith.constant 1.000000e+00 : f32
    %11 = vector.broadcast %cst_7 : f32 to vector<8x64xf32>
    %12 = arith.addf %11, %10 : vector<8x64xf32>
    %13 = arith.mulf %7, %12 : vector<8x64xf32>
    %c0_8 = arith.constant 0 : index
    %c0_9 = arith.constant 0 : index
    %14 = vector.load %arg4[%c0_8, %c0_9] : memref<64x128xf32, #tpu.memory_space<vmem>>, vector<64x128xf32>
    %cst_10 = arith.constant dense<0.000000e+00> : vector<8x128xf32>
    %15 = tpu.matmul %13, %14, %cst_10 {dimension_numbers = #tpu.dot_dimension_numbers<[1], [0], [0], [1], [0, 0, 1, 1], [], []>} : vector<8x64xf32>, vector<64x128xf32>, vector<8x128xf32> -> vector<8x128xf32>
    %c0_11 = arith.constant 0 : index
    %c0_12 = arith.constant 0 : index
    %16 = vector.load %arg5[%c0_11, %c0_12] : memref<1x128xf32, #tpu.memory_space<vmem>>, vector<1x128xf32>
    %17 = vector.broadcast %16 : vector<1x128xf32> to vector<8x128xf32>
    %18 = arith.addf %15, %17 : vector<8x128xf32>
    %c0_13 = arith.constant 0 : index
    %c0_14 = arith.constant 0 : index
    %19 = vector.load %arg6[%c0_13, %c0_14] : memref<1x128xf32, #tpu.memory_space<vmem>>, vector<1x128xf32>
    %c0_15 = arith.constant 0 : index
    %c0_16 = arith.constant 0 : index
    %20 = vector.load %arg7[%c0_15, %c0_16] : memref<1x128xf32, #tpu.memory_space<vmem>>, vector<1x128xf32>
    %cst_17 = arith.constant dense<0.000000e+00> : vector<8xf32>
    %21 = vector.multi_reduction <add>, %18, %cst_17 [1] : vector<8x128xf32> to vector<8xf32>
    %22 = vector.shape_cast %21 : vector<8xf32> to vector<8x1xf32>
    %cst_18 = arith.constant 1.280000e+02 : f32
    %23 = vector.broadcast %cst_18 : f32 to vector<8x1xf32>
    %24 = arith.divf %22, %23 : vector<8x1xf32>
    %25 = arith.mulf %18, %18 : vector<8x128xf32>
    %cst_19 = arith.constant dense<0.000000e+00> : vector<8xf32>
    %26 = vector.multi_reduction <add>, %25, %cst_19 [1] : vector<8x128xf32> to vector<8xf32>
    %27 = vector.shape_cast %26 : vector<8xf32> to vector<8x1xf32>
    %cst_20 = arith.constant 1.280000e+02 : f32
    %28 = vector.broadcast %cst_20 : f32 to vector<8x1xf32>
    %29 = arith.divf %27, %28 : vector<8x1xf32>
    %30 = arith.mulf %24, %24 : vector<8x1xf32>
    %31 = arith.subf %29, %30 : vector<8x1xf32>
    %32 = vector.broadcast %24 : vector<8x1xf32> to vector<8x128xf32>
    %33 = arith.subf %18, %32 : vector<8x128xf32>
    %cst_21 = arith.constant 9.99999974E-6 : f32
    %34 = vector.broadcast %cst_21 : f32 to vector<8x1xf32>
    %35 = arith.addf %31, %34 : vector<8x1xf32>
    %36 = math.rsqrt %35 : vector<8x1xf32>
    %37 = vector.broadcast %36 : vector<8x1xf32> to vector<8x128xf32>
    %38 = arith.mulf %33, %37 : vector<8x128xf32>
    %39 = vector.broadcast %19 : vector<1x128xf32> to vector<8x128xf32>
    %40 = arith.mulf %38, %39 : vector<8x128xf32>
    %41 = vector.broadcast %20 : vector<1x128xf32> to vector<8x128xf32>
    %42 = arith.addf %40, %41 : vector<8x128xf32>
    %c0_22 = arith.constant 0 : index
    %c0_23 = arith.constant 0 : index
    %c0_24 = arith.constant 0 : index
    %43 = vector.load %arg8[%c0_22, %c0_23, %c0_24] : memref<3x128x128xf32, #tpu.memory_space<vmem>>, vector<1x128x128xf32>
    %44 = vector.shape_cast %43 : vector<1x128x128xf32> to vector<128x128xf32>
    %cst_25 = arith.constant dense<0.000000e+00> : vector<8x128xf32>
    %45 = tpu.matmul %42, %44, %cst_25 {dimension_numbers = #tpu.dot_dimension_numbers<[1], [0], [0], [1], [0, 0, 1, 1], [], []>} : vector<8x128xf32>, vector<128x128xf32>, vector<8x128xf32> -> vector<8x128xf32>
    %c0_26 = arith.constant 0 : index
    %c0_27 = arith.constant 0 : index
    %c0_28 = arith.constant 0 : index
    %46 = vector.load %arg9[%c0_26, %c0_27, %c0_28] : memref<3x1x128xf32, #tpu.memory_space<vmem>>, vector<1x1x128xf32>
    %47 = vector.shape_cast %46 : vector<1x1x128xf32> to vector<1x128xf32>
    %48 = vector.broadcast %47 : vector<1x128xf32> to vector<8x128xf32>
    %49 = arith.addf %45, %48 : vector<8x128xf32>
    %50 = arith.addf %42, %49 : vector<8x128xf32>
    %c0_29 = arith.constant 0 : index
    %c0_30 = arith.constant 0 : index
    %c0_31 = arith.constant 0 : index
    %51 = vector.load %arg10[%c0_29, %c0_30, %c0_31] : memref<3x1x128xf32, #tpu.memory_space<vmem>>, vector<1x1x128xf32>
    %52 = vector.shape_cast %51 : vector<1x1x128xf32> to vector<1x128xf32>
    %c0_32 = arith.constant 0 : index
    %c0_33 = arith.constant 0 : index
    %c0_34 = arith.constant 0 : index
    %53 = vector.load %arg11[%c0_32, %c0_33, %c0_34] : memref<3x1x128xf32, #tpu.memory_space<vmem>>, vector<1x1x128xf32>
    %54 = vector.shape_cast %53 : vector<1x1x128xf32> to vector<1x128xf32>
    %cst_35 = arith.constant dense<0.000000e+00> : vector<8xf32>
    %55 = vector.multi_reduction <add>, %50, %cst_35 [1] : vector<8x128xf32> to vector<8xf32>
    %56 = vector.shape_cast %55 : vector<8xf32> to vector<8x1xf32>
    %cst_36 = arith.constant 1.280000e+02 : f32
    %57 = vector.broadcast %cst_36 : f32 to vector<8x1xf32>
    %58 = arith.divf %56, %57 : vector<8x1xf32>
    %59 = arith.mulf %50, %50 : vector<8x128xf32>
    %cst_37 = arith.constant dense<0.000000e+00> : vector<8xf32>
    %60 = vector.multi_reduction <add>, %59, %cst_37 [1] : vector<8x128xf32> to vector<8xf32>
    %61 = vector.shape_cast %60 : vector<8xf32> to vector<8x1xf32>
    %cst_38 = arith.constant 1.280000e+02 : f32
    %62 = vector.broadcast %cst_38 : f32 to vector<8x1xf32>
    %63 = arith.divf %61, %62 : vector<8x1xf32>
    %64 = arith.mulf %58, %58 : vector<8x1xf32>
    %65 = arith.subf %63, %64 : vector<8x1xf32>
    %66 = vector.broadcast %58 : vector<8x1xf32> to vector<8x128xf32>
    %67 = arith.subf %50, %66 : vector<8x128xf32>
    %cst_39 = arith.constant 9.99999974E-6 : f32
    %68 = vector.broadcast %cst_39 : f32 to vector<8x1xf32>
    %69 = arith.addf %65, %68 : vector<8x1xf32>
    %70 = math.rsqrt %69 : vector<8x1xf32>
    %71 = vector.broadcast %70 : vector<8x1xf32> to vector<8x128xf32>
    %72 = arith.mulf %67, %71 : vector<8x128xf32>
    %73 = vector.broadcast %52 : vector<1x128xf32> to vector<8x128xf32>
    %74 = arith.mulf %72, %73 : vector<8x128xf32>
    %75 = vector.broadcast %54 : vector<1x128xf32> to vector<8x128xf32>
    %76 = arith.addf %74, %75 : vector<8x128xf32>
    %c0_40 = arith.constant 0 : index
    %c0_41 = arith.constant 0 : index
    %c0_42 = arith.constant 0 : index
    %77 = vector.load %arg12[%c0_40, %c0_41, %c0_42] : memref<3x128x512xf32, #tpu.memory_space<vmem>>, vector<1x128x512xf32>
    %78 = vector.shape_cast %77 : vector<1x128x512xf32> to vector<128x512xf32>
    %cst_43 = arith.constant dense<0.000000e+00> : vector<8x512xf32>
    %79 = tpu.matmul %76, %78, %cst_43 {dimension_numbers = #tpu.dot_dimension_numbers<[1], [0], [0], [1], [0, 0, 1, 1], [], []>} : vector<8x128xf32>, vector<128x512xf32>, vector<8x512xf32> -> vector<8x512xf32>
    %c0_44 = arith.constant 0 : index
    %c0_45 = arith.constant 0 : index
    %c0_46 = arith.constant 0 : index
    %80 = vector.load %arg13[%c0_44, %c0_45, %c0_46] : memref<3x1x512xf32, #tpu.memory_space<vmem>>, vector<1x1x512xf32>
    %81 = vector.shape_cast %80 : vector<1x1x512xf32> to vector<1x512xf32>
    %82 = vector.broadcast %81 : vector<1x512xf32> to vector<8x512xf32>
    %83 = arith.addf %79, %82 : vector<8x512xf32>
    %cst_47 = arith.constant 5.000000e-01 : f32
    %84 = vector.broadcast %cst_47 : f32 to vector<8x512xf32>
    %85 = arith.mulf %84, %83 : vector<8x512xf32>
    %cst_48 = arith.constant 0.707106769 : f32
    %86 = vector.broadcast %cst_48 : f32 to vector<8x512xf32>
    %87 = arith.mulf %83, %86 : vector<8x512xf32>
    %88 = math.erf %87 : vector<8x512xf32>
    %cst_49 = arith.constant 1.000000e+00 : f32
    %89 = vector.broadcast %cst_49 : f32 to vector<8x512xf32>
    %90 = arith.addf %89, %88 : vector<8x512xf32>
    %91 = arith.mulf %85, %90 : vector<8x512xf32>
    %c0_50 = arith.constant 0 : index
    %c0_51 = arith.constant 0 : index
    %c0_52 = arith.constant 0 : index
    %92 = vector.load %arg14[%c0_50, %c0_51, %c0_52] : memref<3x512x128xf32, #tpu.memory_space<vmem>>, vector<1x512x128xf32>
    %93 = vector.shape_cast %92 : vector<1x512x128xf32> to vector<512x128xf32>
    %cst_53 = arith.constant dense<0.000000e+00> : vector<8x128xf32>
    %94 = tpu.matmul %91, %93, %cst_53 {dimension_numbers = #tpu.dot_dimension_numbers<[1], [0], [0], [1], [0, 0, 1, 1], [], []>} : vector<8x512xf32>, vector<512x128xf32>, vector<8x128xf32> -> vector<8x128xf32>
    %c0_54 = arith.constant 0 : index
    %c0_55 = arith.constant 0 : index
    %c0_56 = arith.constant 0 : index
    %95 = vector.load %arg15[%c0_54, %c0_55, %c0_56] : memref<3x1x128xf32, #tpu.memory_space<vmem>>, vector<1x1x128xf32>
    %96 = vector.shape_cast %95 : vector<1x1x128xf32> to vector<1x128xf32>
    %97 = vector.broadcast %96 : vector<1x128xf32> to vector<8x128xf32>
    %98 = arith.addf %94, %97 : vector<8x128xf32>
    %99 = arith.addf %76, %98 : vector<8x128xf32>
    %c0_57 = arith.constant 0 : index
    %c0_58 = arith.constant 0 : index
    %c0_59 = arith.constant 0 : index
    %100 = vector.load %arg16[%c0_57, %c0_58, %c0_59] : memref<3x1x128xf32, #tpu.memory_space<vmem>>, vector<1x1x128xf32>
    %101 = vector.shape_cast %100 : vector<1x1x128xf32> to vector<1x128xf32>
    %c0_60 = arith.constant 0 : index
    %c0_61 = arith.constant 0 : index
    %c0_62 = arith.constant 0 : index
    %102 = vector.load %arg17[%c0_60, %c0_61, %c0_62] : memref<3x1x128xf32, #tpu.memory_space<vmem>>, vector<1x1x128xf32>
    %103 = vector.shape_cast %102 : vector<1x1x128xf32> to vector<1x128xf32>
    %cst_63 = arith.constant dense<0.000000e+00> : vector<8xf32>
    %104 = vector.multi_reduction <add>, %99, %cst_63 [1] : vector<8x128xf32> to vector<8xf32>
    %105 = vector.shape_cast %104 : vector<8xf32> to vector<8x1xf32>
    %cst_64 = arith.constant 1.280000e+02 : f32
    %106 = vector.broadcast %cst_64 : f32 to vector<8x1xf32>
    %107 = arith.divf %105, %106 : vector<8x1xf32>
    %108 = arith.mulf %99, %99 : vector<8x128xf32>
    %cst_65 = arith.constant dense<0.000000e+00> : vector<8xf32>
    %109 = vector.multi_reduction <add>, %108, %cst_65 [1] : vector<8x128xf32> to vector<8xf32>
    %110 = vector.shape_cast %109 : vector<8xf32> to vector<8x1xf32>
    %cst_66 = arith.constant 1.280000e+02 : f32
    %111 = vector.broadcast %cst_66 : f32 to vector<8x1xf32>
    %112 = arith.divf %110, %111 : vector<8x1xf32>
    %113 = arith.mulf %107, %107 : vector<8x1xf32>
    %114 = arith.subf %112, %113 : vector<8x1xf32>
    %115 = vector.broadcast %107 : vector<8x1xf32> to vector<8x128xf32>
    %116 = arith.subf %99, %115 : vector<8x128xf32>
    %cst_67 = arith.constant 9.99999974E-6 : f32
    %117 = vector.broadcast %cst_67 : f32 to vector<8x1xf32>
    %118 = arith.addf %114, %117 : vector<8x1xf32>
    %119 = math.rsqrt %118 : vector<8x1xf32>
    %120 = vector.broadcast %119 : vector<8x1xf32> to vector<8x128xf32>
    %121 = arith.mulf %116, %120 : vector<8x128xf32>
    %122 = vector.broadcast %101 : vector<1x128xf32> to vector<8x128xf32>
    %123 = arith.mulf %121, %122 : vector<8x128xf32>
    %124 = vector.broadcast %103 : vector<1x128xf32> to vector<8x128xf32>
    %125 = arith.addf %123, %124 : vector<8x128xf32>
    %c1 = arith.constant 1 : index
    %c0_68 = arith.constant 0 : index
    %c0_69 = arith.constant 0 : index
    %126 = vector.load %arg8[%c1, %c0_68, %c0_69] : memref<3x128x128xf32, #tpu.memory_space<vmem>>, vector<1x128x128xf32>
    %127 = vector.shape_cast %126 : vector<1x128x128xf32> to vector<128x128xf32>
    %cst_70 = arith.constant dense<0.000000e+00> : vector<8x128xf32>
    %128 = tpu.matmul %125, %127, %cst_70 {dimension_numbers = #tpu.dot_dimension_numbers<[1], [0], [0], [1], [0, 0, 1, 1], [], []>} : vector<8x128xf32>, vector<128x128xf32>, vector<8x128xf32> -> vector<8x128xf32>
    %c1_71 = arith.constant 1 : index
    %c0_72 = arith.constant 0 : index
    %c0_73 = arith.constant 0 : index
    %129 = vector.load %arg9[%c1_71, %c0_72, %c0_73] : memref<3x1x128xf32, #tpu.memory_space<vmem>>, vector<1x1x128xf32>
    %130 = vector.shape_cast %129 : vector<1x1x128xf32> to vector<1x128xf32>
    %131 = vector.broadcast %130 : vector<1x128xf32> to vector<8x128xf32>
    %132 = arith.addf %128, %131 : vector<8x128xf32>
    %133 = arith.addf %125, %132 : vector<8x128xf32>
    %c1_74 = arith.constant 1 : index
    %c0_75 = arith.constant 0 : index
    %c0_76 = arith.constant 0 : index
    %134 = vector.load %arg10[%c1_74, %c0_75, %c0_76] : memref<3x1x128xf32, #tpu.memory_space<vmem>>, vector<1x1x128xf32>
    %135 = vector.shape_cast %134 : vector<1x1x128xf32> to vector<1x128xf32>
    %c1_77 = arith.constant 1 : index
    %c0_78 = arith.constant 0 : index
    %c0_79 = arith.constant 0 : index
    %136 = vector.load %arg11[%c1_77, %c0_78, %c0_79] : memref<3x1x128xf32, #tpu.memory_space<vmem>>, vector<1x1x128xf32>
    %137 = vector.shape_cast %136 : vector<1x1x128xf32> to vector<1x128xf32>
    %cst_80 = arith.constant dense<0.000000e+00> : vector<8xf32>
    %138 = vector.multi_reduction <add>, %133, %cst_80 [1] : vector<8x128xf32> to vector<8xf32>
    %139 = vector.shape_cast %138 : vector<8xf32> to vector<8x1xf32>
    %cst_81 = arith.constant 1.280000e+02 : f32
    %140 = vector.broadcast %cst_81 : f32 to vector<8x1xf32>
    %141 = arith.divf %139, %140 : vector<8x1xf32>
    %142 = arith.mulf %133, %133 : vector<8x128xf32>
    %cst_82 = arith.constant dense<0.000000e+00> : vector<8xf32>
    %143 = vector.multi_reduction <add>, %142, %cst_82 [1] : vector<8x128xf32> to vector<8xf32>
    %144 = vector.shape_cast %143 : vector<8xf32> to vector<8x1xf32>
    %cst_83 = arith.constant 1.280000e+02 : f32
    %145 = vector.broadcast %cst_83 : f32 to vector<8x1xf32>
    %146 = arith.divf %144, %145 : vector<8x1xf32>
    %147 = arith.mulf %141, %141 : vector<8x1xf32>
    %148 = arith.subf %146, %147 : vector<8x1xf32>
    %149 = vector.broadcast %141 : vector<8x1xf32> to vector<8x128xf32>
    %150 = arith.subf %133, %149 : vector<8x128xf32>
    %cst_84 = arith.constant 9.99999974E-6 : f32
    %151 = vector.broadcast %cst_84 : f32 to vector<8x1xf32>
    %152 = arith.addf %148, %151 : vector<8x1xf32>
    %153 = math.rsqrt %152 : vector<8x1xf32>
    %154 = vector.broadcast %153 : vector<8x1xf32> to vector<8x128xf32>
    %155 = arith.mulf %150, %154 : vector<8x128xf32>
    %156 = vector.broadcast %135 : vector<1x128xf32> to vector<8x128xf32>
    %157 = arith.mulf %155, %156 : vector<8x128xf32>
    %158 = vector.broadcast %137 : vector<1x128xf32> to vector<8x128xf32>
    %159 = arith.addf %157, %158 : vector<8x128xf32>
    %c1_85 = arith.constant 1 : index
    %c0_86 = arith.constant 0 : index
    %c0_87 = arith.constant 0 : index
    %160 = vector.load %arg12[%c1_85, %c0_86, %c0_87] : memref<3x128x512xf32, #tpu.memory_space<vmem>>, vector<1x128x512xf32>
    %161 = vector.shape_cast %160 : vector<1x128x512xf32> to vector<128x512xf32>
    %cst_88 = arith.constant dense<0.000000e+00> : vector<8x512xf32>
    %162 = tpu.matmul %159, %161, %cst_88 {dimension_numbers = #tpu.dot_dimension_numbers<[1], [0], [0], [1], [0, 0, 1, 1], [], []>} : vector<8x128xf32>, vector<128x512xf32>, vector<8x512xf32> -> vector<8x512xf32>
    %c1_89 = arith.constant 1 : index
    %c0_90 = arith.constant 0 : index
    %c0_91 = arith.constant 0 : index
    %163 = vector.load %arg13[%c1_89, %c0_90, %c0_91] : memref<3x1x512xf32, #tpu.memory_space<vmem>>, vector<1x1x512xf32>
    %164 = vector.shape_cast %163 : vector<1x1x512xf32> to vector<1x512xf32>
    %165 = vector.broadcast %164 : vector<1x512xf32> to vector<8x512xf32>
    %166 = arith.addf %162, %165 : vector<8x512xf32>
    %cst_92 = arith.constant 5.000000e-01 : f32
    %167 = vector.broadcast %cst_92 : f32 to vector<8x512xf32>
    %168 = arith.mulf %167, %166 : vector<8x512xf32>
    %cst_93 = arith.constant 0.707106769 : f32
    %169 = vector.broadcast %cst_93 : f32 to vector<8x512xf32>
    %170 = arith.mulf %166, %169 : vector<8x512xf32>
    %171 = math.erf %170 : vector<8x512xf32>
    %cst_94 = arith.constant 1.000000e+00 : f32
    %172 = vector.broadcast %cst_94 : f32 to vector<8x512xf32>
    %173 = arith.addf %172, %171 : vector<8x512xf32>
    %174 = arith.mulf %168, %173 : vector<8x512xf32>
    %c1_95 = arith.constant 1 : index
    %c0_96 = arith.constant 0 : index
    %c0_97 = arith.constant 0 : index
    %175 = vector.load %arg14[%c1_95, %c0_96, %c0_97] : memref<3x512x128xf32, #tpu.memory_space<vmem>>, vector<1x512x128xf32>
    %176 = vector.shape_cast %175 : vector<1x512x128xf32> to vector<512x128xf32>
    %cst_98 = arith.constant dense<0.000000e+00> : vector<8x128xf32>
    %177 = tpu.matmul %174, %176, %cst_98 {dimension_numbers = #tpu.dot_dimension_numbers<[1], [0], [0], [1], [0, 0, 1, 1], [], []>} : vector<8x512xf32>, vector<512x128xf32>, vector<8x128xf32> -> vector<8x128xf32>
    %c1_99 = arith.constant 1 : index
    %c0_100 = arith.constant 0 : index
    %c0_101 = arith.constant 0 : index
    %178 = vector.load %arg15[%c1_99, %c0_100, %c0_101] : memref<3x1x128xf32, #tpu.memory_space<vmem>>, vector<1x1x128xf32>
    %179 = vector.shape_cast %178 : vector<1x1x128xf32> to vector<1x128xf32>
    %180 = vector.broadcast %179 : vector<1x128xf32> to vector<8x128xf32>
    %181 = arith.addf %177, %180 : vector<8x128xf32>
    %182 = arith.addf %159, %181 : vector<8x128xf32>
    %c1_102 = arith.constant 1 : index
    %c0_103 = arith.constant 0 : index
    %c0_104 = arith.constant 0 : index
    %183 = vector.load %arg16[%c1_102, %c0_103, %c0_104] : memref<3x1x128xf32, #tpu.memory_space<vmem>>, vector<1x1x128xf32>
    %184 = vector.shape_cast %183 : vector<1x1x128xf32> to vector<1x128xf32>
    %c1_105 = arith.constant 1 : index
    %c0_106 = arith.constant 0 : index
    %c0_107 = arith.constant 0 : index
    %185 = vector.load %arg17[%c1_105, %c0_106, %c0_107] : memref<3x1x128xf32, #tpu.memory_space<vmem>>, vector<1x1x128xf32>
    %186 = vector.shape_cast %185 : vector<1x1x128xf32> to vector<1x128xf32>
    %cst_108 = arith.constant dense<0.000000e+00> : vector<8xf32>
    %187 = vector.multi_reduction <add>, %182, %cst_108 [1] : vector<8x128xf32> to vector<8xf32>
    %188 = vector.shape_cast %187 : vector<8xf32> to vector<8x1xf32>
    %cst_109 = arith.constant 1.280000e+02 : f32
    %189 = vector.broadcast %cst_109 : f32 to vector<8x1xf32>
    %190 = arith.divf %188, %189 : vector<8x1xf32>
    %191 = arith.mulf %182, %182 : vector<8x128xf32>
    %cst_110 = arith.constant dense<0.000000e+00> : vector<8xf32>
    %192 = vector.multi_reduction <add>, %191, %cst_110 [1] : vector<8x128xf32> to vector<8xf32>
    %193 = vector.shape_cast %192 : vector<8xf32> to vector<8x1xf32>
    %cst_111 = arith.constant 1.280000e+02 : f32
    %194 = vector.broadcast %cst_111 : f32 to vector<8x1xf32>
    %195 = arith.divf %193, %194 : vector<8x1xf32>
    %196 = arith.mulf %190, %190 : vector<8x1xf32>
    %197 = arith.subf %195, %196 : vector<8x1xf32>
    %198 = vector.broadcast %190 : vector<8x1xf32> to vector<8x128xf32>
    %199 = arith.subf %182, %198 : vector<8x128xf32>
    %cst_112 = arith.constant 9.99999974E-6 : f32
    %200 = vector.broadcast %cst_112 : f32 to vector<8x1xf32>
    %201 = arith.addf %197, %200 : vector<8x1xf32>
    %202 = math.rsqrt %201 : vector<8x1xf32>
    %203 = vector.broadcast %202 : vector<8x1xf32> to vector<8x128xf32>
    %204 = arith.mulf %199, %203 : vector<8x128xf32>
    %205 = vector.broadcast %184 : vector<1x128xf32> to vector<8x128xf32>
    %206 = arith.mulf %204, %205 : vector<8x128xf32>
    %207 = vector.broadcast %186 : vector<1x128xf32> to vector<8x128xf32>
    %208 = arith.addf %206, %207 : vector<8x128xf32>
    %c2 = arith.constant 2 : index
    %c0_113 = arith.constant 0 : index
    %c0_114 = arith.constant 0 : index
    %209 = vector.load %arg8[%c2, %c0_113, %c0_114] : memref<3x128x128xf32, #tpu.memory_space<vmem>>, vector<1x128x128xf32>
    %210 = vector.shape_cast %209 : vector<1x128x128xf32> to vector<128x128xf32>
    %cst_115 = arith.constant dense<0.000000e+00> : vector<8x128xf32>
    %211 = tpu.matmul %208, %210, %cst_115 {dimension_numbers = #tpu.dot_dimension_numbers<[1], [0], [0], [1], [0, 0, 1, 1], [], []>} : vector<8x128xf32>, vector<128x128xf32>, vector<8x128xf32> -> vector<8x128xf32>
    %c2_116 = arith.constant 2 : index
    %c0_117 = arith.constant 0 : index
    %c0_118 = arith.constant 0 : index
    %212 = vector.load %arg9[%c2_116, %c0_117, %c0_118] : memref<3x1x128xf32, #tpu.memory_space<vmem>>, vector<1x1x128xf32>
    %213 = vector.shape_cast %212 : vector<1x1x128xf32> to vector<1x128xf32>
    %214 = vector.broadcast %213 : vector<1x128xf32> to vector<8x128xf32>
    %215 = arith.addf %211, %214 : vector<8x128xf32>
    %216 = arith.addf %208, %215 : vector<8x128xf32>
    %c2_119 = arith.constant 2 : index
    %c0_120 = arith.constant 0 : index
    %c0_121 = arith.constant 0 : index
    %217 = vector.load %arg10[%c2_119, %c0_120, %c0_121] : memref<3x1x128xf32, #tpu.memory_space<vmem>>, vector<1x1x128xf32>
    %218 = vector.shape_cast %217 : vector<1x1x128xf32> to vector<1x128xf32>
    %c2_122 = arith.constant 2 : index
    %c0_123 = arith.constant 0 : index
    %c0_124 = arith.constant 0 : index
    %219 = vector.load %arg11[%c2_122, %c0_123, %c0_124] : memref<3x1x128xf32, #tpu.memory_space<vmem>>, vector<1x1x128xf32>
    %220 = vector.shape_cast %219 : vector<1x1x128xf32> to vector<1x128xf32>
    %cst_125 = arith.constant dense<0.000000e+00> : vector<8xf32>
    %221 = vector.multi_reduction <add>, %216, %cst_125 [1] : vector<8x128xf32> to vector<8xf32>
    %222 = vector.shape_cast %221 : vector<8xf32> to vector<8x1xf32>
    %cst_126 = arith.constant 1.280000e+02 : f32
    %223 = vector.broadcast %cst_126 : f32 to vector<8x1xf32>
    %224 = arith.divf %222, %223 : vector<8x1xf32>
    %225 = arith.mulf %216, %216 : vector<8x128xf32>
    %cst_127 = arith.constant dense<0.000000e+00> : vector<8xf32>
    %226 = vector.multi_reduction <add>, %225, %cst_127 [1] : vector<8x128xf32> to vector<8xf32>
    %227 = vector.shape_cast %226 : vector<8xf32> to vector<8x1xf32>
    %cst_128 = arith.constant 1.280000e+02 : f32
    %228 = vector.broadcast %cst_128 : f32 to vector<8x1xf32>
    %229 = arith.divf %227, %228 : vector<8x1xf32>
    %230 = arith.mulf %224, %224 : vector<8x1xf32>
    %231 = arith.subf %229, %230 : vector<8x1xf32>
    %232 = vector.broadcast %224 : vector<8x1xf32> to vector<8x128xf32>
    %233 = arith.subf %216, %232 : vector<8x128xf32>
    %cst_129 = arith.constant 9.99999974E-6 : f32
    %234 = vector.broadcast %cst_129 : f32 to vector<8x1xf32>
    %235 = arith.addf %231, %234 : vector<8x1xf32>
    %236 = math.rsqrt %235 : vector<8x1xf32>
    %237 = vector.broadcast %236 : vector<8x1xf32> to vector<8x128xf32>
    %238 = arith.mulf %233, %237 : vector<8x128xf32>
    %239 = vector.broadcast %218 : vector<1x128xf32> to vector<8x128xf32>
    %240 = arith.mulf %238, %239 : vector<8x128xf32>
    %241 = vector.broadcast %220 : vector<1x128xf32> to vector<8x128xf32>
    %242 = arith.addf %240, %241 : vector<8x128xf32>
    %c2_130 = arith.constant 2 : index
    %c0_131 = arith.constant 0 : index
    %c0_132 = arith.constant 0 : index
    %243 = vector.load %arg12[%c2_130, %c0_131, %c0_132] : memref<3x128x512xf32, #tpu.memory_space<vmem>>, vector<1x128x512xf32>
    %244 = vector.shape_cast %243 : vector<1x128x512xf32> to vector<128x512xf32>
    %cst_133 = arith.constant dense<0.000000e+00> : vector<8x512xf32>
    %245 = tpu.matmul %242, %244, %cst_133 {dimension_numbers = #tpu.dot_dimension_numbers<[1], [0], [0], [1], [0, 0, 1, 1], [], []>} : vector<8x128xf32>, vector<128x512xf32>, vector<8x512xf32> -> vector<8x512xf32>
    %c2_134 = arith.constant 2 : index
    %c0_135 = arith.constant 0 : index
    %c0_136 = arith.constant 0 : index
    %246 = vector.load %arg13[%c2_134, %c0_135, %c0_136] : memref<3x1x512xf32, #tpu.memory_space<vmem>>, vector<1x1x512xf32>
    %247 = vector.shape_cast %246 : vector<1x1x512xf32> to vector<1x512xf32>
    %248 = vector.broadcast %247 : vector<1x512xf32> to vector<8x512xf32>
    %249 = arith.addf %245, %248 : vector<8x512xf32>
    %cst_137 = arith.constant 5.000000e-01 : f32
    %250 = vector.broadcast %cst_137 : f32 to vector<8x512xf32>
    %251 = arith.mulf %250, %249 : vector<8x512xf32>
    %cst_138 = arith.constant 0.707106769 : f32
    %252 = vector.broadcast %cst_138 : f32 to vector<8x512xf32>
    %253 = arith.mulf %249, %252 : vector<8x512xf32>
    %254 = math.erf %253 : vector<8x512xf32>
    %cst_139 = arith.constant 1.000000e+00 : f32
    %255 = vector.broadcast %cst_139 : f32 to vector<8x512xf32>
    %256 = arith.addf %255, %254 : vector<8x512xf32>
    %257 = arith.mulf %251, %256 : vector<8x512xf32>
    %c2_140 = arith.constant 2 : index
    %c0_141 = arith.constant 0 : index
    %c0_142 = arith.constant 0 : index
    %258 = vector.load %arg14[%c2_140, %c0_141, %c0_142] : memref<3x512x128xf32, #tpu.memory_space<vmem>>, vector<1x512x128xf32>
    %259 = vector.shape_cast %258 : vector<1x512x128xf32> to vector<512x128xf32>
    %cst_143 = arith.constant dense<0.000000e+00> : vector<8x128xf32>
    %260 = tpu.matmul %257, %259, %cst_143 {dimension_numbers = #tpu.dot_dimension_numbers<[1], [0], [0], [1], [0, 0, 1, 1], [], []>} : vector<8x512xf32>, vector<512x128xf32>, vector<8x128xf32> -> vector<8x128xf32>
    %c2_144 = arith.constant 2 : index
    %c0_145 = arith.constant 0 : index
    %c0_146 = arith.constant 0 : index
    %261 = vector.load %arg15[%c2_144, %c0_145, %c0_146] : memref<3x1x128xf32, #tpu.memory_space<vmem>>, vector<1x1x128xf32>
    %262 = vector.shape_cast %261 : vector<1x1x128xf32> to vector<1x128xf32>
    %263 = vector.broadcast %262 : vector<1x128xf32> to vector<8x128xf32>
    %264 = arith.addf %260, %263 : vector<8x128xf32>
    %265 = arith.addf %242, %264 : vector<8x128xf32>
    %c2_147 = arith.constant 2 : index
    %c0_148 = arith.constant 0 : index
    %c0_149 = arith.constant 0 : index
    %266 = vector.load %arg16[%c2_147, %c0_148, %c0_149] : memref<3x1x128xf32, #tpu.memory_space<vmem>>, vector<1x1x128xf32>
    %267 = vector.shape_cast %266 : vector<1x1x128xf32> to vector<1x128xf32>
    %c2_150 = arith.constant 2 : index
    %c0_151 = arith.constant 0 : index
    %c0_152 = arith.constant 0 : index
    %268 = vector.load %arg17[%c2_150, %c0_151, %c0_152] : memref<3x1x128xf32, #tpu.memory_space<vmem>>, vector<1x1x128xf32>
    %269 = vector.shape_cast %268 : vector<1x1x128xf32> to vector<1x128xf32>
    %cst_153 = arith.constant dense<0.000000e+00> : vector<8xf32>
    %270 = vector.multi_reduction <add>, %265, %cst_153 [1] : vector<8x128xf32> to vector<8xf32>
    %271 = vector.shape_cast %270 : vector<8xf32> to vector<8x1xf32>
    %cst_154 = arith.constant 1.280000e+02 : f32
    %272 = vector.broadcast %cst_154 : f32 to vector<8x1xf32>
    %273 = arith.divf %271, %272 : vector<8x1xf32>
    %274 = arith.mulf %265, %265 : vector<8x128xf32>
    %cst_155 = arith.constant dense<0.000000e+00> : vector<8xf32>
    %275 = vector.multi_reduction <add>, %274, %cst_155 [1] : vector<8x128xf32> to vector<8xf32>
    %276 = vector.shape_cast %275 : vector<8xf32> to vector<8x1xf32>
    %cst_156 = arith.constant 1.280000e+02 : f32
    %277 = vector.broadcast %cst_156 : f32 to vector<8x1xf32>
    %278 = arith.divf %276, %277 : vector<8x1xf32>
    %279 = arith.mulf %273, %273 : vector<8x1xf32>
    %280 = arith.subf %278, %279 : vector<8x1xf32>
    %281 = vector.broadcast %273 : vector<8x1xf32> to vector<8x128xf32>
    %282 = arith.subf %265, %281 : vector<8x128xf32>
    %cst_157 = arith.constant 9.99999974E-6 : f32
    %283 = vector.broadcast %cst_157 : f32 to vector<8x1xf32>
    %284 = arith.addf %280, %283 : vector<8x1xf32>
    %285 = math.rsqrt %284 : vector<8x1xf32>
    %286 = vector.broadcast %285 : vector<8x1xf32> to vector<8x128xf32>
    %287 = arith.mulf %282, %286 : vector<8x128xf32>
    %288 = vector.broadcast %267 : vector<1x128xf32> to vector<8x128xf32>
    %289 = arith.mulf %287, %288 : vector<8x128xf32>
    %290 = vector.broadcast %269 : vector<1x128xf32> to vector<8x128xf32>
    %291 = arith.addf %289, %290 : vector<8x128xf32>
    %c0_158 = arith.constant 0 : index
    %c0_159 = arith.constant 0 : index
    %292 = vector.load %arg18[%c0_158, %c0_159] : memref<128x320xf32, #tpu.memory_space<vmem>>, vector<128x320xf32>
    %cst_160 = arith.constant dense<0.000000e+00> : vector<8x320xf32>
    %293 = tpu.matmul %291, %292, %cst_160 {dimension_numbers = #tpu.dot_dimension_numbers<[1], [0], [0], [1], [0, 0, 1, 1], [], []>} : vector<8x128xf32>, vector<128x320xf32>, vector<8x320xf32> -> vector<8x320xf32>
    %c0_161 = arith.constant 0 : index
    %c0_162 = arith.constant 0 : index
    %294 = vector.load %arg19[%c0_161, %c0_162] : memref<1x320xf32, #tpu.memory_space<vmem>>, vector<1x320xf32>
    %295 = vector.broadcast %294 : vector<1x320xf32> to vector<8x320xf32>
    %296 = arith.addf %293, %295 : vector<8x320xf32>
    %cst_163 = arith.constant 5.000000e-01 : f32
    %297 = vector.broadcast %cst_163 : f32 to vector<8x320xf32>
    %298 = arith.mulf %297, %296 : vector<8x320xf32>
    %cst_164 = arith.constant 0.707106769 : f32
    %299 = vector.broadcast %cst_164 : f32 to vector<8x320xf32>
    %300 = arith.mulf %296, %299 : vector<8x320xf32>
    %301 = math.erf %300 : vector<8x320xf32>
    %cst_165 = arith.constant 1.000000e+00 : f32
    %302 = vector.broadcast %cst_165 : f32 to vector<8x320xf32>
    %303 = arith.addf %302, %301 : vector<8x320xf32>
    %304 = arith.mulf %298, %303 : vector<8x320xf32>
    %c0_166 = arith.constant 0 : index
    %c0_167 = arith.constant 0 : index
    %305 = vector.load %arg20[%c0_166, %c0_167] : memref<320x128xf32, #tpu.memory_space<vmem>>, vector<320x128xf32>
    %cst_168 = arith.constant dense<0.000000e+00> : vector<8x128xf32>
    %306 = tpu.matmul %304, %305, %cst_168 {dimension_numbers = #tpu.dot_dimension_numbers<[1], [0], [0], [1], [0, 0, 1, 1], [], []>} : vector<8x320xf32>, vector<320x128xf32>, vector<8x128xf32> -> vector<8x128xf32>
    %c0_169 = arith.constant 0 : index
    %c0_170 = arith.constant 0 : index
    %307 = vector.load %arg21[%c0_169, %c0_170] : memref<1x128xf32, #tpu.memory_space<vmem>>, vector<1x128xf32>
    %308 = vector.broadcast %307 : vector<1x128xf32> to vector<8x128xf32>
    %309 = arith.addf %306, %308 : vector<8x128xf32>
    %c0_171 = arith.constant 0 : index
    %c0_172 = arith.constant 0 : index
    %310 = vector.load %arg22[%c0_171, %c0_172] : memref<8x128xf32, #tpu.memory_space<vmem>>, vector<8x128xf32>
    tpu.vector_store %arg22[%c0_171, %c0_172], %309 {strides = array<i32>} : memref<8x128xf32, #tpu.memory_space<vmem>>, vector<8x128xf32>,
    return
  }
  func.func @transform_0(%arg0: i32) -> (i32, i32) {
    %c0_i32 = arith.constant 0 : i32
    %c0_i32_0 = arith.constant 0 : i32
    return %arg0, %c0_i32 : i32, i32
  }
  func.func @transform_1(%arg0: i32) -> (i32, i32) {
    %c0_i32 = arith.constant 0 : i32
    %c0_i32_0 = arith.constant 0 : i32
    %c0_i32_1 = arith.constant 0 : i32
    return %c0_i32, %c0_i32_0 : i32, i32
  }
  func.func @transform_2(%arg0: i32) -> (i32, i32) {
    %c0_i32 = arith.constant 0 : i32
    %c0_i32_0 = arith.constant 0 : i32
    %c0_i32_1 = arith.constant 0 : i32
    return %c0_i32, %c0_i32_0 : i32, i32
  }
  func.func @transform_3(%arg0: i32) -> (i32, i32) {
    %c0_i32 = arith.constant 0 : i32
    %c0_i32_0 = arith.constant 0 : i32
    %c0_i32_1 = arith.constant 0 : i32
    return %c0_i32, %c0_i32_0 : i32, i32
  }
  func.func @transform_4(%arg0: i32) -> (i32, i32) {
    %c0_i32 = arith.constant 0 : i32
    %c0_i32_0 = arith.constant 0 : i32
    %c0_i32_1 = arith.constant 0 : i32
    return %c0_i32, %c0_i32_0 : i32, i32
  }
  func.func @transform_5(%arg0: i32) -> (i32, i32) {
    %c0_i32 = arith.constant 0 : i32
    %c0_i32_0 = arith.constant 0 : i32
    %c0_i32_1 = arith.constant 0 : i32
    return %c0_i32, %c0_i32_0 : i32, i32
  }
  func.func @transform_6(%arg0: i32) -> (i32, i32) {
    %c0_i32 = arith.constant 0 : i32
    %c0_i32_0 = arith.constant 0 : i32
    %c0_i32_1 = arith.constant 0 : i32
    return %c0_i32, %c0_i32_0 : i32, i32
  }
  func.func @transform_7(%arg0: i32) -> (i32, i32, i32) {
    %c0_i32 = arith.constant 0 : i32
    %c0_i32_0 = arith.constant 0 : i32
    %c0_i32_1 = arith.constant 0 : i32
    %c0_i32_2 = arith.constant 0 : i32
    return %c0_i32, %c0_i32_0, %c0_i32_1 : i32, i32, i32
  }
  func.func @transform_8(%arg0: i32) -> (i32, i32, i32) {
    %c0_i32 = arith.constant 0 : i32
    %c0_i32_0 = arith.constant 0 : i32
    %c0_i32_1 = arith.constant 0 : i32
    %c0_i32_2 = arith.constant 0 : i32
    return %c0_i32, %c0_i32_0, %c0_i32_1 : i32, i32, i32
  }
  func.func @transform_9(%arg0: i32) -> (i32, i32, i32) {
    %c0_i32 = arith.constant 0 : i32
    %c0_i32_0 = arith.constant 0 : i32
    %c0_i32_1 = arith.constant 0 : i32
    %c0_i32_2 = arith.constant 0 : i32
    return %c0_i32, %c0_i32_0, %c0_i32_1 : i32, i32, i32
  }
  func.func @transform_10(%arg0: i32) -> (i32, i32, i32) {
    %c0_i32 = arith.constant 0 : i32
    %c0_i32_0 = arith.constant 0 : i32
    %c0_i32_1 = arith.constant 0 : i32
    %c0_i32_2 = arith.constant 0 : i32
    return %c0_i32, %c0_i32_0, %c0_i32_1 : i32, i32, i32
  }
  func.func @transform_11(%arg0: i32) -> (i32, i32, i32) {
    %c0_i32 = arith.constant 0 : i32
    %c0_i32_0 = arith.constant 0 : i32
    %c0_i32_1 = arith.constant 0 : i32
    %c0_i32_2 = arith.constant 0 : i32
    return %c0_i32, %c0_i32_0, %c0_i32_1 : i32, i32, i32
  }
  func.func @transform_12(%arg0: i32) -> (i32, i32, i32) {
    %c0_i32 = arith.constant 0 : i32
    %c0_i32_0 = arith.constant 0 : i32
    %c0_i32_1 = arith.constant 0 : i32
    %c0_i32_2 = arith.constant 0 : i32
    return %c0_i32, %c0_i32_0, %c0_i32_1 : i32, i32, i32
  }
  func.func @transform_13(%arg0: i32) -> (i32, i32, i32) {
    %c0_i32 = arith.constant 0 : i32
    %c0_i32_0 = arith.constant 0 : i32
    %c0_i32_1 = arith.constant 0 : i32
    %c0_i32_2 = arith.constant 0 : i32
    return %c0_i32, %c0_i32_0, %c0_i32_1 : i32, i32, i32
  }
  func.func @transform_14(%arg0: i32) -> (i32, i32, i32) {
    %c0_i32 = arith.constant 0 : i32
    %c0_i32_0 = arith.constant 0 : i32
    %c0_i32_1 = arith.constant 0 : i32
    %c0_i32_2 = arith.constant 0 : i32
    return %c0_i32, %c0_i32_0, %c0_i32_1 : i32, i32, i32
  }
  func.func @transform_15(%arg0: i32) -> (i32, i32, i32) {
    %c0_i32 = arith.constant 0 : i32
    %c0_i32_0 = arith.constant 0 : i32
    %c0_i32_1 = arith.constant 0 : i32
    %c0_i32_2 = arith.constant 0 : i32
    return %c0_i32, %c0_i32_0, %c0_i32_1 : i32, i32, i32
  }
  func.func @transform_16(%arg0: i32) -> (i32, i32, i32) {
    %c0_i32 = arith.constant 0 : i32
    %c0_i32_0 = arith.constant 0 : i32
    %c0_i32_1 = arith.constant 0 : i32
    %c0_i32_2 = arith.constant 0 : i32
    return %c0_i32, %c0_i32_0, %c0_i32_1 : i32, i32, i32
  }
  func.func @transform_17(%arg0: i32) -> (i32, i32) {
    %c0_i32 = arith.constant 0 : i32
    %c0_i32_0 = arith.constant 0 : i32
    %c0_i32_1 = arith.constant 0 : i32
    return %c0_i32, %c0_i32_0 : i32, i32
  }
  func.func @transform_18(%arg0: i32) -> (i32, i32) {
    %c0_i32 = arith.constant 0 : i32
    %c0_i32_0 = arith.constant 0 : i32
    %c0_i32_1 = arith.constant 0 : i32
    return %c0_i32, %c0_i32_0 : i32, i32
  }
  func.func @transform_19(%arg0: i32) -> (i32, i32) {
    %c0_i32 = arith.constant 0 : i32
    %c0_i32_0 = arith.constant 0 : i32
    %c0_i32_1 = arith.constant 0 : i32
    return %c0_i32, %c0_i32_0 : i32, i32
  }
  func.func @transform_20(%arg0: i32) -> (i32, i32) {
    %c0_i32 = arith.constant 0 : i32
    %c0_i32_0 = arith.constant 0 : i32
    %c0_i32_1 = arith.constant 0 : i32
    return %c0_i32, %c0_i32_0 : i32, i32
  }
  func.func @transform_21(%arg0: i32) -> (i32, i32) {
    %c0_i32 = arith.constant 0 : i32
    %c0_i32_0 = arith.constant 0 : i32
    return %arg0, %c0_i32 : i32, i32
  }
}

module attributes {stable_mosaic.version = 11 : i64} {
  func.func @hand_pose_kernel(%arg0: i32, %arg1: memref<8x4xf32, #tpu.memory_space<vmem>>, %arg2: memref<4x64xf32, #tpu.memory_space<vmem>>, %arg3: memref<1x64xf32, #tpu.memory_space<vmem>>, %arg4: memref<64x128xf32, #tpu.memory_space<vmem>>, %arg5: memref<1x128xf32, #tpu.memory_space<vmem>>, %arg6: memref<1x128xf32, #tpu.memory_space<vmem>>, %arg7: memref<1x128xf32, #tpu.memory_space<vmem>>, %arg8: memref<3x128x128xf32, #tpu.memory_space<vmem>>, %arg9: memref<3x1x128xf32, #tpu.memory_space<vmem>>, %arg10: memref<3x1x128xf32, #tpu.memory_space<vmem>>, %arg11: memref<3x1x128xf32, #tpu.memory_space<vmem>>, %arg12: memref<3x128x512xf32, #tpu.memory_space<vmem>>, %arg13: memref<3x1x512xf32, #tpu.memory_space<vmem>>, %arg14: memref<3x512x128xf32, #tpu.memory_space<vmem>>, %arg15: memref<3x1x128xf32, #tpu.memory_space<vmem>>, %arg16: memref<3x1x128xf32, #tpu.memory_space<vmem>>, %arg17: memref<3x1x128xf32, #tpu.memory_space<vmem>>, %arg18: memref<128x320xf32, #tpu.memory_space<vmem>>, %arg19: memref<1x320xf32, #tpu.memory_space<vmem>>, %arg20: memref<320x128xf32, #tpu.memory_space<vmem>>, %arg21: memref<1x128xf32, #tpu.memory_space<vmem>>, %arg22: memref<8x128xf32, #tpu.memory_space<vmem>>) attributes {dimension_semantics = [#tpu.dimension_semantics<parallel>], iteration_bounds = array<i64: 1>, scalar_prefetch = 0 : i64, scratch_operands = 0 : i64, tpu.core_type = #tpu.core_type<tc>, window_params = [{transform_indices = @transform_0, window_bounds = array<i64: 8, 4>}, {pipeline_mode = #tpu.pipeline_mode<synchronous>, transform_indices = @transform_1, window_bounds = array<i64: 4, 64>}, {pipeline_mode = #tpu.pipeline_mode<synchronous>, transform_indices = @transform_2, window_bounds = array<i64: 1, 64>}, {pipeline_mode = #tpu.pipeline_mode<synchronous>, transform_indices = @transform_3, window_bounds = array<i64: 64, 128>}, {pipeline_mode = #tpu.pipeline_mode<synchronous>, transform_indices = @transform_4, window_bounds = array<i64: 1, 128>}, {pipeline_mode = #tpu.pipeline_mode<synchronous>, transform_indices = @transform_5, window_bounds = array<i64: 1, 128>}, {pipeline_mode = #tpu.pipeline_mode<synchronous>, transform_indices = @transform_6, window_bounds = array<i64: 1, 128>}, {pipeline_mode = #tpu.pipeline_mode<synchronous>, transform_indices = @transform_7, window_bounds = array<i64: 3, 128, 128>}, {pipeline_mode = #tpu.pipeline_mode<synchronous>, transform_indices = @transform_8, window_bounds = array<i64: 3, 1, 128>}, {pipeline_mode = #tpu.pipeline_mode<synchronous>, transform_indices = @transform_9, window_bounds = array<i64: 3, 1, 128>}, {pipeline_mode = #tpu.pipeline_mode<synchronous>, transform_indices = @transform_10, window_bounds = array<i64: 3, 1, 128>}, {pipeline_mode = #tpu.pipeline_mode<synchronous>, transform_indices = @transform_11, window_bounds = array<i64: 3, 128, 512>}, {pipeline_mode = #tpu.pipeline_mode<synchronous>, transform_indices = @transform_12, window_bounds = array<i64: 3, 1, 512>}, {pipeline_mode = #tpu.pipeline_mode<synchronous>, transform_indices = @transform_13, window_bounds = array<i64: 3, 512, 128>}, {pipeline_mode = #tpu.pipeline_mode<synchronous>, transform_indices = @transform_14, window_bounds = array<i64: 3, 1, 128>}, {pipeline_mode = #tpu.pipeline_mode<synchronous>, transform_indices = @transform_15, window_bounds = array<i64: 3, 1, 128>}, {pipeline_mode = #tpu.pipeline_mode<synchronous>, transform_indices = @transform_16, window_bounds = array<i64: 3, 1, 128>}, {pipeline_mode = #tpu.pipeline_mode<synchronous>, transform_indices = @transform_17, window_bounds = array<i64: 128, 320>}, {pipeline_mode = #tpu.pipeline_mode<synchronous>, transform_indices = @transform_18, window_bounds = array<i64: 1, 320>}, {pipeline_mode = #tpu.pipeline_mode<synchronous>, transform_indices = @transform_19, window_bounds = array<i64: 320, 128>}, {pipeline_mode = #tpu.pipeline_mode<synchronous>, transform_indices = @transform_20, window_bounds = array<i64: 1, 128>}, {transform_indices = @transform_21, window_bounds = array<i64: 8, 128>}]} {
    %c0 = arith.constant 0 : index
    %c0_0 = arith.constant 0 : index
    %0 = vector.load %arg1[%c0, %c0_0] : memref<8x4xf32, #tpu.memory_space<vmem>>, vector<8x4xf32>
    %c0_1 = arith.constant 0 : index
    %c0_2 = arith.constant 0 : index
    %1 = vector.load %arg2[%c0_1, %c0_2] : memref<4x64xf32, #tpu.memory_space<vmem>>, vector<4x64xf32>
    %cst = arith.constant dense<0.000000e+00> : vector<8x64xf32>
    %2 = tpu.matmul %0, %1, %cst {dimension_numbers = #tpu.dot_dimension_numbers<[1], [0], [0], [1], [0, 0, 1, 1], [], []>} : vector<8x4xf32>, vector<4x64xf32>, vector<8x64xf32> -> vector<8x64xf32>
    %c0_3 = arith.constant 0 : index
    %c0_4 = arith.constant 0 : index
    %3 = vector.load %arg3[%c0_3, %c0_4] : memref<1x64xf32, #tpu.memory_space<vmem>>, vector<1x64xf32>
    %4 = vector.broadcast %3 : vector<1x64xf32> to vector<8x64xf32>
    %5 = arith.addf %2, %4 : vector<8x64xf32>
    %cst_5 = arith.constant 5.000000e-01 : f32
    %6 = vector.broadcast %cst_5 : f32 to vector<8x64xf32>
    %7 = arith.mulf %6, %5 : vector<8x64xf32>
    %cst_6 = arith.constant 0.707106769 : f32
    %8 = vector.broadcast %cst_6 : f32 to vector<8x64xf32>
    %9 = arith.mulf %5, %8 : vector<8x64xf32>
    %10 = math.erf %9 : vector<8x64xf32>
    %cst_7 = arith.constant 1.000000e+00 : f32
    %11 = vector.broadcast %cst_7 : f32 to vector<8x64xf32>
    %12 = arith.addf %11, %10 : vector<8x64xf32>
    %13 = arith.mulf %7, %12 : vector<8x64xf32>
    %c0_8 = arith.constant 0 : index
    %c0_9 = arith.constant 0 : index
    %14 = vector.load %arg4[%c0_8, %c0_9] : memref<64x128xf32, #tpu.memory_space<vmem>>, vector<64x128xf32>
    %cst_10 = arith.constant dense<0.000000e+00> : vector<8x128xf32>
    %15 = tpu.matmul %13, %14, %cst_10 {dimension_numbers = #tpu.dot_dimension_numbers<[1], [0], [0], [1], [0, 0, 1, 1], [], []>} : vector<8x64xf32>, vector<64x128xf32>, vector<8x128xf32> -> vector<8x128xf32>
    %c0_11 = arith.constant 0 : index
    %c0_12 = arith.constant 0 : index
    %16 = vector.load %arg5[%c0_11, %c0_12] : memref<1x128xf32, #tpu.memory_space<vmem>>, vector<1x128xf32>
    %17 = vector.broadcast %16 : vector<1x128xf32> to vector<8x128xf32>
    %18 = arith.addf %15, %17 : vector<8x128xf32>
    %c0_13 = arith.constant 0 : index
    %c0_14 = arith.constant 0 : index
    %19 = vector.load %arg6[%c0_13, %c0_14] : memref<1x128xf32, #tpu.memory_space<vmem>>, vector<1x128xf32>
    %c0_15 = arith.constant 0 : index
    %c0_16 = arith.constant 0 : index
    %20 = vector.load %arg7[%c0_15, %c0_16] : memref<1x128xf32, #tpu.memory_space<vmem>>, vector<1x128xf32>
    %cst_17 = arith.constant dense<0.000000e+00> : vector<8xf32>
    %21 = vector.multi_reduction <add>, %18, %cst_17 [1] : vector<8x128xf32> to vector<8xf32>
    %22 = vector.shape_cast %21 : vector<8xf32> to vector<8x1xf32>
    %cst_18 = arith.constant 1.280000e+02 : f32
    %23 = vector.broadcast %cst_18 : f32 to vector<8x1xf32>
    %24 = arith.divf %22, %23 : vector<8x1xf32>
    %25 = arith.mulf %18, %18 : vector<8x128xf32>
    %cst_19 = arith.constant dense<0.000000e+00> : vector<8xf32>
    %26 = vector.multi_reduction <add>, %25, %cst_19 [1] : vector<8x128xf32> to vector<8xf32>
    %27 = vector.shape_cast %26 : vector<8xf32> to vector<8x1xf32>
    %cst_20 = arith.constant 1.280000e+02 : f32
    %28 = vector.broadcast %cst_20 : f32 to vector<8x1xf32>
    %29 = arith.divf %27, %28 : vector<8x1xf32>
    %30 = arith.mulf %24, %24 : vector<8x1xf32>
    %31 = arith.subf %29, %30 : vector<8x1xf32>
    %32 = vector.broadcast %24 : vector<8x1xf32> to vector<8x128xf32>
    %33 = arith.subf %18, %32 : vector<8x128xf32>
    %cst_21 = arith.constant 9.99999974E-6 : f32
    %34 = vector.broadcast %cst_21 : f32 to vector<8x1xf32>
    %35 = arith.addf %31, %34 : vector<8x1xf32>
    %36 = math.rsqrt %35 : vector<8x1xf32>
    %37 = vector.broadcast %36 : vector<8x1xf32> to vector<8x128xf32>
    %38 = arith.mulf %33, %37 : vector<8x128xf32>
    %39 = vector.broadcast %19 : vector<1x128xf32> to vector<8x128xf32>
    %40 = arith.mulf %38, %39 : vector<8x128xf32>
    %41 = vector.broadcast %20 : vector<1x128xf32> to vector<8x128xf32>
    %42 = arith.addf %40, %41 : vector<8x128xf32>
    %c0_22 = arith.constant 0 : index
    %c0_23 = arith.constant 0 : index
    %c0_24 = arith.constant 0 : index
    %43 = vector.load %arg8[%c0_22, %c0_23, %c0_24] : memref<3x128x128xf32, #tpu.memory_space<vmem>>, vector<1x128x128xf32>
    %44 = vector.shape_cast %43 : vector<1x128x128xf32> to vector<128x128xf32>
    %cst_25 = arith.constant dense<0.000000e+00> : vector<8x128xf32>
    %45 = tpu.matmul %42, %44, %cst_25 {dimension_numbers = #tpu.dot_dimension_numbers<[1], [0], [0], [1], [0, 0, 1, 1], [], []>} : vector<8x128xf32>, vector<128x128xf32>, vector<8x128xf32> -> vector<8x128xf32>
    %c0_26 = arith.constant 0 : index
    %c0_27 = arith.constant 0 : index
    %c0_28 = arith.constant 0 : index
    %46 = vector.load %arg9[%c0_26, %c0_27, %c0_28] : memref<3x1x128xf32, #tpu.memory_space<vmem>>, vector<1x1x128xf32>
    %47 = vector.shape_cast %46 : vector<1x1x128xf32> to vector<1x128xf32>
    %48 = vector.broadcast %47 : vector<1x128xf32> to vector<8x128xf32>
    %49 = arith.addf %45, %48 : vector<8x128xf32>
    %50 = arith.addf %42, %49 : vector<8x128xf32>
    %c0_29 = arith.constant 0 : index
    %c0_30 = arith.constant 0 : index
    %c0_31 = arith.constant 0 : index
    %51 = vector.load %arg10[%c0_29, %c0_30, %c0_31] : memref<3x1x128xf32, #tpu.memory_space<vmem>>, vector<1x1x128xf32>
    %52 = vector.shape_cast %51 : vector<1x1x128xf32> to vector<1x128xf32>
    %c0_32 = arith.constant 0 : index
    %c0_33 = arith.constant 0 : index
    %c0_34 = arith.constant 0 : index
    %53 = vector.load %arg11[%c0_32, %c0_33, %c0_34] : memref<3x1x128xf32, #tpu.memory_space<vmem>>, vector<1x1x128xf32>
    %54 = vector.shape_cast %53 : vector<1x1x128xf32> to vector<1x128xf32>
    %cst_35 = arith.constant dense<0.000000e+00> : vector<8xf32>
    %55 = vector.multi_reduction <add>, %50, %cst_35 [1] : vector<8x128xf32> to vector<8xf32>
    %56 = vector.shape_cast %55 : vector<8xf32> to vector<8x1xf32>
    %cst_36 = arith.constant 1.280000e+02 : f32
    %57 = vector.broadcast %cst_36 : f32 to vector<8x1xf32>
    %58 = arith.divf %56, %57 : vector<8x1xf32>
    %59 = arith.mulf %50, %50 : vector<8x128xf32>
    %cst_37 = arith.constant dense<0.000000e+00> : vector<8xf32>
    %60 = vector.multi_reduction <add>, %59, %cst_37 [1] : vector<8x128xf32> to vector<8xf32>
    %61 = vector.shape_cast %60 : vector<8xf32> to vector<8x1xf32>
    %cst_38 = arith.constant 1.280000e+02 : f32
    %62 = vector.broadcast %cst_38 : f32 to vector<8x1xf32>
    %63 = arith.divf %61, %62 : vector<8x1xf32>
    %64 = arith.mulf %58, %58 : vector<8x1xf32>
    %65 = arith.subf %63, %64 : vector<8x1xf32>
    %66 = vector.broadcast %58 : vector<8x1xf32> to vector<8x128xf32>
    %67 = arith.subf %50, %66 : vector<8x128xf32>
    %cst_39 = arith.constant 9.99999974E-6 : f32
    %68 = vector.broadcast %cst_39 : f32 to vector<8x1xf32>
    %69 = arith.addf %65, %68 : vector<8x1xf32>
    %70 = math.rsqrt %69 : vector<8x1xf32>
    %71 = vector.broadcast %70 : vector<8x1xf32> to vector<8x128xf32>
    %72 = arith.mulf %67, %71 : vector<8x128xf32>
    %73 = vector.broadcast %52 : vector<1x128xf32> to vector<8x128xf32>
    %74 = arith.mulf %72, %73 : vector<8x128xf32>
    %75 = vector.broadcast %54 : vector<1x128xf32> to vector<8x128xf32>
    %76 = arith.addf %74, %75 : vector<8x128xf32>
    %c0_40 = arith.constant 0 : index
    %c0_41 = arith.constant 0 : index
    %c0_42 = arith.constant 0 : index
    %77 = vector.load %arg12[%c0_40, %c0_41, %c0_42] : memref<3x128x512xf32, #tpu.memory_space<vmem>>, vector<1x128x512xf32>
    %78 = vector.shape_cast %77 : vector<1x128x512xf32> to vector<128x512xf32>
    %cst_43 = arith.constant dense<0.000000e+00> : vector<8x512xf32>
    %79 = tpu.matmul %76, %78, %cst_43 {dimension_numbers = #tpu.dot_dimension_numbers<[1], [0], [0], [1], [0, 0, 1, 1], [], []>} : vector<8x128xf32>, vector<128x512xf32>, vector<8x512xf32> -> vector<8x512xf32>
    %c0_44 = arith.constant 0 : index
    %c0_45 = arith.constant 0 : index
    %c0_46 = arith.constant 0 : index
    %80 = vector.load %arg13[%c0_44, %c0_45, %c0_46] : memref<3x1x512xf32, #tpu.memory_space<vmem>>, vector<1x1x512xf32>
    %81 = vector.shape_cast %80 : vector<1x1x512xf32> to vector<1x512xf32>
    %82 = vector.broadcast %81 : vector<1x512xf32> to vector<8x512xf32>
    %83 = arith.addf %79, %82 : vector<8x512xf32>
    %cst_47 = arith.constant 5.000000e-01 : f32
    %84 = vector.broadcast %cst_47 : f32 to vector<8x512xf32>
    %85 = arith.mulf %84, %83 : vector<8x512xf32>
    %cst_48 = arith.constant 0.707106769 : f32
    %86 = vector.broadcast %cst_48 : f32 to vector<8x512xf32>
    %87 = arith.mulf %83, %86 : vector<8x512xf32>
    %88 = math.erf %87 : vector<8x512xf32>
    %cst_49 = arith.constant 1.000000e+00 : f32
    %89 = vector.broadcast %cst_49 : f32 to vector<8x512xf32>
    %90 = arith.addf %89, %88 : vector<8x512xf32>
    %91 = arith.mulf %85, %90 : vector<8x512xf32>
    %c0_50 = arith.constant 0 : index
    %c0_51 = arith.constant 0 : index
    %c0_52 = arith.constant 0 : index
    %92 = vector.load %arg14[%c0_50, %c0_51, %c0_52] : memref<3x512x128xf32, #tpu.memory_space<vmem>>, vector<1x512x128xf32>
    %93 = vector.shape_cast %92 : vector<1x512x128xf32> to vector<512x128xf32>
    %cst_53 = arith.constant dense<0.000000e+00> : vector<8x128xf32>
    %94 = tpu.matmul %91, %93, %cst_53 {dimension_numbers = #tpu.dot_dimension_numbers<[1], [0], [0], [1], [0, 0, 1, 1], [], []>} : vector<8x512xf32>, vector<512x128xf32>, vector<8x128xf32> -> vector<8x128xf32>
    %c0_54 = arith.constant 0 : index
    %c0_55 = arith.constant 0 : index
    %c0_56 = arith.constant 0 : index
    %95 = vector.load %arg15[%c0_54, %c0_55, %c0_56] : memref<3x1x128xf32, #tpu.memory_space<vmem>>, vector<1x1x128xf32>
    %96 = vector.shape_cast %95 : vector<1x1x128xf32> to vector<1x128xf32>
    %97 = vector.broadcast %96 : vector<1x128xf32> to vector<8x128xf32>
    %98 = arith.addf %94, %97 : vector<8x128xf32>
    %99 = arith.addf %76, %98 : vector<8x128xf32>
    %c0_57 = arith.constant 0 : index
    %c0_58 = arith.constant 0 : index
    %c0_59 = arith.constant 0 : index
    %100 = vector.load %arg16[%c0_57, %c0_58, %c0_59] : memref<3x1x128xf32, #tpu.memory_space<vmem>>, vector<1x1x128xf32>
    %101 = vector.shape_cast %100 : vector<1x1x128xf32> to vector<1x128xf32>
    %c0_60 = arith.constant 0 : index
    %c0_61 = arith.constant 0 : index
    %c0_62 = arith.constant 0 : index
    %102 = vector.load %arg17[%c0_60, %c0_61, %c0_62] : memref<3x1x128xf32, #tpu.memory_space<vmem>>, vector<1x1x128xf32>
    %103 = vector.shape_cast %102 : vector<1x1x128xf32> to vector<1x128xf32>
    %cst_63 = arith.constant dense<0.000000e+00> : vector<8xf32>
    %104 = vector.multi_reduction <add>, %99, %cst_63 [1] : vector<8x128xf32> to vector<8xf32>
    %105 = vector.shape_cast %104 : vector<8xf32> to vector<8x1xf32>
    %cst_64 = arith.constant 1.280000e+02 : f32
    %106 = vector.broadcast %cst_64 : f32 to vector<8x1xf32>
    %107 = arith.divf %105, %106 : vector<8x1xf32>
    %108 = arith.mulf %99, %99 : vector<8x128xf32>
    %cst_65 = arith.constant dense<0.000000e+00> : vector<8xf32>
    %109 = vector.multi_reduction <add>, %108, %cst_65 [1] : vector<8x128xf32> to vector<8xf32>
    %110 = vector.shape_cast %109 : vector<8xf32> to vector<8x1xf32>
    %cst_66 = arith.constant 1.280000e+02 : f32
    %111 = vector.broadcast %cst_66 : f32 to vector<8x1xf32>
    %112 = arith.divf %110, %111 : vector<8x1xf32>
    %113 = arith.mulf %107, %107 : vector<8x1xf32>
    %114 = arith.subf %112, %113 : vector<8x1xf32>
    %115 = vector.broadcast %107 : vector<8x1xf32> to vector<8x128xf32>
    %116 = arith.subf %99, %115 : vector<8x128xf32>
    %cst_67 = arith.constant 9.99999974E-6 : f32
    %117 = vector.broadcast %cst_67 : f32 to vector<8x1xf32>
    %118 = arith.addf %114, %117 : vector<8x1xf32>
    %119 = math.rsqrt %118 : vector<8x1xf32>
    %120 = vector.broadcast %119 : vector<8x1xf32> to vector<8x128xf32>
    %121 = arith.mulf %116, %120 : vector<8x128xf32>
    %122 = vector.broadcast %101 : vector<1x128xf32> to vector<8x128xf32>
    %123 = arith.mulf %121, %122 : vector<8x128xf32>
    %124 = vector.broadcast %103 : vector<1x128xf32> to vector<8x128xf32>
    %125 = arith.addf %123, %124 : vector<8x128xf32>
    %c1 = arith.constant 1 : index
    %c0_68 = arith.constant 0 : index
    %c0_69 = arith.constant 0 : index
    %126 = vector.load %arg8[%c1, %c0_68, %c0_69] : memref<3x128x128xf32, #tpu.memory_space<vmem>>, vector<1x128x128xf32>
    %127 = vector.shape_cast %126 : vector<1x128x128xf32> to vector<128x128xf32>
    %cst_70 = arith.constant dense<0.000000e+00> : vector<8x128xf32>
    %128 = tpu.matmul %125, %127, %cst_70 {dimension_numbers = #tpu.dot_dimension_numbers<[1], [0], [0], [1], [0, 0, 1, 1], [], []>} : vector<8x128xf32>, vector<128x128xf32>, vector<8x128xf32> -> vector<8x128xf32>
    %c1_71 = arith.constant 1 : index
    %c0_72 = arith.constant 0 : index
    %c0_73 = arith.constant 0 : index
    %129 = vector.load %arg9[%c1_71, %c0_72, %c0_73] : memref<3x1x128xf32, #tpu.memory_space<vmem>>, vector<1x1x128xf32>
    %130 = vector.shape_cast %129 : vector<1x1x128xf32> to vector<1x128xf32>
    %131 = vector.broadcast %130 : vector<1x128xf32> to vector<8x128xf32>
    %132 = arith.addf %128, %131 : vector<8x128xf32>
    %133 = arith.addf %125, %132 : vector<8x128xf32>
    %c1_74 = arith.constant 1 : index
    %c0_75 = arith.constant 0 : index
    %c0_76 = arith.constant 0 : index
    %134 = vector.load %arg10[%c1_74, %c0_75, %c0_76] : memref<3x1x128xf32, #tpu.memory_space<vmem>>, vector<1x1x128xf32>
    %135 = vector.shape_cast %134 : vector<1x1x128xf32> to vector<1x128xf32>
    %c1_77 = arith.constant 1 : index
    %c0_78 = arith.constant 0 : index
    %c0_79 = arith.constant 0 : index
    %136 = vector.load %arg11[%c1_77, %c0_78, %c0_79] : memref<3x1x128xf32, #tpu.memory_space<vmem>>, vector<1x1x128xf32>
    %137 = vector.shape_cast %136 : vector<1x1x128xf32> to vector<1x128xf32>
    %cst_80 = arith.constant dense<0.000000e+00> : vector<8xf32>
    %138 = vector.multi_reduction <add>, %133, %cst_80 [1] : vector<8x128xf32> to vector<8xf32>
    %139 = vector.shape_cast %138 : vector<8xf32> to vector<8x1xf32>
    %cst_81 = arith.constant 1.280000e+02 : f32
    %140 = vector.broadcast %cst_81 : f32 to vector<8x1xf32>
    %141 = arith.divf %139, %140 : vector<8x1xf32>
    %142 = arith.mulf %133, %133 : vector<8x128xf32>
    %cst_82 = arith.constant dense<0.000000e+00> : vector<8xf32>
    %143 = vector.multi_reduction <add>, %142, %cst_82 [1] : vector<8x128xf32> to vector<8xf32>
    %144 = vector.shape_cast %143 : vector<8xf32> to vector<8x1xf32>
    %cst_83 = arith.constant 1.280000e+02 : f32
    %145 = vector.broadcast %cst_83 : f32 to vector<8x1xf32>
    %146 = arith.divf %144, %145 : vector<8x1xf32>
    %147 = arith.mulf %141, %141 : vector<8x1xf32>
    %148 = arith.subf %146, %147 : vector<8x1xf32>
    %149 = vector.broadcast %141 : vector<8x1xf32> to vector<8x128xf32>
    %150 = arith.subf %133, %149 : vector<8x128xf32>
    %cst_84 = arith.constant 9.99999974E-6 : f32
    %151 = vector.broadcast %cst_84 : f32 to vector<8x1xf32>
    %152 = arith.addf %148, %151 : vector<8x1xf32>
    %153 = math.rsqrt %152 : vector<8x1xf32>
    %154 = vector.broadcast %153 : vector<8x1xf32> to vector<8x128xf32>
    %155 = arith.mulf %150, %154 : vector<8x128xf32>
    %156 = vector.broadcast %135 : vector<1x128xf32> to vector<8x128xf32>
    %157 = arith.mulf %155, %156 : vector<8x128xf32>
    %158 = vector.broadcast %137 : vector<1x128xf32> to vector<8x128xf32>
    %159 = arith.addf %157, %158 : vector<8x128xf32>
    %c1_85 = arith.constant 1 : index
    %c0_86 = arith.constant 0 : index
    %c0_87 = arith.constant 0 : index
    %160 = vector.load %arg12[%c1_85, %c0_86, %c0_87] : memref<3x128x512xf32, #tpu.memory_space<vmem>>, vector<1x128x512xf32>
    %161 = vector.shape_cast %160 : vector<1x128x512xf32> to vector<128x512xf32>
    %cst_88 = arith.constant dense<0.000000e+00> : vector<8x512xf32>
    %162 = tpu.matmul %159, %161, %cst_88 {dimension_numbers = #tpu.dot_dimension_numbers<[1], [0], [0], [1], [0, 0, 1, 1], [], []>} : vector<8x128xf32>, vector<128x512xf32>, vector<8x512xf32> -> vector<8x512xf32>
    %c1_89 = arith.constant 1 : index
    %c0_90 = arith.constant 0 : index
    %c0_91 = arith.constant 0 : index
    %163 = vector.load %arg13[%c1_89, %c0_90, %c0_91] : memref<3x1x512xf32, #tpu.memory_space<vmem>>, vector<1x1x512xf32>
    %164 = vector.shape_cast %163 : vector<1x1x512xf32> to vector<1x512xf32>
    %165 = vector.broadcast %164 : vector<1x512xf32> to vector<8x512xf32>
    %166 = arith.addf %162, %165 : vector<8x512xf32>
    %cst_92 = arith.constant 5.000000e-01 : f32
    %167 = vector.broadcast %cst_92 : f32 to vector<8x512xf32>
    %168 = arith.mulf %167, %166 : vector<8x512xf32>
    %cst_93 = arith.constant 0.707106769 : f32
    %169 = vector.broadcast %cst_93 : f32 to vector<8x512xf32>
    %170 = arith.mulf %166, %169 : vector<8x512xf32>
    %171 = math.erf %170 : vector<8x512xf32>
    %cst_94 = arith.constant 1.000000e+00 : f32
    %172 = vector.broadcast %cst_94 : f32 to vector<8x512xf32>
    %173 = arith.addf %172, %171 : vector<8x512xf32>
    %174 = arith.mulf %168, %173 : vector<8x512xf32>
    %c1_95 = arith.constant 1 : index
    %c0_96 = arith.constant 0 : index
    %c0_97 = arith.constant 0 : index
    %175 = vector.load %arg14[%c1_95, %c0_96, %c0_97] : memref<3x512x128xf32, #tpu.memory_space<vmem>>, vector<1x512x128xf32>
    %176 = vector.shape_cast %175 : vector<1x512x128xf32> to vector<512x128xf32>
    %cst_98 = arith.constant dense<0.000000e+00> : vector<8x128xf32>
    %177 = tpu.matmul %174, %176, %cst_98 {dimension_numbers = #tpu.dot_dimension_numbers<[1], [0], [0], [1], [0, 0, 1, 1], [], []>} : vector<8x512xf32>, vector<512x128xf32>, vector<8x128xf32> -> vector<8x128xf32>
    %c1_99 = arith.constant 1 : index
    %c0_100 = arith.constant 0 : index
    %c0_101 = arith.constant 0 : index
    %178 = vector.load %arg15[%c1_99, %c0_100, %c0_101] : memref<3x1x128xf32, #tpu.memory_space<vmem>>, vector<1x1x128xf32>
    %179 = vector.shape_cast %178 : vector<1x1x128xf32> to vector<1x128xf32>
    %180 = vector.broadcast %179 : vector<1x128xf32> to vector<8x128xf32>
    %181 = arith.addf %177, %180 : vector<8x128xf32>
    %182 = arith.addf %159, %181 : vector<8x128xf32>
    %c1_102 = arith.constant 1 : index
    %c0_103 = arith.constant 0 : index
    %c0_104 = arith.constant 0 : index
    %183 = vector.load %arg16[%c1_102, %c0_103, %c0_104] : memref<3x1x128xf32, #tpu.memory_space<vmem>>, vector<1x1x128xf32>
    %184 = vector.shape_cast %183 : vector<1x1x128xf32> to vector<1x128xf32>
    %c1_105 = arith.constant 1 : index
    %c0_106 = arith.constant 0 : index
    %c0_107 = arith.constant 0 : index
    %185 = vector.load %arg17[%c1_105, %c0_106, %c0_107] : memref<3x1x128xf32, #tpu.memory_space<vmem>>, vector<1x1x128xf32>
    %186 = vector.shape_cast %185 : vector<1x1x128xf32> to vector<1x128xf32>
    %cst_108 = arith.constant dense<0.000000e+00> : vector<8xf32>
    %187 = vector.multi_reduction <add>, %182, %cst_108 [1] : vector<8x128xf32> to vector<8xf32>
    %188 = vector.shape_cast %187 : vector<8xf32> to vector<8x1xf32>
    %cst_109 = arith.constant 1.280000e+02 : f32
    %189 = vector.broadcast %cst_109 : f32 to vector<8x1xf32>
    %190 = arith.divf %188, %189 : vector<8x1xf32>
    %191 = arith.mulf %182, %182 : vector<8x128xf32>
    %cst_110 = arith.constant dense<0.000000e+00> : vector<8xf32>
    %192 = vector.multi_reduction <add>, %191, %cst_110 [1] : vector<8x128xf32> to vector<8xf32>
    %193 = vector.shape_cast %192 : vector<8xf32> to vector<8x1xf32>
    %cst_111 = arith.constant 1.280000e+02 : f32
    %194 = vector.broadcast %cst_111 : f32 to vector<8x1xf32>
    %195 = arith.divf %193, %194 : vector<8x1xf32>
    %196 = arith.mulf %190, %190 : vector<8x1xf32>
    %197 = arith.subf %195, %196 : vector<8x1xf32>
    %198 = vector.broadcast %190 : vector<8x1xf32> to vector<8x128xf32>
    %199 = arith.subf %182, %198 : vector<8x128xf32>
    %cst_112 = arith.constant 9.99999974E-6 : f32
    %200 = vector.broadcast %cst_112 : f32 to vector<8x1xf32>
    %201 = arith.addf %197, %200 : vector<8x1xf32>
    %202 = math.rsqrt %201 : vector<8x1xf32>
    %203 = vector.broadcast %202 : vector<8x1xf32> to vector<8x128xf32>
    %204 = arith.mulf %199, %203 : vector<8x128xf32>
    %205 = vector.broadcast %184 : vector<1x128xf32> to vector<8x128xf32>
    %206 = arith.mulf %204, %205 : vector<8x128xf32>
    %207 = vector.broadcast %186 : vector<1x128xf32> to vector<8x128xf32>
    %208 = arith.addf %206, %207 : vector<8x128xf32>
    %c2 = arith.constant 2 : index
    %c0_113 = arith.constant 0 : index
    %c0_114 = arith.constant 0 : index
    %209 = vector.load %arg8[%c2, %c0_113, %c0_114] : memref<3x128x128xf32, #tpu.memory_space<vmem>>, vector<1x128x128xf32>
    %210 = vector.shape_cast %209 : vector<1x128x128xf32> to vector<128x128xf32>
    %cst_115 = arith.constant dense<0.000000e+00> : vector<8x128xf32>
    %211 = tpu.matmul %208, %210, %cst_115 {dimension_numbers = #tpu.dot_dimension_numbers<[1], [0], [0], [1], [0, 0, 1, 1], [], []>} : vector<8x128xf32>, vector<128x128xf32>, vector<8x128xf32> -> vector<8x128xf32>
    %c2_116 = arith.constant 2 : index
    %c0_117 = arith.constant 0 : index
    %c0_118 = arith.constant 0 : index
    %212 = vector.load %arg9[%c2_116, %c0_117, %c0_118] : memref<3x1x128xf32, #tpu.memory_space<vmem>>, vector<1x1x128xf32>
    %213 = vector.shape_cast %212 : vector<1x1x128xf32> to vector<1x128xf32>
    %214 = vector.broadcast %213 : vector<1x128xf32> to vector<8x128xf32>
    %215 = arith.addf %211, %214 : vector<8x128xf32>
    %216 = arith.addf %208, %215 : vector<8x128xf32>
    %c2_119 = arith.constant 2 : index
    %c0_120 = arith.constant 0 : index
    %c0_121 = arith.constant 0 : index
    %217 = vector.load %arg10[%c2_119, %c0_120, %c0_121] : memref<3x1x128xf32, #tpu.memory_space<vmem>>, vector<1x1x128xf32>
    %218 = vector.shape_cast %217 : vector<1x1x128xf32> to vector<1x128xf32>
    %c2_122 = arith.constant 2 : index
    %c0_123 = arith.constant 0 : index
    %c0_124 = arith.constant 0 : index
    %219 = vector.load %arg11[%c2_122, %c0_123, %c0_124] : memref<3x1x128xf32, #tpu.memory_space<vmem>>, vector<1x1x128xf32>
    %220 = vector.shape_cast %219 : vector<1x1x128xf32> to vector<1x128xf32>
    %cst_125 = arith.constant dense<0.000000e+00> : vector<8xf32>
    %221 = vector.multi_reduction <add>, %216, %cst_125 [1] : vector<8x128xf32> to vector<8xf32>
    %222 = vector.shape_cast %221 : vector<8xf32> to vector<8x1xf32>
    %cst_126 = arith.constant 1.280000e+02 : f32
    %223 = vector.broadcast %cst_126 : f32 to vector<8x1xf32>
    %224 = arith.divf %222, %223 : vector<8x1xf32>
    %225 = arith.mulf %216, %216 : vector<8x128xf32>
    %cst_127 = arith.constant dense<0.000000e+00> : vector<8xf32>
    %226 = vector.multi_reduction <add>, %225, %cst_127 [1] : vector<8x128xf32> to vector<8xf32>
    %227 = vector.shape_cast %226 : vector<8xf32> to vector<8x1xf32>
    %cst_128 = arith.constant 1.280000e+02 : f32
    %228 = vector.broadcast %cst_128 : f32 to vector<8x1xf32>
    %229 = arith.divf %227, %228 : vector<8x1xf32>
    %230 = arith.mulf %224, %224 : vector<8x1xf32>
    %231 = arith.subf %229, %230 : vector<8x1xf32>
    %232 = vector.broadcast %224 : vector<8x1xf32> to vector<8x128xf32>
    %233 = arith.subf %216, %232 : vector<8x128xf32>
    %cst_129 = arith.constant 9.99999974E-6 : f32
    %234 = vector.broadcast %cst_129 : f32 to vector<8x1xf32>
    %235 = arith.addf %231, %234 : vector<8x1xf32>
    %236 = math.rsqrt %235 : vector<8x1xf32>
    %237 = vector.broadcast %236 : vector<8x1xf32> to vector<8x128xf32>
    %238 = arith.mulf %233, %237 : vector<8x128xf32>
    %239 = vector.broadcast %218 : vector<1x128xf32> to vector<8x128xf32>
    %240 = arith.mulf %238, %239 : vector<8x128xf32>
    %241 = vector.broadcast %220 : vector<1x128xf32> to vector<8x128xf32>
    %242 = arith.addf %240, %241 : vector<8x128xf32>
    %c2_130 = arith.constant 2 : index
    %c0_131 = arith.constant 0 : index
    %c0_132 = arith.constant 0 : index
    %243 = vector.load %arg12[%c2_130, %c0_131, %c0_132] : memref<3x128x512xf32, #tpu.memory_space<vmem>>, vector<1x128x512xf32>
    %244 = vector.shape_cast %243 : vector<1x128x512xf32> to vector<128x512xf32>
    %cst_133 = arith.constant dense<0.000000e+00> : vector<8x512xf32>
    %245 = tpu.matmul %242, %244, %cst_133 {dimension_numbers = #tpu.dot_dimension_numbers<[1], [0], [0], [1], [0, 0, 1, 1], [], []>} : vector<8x128xf32>, vector<128x512xf32>, vector<8x512xf32> -> vector<8x512xf32>
    %c2_134 = arith.constant 2 : index
    %c0_135 = arith.constant 0 : index
    %c0_136 = arith.constant 0 : index
    %246 = vector.load %arg13[%c2_134, %c0_135, %c0_136] : memref<3x1x512xf32, #tpu.memory_space<vmem>>, vector<1x1x512xf32>
    %247 = vector.shape_cast %246 : vector<1x1x512xf32> to vector<1x512xf32>
    %248 = vector.broadcast %247 : vector<1x512xf32> to vector<8x512xf32>
    %249 = arith.addf %245, %248 : vector<8x512xf32>
    %cst_137 = arith.constant 5.000000e-01 : f32
    %250 = vector.broadcast %cst_137 : f32 to vector<8x512xf32>
    %251 = arith.mulf %250, %249 : vector<8x512xf32>
    %cst_138 = arith.constant 0.707106769 : f32
    %252 = vector.broadcast %cst_138 : f32 to vector<8x512xf32>
    %253 = arith.mulf %249, %252 : vector<8x512xf32>
    %254 = math.erf %253 : vector<8x512xf32>
    %cst_139 = arith.constant 1.000000e+00 : f32
    %255 = vector.broadcast %cst_139 : f32 to vector<8x512xf32>
    %256 = arith.addf %255, %254 : vector<8x512xf32>
    %257 = arith.mulf %251, %256 : vector<8x512xf32>
    %c2_140 = arith.constant 2 : index
    %c0_141 = arith.constant 0 : index
    %c0_142 = arith.constant 0 : index
    %258 = vector.load %arg14[%c2_140, %c0_141, %c0_142] : memref<3x512x128xf32, #tpu.memory_space<vmem>>, vector<1x512x128xf32>
    %259 = vector.shape_cast %258 : vector<1x512x128xf32> to vector<512x128xf32>
    %cst_143 = arith.constant dense<0.000000e+00> : vector<8x128xf32>
    %260 = tpu.matmul %257, %259, %cst_143 {dimension_numbers = #tpu.dot_dimension_numbers<[1], [0], [0], [1], [0, 0, 1, 1], [], []>} : vector<8x512xf32>, vector<512x128xf32>, vector<8x128xf32> -> vector<8x128xf32>
    %c2_144 = arith.constant 2 : index
    %c0_145 = arith.constant 0 : index
    %c0_146 = arith.constant 0 : index
    %261 = vector.load %arg15[%c2_144, %c0_145, %c0_146] : memref<3x1x128xf32, #tpu.memory_space<vmem>>, vector<1x1x128xf32>
    %262 = vector.shape_cast %261 : vector<1x1x128xf32> to vector<1x128xf32>
    %263 = vector.broadcast %262 : vector<1x128xf32> to vector<8x128xf32>
    %264 = arith.addf %260, %263 : vector<8x128xf32>
    %265 = arith.addf %242, %264 : vector<8x128xf32>
    %c2_147 = arith.constant 2 : index
    %c0_148 = arith.constant 0 : index
    %c0_149 = arith.constant 0 : index
    %266 = vector.load %arg16[%c2_147, %c0_148, %c0_149] : memref<3x1x128xf32, #tpu.memory_space<vmem>>, vector<1x1x128xf32>
    %267 = vector.shape_cast %266 : vector<1x1x128xf32> to vector<1x128xf32>
    %c2_150 = arith.constant 2 : index
    %c0_151 = arith.constant 0 : index
    %c0_152 = arith.constant 0 : index
    %268 = vector.load %arg17[%c2_150, %c0_151, %c0_152] : memref<3x1x128xf32, #tpu.memory_space<vmem>>, vector<1x1x128xf32>
    %269 = vector.shape_cast %268 : vector<1x1x128xf32> to vector<1x128xf32>
    %cst_153 = arith.constant dense<0.000000e+00> : vector<8xf32>
    %270 = vector.multi_reduction <add>, %265, %cst_153 [1] : vector<8x128xf32> to vector<8xf32>
    %271 = vector.shape_cast %270 : vector<8xf32> to vector<8x1xf32>
    %cst_154 = arith.constant 1.280000e+02 : f32
    %272 = vector.broadcast %cst_154 : f32 to vector<8x1xf32>
    %273 = arith.divf %271, %272 : vector<8x1xf32>
    %274 = arith.mulf %265, %265 : vector<8x128xf32>
    %cst_155 = arith.constant dense<0.000000e+00> : vector<8xf32>
    %275 = vector.multi_reduction <add>, %274, %cst_155 [1] : vector<8x128xf32> to vector<8xf32>
    %276 = vector.shape_cast %275 : vector<8xf32> to vector<8x1xf32>
    %cst_156 = arith.constant 1.280000e+02 : f32
    %277 = vector.broadcast %cst_156 : f32 to vector<8x1xf32>
    %278 = arith.divf %276, %277 : vector<8x1xf32>
    %279 = arith.mulf %273, %273 : vector<8x1xf32>
    %280 = arith.subf %278, %279 : vector<8x1xf32>
    %281 = vector.broadcast %273 : vector<8x1xf32> to vector<8x128xf32>
    %282 = arith.subf %265, %281 : vector<8x128xf32>
    %cst_157 = arith.constant 9.99999974E-6 : f32
    %283 = vector.broadcast %cst_157 : f32 to vector<8x1xf32>
    %284 = arith.addf %280, %283 : vector<8x1xf32>
    %285 = math.rsqrt %284 : vector<8x1xf32>
    %286 = vector.broadcast %285 : vector<8x1xf32> to vector<8x128xf32>
    %287 = arith.mulf %282, %286 : vector<8x128xf32>
    %288 = vector.broadcast %267 : vector<1x128xf32> to vector<8x128xf32>
    %289 = arith.mulf %287, %288 : vector<8x128xf32>
    %290 = vector.broadcast %269 : vector<1x128xf32> to vector<8x128xf32>
    %291 = arith.addf %289, %290 : vector<8x128xf32>
    %c0_158 = arith.constant 0 : index
    %c0_159 = arith.constant 0 : index
    %292 = vector.load %arg18[%c0_158, %c0_159] : memref<128x320xf32, #tpu.memory_space<vmem>>, vector<128x320xf32>
    %cst_160 = arith.constant dense<0.000000e+00> : vector<8x320xf32>
    %293 = tpu.matmul %291, %292, %cst_160 {dimension_numbers = #tpu.dot_dimension_numbers<[1], [0], [0], [1], [0, 0, 1, 1], [], []>} : vector<8x128xf32>, vector<128x320xf32>, vector<8x320xf32> -> vector<8x320xf32>
    %c0_161 = arith.constant 0 : index
    %c0_162 = arith.constant 0 : index
    %294 = vector.load %arg19[%c0_161, %c0_162] : memref<1x320xf32, #tpu.memory_space<vmem>>, vector<1x320xf32>
    %295 = vector.broadcast %294 : vector<1x320xf32> to vector<8x320xf32>
    %296 = arith.addf %293, %295 : vector<8x320xf32>
    %cst_163 = arith.constant 5.000000e-01 : f32
    %297 = vector.broadcast %cst_163 : f32 to vector<8x320xf32>
    %298 = arith.mulf %297, %296 : vector<8x320xf32>
    %cst_164 = arith.constant 0.707106769 : f32
    %299 = vector.broadcast %cst_164 : f32 to vector<8x320xf32>
    %300 = arith.mulf %296, %299 : vector<8x320xf32>
    %301 = math.erf %300 : vector<8x320xf32>
    %cst_165 = arith.constant 1.000000e+00 : f32
    %302 = vector.broadcast %cst_165 : f32 to vector<8x320xf32>
    %303 = arith.addf %302, %301 : vector<8x320xf32>
    %304 = arith.mulf %298, %303 : vector<8x320xf32>
    %c0_166 = arith.constant 0 : index
    %c0_167 = arith.constant 0 : index
    %305 = vector.load %arg20[%c0_166, %c0_167] : memref<320x128xf32, #tpu.memory_space<vmem>>, vector<320x128xf32>
    %cst_168 = arith.constant dense<0.000000e+00> : vector<8x128xf32>
    %306 = tpu.matmul %304, %305, %cst_168 {dimension_numbers = #tpu.dot_dimension_numbers<[1], [0], [0], [1], [0, 0, 1, 1], [], []>} : vector<8x320xf32>, vector<320x128xf32>, vector<8x128xf32> -> vector<8x128xf32>
    %c0_169 = arith.constant 0 : index
    %c0_170 = arith.constant 0 : index
    %307 = vector.load %arg21[%c0_169, %c0_170] : memref<1x128xf32, #tpu.memory_space<vmem>>, vector<1x128xf32>
    %308 = vector.broadcast %307 : vector<1x128xf32> to vector<8x128xf32>
    %309 = arith.addf %306, %308 : vector<8x128xf32>
    %c0_171 = arith.constant 0 : index
    %c0_172 = arith.constant 0 : index
    %310 = vector.load %arg22[%c0_171, %c0_172] : memref<8x128xf32, #tpu.memory_space<vmem>>, vector<8x128xf32>
    tpu.vector_store %arg22[%c0_171, %c0_172], %309 {strides = array<i32>} : memref<8x128xf32, #tpu.memory_space<vmem>>, vector<8x128xf32>,
    return
  }
  func.func @transform_0(%arg0: i32) -> (i32, i32) {
    %c0_i32 = arith.constant 0 : i32
    %c0_i32_0 = arith.constant 0 : i32
    return %arg0, %c0_i32 : i32, i32
  }
  func.func @transform_1(%arg0: i32) -> (i32, i32) {
    %c0_i32 = arith.constant 0 : i32
    %c0_i32_0 = arith.constant 0 : i32
    %c0_i32_1 = arith.constant 0 : i32
    return %c0_i32, %c0_i32_0 : i32, i32
  }
  func.func @transform_2(%arg0: i32) -> (i32, i32) {
    %c0_i32 = arith.constant 0 : i32
    %c0_i32_0 = arith.constant 0 : i32
    %c0_i32_1 = arith.constant 0 : i32
    return %c0_i32, %c0_i32_0 : i32, i32
  }
  func.func @transform_3(%arg0: i32) -> (i32, i32) {
    %c0_i32 = arith.constant 0 : i32
    %c0_i32_0 = arith.constant 0 : i32
    %c0_i32_1 = arith.constant 0 : i32
    return %c0_i32, %c0_i32_0 : i32, i32
  }
  func.func @transform_4(%arg0: i32) -> (i32, i32) {
    %c0_i32 = arith.constant 0 : i32
    %c0_i32_0 = arith.constant 0 : i32
    %c0_i32_1 = arith.constant 0 : i32
    return %c0_i32, %c0_i32_0 : i32, i32
  }
  func.func @transform_5(%arg0: i32) -> (i32, i32) {
    %c0_i32 = arith.constant 0 : i32
    %c0_i32_0 = arith.constant 0 : i32
    %c0_i32_1 = arith.constant 0 : i32
    return %c0_i32, %c0_i32_0 : i32, i32
  }
  func.func @transform_6(%arg0: i32) -> (i32, i32) {
    %c0_i32 = arith.constant 0 : i32
    %c0_i32_0 = arith.constant 0 : i32
    %c0_i32_1 = arith.constant 0 : i32
    return %c0_i32, %c0_i32_0 : i32, i32
  }
  func.func @transform_7(%arg0: i32) -> (i32, i32, i32) {
    %c0_i32 = arith.constant 0 : i32
    %c0_i32_0 = arith.constant 0 : i32
    %c0_i32_1 = arith.constant 0 : i32
    %c0_i32_2 = arith.constant 0 : i32
    return %c0_i32, %c0_i32_0, %c0_i32_1 : i32, i32, i32
  }
  func.func @transform_8(%arg0: i32) -> (i32, i32, i32) {
    %c0_i32 = arith.constant 0 : i32
    %c0_i32_0 = arith.constant 0 : i32
    %c0_i32_1 = arith.constant 0 : i32
    %c0_i32_2 = arith.constant 0 : i32
    return %c0_i32, %c0_i32_0, %c0_i32_1 : i32, i32, i32
  }
  func.func @transform_9(%arg0: i32) -> (i32, i32, i32) {
    %c0_i32 = arith.constant 0 : i32
    %c0_i32_0 = arith.constant 0 : i32
    %c0_i32_1 = arith.constant 0 : i32
    %c0_i32_2 = arith.constant 0 : i32
    return %c0_i32, %c0_i32_0, %c0_i32_1 : i32, i32, i32
  }
  func.func @transform_10(%arg0: i32) -> (i32, i32, i32) {
    %c0_i32 = arith.constant 0 : i32
    %c0_i32_0 = arith.constant 0 : i32
    %c0_i32_1 = arith.constant 0 : i32
    %c0_i32_2 = arith.constant 0 : i32
    return %c0_i32, %c0_i32_0, %c0_i32_1 : i32, i32, i32
  }
  func.func @transform_11(%arg0: i32) -> (i32, i32, i32) {
    %c0_i32 = arith.constant 0 : i32
    %c0_i32_0 = arith.constant 0 : i32
    %c0_i32_1 = arith.constant 0 : i32
    %c0_i32_2 = arith.constant 0 : i32
    return %c0_i32, %c0_i32_0, %c0_i32_1 : i32, i32, i32
  }
  func.func @transform_12(%arg0: i32) -> (i32, i32, i32) {
    %c0_i32 = arith.constant 0 : i32
    %c0_i32_0 = arith.constant 0 : i32
    %c0_i32_1 = arith.constant 0 : i32
    %c0_i32_2 = arith.constant 0 : i32
    return %c0_i32, %c0_i32_0, %c0_i32_1 : i32, i32, i32
  }
  func.func @transform_13(%arg0: i32) -> (i32, i32, i32) {
    %c0_i32 = arith.constant 0 : i32
    %c0_i32_0 = arith.constant 0 : i32
    %c0_i32_1 = arith.constant 0 : i32
    %c0_i32_2 = arith.constant 0 : i32
    return %c0_i32, %c0_i32_0, %c0_i32_1 : i32, i32, i32
  }
  func.func @transform_14(%arg0: i32) -> (i32, i32, i32) {
    %c0_i32 = arith.constant 0 : i32
    %c0_i32_0 = arith.constant 0 : i32
    %c0_i32_1 = arith.constant 0 : i32
    %c0_i32_2 = arith.constant 0 : i32
    return %c0_i32, %c0_i32_0, %c0_i32_1 : i32, i32, i32
  }
  func.func @transform_15(%arg0: i32) -> (i32, i32, i32) {
    %c0_i32 = arith.constant 0 : i32
    %c0_i32_0 = arith.constant 0 : i32
    %c0_i32_1 = arith.constant 0 : i32
    %c0_i32_2 = arith.constant 0 : i32
    return %c0_i32, %c0_i32_0, %c0_i32_1 : i32, i32, i32
  }
  func.func @transform_16(%arg0: i32) -> (i32, i32, i32) {
    %c0_i32 = arith.constant 0 : i32
    %c0_i32_0 = arith.constant 0 : i32
    %c0_i32_1 = arith.constant 0 : i32
    %c0_i32_2 = arith.constant 0 : i32
    return %c0_i32, %c0_i32_0, %c0_i32_1 : i32, i32, i32
  }
  func.func @transform_17(%arg0: i32) -> (i32, i32) {
    %c0_i32 = arith.constant 0 : i32
    %c0_i32_0 = arith.constant 0 : i32
    %c0_i32_1 = arith.constant 0 : i32
    return %c0_i32, %c0_i32_0 : i32, i32
  }
  func.func @transform_18(%arg0: i32) -> (i32, i32) {
    %c0_i32 = arith.constant 0 : i32
    %c0_i32_0 = arith.constant 0 : i32
    %c0_i32_1 = arith.constant 0 : i32
    return %c0_i32, %c0_i32_0 : i32, i32
  }
  func.func @transform_19(%arg0: i32) -> (i32, i32) {
    %c0_i32 = arith.constant 0 : i32
    %c0_i32_0 = arith.constant 0 : i32
    %c0_i32_1 = arith.constant 0 : i32
    return %c0_i32, %c0_i32_0 : i32, i32
  }
  func.func @transform_20(%arg0: i32) -> (i32, i32) {
    %c0_i32 = arith.constant 0 : i32
    %c0_i32_0 = arith.constant 0 : i32
    %c0_i32_1 = arith.constant 0 : i32
    return %c0_i32, %c0_i32_0 : i32, i32
  }
  func.func @transform_21(%arg0: i32) -> (i32, i32) {
    %c0_i32 = arith.constant 0 : i32
    %c0_i32_0 = arith.constant 0 : i32
    return %arg0, %c0_i32 : i32, i32
  }
}

</mosaic_0001>

<bundles_post_ra>
// kernel: tpu_custom_call.1
= control target key start
LH: loop header
LB: loop body
LE: loop exit
PB: predicated region body
PF: predicated region fallthrough
CT: control target
= control target key end

     0   :  { %s4122_s0 = inlined_call_operand.vmem [shape: f32[8,4], index: 0, kind: input, shape index: {}]   ;;  %s4123_s1 = inlined_call_operand.vmem [shape: f32[4,64], index: 1, kind: input, shape index: {}]   ;;  %s4124_s2 = inlined_call_operand.hbm [shape: f32[1,64], index: 2, kind: input, shape index: {}]   ;;  %s4125_s3 = inlined_call_operand.hbm [shape: f32[64,128], index: 3, kind: input, shape index: {}]   ;;  %s4126_s4 = inlined_call_operand.hbm [shape: f32[1,128], index: 4, kind: input, shape index: {}]   ;;  %s4127_s5 = inlined_call_operand.hbm [shape: f32[1,128], index: 5, kind: input, shape index: {}]   ;;  %s4128_s6 = inlined_call_operand.hbm [shape: f32[1,128], index: 6, kind: input, shape index: {}]   ;;  %s4129_s7 = inlined_call_operand.vmem [shape: f32[3,128,128], index: 7, kind: input, shape index: {}]   ;;  %s4130_s8 = inlined_call_operand.vmem [shape: f32[3,1,128], index: 8, kind: input, shape index: {}]   ;;  %s4131_s9 = inlined_call_operand.hbm [shape: f32[3,1,128], index: 9, kind: input, shape index: {}]   ;;  %s4132_s10 = inlined_call_operand.hbm [shape: f32[3,1,128], index: 10, kind: input, shape index: {}]   ;;  %s4133_s11 = inlined_call_operand.hbm [shape: f32[3,128,512], index: 11, kind: input, shape index: {}]   ;;  %s4134_s12 = inlined_call_operand.vmem [shape: f32[3,1,512], index: 12, kind: input, shape index: {}]   ;;  %s4135_s13 = inlined_call_operand.hbm [shape: f32[3,512,128], index: 13, kind: input, shape index: {}]   ;;  %s4136_s14 = inlined_call_operand.hbm [shape: f32[3,1,128], index: 14, kind: input, shape index: {}]   ;;  %s4137_s15 = inlined_call_operand.hbm [shape: f32[3,1,128], index: 15, kind: input, shape index: {}]   ;;  %s4138_s16 = inlined_call_operand.vmem [shape: f32[3,1,128], index: 16, kind: input, shape index: {}]   ;;  %s4139_s17 = inlined_call_operand.vmem [shape: f32[128,320], index: 17, kind: input, shape index: {}]   ;;  %s4140_s18 = inlined_call_operand.vmem [shape: f32[1,320], index: 18, kind: input, shape index: {}]   ;;  %s4141_s19 = inlined_call_operand.vmem [shape: f32[320,128], index: 19, kind: input, shape index: {}]   ;;  %s4142_s20 = inlined_call_operand.vmem [shape: f32[1,128], index: 20, kind: input, shape index: {}]   ;;  %s4143_s21 = inlined_call_operand.hbm [shape: f32[8,128], index: 21, kind: output, shape index: {}]  }
   0x1   :  { %4145 = sst [smem:[#allocation28_spill]] %s4122_s0 }
   0x2   :  { %4146 = sst [smem:[#allocation29_spill]] %s4123_s1 }
   0x3   :  { %4147 = sst [smem:[#allocation30_spill]] %s4124_s2 }
   0x4   :  { %4148 = sst [smem:[#allocation31_spill]] %s4125_s3 }
   0x5   :  { %4149 = sst [smem:[#allocation32_spill]] %s4126_s4 }
   0x6   :  { %4150 = sst [smem:[#allocation33_spill]] %s4127_s5 }
   0x7   :  { %4151 = sst [smem:[#allocation34_spill]] %s4142_s20 }
   0x8   :  { %4152 = sst [smem:[#allocation35_spill]] %s4143_s21 }
   0x9   :  { %26 = vsyncpa [#allocation3], 0 }
   0xa   :  { %27 = vsyncpa [#allocation6], 0 }
   0xb   :  { %28 = vsyncpa [#allocation9], 0 }
   0xc   :  { %29 = vsyncpa [#allocation12], 0 }
   0xd   :  { %30 = vsyncpa [#allocation15], 0 }
   0xe   :  { %31 = vsyncpa [#allocation18], 0  ;;  %s4153_s26 = sld [smem:[#allocation31_spill]] }
  0x14   :  { %s52_s27 = sshll.u32 %s4153_s26, 4  ;;  %s53_s27 = int_to_ptr.hbm [resolvable:$true] %s52_s27 }
  0x15   :  { %32 = vsyncpa [#allocation4], 0  ;;  %s2985_s3 = smov [#allocation5]   ;;  %s4154_s4 = sld [smem:[#allocation33_spill]] }
  0x16   :  { %s54_s28 = sshll.u32 %s2985_s3, 4  ;;  %s4144_s5 = smov 128   ;;  %s55_s28 = int_to_ptr.vmem [resolvable:$true] %s54_s28 }
  0x17   :  { %s2987_s22 = smov 8   ;;  %s2988_s23 = smov [#allocation8]  }
  0x18   :  { %60 = dma.hbm_to_vmem [thread:$0]  %s53_s27, 1024, %s55_s28, [#allocation6], %s4144_s5, %s4144_s5, %s2987_s22  }
  0x19   :  { %s79_s1 = sshll.u32 %s2988_s23, 4  ;;  %s102_s25 = sshll.u32 %s4131_s9, 4  ;;  %s80_s1 = int_to_ptr.vmem [resolvable:$true] %s79_s1  ;;  %s103_s25 = int_to_ptr.hbm [resolvable:$true] %s102_s25 }
  0x1a   :  { %s2989_s26 = smov [#allocation11]   ;;  %s2990_s21 = smov 16  }
  0x1b   :  { %s77_s30 = sshll.u32 %s4154_s4, 4  ;;  %s104_s3 = sshll.u32 %s2989_s26, 4  ;;  %s78_s30 = int_to_ptr.hbm [resolvable:$true] %s77_s30  ;;  %s105_s3 = int_to_ptr.vmem [resolvable:$true] %s104_s3 }
  0x1c   :  { %82 = dma.hbm_to_vmem [thread:$0]  %s78_s30, 16, %s80_s1, [#allocation9]  }
  0x1d   :  { %s128_s4 = sshll.u32 %s4133_s11, 4  ;;  %s2991_s20 = smov 1   ;;  %s129_s4 = int_to_ptr.hbm [resolvable:$true] %s128_s4 }
  0x1e   :  { %110 = dma.hbm_to_vmem [thread:$0]  %s103_s25, 48, %s105_s3, [#allocation12], %s2990_s21, %s2990_s21, %s2991_s20  }
  0x1f   :  { %s2992_s27 = smov [#allocation14]   ;;  %s2993_s9 = smov 512  }
  0x20   :  { %s130_s28 = sshll.u32 %s2992_s27, 4  ;;  %s2994_s23 = smov 32   ;;  %s131_s28 = int_to_ptr.vmem [resolvable:$true] %s130_s28 }
  0x21   :  { %136 = dma.hbm_to_vmem [thread:$0]  %s129_s4, 24576, %s131_s28, [#allocation15], %s2993_s9, %s2993_s9, %s2994_s23  }
  0x22   :  { %s156_s24 = sshll.u32 %s4136_s14, 4  ;;  %s2995_s2 = smov [#allocation17]   ;;  %s157_s24 = int_to_ptr.hbm [resolvable:$true] %s156_s24 }
  0x23   :  { %s158_s11 = sshll.u32 %s2995_s2, 4  ;;  %s4155_s0 = sld [smem:[#allocation30_spill]]  ;;  %s159_s11 = int_to_ptr.vmem [resolvable:$true] %s158_s11 }
  0x24   :  { %164 = dma.hbm_to_vmem [thread:$0]  %s157_s24, 48, %s159_s11, [#allocation18], %s2990_s21, %s2990_s21, %s2991_s20  }
  0x25   :  { %s2996_s25 = smov [#allocation2]   ;;  %s4156_s28 = sld [smem:[#allocation32_spill]] }
  0x26   :  { %s44_s3 = sshll.u32 %s2996_s25, 4  ;;  %s88_s30 = sshll.u32 %s4128_s6, 4  ;;  %s45_s3 = int_to_ptr.vmem [resolvable:$true] %s44_s3  ;;  %s89_s30 = int_to_ptr.hbm [resolvable:$true] %s88_s30 }
  0x27   :  { %s2997_s1 = smov [#allocation7]   ;;  %s2998_s24 = smov [#allocation10]  }
  0x28   :  { %s68_s2 = sshll.u32 %s2997_s1, 4  ;;  %s90_s11 = sshll.u32 %s2998_s24, 4  ;;  %s69_s2 = int_to_ptr.vmem [resolvable:$true] %s68_s2  ;;  %s91_s11 = int_to_ptr.vmem [resolvable:$true] %s90_s11 }
  0x29   :  { %s42_s5 = sshll.u32 %s4155_s0, 4  ;;  %s115_s0 = sshll.u32 %s4132_s10, 4  ;;  %s43_s5 = int_to_ptr.hbm [resolvable:$true] %s42_s5  ;;  %s116_s0 = int_to_ptr.hbm [resolvable:$true] %s115_s0 }
  0x2a   :  { %47 = dma.hbm_to_vmem [thread:$0]  %s43_s5, 16, %s45_s3, [#allocation3]  }
  0x2b   :  { %s66_s9 = sshll.u32 %s4156_s28, 4  ;;  %s143_s3 = sshll.u32 %s4135_s13, 4  ;;  %s67_s9 = int_to_ptr.hbm [resolvable:$true] %s66_s9  ;;  %s144_s3 = int_to_ptr.hbm [resolvable:$true] %s143_s3 }
  0x2c   :  { %71 = dma.hbm_to_vmem [thread:$0]  %s67_s9, 16, %s69_s2, [#allocation6]  }
  0x2d   :  { %93 = dma.hbm_to_vmem [thread:$0]  %s89_s30, 16, %s91_s11, [#allocation9]  }
  0x2e   :  { %s2999_s4 = smov [#allocation13]   ;;  %s3000_s27 = smov [#allocation16]  }
  0x2f   :  { %s117_s6 = sshll.u32 %s2999_s4, 4  ;;  %s145_s28 = sshll.u32 %s3000_s27, 4  ;;  %s118_s6 = int_to_ptr.vmem [resolvable:$true] %s117_s6  ;;  %s146_s28 = int_to_ptr.vmem [resolvable:$true] %s145_s28 }
  0x30   :  { %123 = dma.hbm_to_vmem [thread:$0]  %s116_s0, 48, %s118_s6, [#allocation12], %s2990_s21, %s2990_s21, %s2991_s20  }
  0x31   :  { %s169_s10 = sshll.u32 %s4137_s15, 4  ;;  %s4157_s23 = smov 128   ;;  %s170_s10 = int_to_ptr.hbm [resolvable:$true] %s169_s10 }
  0x32   :  { %151 = dma.hbm_to_vmem [thread:$0]  %s144_s3, 24576, %s146_s28, [#allocation15], %s4157_s23, %s4157_s23, %s2987_s22  }
  0x33   :  { %s3001_s13 = smov [#allocation19]  }
  0x34   :  { %s171_s30 = sshll.u32 %s3001_s13, 4  ;;  %s172_s30 = int_to_ptr.vmem [resolvable:$true] %s171_s30 }
  0x35   :  { %177 = dma.hbm_to_vmem [thread:$0]  %s170_s10, 48, %s172_s30, [#allocation18], %s2990_s21, %s2990_s21, %s2991_s20  }
  0x36   :  { %2971 = dma.done.wait [#allocation3], 16  }
  0x37   :  { %2972 = vsyncadd [#allocation3], 4294967280 }
  0x38   :  { %2973 = dma.done.wait [#allocation6], 1040  }
  0x39   :  { %2974 = vsyncadd [#allocation6], 4294966256 }
  0x3a   :  { %2975 = dma.done.wait [#allocation9], 32  }
  0x3b   :  { %2976 = vsyncadd [#allocation9], 4294967264 }
  0x3c   :  { %2977 = dma.done.wait [#allocation12], 96  }
  0x3d   :  { %2978 = vsyncadd [#allocation12], 4294967200 }
  0x3e   :  { %2979 = dma.done.wait [#allocation15], 49152  }
  0x3f   :  { %2980 = vsyncadd [#allocation15], 4294918144 }
  0x40   :  { %2981 = dma.done.wait [#allocation18], 96  }
  0x41   :  { %2982 = vsyncadd [#allocation18], 4294967200  ;;  %vm242_vm0 = vcmask 1043456   ;;  %vm238_vm1 = vcmask 31744   ;;  %s4158_s1 = sld [smem:[#allocation29_spill]]  ;;  %v317_v8 = vld [vmem:[#allocation5 + $0x38] sm:$0xff] }
  0x42   :  { %s4159_s21 = sld [smem:[#allocation28_spill]]  ;;  %v2612_v2 = vld [vmem:[#allocation2] ss:$0 sm:$0xff]  ;;  %334 = vmatpush.msra.mxu1 %v317_v8  ;;  %v316_v11 = vld [vmem:[#allocation5 + $0x30] sm:$0xff]  ;;  %v315_v14 = vld [vmem:[#allocation5 + $0x28] sm:$0xff]  ;;  %vm322_vm6 = vcmask 523264  }
  0x43   :  { %v314_v17 = vld [vmem:[#allocation5 + $0x20] sm:$0xff]  ;;  %v313_v18 = vld [vmem:[#allocation5 + $0x18] sm:$0xff]  ;;  %v312_v20 = vld [vmem:[#allocation5 + $0x10] sm:$0xff]  ;;  %v3002_v57 = vmov 128.0   ;;  %s3003_s24 = smov [#allocation20]  }
  0x44   :  { %335 = vmatpush.msra.mxu1 %v316_v11  ;;  %v311_v23 = vld [vmem:[#allocation5 + $0x8] sm:$0xff]  ;;  %v310_v25 = vld [vmem:[#allocation5] sm:$0xff]  ;;  %v400_v56 = vld [vmem:[%s4129_s7 + $0x78] sm:$0xff]  ;;  %s2518_s11 = sshll.u32 %s3003_s24, 4  ;;  %s2519_s11 = int_to_ptr.vmem [resolvable:$true] %s2518_s11 }
  0x45   :  { %v2613_v52 = vld [vmem:[#allocation7] ss:$0 sm:$0xff]  ;;  %405 = vmatpush.msra.mxu2 %v400_v56  ;;  %v399_v58 = vld [vmem:[%s4129_s7 + $0x70] sm:$0xff]  ;;  %v398_v59 = vld [vmem:[%s4129_s7 + $0x68] sm:$0xff] }
  0x46   :  { %336 = vmatpush.msra.mxu1 %v315_v14  ;;  %v397_v60 = vld [vmem:[%s4129_s7 + $0x60] sm:$0xff]  ;;  %v396_v62 = vld [vmem:[%s4129_s7 + $0x58] sm:$0xff]  ;;  %v386_v14 = vld [vmem:[%s4129_s7 + $0x8] sm:$0xff] }
  0x47   :  { %v233_v0 = vld [vmem:[%s4158_s1] sm:$0xf]  ;;  %406 = vmatpush.msra.mxu2 %v399_v58  ;;  %v502_v56 = vld [vmem:[#allocation14 + $0x160] sm:$0xff] }
  0x48   :  { %v232_v1 = vld [vmem:[%s4159_s21] sm:$0xff]  ;;  %2535 = vmatpush.msk.msra.mxu0 %vm242_vm0, %v233_v0  ;;  %337 = vmatpush.msra.mxu1 %v314_v17  ;;  %v395_v0 = vld [vmem:[%s4129_s7 + $0x50] sm:$0xff]  ;;  %s4162_s21 = sld [smem:[#allocation34_spill]] }
  0x49   :  { %2536 = vmatmul.msk.f32.vlgmr.msra.gmra.mxu0 %vm238_vm1, %v232_v1  ;;  %407 = vmatpush.msra.mxu2 %v398_v59  ;;  %v394_v1 = vld [vmem:[%s4129_s7 + $0x48] sm:$0xff]  ;;  %v389_v8 = vld [vmem:[%s4129_s7 + $0x20] sm:$0xff] }
  0x4a   :  { %338 = vmatpush.msra.mxu1 %v313_v18  ;;  %v504_v58 = vld [vmem:[#allocation14 + $0x170] sm:$0xff]  ;;  %v505_v59 = vld [vmem:[#allocation14 + $0x178] sm:$0xff] }
  0x4b   :  { %408 = vmatpush.msra.mxu2 %v397_v60  ;;  %v498_v60 = vld [vmem:[#allocation14 + $0x140] sm:$0xff] }
  0x4c   :  { %339 = vmatpush.msra.mxu1 %v312_v20 }
  0x4d   :  { %409 = vmatpush.msra.mxu2 %v396_v62  ;;  %v500_v62 = vld [vmem:[#allocation14 + $0x150] sm:$0xff] }
  0x4e   :  { %340 = vmatpush.msra.mxu1 %v311_v23 }
  0x4f   :  { %410 = vmatpush.msra.mxu2 %v395_v0  ;;  %v494_v0 = vld [vmem:[#allocation14 + $0x120] sm:$0xff] }
  0x50   :  { %341 = vmatpush.msra.mxu1 %v310_v25 }
  0x51   :  { %411 = vmatpush.msra.mxu2 %v394_v1  ;;  %v495_v1 = vld [vmem:[#allocation14 + $0x128] sm:$0xff] }
  0xc6   :  { %v263_v3 = vpop.f32.mrf.mxu0 }
  0xc7   :  { %v264_v4 = vadd.f32 %v2612_v2, %v263_v3  ;;  %v393_v3 = vld [vmem:[%s4129_s7 + $0x40] sm:$0xff] }
  0xc8   :  { %412 = vmatpush.msra.mxu2 %v393_v3  ;;  %v497_v3 = vld [vmem:[#allocation14 + $0x138] sm:$0xff] }
  0xc9   :  { %v267_v5 = vmul.f32 0.70710677, %v264_v4  ;;  %v266_v49 = vmul.f32 0.5, %v264_v4  ;;  %v392_v4 = vld [vmem:[%s4129_s7 + $0x38] sm:$0xff] }
  0xca   :  { %413 = vmatpush.msra.mxu2 %v392_v4  ;;  %v490_v4 = vld [vmem:[#allocation14 + $0x100] sm:$0xff] }
  0xcb   :  { %v268_v6 = vmul.f32 %v267_v5, %v267_v5 }
  0xcd   :  { %v269_v7 = vmin.f32 %v268_v6, 16.0  ;;  %v391_v6 = vld [vmem:[%s4129_s7 + $0x30] sm:$0xff] }
  0xce   :  { %414 = vmatpush.msra.mxu2 %v391_v6  ;;  %v492_v6 = vld [vmem:[#allocation14 + $0x110] sm:$0xff] }
  0xcf   :  { %v270_v9 = vmul.f32 2.1237322e-06, %v269_v7  ;;  %v281_v10 = vmul.f32 3.8918573e-05, %v269_v7 }
  0xd1   :  { %v271_v12 = vadd.f32 0.00028619796, %v270_v9  ;;  %v282_v13 = vadd.f32 0.001143296, %v281_v10  ;;  %v388_v10 = vld [vmem:[%s4129_s7 + $0x18] sm:$0xff] }
  0xd3   :  { %v272_v15 = vmul.f32 %v271_v12, %v269_v7  ;;  %v283_v16 = vmul.f32 %v282_v13, %v269_v7  ;;  %v387_v12 = vld [vmem:[%s4129_s7 + $0x10] sm:$0xff] }
  0xd5   :  { %v284_v19 = vadd.f32 0.014752088, %v283_v16  ;;  %v273_v21 = vadd.f32 0.0036580483, %v272_v15  ;;  %v385_v15 = vld [vmem:[%s4129_s7] sm:$0xff] }
  0xd7   :  { %v285_v22 = vmul.f32 %v284_v19, %v269_v7  ;;  %v274_v26 = vmul.f32 %v273_v21, %v269_v7 }
  0xd9   :  { %v286_v24 = vadd.f32 0.112945676, %v285_v22  ;;  %v275_v29 = vadd.f32 0.05243302, %v274_v26 }
  0xdb   :  { %v287_v27 = vmul.f32 %v286_v24, %v269_v7  ;;  %v276_v32 = vmul.f32 %v275_v29, %v269_v7  ;;  %v2614_v29 = vld [vmem:[#allocation8] ss:$0 sm:$0xff] }
  0xdd   :  { %v288_v28 = vadd.f32 0.4994258, %v287_v27  ;;  %v277_v33 = vadd.f32 0.18741608, %v276_v32  ;;  %v2615_v32 = vld [vmem:[#allocation10] ss:$0 sm:$0xff] }
  0xdf   :  { %v289_v30 = vmul.f32 %v288_v28, %v269_v7  ;;  %v278_v35 = vmul.f32 %v277_v33, %v269_v7  ;;  %v390_v7 = vld [vmem:[%s4129_s7 + $0x28] sm:$0xff] }
  0xe0   :  { %415 = vmatpush.msra.mxu2 %v390_v7  ;;  %v493_v7 = vld [vmem:[#allocation14 + $0x118] sm:$0xff] }
  0xe1   :  { %v290_v31 = vadd.f32 1.0, %v289_v30  ;;  %v279_v39 = vadd.f32 1.1283791, %v278_v35  ;;  %v2616_v35 = vld [vmem:[%s4130_s8] ss:$0 sm:$0xff] }
  0xe2   :  { %416 = vmatpush.msra.mxu2 %v389_v8  ;;  %v486_v8 = vld [vmem:[#allocation14 + $0xe0] sm:$0xff] }
  0xe3   :  { %2635 = vrcp.f32 %v290_v31  ;;  %v302_v38 = vand.u32 2147483648, %v290_v31  ;;  %v300_v41 = vand.u32 2147483647, %v290_v31  ;;  %vm296_vm3 = vweird.f32 %v290_v31 }
  0xe4   :  { %v280_v44 = vmul.f32 %v279_v39, %v267_v5  ;;  %2637 = vrcp.f32 %v3002_v57  ;;  %417 = vmatpush.msra.mxu2 %v388_v10  ;;  %v503_v57 = vld [vmem:[#allocation14 + $0x168] sm:$0xff]  ;;  %v488_v10 = vld [vmem:[#allocation14 + $0xf0] sm:$0xff] }
  0xe5   :  { %v303_v43 = vor.u32 1.1754944e-38, %v302_v38  ;;  %vm301_vm5 = vcmp.eq.f32.partialorder %v300_v41, 8.507059e+37  ;;  %v519_v41 = vld [vmem:[#allocation14 + $0x1e8] sm:$0xff] }
  0xe6   :  { %418 = vmatpush.msra.mxu2 %v387_v12  ;;  %552 = vmatpush.msrb.mxu0 %v519_v41  ;;  %v482_v12 = vld [vmem:[#allocation14 + $0xc0] sm:$0xff]  ;;  %v459_v41 = vld [vmem:[#allocation14 + $0x8] sm:$0xff] }
  0xe8   :  { %419 = vmatpush.msra.mxu2 %v386_v14  ;;  %v483_v14 = vld [vmem:[#allocation14 + $0xc8] sm:$0xff] }
  0xe9   :  { %v2636_v34 = vpop.eup %2635 }
  0xea   :  { %v292_v36 = vmul.f32 %v2636_v34, %v290_v31  ;;  %vm297_vm2 = vweird.f32 %v2636_v34  ;;  %v2638_v61 = vpop.eup %2637  ;;  %420 = vmatpush.msra.mxu2 %v385_v15  ;;  %v484_v15 = vld [vmem:[#allocation14 + $0xd0] sm:$0xff] }
  0xeb   :  { %vm298_vm4 = vmor %vm296_vm3, %vm297_vm2  ;;  %v351_v63 = vmul.f32 128.0, %v2638_v61  ;;  %vm355_vm7 = vweird.f32 %v2638_v61 }
  0xec   :  { %v293_v37 = vsub.f32 1.0, %v292_v36 }
  0xed   :  { %v352_v2 = vsub.f32 1.0, %v351_v63  ;;  %v501_v63 = vld [vmem:[#allocation14 + $0x158] sm:$0xff] }
  0xee   :  { %v294_v40 = vmul.f32 %v2636_v34, %v293_v37 }
  0xef   :  { %v353_v5 = vmul.f32 %v2638_v61, %v352_v2  ;;  %v496_v2 = vld [vmem:[#allocation14 + $0x130] sm:$0xff] }
  0xf0   :  { %v295_v42 = vadd.f32 %v2636_v34, %v294_v40  ;;  %v518_v40 = vld [vmem:[#allocation14 + $0x1e0] sm:$0xff] }
  0xf1   :  { %v354_v9 = vadd.f32 %v2638_v61, %v353_v5  ;;  %532 = vmatpush.msra.mxu3 %v518_v40  ;;  %v491_v5 = vld [vmem:[#allocation14 + $0x108] sm:$0xff] }
  0xf2   :  { %v299_v45 = vsel %vm298_vm4, %v2636_v34, %v295_v42  ;;  %v520_v42 = vld [vmem:[#allocation14 + $0x1f0] sm:$0xff] }
  0xf3   :  { %v304_v46 = vsel %vm301_vm5, %v303_v43, %v299_v45  ;;  %v3219_v13 = vsel %vm355_vm7, %v2638_v61, %v354_v9  ;;  %v521_v43 = vld [vmem:[#allocation14 + $0x1f8] sm:$0xff]  ;;  %572 = vmatpush.msrb.mxu1 %v520_v42  ;;  %v515_v45 = vld [vmem:[#allocation14 + $0x1c8] sm:$0xff]  ;;  %v460_v42 = vld [vmem:[#allocation14 + $0x10] sm:$0xff] }
  0xf4   :  { %v305_v47 = vmul.f32 %v304_v46, %v280_v44  ;;  %592 = vmatpush.msrb.mxu2 %v521_v43  ;;  %v514_v44 = vld [vmem:[#allocation14 + $0x1c0] sm:$0xff]  ;;  %v516_v46 = vld [vmem:[#allocation14 + $0x1d0] sm:$0xff]  ;;  %553 = vmatpush.msrb.mxu0 %v515_v45  ;;  %v499_v61 = vld [vmem:[#allocation14 + $0x148] sm:$0xff] }
  0xf5   :  { %533 = vmatpush.msra.mxu3 %v514_v44  ;;  %573 = vmatpush.msrb.mxu1 %v516_v46  ;;  %v487_v9 = vld [vmem:[#allocation14 + $0xe8] sm:$0xff]  ;;  %v461_v43 = vld [vmem:[#allocation14 + $0x18] sm:$0xff] }
  0xf6   :  { %v2537_v48 = vclamps-f32 %v305_v47, 1.0  ;;  %v517_v47 = vld [vmem:[#allocation14 + $0x1d8] sm:$0xff] }
  0xf7   :  { %593 = vmatpush.msrb.mxu2 %v517_v47 }
  0xf8   :  { %v308_v50 = vadd.f32 1.0, %v2537_v48  ;;  %v510_v48 = vld [vmem:[#allocation14 + $0x1a0] sm:$0xff] }
  0xf9   :  { %534 = vmatpush.msra.mxu3 %v510_v48 }
  0xfa   :  { %v309_v51 = vmul.f32 %v308_v50, %v266_v49  ;;  %v511_v49 = vld [vmem:[#allocation14 + $0x1a8] sm:$0xff]  ;;  %v512_v50 = vld [vmem:[#allocation14 + $0x1b0] sm:$0xff] }
  0xfb   :  { %554 = vmatpush.msrb.mxu0 %v511_v49  ;;  %574 = vmatpush.msrb.mxu1 %v512_v50 }
  0xfc   :  { %2538 = vmatmul.msk.f32.vlgmr.msra.gmra.mxu1 %vm322_vm6, %v309_v51  ;;  %v513_v51 = vld [vmem:[#allocation14 + $0x1b8] sm:$0xff] }
  0xfd   :  { %594 = vmatpush.msrb.mxu2 %v513_v51 }
 0x179   :  { %v343_v53 = vpop.f32.mrf.mxu1 }
 0x17a   :  { %v3172_v54 = vadd.f32 %v2613_v52, %v343_v53  ;;  %v506_v52 = vld [vmem:[#allocation14 + $0x180] sm:$0xff]  ;;  %v507_v53 = vld [vmem:[#allocation14 + $0x188] sm:$0xff] }
 0x17b   :  { %535 = vmatpush.msra.mxu3 %v506_v52  ;;  %555 = vmatpush.msrb.mxu0 %v507_v53 }
 0x17c   :  { %348 = vadd.xlane.f32.xlu0 %v3172_v54  ;;  %v358_v55 = vmul.f32 %v3172_v54, %v3172_v54 }
 0x17d   :  { %536 = vmatpush.msra.mxu3 %v502_v56  ;;  %556 = vmatpush.msrb.mxu0 %v503_v57  ;;  %v2617_v56 = vld [vmem:[#allocation11] ss:$0 sm:$0xff] }
 0x17f   :  { %537 = vmatpush.msra.mxu3 %v498_v60  ;;  %557 = vmatpush.msrb.mxu0 %v499_v61 }
 0x181   :  { %538 = vmatpush.msra.mxu3 %v494_v0  ;;  %558 = vmatpush.msrb.mxu0 %v495_v1 }
 0x183   :  { %539 = vmatpush.msra.mxu3 %v490_v4  ;;  %559 = vmatpush.msrb.mxu0 %v491_v5 }
 0x184   :  { %359 = vadd.xlane.f32.xlu0 %v358_v55  ;;  %v509_v55 = vld [vmem:[#allocation14 + $0x198] sm:$0xff] }
 0x185   :  { %595 = vmatpush.msrb.mxu2 %v509_v55  ;;  %540 = vmatpush.msra.mxu3 %v486_v8 }
 0x186   :  { %560 = vmatpush.msrb.mxu0 %v487_v9 }
 0x187   :  { %596 = vmatpush.msrb.mxu2 %v505_v59  ;;  %541 = vmatpush.msra.mxu3 %v482_v12  ;;  %v2618_v59 = vld [vmem:[#allocation13] ss:$0 sm:$0xff]  ;;  %v834_v12 = vld [vmem:[#allocation16 + $0x170] sm:$0xff] }
 0x188   :  { %561 = vmatpush.msrb.mxu0 %v483_v14 }
 0x189   :  { %597 = vmatpush.msrb.mxu2 %v501_v63 }
 0x18b   :  { %598 = vmatpush.msrb.mxu2 %v497_v3 }
 0x18d   :  { %599 = vmatpush.msrb.mxu2 %v493_v7  ;;  %v835_v7 = vld [vmem:[#allocation16 + $0x178] sm:$0xff] }
 0x1ef   :  { %v349_v11 = vpop.xlane.xlu0 %348 }
 0x1f0   :  { %v357_v16 = vmul.f32 %v3219_v13, %v349_v11  ;;  %v489_v11 = vld [vmem:[#allocation14 + $0xf8] sm:$0xff] }
 0x1f1   :  { %600 = vmatpush.msrb.mxu2 %v489_v11  ;;  %v818_v11 = vld [vmem:[#allocation16 + $0xf0] sm:$0xff] }
 0x1f2   :  { %v362_v18 = vmul.f32 %v357_v16, %v357_v16  ;;  %v364_v28 = vsub.f32 %v3172_v54, %v357_v16  ;;  %v508_v54 = vld [vmem:[#allocation14 + $0x190] sm:$0xff]  ;;  %v485_v16 = vld [vmem:[#allocation14 + $0xd8] sm:$0xff] }
 0x1f3   :  { %575 = vmatpush.msrb.mxu1 %v508_v54  ;;  %601 = vmatpush.msrb.mxu2 %v485_v16 }
 0x1f5   :  { %576 = vmatpush.msrb.mxu1 %v504_v58 }
 0x1f7   :  { %v360_v17 = vpop.xlane.xlu0 %359  ;;  %577 = vmatpush.msrb.mxu1 %v500_v62 }
 0x1f8   :  { %v361_v19 = vmul.f32 %v360_v17, %v3219_v13  ;;  %v478_v17 = vld [vmem:[#allocation14 + $0xa0] sm:$0xff] }
 0x1f9   :  { %578 = vmatpush.msrb.mxu1 %v496_v2  ;;  %542 = vmatpush.msra.mxu3 %v478_v17 }
 0x1fa   :  { %v363_v20 = vsub.f32 %v361_v19, %v362_v18  ;;  %v479_v18 = vld [vmem:[#allocation14 + $0xa8] sm:$0xff]  ;;  %v480_v19 = vld [vmem:[#allocation14 + $0xb0] sm:$0xff] }
 0x1fb   :  { %579 = vmatpush.msrb.mxu1 %v492_v6  ;;  %562 = vmatpush.msrb.mxu0 %v479_v18  ;;  %v819_v6 = vld [vmem:[#allocation16 + $0xf8] sm:$0xff] }
 0x1fc   :  { %v365_v21 = vadd.f32 1e-05, %v363_v20  ;;  %v481_v20 = vld [vmem:[#allocation14 + $0xb8] sm:$0xff] }
 0x1fd   :  { %580 = vmatpush.msrb.mxu1 %v488_v10  ;;  %602 = vmatpush.msrb.mxu2 %v481_v20  ;;  %v833_v20 = vld [vmem:[#allocation16 + $0x168] sm:$0xff] }
 0x1fe   :  { %2639 = vrsqrt.f32 %v365_v21  ;;  %vm372_vm9 = vweird.f32 %v365_v21 }
 0x1ff   :  { %581 = vmatpush.msrb.mxu1 %v484_v15 }
 0x201   :  { %582 = vmatpush.msrb.mxu1 %v480_v19  ;;  %v817_v19 = vld [vmem:[#allocation16 + $0xe8] sm:$0xff] }
 0x204   :  { %v2640_v22 = vpop.eup %2639 }
 0x205   :  { %v367_v23 = vmul.f32 %v2640_v22, %v365_v21  ;;  %vm373_vm8 = vweird.f32 %v2640_v22  ;;  %v474_v21 = vld [vmem:[#allocation14 + $0x80] sm:$0xff] }
 0x206   :  { %vm374_vm10 = vmor %vm372_vm9, %vm373_vm8  ;;  %543 = vmatpush.msra.mxu3 %v474_v21 }
 0x207   :  { %v368_v24 = vmul.f32 %v2640_v22, %v367_v23  ;;  %v476_v23 = vld [vmem:[#allocation14 + $0x90] sm:$0xff] }
 0x208   :  { %583 = vmatpush.msrb.mxu1 %v476_v23 }
 0x209   :  { %v369_v25 = vmul.f32 0.5, %v368_v24  ;;  %v477_v24 = vld [vmem:[#allocation14 + $0x98] sm:$0xff] }
 0x20a   :  { %603 = vmatpush.msrb.mxu2 %v477_v24 }
 0x20b   :  { %v370_v26 = vsub.f32 1.5, %v369_v25 }
 0x20d   :  { %v371_v27 = vmul.f32 %v2640_v22, %v370_v26  ;;  %v470_v26 = vld [vmem:[#allocation14 + $0x60] sm:$0xff] }
 0x20e   :  { %544 = vmatpush.msra.mxu3 %v470_v26 }
 0x20f   :  { %v375_v30 = vsel %vm374_vm10, %v2640_v22, %v371_v27  ;;  %v475_v22 = vld [vmem:[#allocation14 + $0x88] sm:$0xff] }
 0x210   :  { %v376_v31 = vmul.f32 %v375_v30, %v364_v28  ;;  %563 = vmatpush.msrb.mxu0 %v475_v22  ;;  %v471_v27 = vld [vmem:[#allocation14 + $0x68] sm:$0xff]  ;;  %v472_v28 = vld [vmem:[#allocation14 + $0x70] sm:$0xff]  ;;  %v466_v30 = vld [vmem:[#allocation14 + $0x40] sm:$0xff] }
 0x211   :  { %584 = vmatpush.msrb.mxu1 %v472_v28  ;;  %545 = vmatpush.msra.mxu3 %v466_v30 }
 0x212   :  { %v380_v33 = vmul.f32 %v2614_v29, %v376_v31  ;;  %564 = vmatpush.msrb.mxu0 %v471_v27  ;;  %v473_v29 = vld [vmem:[#allocation14 + $0x78] sm:$0xff]  ;;  %v467_v31 = vld [vmem:[#allocation14 + $0x48] sm:$0xff] }
 0x213   :  { %604 = vmatpush.msrb.mxu2 %v473_v29 }
 0x214   :  { %v384_v34 = vadd.f32 %v2615_v32, %v380_v33  ;;  %v468_v32 = vld [vmem:[#allocation14 + $0x50] sm:$0xff]  ;;  %565 = vmatpush.msrb.mxu0 %v467_v31  ;;  %v469_v33 = vld [vmem:[#allocation14 + $0x58] sm:$0xff]  ;;  %v816_v31 = vld [vmem:[#allocation16 + $0xe0] sm:$0xff] }
 0x215   :  { %585 = vmatpush.msrb.mxu1 %v468_v32  ;;  %605 = vmatpush.msrb.mxu2 %v469_v33 }
 0x216   :  { %421 = vmatmul.f32.vlgmr.msra.gmra.mxu2 %v384_v34 }
 0x299   :  { %v422_v36 = vpop.f32.mrf.mxu2 }
 0x29a   :  { %v423_v37 = vadd.f32 %v2616_v35, %v422_v36  ;;  %v463_v35 = vld [vmem:[#allocation14 + $0x28] sm:$0xff]  ;;  %v464_v36 = vld [vmem:[#allocation14 + $0x30] sm:$0xff] }
 0x29b   :  { %566 = vmatpush.msrb.mxu0 %v463_v35  ;;  %586 = vmatpush.msrb.mxu1 %v464_v36 }
 0x29c   :  { %v3233_v38 = vadd.f32 %v423_v37, %v384_v34  ;;  %v462_v34 = vld [vmem:[#allocation14 + $0x20] sm:$0xff]  ;;  %v465_v37 = vld [vmem:[#allocation14 + $0x38] sm:$0xff] }
 0x29d   :  { %546 = vmatpush.msra.mxu3 %v462_v34  ;;  %606 = vmatpush.msrb.mxu2 %v465_v37 }
 0x29e   :  { %428 = vadd.xlane.f32.xlu1 %v3233_v38  ;;  %v431_v39 = vmul.f32 %v3233_v38, %v3233_v38  ;;  %567 = vmatpush.msrb.mxu0 %v459_v41  ;;  %v802_v41 = vld [vmem:[#allocation16 + $0x70] sm:$0xff] }
 0x29f   :  { %587 = vmatpush.msrb.mxu1 %v460_v42  ;;  %607 = vmatpush.msrb.mxu2 %v461_v43 }
 0x2a0   :  { %876 = vmatpush.msra.mxu0 %v819_v6  ;;  %v829_v6 = vld [vmem:[#allocation16 + $0x148] sm:$0xff] }
 0x2a1   :  { %896 = vmatpush.msra.mxu1 %v835_v7  ;;  %v848_v7 = vld [vmem:[#allocation16 + $0x1e0] sm:$0xff] }
 0x2a2   :  { %877 = vmatpush.msra.mxu0 %v818_v11 }
 0x2a3   :  { %897 = vmatpush.msra.mxu1 %v834_v12 }
 0x2a4   :  { %878 = vmatpush.msra.mxu0 %v817_v19 }
 0x2a5   :  { %898 = vmatpush.msra.mxu1 %v833_v20 }
 0x2a6   :  { %432 = vadd.xlane.f32.xlu1 %v431_v39  ;;  %v458_v39 = vld [vmem:[#allocation14] sm:$0xff]  ;;  %879 = vmatpush.msra.mxu0 %v816_v31  ;;  %v847_v31 = vld [vmem:[#allocation16 + $0x1d8] sm:$0xff] }
 0x2a7   :  { %547 = vmatpush.msra.mxu3 %v458_v39  ;;  %v832_v39 = vld [vmem:[#allocation16 + $0x160] sm:$0xff] }
 0x2a8   :  { %899 = vmatpush.msra.mxu1 %v832_v39 }
 0x311   :  { %v429_v25 = vpop.xlane.xlu1 %428 }
 0x312   :  { %v430_v40 = vmul.f32 %v429_v25, %v3219_v13  ;;  %v803_v25 = vld [vmem:[#allocation16 + $0x78] sm:$0xff] }
 0x313   :  { %856 = vmatpush.msrb.mxu3 %v803_v25  ;;  %v799_v25 = vld [vmem:[#allocation16 + $0x58] sm:$0xff] }
 0x314   :  { %v435_v45 = vmul.f32 %v430_v40, %v430_v40  ;;  %v437_v55 = vsub.f32 %v3233_v38, %v430_v40  ;;  %v522_v38 = vld [vmem:[%s4134_s12] sm:$0xf]  ;;  %v851_v40 = vld [vmem:[#allocation16 + $0x1f8] sm:$0xff] }
 0x315   :  { %v525_v62 = vperm.slane %v522_v38, 1  ;;  %v526_v63 = vperm.slane %v522_v38, 2  ;;  %v524_v5 = vperm.slane %v522_v38, 0  ;;  %v527_v9 = vperm.slane %v522_v38, 3  ;;  %916 = vmatpush.msra.mxu2 %v851_v40  ;;  %857 = vmatpush.msrb.mxu3 %v802_v41  ;;  %v849_v38 = vld [vmem:[#allocation16 + $0x1e8] sm:$0xff]  ;;  %v811_v40 = vld [vmem:[#allocation16 + $0xb8] sm:$0xff] }
 0x316   :  { %v827_v41 = vld [vmem:[#allocation16 + $0x138] sm:$0xff] }
 0x319   :  { %v433_v44 = vpop.xlane.xlu1 %432 }
 0x31a   :  { %v434_v46 = vmul.f32 %v433_v44, %v3219_v13 }
 0x31c   :  { %v436_v47 = vsub.f32 %v434_v46, %v435_v45  ;;  %v815_v46 = vld [vmem:[#allocation16 + $0xd8] sm:$0xff] }
 0x31d   :  { %880 = vmatpush.msra.mxu0 %v815_v46 }
 0x31e   :  { %v438_v48 = vadd.f32 1e-05, %v436_v47  ;;  %v831_v47 = vld [vmem:[#allocation16 + $0x158] sm:$0xff] }
 0x31f   :  { %900 = vmatpush.msra.mxu1 %v831_v47  ;;  %v846_v47 = vld [vmem:[#allocation16 + $0x1d0] sm:$0xff] }
 0x320   :  { %2641 = vrsqrt.f32 %v438_v48  ;;  %vm445_vm12 = vweird.f32 %v438_v48 }
 0x326   :  { %v2642_v49 = vpop.eup %2641 }
 0x327   :  { %v440_v50 = vmul.f32 %v2642_v49, %v438_v48  ;;  %vm446_vm11 = vweird.f32 %v2642_v49  ;;  %v850_v48 = vld [vmem:[#allocation16 + $0x1f0] sm:$0xff] }
 0x328   :  { %vm447_vm13 = vmor %vm445_vm12, %vm446_vm11  ;;  %917 = vmatpush.msra.mxu2 %v850_v48  ;;  %v797_v48 = vld [vmem:[#allocation16 + $0x48] sm:$0xff] }
 0x329   :  { %v441_v51 = vmul.f32 %v2642_v49, %v440_v50 }
 0x32a   :  { %918 = vmatpush.msra.mxu2 %v849_v38  ;;  %v809_v38 = vld [vmem:[#allocation16 + $0xa8] sm:$0xff] }
 0x32b   :  { %v442_v52 = vmul.f32 0.5, %v441_v51  ;;  %v801_v51 = vld [vmem:[#allocation16 + $0x68] sm:$0xff] }
 0x32c   :  { %858 = vmatpush.msrb.mxu3 %v801_v51  ;;  %919 = vmatpush.msra.mxu2 %v848_v7  ;;  %v826_v51 = vld [vmem:[#allocation16 + $0x130] sm:$0xff]  ;;  %v824_v7 = vld [vmem:[#allocation16 + $0x120] sm:$0xff] }
 0x32d   :  { %v443_v53 = vsub.f32 1.5, %v442_v52  ;;  %v814_v52 = vld [vmem:[#allocation16 + $0xd0] sm:$0xff] }
 0x32e   :  { %881 = vmatpush.msra.mxu0 %v814_v52  ;;  %920 = vmatpush.msra.mxu2 %v847_v31  ;;  %v845_v52 = vld [vmem:[#allocation16 + $0x1c8] sm:$0xff]  ;;  %v792_v31 = vld [vmem:[#allocation16 + $0x20] sm:$0xff] }
 0x32f   :  { %v444_v54 = vmul.f32 %v2642_v49, %v443_v53 }
 0x330   :  { %921 = vmatpush.msra.mxu2 %v846_v47 }
 0x331   :  { %v448_v57 = vsel %vm447_vm13, %v2642_v49, %v444_v54 }
 0x332   :  { %v449_v58 = vmul.f32 %v448_v57, %v437_v55  ;;  %922 = vmatpush.msra.mxu2 %v845_v52 }
 0x334   :  { %v453_v60 = vmul.f32 %v2617_v56, %v449_v58 }
 0x336   :  { %v3241_v61 = vadd.f32 %v2618_v59, %v453_v60  ;;  %v830_v60 = vld [vmem:[#allocation16 + $0x150] sm:$0xff] }
 0x337   :  { %901 = vmatpush.msra.mxu1 %v830_v60 }
 0x338   :  { %548 = vmatmul.f32.vlgmr.msra.gmra.mxu3 %v3241_v61  ;;  %568 = vmatmul.f32.vlgmr.msrb.gmra.mxu0 %v3241_v61 }
 0x339   :  { %588 = vmatmul.f32.vlgmr.msrb.gmra.mxu1 %v3241_v61  ;;  %608 = vmatmul.f32.vlgmr.msrb.gmra.mxu2 %v3241_v61 }
 0x33a   :  { %902 = vmatpush.msra.mxu1 %v829_v6  ;;  %v808_v6 = vld [vmem:[#allocation16 + $0xa0] sm:$0xff] }
 0x3b5   :  { %v569_v0 = vpop.f32.mrf.mxu0 }
 0x3b6   :  { %v3250_v1 = vadd.f32 %v569_v0, %v525_v62  ;;  %v589_v2 = vpop.f32.mrf.mxu1  ;;  %v800_v62 = vld [vmem:[#allocation16 + $0x60] sm:$0xff] }
 0x3b7   :  { %v3252_v3 = vadd.f32 %v589_v2, %v526_v63  ;;  %859 = vmatpush.msrb.mxu3 %v800_v62  ;;  %v825_v62 = vld [vmem:[#allocation16 + $0x128] sm:$0xff] }
 0x3b8   :  { %v3255_v4 = vmul.f32 0.70710677, %v3250_v1 }
 0x3b9   :  { %v3258_v8 = vmul.f32 0.70710677, %v3252_v3  ;;  %860 = vmatpush.msrb.mxu3 %v799_v25  ;;  %v806_v25 = vld [vmem:[#allocation16 + $0x90] sm:$0xff] }
 0x3ba   :  { %v660_v10 = vmul.f32 %v3255_v4, %v3255_v4 }
 0x3bb   :  { %v700_v14 = vmul.f32 %v3258_v8, %v3258_v8  ;;  %v549_v15 = vpop.f32.mrf.mxu3 }
 0x3bc   :  { %v3264_v16 = vmin.f32 %v660_v10, 16.0  ;;  %v3266_v17 = vadd.f32 %v549_v15, %v524_v5  ;;  %v609_v18 = vpop.f32.mrf.mxu2  ;;  %v813_v5 = vld [vmem:[#allocation16 + $0xc8] sm:$0xff] }
 0x3bd   :  { %v3268_v21 = vmin.f32 %v700_v14, 16.0  ;;  %v3270_v22 = vadd.f32 %v609_v18, %v527_v9  ;;  %882 = vmatpush.msra.mxu0 %v813_v5  ;;  %v795_v5 = vld [vmem:[#allocation16 + $0x38] sm:$0xff] }
 0x3be   :  { %v662_v23 = vmul.f32 2.1237322e-06, %v3264_v16  ;;  %v673_v24 = vmul.f32 3.8918573e-05, %v3264_v16  ;;  %v3277_v28 = vmul.f32 0.70710677, %v3266_v17 }
 0x3bf   :  { %v702_v26 = vmul.f32 2.1237322e-06, %v3268_v21  ;;  %v713_v27 = vmul.f32 3.8918573e-05, %v3268_v21  ;;  %v3282_v35 = vmul.f32 0.70710677, %v3270_v22 }
 0x3c0   :  { %v663_v29 = vadd.f32 0.00028619796, %v662_v23  ;;  %v674_v30 = vadd.f32 0.001143296, %v673_v24  ;;  %v620_v34 = vmul.f32 %v3277_v28, %v3277_v28 }
 0x3c1   :  { %v703_v32 = vadd.f32 0.00028619796, %v702_v26  ;;  %v714_v33 = vadd.f32 0.001143296, %v713_v27  ;;  %v740_v45 = vmul.f32 %v3282_v35, %v3282_v35  ;;  %v812_v26 = vld [vmem:[#allocation16 + $0xc0] sm:$0xff] }
 0x3c2   :  { %v664_v36 = vmul.f32 %v663_v29, %v3264_v16  ;;  %v675_v37 = vmul.f32 %v674_v30, %v3264_v16  ;;  %v3288_v44 = vmin.f32 %v620_v34, 16.0  ;;  %v828_v27 = vld [vmem:[#allocation16 + $0x140] sm:$0xff]  ;;  %883 = vmatpush.msra.mxu0 %v812_v26 }
 0x3c3   :  { %v704_v42 = vmul.f32 %v703_v32, %v3268_v21  ;;  %v715_v43 = vmul.f32 %v714_v33, %v3268_v21  ;;  %v3296_v59 = vmin.f32 %v740_v45, 16.0  ;;  %v798_v32 = vld [vmem:[#allocation16 + $0x50] sm:$0xff]  ;;  %903 = vmatpush.msra.mxu1 %v828_v27 }
 0x3c4   :  { %v665_v49 = vadd.f32 0.0036580483, %v664_v36  ;;  %v676_v50 = vadd.f32 0.014752088, %v675_v37  ;;  %v622_v55 = vmul.f32 2.1237322e-06, %v3288_v44  ;;  %861 = vmatpush.msrb.mxu3 %v798_v32  ;;  %884 = vmatpush.msra.mxu0 %v811_v40 }
 0x3c5   :  { %v705_v53 = vadd.f32 0.0036580483, %v704_v42  ;;  %v716_v54 = vadd.f32 0.014752088, %v715_v43  ;;  %v633_v58 = vmul.f32 3.8918573e-05, %v3288_v44  ;;  %904 = vmatpush.msra.mxu1 %v827_v41 }
 0x3c6   :  { %v666_v56 = vmul.f32 %v665_v49, %v3264_v16  ;;  %v677_v57 = vmul.f32 %v676_v50, %v3264_v16  ;;  %v623_v2 = vadd.f32 0.00028619796, %v622_v55  ;;  %v742_v18 = vmul.f32 2.1237322e-06, %v3296_v59  ;;  %v810_v49 = vld [vmem:[#allocation16 + $0xb0] sm:$0xff]  ;;  %862 = vmatpush.msrb.mxu3 %v797_v48  ;;  %v796_v55 = vld [vmem:[#allocation16 + $0x40] sm:$0xff] }
 0x3c7   :  { %v706_v63 = vmul.f32 %v705_v53, %v3268_v21  ;;  %v717_v0 = vmul.f32 %v716_v54, %v3268_v21  ;;  %v634_v11 = vadd.f32 0.001143296, %v633_v58  ;;  %v753_v24 = vmul.f32 3.8918573e-05, %v3296_v59  ;;  %885 = vmatpush.msra.mxu0 %v810_v49  ;;  %905 = vmatpush.msra.mxu1 %v826_v51  ;;  %v791_v40 = vld [vmem:[#allocation16 + $0x18] sm:$0xff]  ;;  %v804_v41 = vld [vmem:[#allocation16 + $0x80] sm:$0xff] }
 0x3c8   :  { %v667_v9 = vadd.f32 0.05243302, %v666_v56  ;;  %v678_v10 = vadd.f32 0.112945676, %v677_v57  ;;  %v624_v15 = vmul.f32 %v623_v2, %v3288_v44  ;;  %v743_v36 = vadd.f32 0.00028619796, %v742_v18  ;;  %863 = vmatpush.msrb.mxu3 %v796_v55 }
 0x3c9   :  { %v707_v12 = vadd.f32 0.05243302, %v706_v63  ;;  %v718_v14 = vadd.f32 0.112945676, %v717_v0  ;;  %v635_v23 = vmul.f32 %v634_v11, %v3288_v44  ;;  %v754_v46 = vadd.f32 0.001143296, %v753_v24  ;;  %886 = vmatpush.msra.mxu0 %v809_v38  ;;  %906 = vmatpush.msra.mxu1 %v825_v62 }
 0x3ca   :  { %v668_v19 = vmul.f32 %v667_v9, %v3264_v16  ;;  %v679_v20 = vmul.f32 %v678_v10, %v3264_v16  ;;  %v625_v30 = vadd.f32 0.0036580483, %v624_v15  ;;  %v744_v58 = vmul.f32 %v743_v36, %v3296_v59  ;;  %v844_v63 = vld [vmem:[#allocation16 + $0x1c0] sm:$0xff]  ;;  %864 = vmatpush.msrb.mxu3 %v795_v5  ;;  %v843_v9 = vld [vmem:[#allocation16 + $0x1b8] sm:$0xff]  ;;  %v794_v10 = vld [vmem:[#allocation16 + $0x30] sm:$0xff] }
 0x3cb   :  { %v719_v29 = vmul.f32 %v718_v14, %v3268_v21  ;;  %v636_v34 = vadd.f32 0.014752088, %v635_v23  ;;  %v708_v43 = vmul.f32 %v707_v12, %v3268_v21  ;;  %v755_v60 = vmul.f32 %v754_v46, %v3296_v59  ;;  %923 = vmatpush.msra.mxu2 %v844_v63  ;;  %v807_v11 = vld [vmem:[#allocation16 + $0x98] sm:$0xff]  ;;  %887 = vmatpush.msra.mxu0 %v808_v6  ;;  %v842_v23 = vld [vmem:[#allocation16 + $0x1b0] sm:$0xff]  ;;  %v793_v24 = vld [vmem:[#allocation16 + $0x28] sm:$0xff] }
 0x3cc   :  { %v680_v33 = vadd.f32 0.4994258, %v679_v20  ;;  %v669_v37 = vadd.f32 0.18741608, %v668_v19  ;;  %v626_v54 = vmul.f32 %v625_v30, %v3288_v44  ;;  %907 = vmatpush.msra.mxu1 %v824_v7  ;;  %v745_v14 = vadd.f32 0.0036580483, %v744_v58  ;;  %865 = vmatpush.msrb.mxu3 %v794_v10 }
 0x3cd   :  { %v720_v39 = vadd.f32 0.4994258, %v719_v29  ;;  %v637_v45 = vmul.f32 %v636_v34, %v3288_v44  ;;  %v709_v2 = vadd.f32 0.18741608, %v708_v43  ;;  %v756_v15 = vadd.f32 0.014752088, %v755_v60  ;;  %924 = vmatpush.msra.mxu2 %v843_v9  ;;  %888 = vmatpush.msra.mxu0 %v807_v11 }
 0x3ce   :  { %v681_v42 = vmul.f32 %v680_v33, %v3264_v16  ;;  %v670_v0 = vmul.f32 %v669_v37, %v3264_v16  ;;  %v627_v12 = vadd.f32 0.05243302, %v626_v54  ;;  %v823_v18 = vld [vmem:[#allocation16 + $0x118] sm:$0xff]  ;;  %866 = vmatpush.msrb.mxu3 %v793_v24  ;;  %v822_v29 = vld [vmem:[#allocation16 + $0x110] sm:$0xff]  ;;  %v841_v30 = vld [vmem:[#allocation16 + $0x1a8] sm:$0xff]  ;;  %v746_v54 = vmul.f32 %v745_v14, %v3296_v59 }
 0x3cf   :  { %v721_v50 = vmul.f32 %v720_v39, %v3268_v21  ;;  %v638_v57 = vadd.f32 0.112945676, %v637_v45  ;;  %v710_v20 = vmul.f32 %v709_v2, %v3268_v21  ;;  %908 = vmatpush.msra.mxu1 %v823_v18  ;;  %v757_v27 = vmul.f32 %v756_v15, %v3296_v59  ;;  %925 = vmatpush.msra.mxu2 %v842_v23  ;;  %v805_v33 = vld [vmem:[#allocation16 + $0x88] sm:$0xff]  ;;  %v840_v21 = vld [vmem:[#allocation16 + $0x1a0] sm:$0xff]  ;;  %v839_v48 = vld [vmem:[#allocation16 + $0x198] sm:$0xff] }
 0x3d0   :  { %v3311_v53 = vadd.f32 1.0, %v681_v42  ;;  %v671_v19 = vadd.f32 1.1283791, %v670_v0  ;;  %889 = vmatpush.msra.mxu0 %v806_v25  ;;  %v821_v34 = vld [vmem:[#allocation16 + $0x108] sm:$0xff]  ;;  %867 = vmatpush.msrb.mxu3 %v792_v31  ;;  %v820_v42 = vld [vmem:[#allocation16 + $0x100] sm:$0xff]  ;;  %v628_v46 = vmul.f32 %v627_v12, %v3288_v44  ;;  %v790_v49 = vld [vmem:[#allocation16 + $0x10] sm:$0xff] }
 0x3d1   :  { %v3314_v56 = vadd.f32 1.0, %v721_v50  ;;  %v639_v16 = vmul.f32 %v638_v57, %v3288_v44  ;;  %909 = vmatpush.msra.mxu1 %v822_v29  ;;  %926 = vmatpush.msra.mxu2 %v841_v30  ;;  %v711_v43 = vadd.f32 1.1283791, %v710_v20  ;;  %v758_v47 = vadd.f32 0.112945676, %v757_v27  ;;  %v838_v38 = vld [vmem:[#allocation16 + $0x190] sm:$0xff] }
 0x3d2   :  { %2643 = vrcp.f32 %v3311_v53  ;;  %890 = vmatpush.msra.mxu0 %v805_v33  ;;  %v672_v50 = vmul.f32 %v671_v19, %v3255_v4  ;;  %868 = vmatpush.msrb.mxu3 %v791_v40  ;;  %v692_v55 = vand.u32 2147483647, %v3311_v53  ;;  %v694_v57 = vand.u32 2147483648, %v3311_v53  ;;  %v789_v62 = vld [vmem:[#allocation16 + $0x8] sm:$0xff]  ;;  %v788_v7 = vld [vmem:[#allocation16] sm:$0xff] }
 0x3d3   :  { %2645 = vrcp.f32 %v3314_v56  ;;  %v640_v26 = vadd.f32 0.4994258, %v639_v16  ;;  %910 = vmatpush.msra.mxu1 %v821_v34  ;;  %927 = vmatpush.msra.mxu2 %v840_v21  ;;  %v759_v60 = vmul.f32 %v758_v47, %v3296_v59  ;;  %v734_v63 = vand.u32 2147483648, %v3314_v56  ;;  %v837_v6 = vld [vmem:[#allocation16 + $0x188] sm:$0xff]  ;;  %v836_v15 = vld [vmem:[#allocation16 + $0x180] sm:$0xff] }
 0x3d4   :  { %891 = vmatpush.msra.mxu0 %v804_v41  ;;  %869 = vmatpush.msrb.mxu3 %v790_v49  ;;  %v732_v2 = vand.u32 2147483647, %v3314_v56  ;;  %vm688_vm0 = vweird.f32 %v3311_v53  ;;  %v629_v10 = vadd.f32 0.18741608, %v628_v46  ;;  %v747_v11 = vadd.f32 0.05243302, %v746_v54 }
 0x3d5   :  { %v641_v39 = vmul.f32 %v640_v26, %v3288_v44  ;;  %911 = vmatpush.msra.mxu1 %v820_v42  ;;  %928 = vmatpush.msra.mxu2 %v839_v48  ;;  %v760_v5 = vadd.f32 0.4994258, %v759_v60  ;;  %v695_v12 = vor.u32 1.1754944e-38, %v694_v57  ;;  %vm728_vm2 = vweird.f32 %v3314_v56 }
 0x3d6   :  { %870 = vmatpush.msrb.mxu3 %v789_v62  ;;  %vm693_vm3 = vcmp.eq.f32.partialorder %v692_v55, 8.507059e+37  ;;  %v735_v19 = vor.u32 1.1754944e-38, %v734_v63  ;;  %vm733_vm5 = vcmp.eq.f32.partialorder %v732_v2, 8.507059e+37  ;;  %v630_v27 = vmul.f32 %v629_v10, %v3288_v44 }
 0x3d7   :  { %v3335_v52 = vadd.f32 1.0, %v641_v39  ;;  %929 = vmatpush.msra.mxu2 %v838_v38  ;;  %v761_v14 = vmul.f32 %v760_v5, %v3296_v59  ;;  %v748_v29 = vmul.f32 %v747_v11, %v3296_v59  ;;  %v614_v33 = vmul.f32 0.5, %v3252_v3 }
 0x3d8   :  { %v3324_v32 = vpop.eup %2643  ;;  %871 = vmatpush.msrb.mxu3 %v788_v7 }
 0x3d9   :  { %v3326_v36 = vpop.eup %2645  ;;  %v684_v37 = vmul.f32 %v3324_v32, %v3311_v53  ;;  %vm689_vm14 = vweird.f32 %v3324_v32  ;;  %2647 = vrcp.f32 %v3335_v52  ;;  %v712_v53 = vmul.f32 %v711_v43, %v3258_v8  ;;  %930 = vmatpush.msra.mxu2 %v837_v6 }
 0x3da   :  { %v724_v45 = vmul.f32 %v3326_v36, %v3314_v56  ;;  %vm729_vm15 = vweird.f32 %v3326_v36  ;;  %vm690_vm1 = vmor %vm688_vm0, %vm689_vm14  ;;  %v762_v24 = vadd.f32 1.0, %v761_v14  ;;  %v654_v39 = vand.u32 2147483648, %v3335_v52 }
 0x3db   :  { %v685_v51 = vsub.f32 1.0, %v684_v37  ;;  %vm730_vm4 = vmor %vm728_vm2, %vm729_vm15  ;;  %931 = vmatpush.msra.mxu2 %v836_v15  ;;  %v631_v37 = vadd.f32 1.1283791, %v630_v27  ;;  %v749_v40 = vadd.f32 0.18741608, %v748_v29  ;;  %vm648_vm8 = vweird.f32 %v3335_v52  ;;  %v2552_v27 = vld [vmem:[%s4129_s7 + $0xc8] sm:$0xff] }
 0x3dc   :  { %v725_v58 = vsub.f32 1.0, %v724_v45  ;;  %2649 = vrcp.f32 %v762_v24  ;;  %v652_v42 = vand.u32 2147483647, %v3335_v52  ;;  %v774_v57 = vand.u32 2147483648, %v762_v24  ;;  %v2551_v29 = vld [vmem:[%s4129_s7 + $0xc0] sm:$0xff] }
 0x3dd   :  { %v686_v4 = vmul.f32 %v3324_v32, %v685_v51  ;;  %v750_v3 = vmul.f32 %v749_v40, %v3296_v59  ;;  %v632_v49 = vmul.f32 %v631_v37, %v3277_v28  ;;  %v772_v38 = vand.u32 2147483647, %v762_v24 }
 0x3de   :  { %v726_v0 = vmul.f32 %v3326_v36, %v725_v58  ;;  %vm653_vm10 = vcmp.eq.f32.partialorder %v652_v42, 8.507059e+37  ;;  %vm768_vm12 = vweird.f32 %v762_v24  ;;  %v612_v59 = vmul.f32 0.5, %v3266_v17 }
 0x3df   :  { %v687_v9 = vadd.f32 %v3324_v32, %v686_v4  ;;  %v2648_v56 = vpop.eup %2647  ;;  %v751_v58 = vadd.f32 1.1283791, %v750_v3  ;;  %v775_v4 = vor.u32 1.1754944e-38, %v774_v57  ;;  %vm773_vm14 = vcmp.eq.f32.partialorder %v772_v38, 8.507059e+37 }
 0x3e0   :  { %v727_v16 = vadd.f32 %v3326_v36, %v726_v0  ;;  %v644_v30 = vmul.f32 %v2648_v56, %v3335_v52  ;;  %vm649_vm7 = vweird.f32 %v2648_v56 }
 0x3e1   :  { %v691_v18 = vsel %vm690_vm1, %v3324_v32, %v687_v9  ;;  %v613_v32 = vmul.f32 0.5, %v3250_v1  ;;  %vm650_vm9 = vmor %vm648_vm8, %vm649_vm7  ;;  %v655_v1 = vor.u32 1.1754944e-38, %v654_v39  ;;  %v752_v28 = vmul.f32 %v751_v58, %v3282_v35  ;;  %v2544_v39 = vld [vmem:[%s4129_s7 + $0x88] sm:$0xff] }
 0x3e2   :  { %v696_v20 = vsel %vm693_vm3, %v695_v12, %v691_v18  ;;  %v731_v23 = vsel %vm730_vm4, %v3326_v36, %v727_v16  ;;  %v645_v21 = vsub.f32 1.0, %v644_v30  ;;  %v2650_v45 = vpop.eup %2649  ;;  %v615_v9 = vmul.f32 0.5, %v3270_v22  ;;  %v2619_v12 = vld [vmem:[#allocation17] ss:$0 sm:$0xff]  ;;  %v2558_v22 = vld [vmem:[%s4129_s7 + $0xf8] sm:$0xff] }
 0x3e3   :  { %v697_v25 = vmul.f32 %v696_v20, %v672_v50  ;;  %v736_v26 = vsel %vm733_vm5, %v735_v19, %v731_v23  ;;  %v764_v48 = vmul.f32 %v2650_v45, %v762_v24  ;;  %vm769_vm11 = vweird.f32 %v2650_v45  ;;  %991 = vmatpush.msra.mxu3 %v2558_v22  ;;  %v2557_v24 = vld [vmem:[%s4129_s7 + $0xf0] sm:$0xff]  ;;  %v1089_v22 = vld [vmem:[#allocation14 + $0x350] sm:$0xff] }
 0x3e4   :  { %v737_v8 = vmul.f32 %v736_v26, %v712_v53  ;;  %v646_v41 = vmul.f32 %v2648_v56, %v645_v21  ;;  %vm770_vm13 = vmor %vm768_vm12, %vm769_vm11  ;;  %v2553_v26 = vld [vmem:[%s4129_s7 + $0xd0] sm:$0xff] }
 0x3e5   :  { %v2540_v31 = vclamps-f32 %v697_v25, 1.0  ;;  %v765_v54 = vsub.f32 1.0, %v764_v48  ;;  %992 = vmatpush.msra.mxu3 %v2557_v24  ;;  %v2554_v25 = vld [vmem:[%s4129_s7 + $0xd8] sm:$0xff]  ;;  %v1090_v24 = vld [vmem:[#allocation14 + $0x358] sm:$0xff] }
 0x3e6   :  { %v2541_v34 = vclamps-f32 %v737_v8, 1.0  ;;  %v647_v47 = vadd.f32 %v2648_v56, %v646_v41  ;;  %v2550_v8 = vld [vmem:[%s4129_s7 + $0xb8] sm:$0xff]  ;;  %v2543_v41 = vld [vmem:[%s4129_s7 + $0x80] sm:$0xff] }
 0x3e7   :  { %v781_v36 = vadd.f32 1.0, %v2540_v31  ;;  %v766_v60 = vmul.f32 %v2650_v45, %v765_v54  ;;  %v2549_v31 = vld [vmem:[%s4129_s7 + $0xb0] sm:$0xff] }
 0x3e8   :  { %v782_v44 = vadd.f32 1.0, %v2541_v34  ;;  %v651_v50 = vsel %vm650_vm9, %v2648_v56, %v647_v47  ;;  %v2556_v56 = vld [vmem:[%s4129_s7 + $0xe8] sm:$0xff]  ;;  %v2546_v34 = vld [vmem:[%s4129_s7 + $0x98] sm:$0xff] }
 0x3e9   :  { %v785_v43 = vmul.f32 %v781_v36, %v613_v32  ;;  %v656_v51 = vsel %vm653_vm10, %v655_v1, %v651_v50  ;;  %v767_v62 = vadd.f32 %v2650_v45, %v766_v60  ;;  %993 = vmatpush.msra.mxu3 %v2556_v56  ;;  %v2548_v32 = vld [vmem:[%s4129_s7 + $0xa8] sm:$0xff]  ;;  %v2545_v36 = vld [vmem:[%s4129_s7 + $0x90] sm:$0xff]  ;;  %v2622_v60 = vld [vmem:[%s4130_s8 + $0x1] ss:$0 sm:$0xff] }
 0x3ea   :  { %v786_v46 = vmul.f32 %v782_v44, %v614_v33  ;;  %v657_v55 = vmul.f32 %v656_v51, %v632_v49  ;;  %v2547_v33 = vld [vmem:[%s4129_s7 + $0xa0] sm:$0xff]  ;;  %v2620_v50 = vld [vmem:[#allocation19] ss:$0 sm:$0xff] }
 0x3eb   :  { %892 = vmatmul.f32.vlgmr.msra.gmra.mxu0 %v785_v43  ;;  %v771_v0 = vsel %vm770_vm13, %v2650_v45, %v767_v62  ;;  %v1083_v56 = vld [vmem:[#allocation14 + $0x320] sm:$0xff] }
 0x3ec   :  { %912 = vmatmul.f32.vlgmr.msra.gmra.mxu1 %v786_v46  ;;  %v2539_v52 = vclamps-f32 %v657_v55, 1.0  ;;  %v776_v2 = vsel %vm773_vm14, %v775_v4, %v771_v0  ;;  %v2621_v55 = vld [vmem:[%s4138_s16] ss:$0 sm:$0xff]  ;;  %v1107_v4 = vld [vmem:[#allocation14 + $0x3e0] sm:$0xff]  ;;  %v1110_v0 = vld [vmem:[#allocation14 + $0x3f8] sm:$0xff] }
 0x3ed   :  { %v777_v6 = vmul.f32 %v776_v2, %v752_v28  ;;  %v1109_v28 = vld [vmem:[#allocation14 + $0x3f0] sm:$0xff]  ;;  %1122 = vmatpush.msrb.mxu0 %v1107_v4  ;;  %v1103_v2 = vld [vmem:[#allocation14 + $0x3c0] sm:$0xff] }
 0x3ee   :  { %v780_v63 = vadd.f32 1.0, %v2539_v52  ;;  %1162 = vmatpush.msrb.mxu2 %v1109_v28  ;;  %v1054_v28 = vld [vmem:[#allocation14 + $0x238] sm:$0xff] }
 0x3ef   :  { %v2542_v7 = vclamps-f32 %v777_v6, 1.0  ;;  %v1105_v6 = vld [vmem:[#allocation14 + $0x3d0] sm:$0xff]  ;;  %1123 = vmatpush.msrb.mxu0 %v1103_v2  ;;  %v1048_v2 = vld [vmem:[#allocation14 + $0x208] sm:$0xff] }
 0x3f0   :  { %v784_v5 = vmul.f32 %v780_v63, %v612_v59  ;;  %v1108_v63 = vld [vmem:[#allocation14 + $0x3e8] sm:$0xff]  ;;  %1163 = vmatpush.msrb.mxu2 %v1105_v6  ;;  %v1049_v6 = vld [vmem:[#allocation14 + $0x210] sm:$0xff] }
 0x3f1   :  { %v783_v10 = vadd.f32 1.0, %v2542_v7  ;;  %1142 = vmatpush.msrb.mxu1 %v1108_v63  ;;  %v1106_v7 = vld [vmem:[#allocation14 + $0x3d8] sm:$0xff]  ;;  %v1053_v63 = vld [vmem:[#allocation14 + $0x230] sm:$0xff] }
 0x3f2   :  { %872 = vmatmul.f32.vlgmr.msrb.gmra.mxu3 %v784_v5  ;;  %v1104_v5 = vld [vmem:[#allocation14 + $0x3c8] sm:$0xff] }
 0x3f3   :  { %v787_v11 = vmul.f32 %v783_v10, %v615_v9  ;;  %1143 = vmatpush.msrb.mxu1 %v1104_v5  ;;  %v1099_v9 = vld [vmem:[#allocation14 + $0x3a0] sm:$0xff]  ;;  %v1100_v10 = vld [vmem:[#allocation14 + $0x3a8] sm:$0xff] }
 0x3f4   :  { %1124 = vmatpush.msrb.mxu0 %v1099_v9 }
 0x3f5   :  { %932 = vmatmul.f32.vlgmr.msra.gmra.mxu2 %v787_v11  ;;  %v1101_v11 = vld [vmem:[#allocation14 + $0x3b0] sm:$0xff]  ;;  %1144 = vmatpush.msrb.mxu1 %v1100_v10 }
 0x3f6   :  { %1164 = vmatpush.msrb.mxu2 %v1101_v11 }
 0x468   :  { %v893_v14 = vpop.f32.mrf.mxu0 }
 0x469   :  { %v913_v18 = vpop.f32.mrf.mxu1 }
 0x475   :  { %v873_v16 = vpop.f32.mrf.mxu3 }
 0x476   :  { %v874_v17 = vadd.f32 %v2619_v12, %v873_v16  ;;  %v1102_v12 = vld [vmem:[#allocation14 + $0x3b8] sm:$0xff]  ;;  %v1095_v16 = vld [vmem:[#allocation14 + $0x380] sm:$0xff] }
 0x477   :  { %1125 = vmatpush.msrb.mxu0 %v1095_v16 }
 0x478   :  { %v894_v15 = vadd.f32 %v893_v14, %v874_v17  ;;  %v933_v35 = vpop.f32.mrf.mxu2  ;;  %v1096_v17 = vld [vmem:[#allocation14 + $0x388] sm:$0xff]  ;;  %v1097_v14 = vld [vmem:[#allocation14 + $0x390] sm:$0xff] }
 0x479   :  { %1145 = vmatpush.msrb.mxu1 %v1096_v17  ;;  %1165 = vmatpush.msrb.mxu2 %v1097_v14 }
 0x47a   :  { %v914_v53 = vadd.f32 %v913_v18, %v894_v15  ;;  %v1098_v15 = vld [vmem:[#allocation14 + $0x398] sm:$0xff]  ;;  %v1091_v18 = vld [vmem:[#allocation14 + $0x360] sm:$0xff] }
 0x47b   :  { %1126 = vmatpush.msrb.mxu0 %v1091_v18  ;;  %v2623_v18 = vld [vmem:[#allocation11 + $0x1] ss:$0 sm:$0xff] }
 0x47c   :  { %v934_v19 = vadd.f32 %v933_v35, %v914_v53  ;;  %v1092_v53 = vld [vmem:[#allocation14 + $0x368] sm:$0xff]  ;;  %v1093_v35 = vld [vmem:[#allocation14 + $0x370] sm:$0xff] }
 0x47d   :  { %1146 = vmatpush.msrb.mxu1 %v1092_v53  ;;  %1166 = vmatpush.msrb.mxu2 %v1093_v35 }
 0x47e   :  { %v936_v20 = vadd.f32 %v934_v19, %v3241_v61  ;;  %v2555_v61 = vld [vmem:[%s4129_s7 + $0xe0] sm:$0xff]  ;;  %v1094_v19 = vld [vmem:[#allocation14 + $0x378] sm:$0xff] }
 0x47f   :  { %994 = vmatpush.msra.mxu3 %v2555_v61  ;;  %1167 = vmatpush.msrb.mxu2 %v1089_v22  ;;  %v1084_v61 = vld [vmem:[#allocation14 + $0x328] sm:$0xff] }
 0x480   :  { %939 = vadd.xlane.f32.xlu2 %v936_v20  ;;  %v942_v23 = vmul.f32 %v936_v20, %v936_v20 }
 0x481   :  { %995 = vmatpush.msra.mxu3 %v2554_v25  ;;  %v1085_v25 = vld [vmem:[#allocation14 + $0x330] sm:$0xff] }
 0x482   :  { %1168 = vmatpush.msrb.mxu2 %v1085_v25 }
 0x483   :  { %996 = vmatpush.msra.mxu3 %v2553_v26  ;;  %v1086_v26 = vld [vmem:[#allocation14 + $0x338] sm:$0xff] }
 0x485   :  { %997 = vmatpush.msra.mxu3 %v2552_v27  ;;  %v1079_v27 = vld [vmem:[#allocation14 + $0x300] sm:$0xff] }
 0x487   :  { %998 = vmatpush.msra.mxu3 %v2551_v29  ;;  %v1080_v29 = vld [vmem:[#allocation14 + $0x308] sm:$0xff] }
 0x488   :  { %943 = vadd.xlane.f32.xlu2 %v942_v23  ;;  %v1088_v23 = vld [vmem:[#allocation14 + $0x348] sm:$0xff] }
 0x489   :  { %999 = vmatpush.msra.mxu3 %v2550_v8  ;;  %1147 = vmatpush.msrb.mxu1 %v1088_v23  ;;  %v1081_v8 = vld [vmem:[#allocation14 + $0x310] sm:$0xff] }
 0x48a   :  { %1169 = vmatpush.msrb.mxu2 %v1081_v8 }
 0x48b   :  { %1000 = vmatpush.msra.mxu3 %v2549_v31  ;;  %1148 = vmatpush.msrb.mxu1 %v1084_v61  ;;  %v1075_v31 = vld [vmem:[#allocation14 + $0x2e0] sm:$0xff] }
 0x48d   :  { %1001 = vmatpush.msra.mxu3 %v2548_v32  ;;  %1149 = vmatpush.msrb.mxu1 %v1080_v29  ;;  %v1076_v32 = vld [vmem:[#allocation14 + $0x2e8] sm:$0xff] }
 0x48f   :  { %1002 = vmatpush.msra.mxu3 %v2547_v33  ;;  %v1077_v33 = vld [vmem:[#allocation14 + $0x2f0] sm:$0xff]  ;;  %1150 = vmatpush.msrb.mxu1 %v1076_v32  ;;  %v1410_v32 = vld [vmem:[#allocation16 + $0x2f8] sm:$0xff] }
 0x490   :  { %1170 = vmatpush.msrb.mxu2 %v1077_v33 }
 0x491   :  { %1003 = vmatpush.msra.mxu3 %v2546_v34  ;;  %v1078_v34 = vld [vmem:[#allocation14 + $0x2f8] sm:$0xff] }
 0x493   :  { %1004 = vmatpush.msra.mxu3 %v2545_v36  ;;  %v1072_v36 = vld [vmem:[#allocation14 + $0x2c8] sm:$0xff] }
 0x494   :  { %1151 = vmatpush.msrb.mxu1 %v1072_v36  ;;  %v1409_v36 = vld [vmem:[#allocation16 + $0x2f0] sm:$0xff] }
 0x495   :  { %1005 = vmatpush.msra.mxu3 %v2544_v39  ;;  %v1074_v39 = vld [vmem:[#allocation14 + $0x2d8] sm:$0xff] }
 0x497   :  { %1006 = vmatpush.msra.mxu3 %v2543_v41  ;;  %v1069_v41 = vld [vmem:[#allocation14 + $0x2b0] sm:$0xff] }
 0x499   :  { %1182 = vmatpush.msrb.mxu3 %v1110_v0  ;;  %v1047_v0 = vld [vmem:[#allocation14 + $0x200] sm:$0xff] }
 0x49b   :  { %1183 = vmatpush.msrb.mxu3 %v1106_v7  ;;  %v1050_v7 = vld [vmem:[#allocation14 + $0x218] sm:$0xff] }
 0x49d   :  { %1184 = vmatpush.msrb.mxu3 %v1102_v12 }
 0x49f   :  { %1185 = vmatpush.msrb.mxu3 %v1098_v15 }
 0x4a1   :  { %1186 = vmatpush.msrb.mxu3 %v1094_v19  ;;  %v2624_v19 = vld [vmem:[#allocation13 + $0x1] ss:$0 sm:$0xff] }
 0x4a3   :  { %1187 = vmatpush.msrb.mxu3 %v1090_v24 }
 0x4a5   :  { %1188 = vmatpush.msrb.mxu3 %v1086_v26 }
 0x4f3   :  { %v940_v30 = vpop.xlane.xlu2 %939 }
 0x4f4   :  { %v941_v21 = vmul.f32 %v940_v30, %v3219_v13  ;;  %v1082_v30 = vld [vmem:[#allocation14 + $0x318] sm:$0xff] }
 0x4f5   :  { %1189 = vmatpush.msrb.mxu3 %v1082_v30 }
 0x4f6   :  { %v946_v40 = vmul.f32 %v941_v21, %v941_v21  ;;  %v948_v49 = vsub.f32 %v936_v20, %v941_v21  ;;  %v1087_v20 = vld [vmem:[#allocation14 + $0x340] sm:$0xff] }
 0x4f7   :  { %1127 = vmatpush.msrb.mxu0 %v1087_v20  ;;  %1190 = vmatpush.msrb.mxu3 %v1078_v34  ;;  %v1071_v21 = vld [vmem:[#allocation14 + $0x2c0] sm:$0xff] }
 0x4f9   :  { %1128 = vmatpush.msrb.mxu0 %v1083_v56  ;;  %1191 = vmatpush.msrb.mxu3 %v1074_v39 }
 0x4fb   :  { %v944_v37 = vpop.xlane.xlu2 %943  ;;  %1129 = vmatpush.msrb.mxu0 %v1079_v27 }
 0x4fc   :  { %v945_v44 = vmul.f32 %v944_v37, %v3219_v13  ;;  %v1073_v37 = vld [vmem:[#allocation14 + $0x2d0] sm:$0xff] }
 0x4fd   :  { %1130 = vmatpush.msrb.mxu0 %v1075_v31  ;;  %1171 = vmatpush.msrb.mxu2 %v1073_v37  ;;  %v1394_v31 = vld [vmem:[#allocation16 + $0x278] sm:$0xff] }
 0x4fe   :  { %v947_v42 = vsub.f32 %v945_v44, %v946_v40  ;;  %v1067_v40 = vld [vmem:[#allocation14 + $0x2a0] sm:$0xff]  ;;  %v1068_v44 = vld [vmem:[#allocation14 + $0x2a8] sm:$0xff] }
 0x4ff   :  { %1131 = vmatpush.msrb.mxu0 %v1071_v21  ;;  %1152 = vmatpush.msrb.mxu1 %v1068_v44  ;;  %v1393_v21 = vld [vmem:[#allocation16 + $0x270] sm:$0xff] }
 0x500   :  { %v949_v43 = vadd.f32 1e-05, %v947_v42  ;;  %v1070_v42 = vld [vmem:[#allocation14 + $0x2b8] sm:$0xff]  ;;  %1172 = vmatpush.msrb.mxu2 %v1069_v41 }
 0x501   :  { %1132 = vmatpush.msrb.mxu0 %v1067_v40  ;;  %1192 = vmatpush.msrb.mxu3 %v1070_v42 }
 0x502   :  { %2651 = vrsqrt.f32 %v949_v43  ;;  %vm956_vm0 = vweird.f32 %v949_v43 }
 0x508   :  { %v2652_v45 = vpop.eup %2651 }
 0x509   :  { %v951_v46 = vmul.f32 %v2652_v45, %v949_v43  ;;  %vm957_vm15 = vweird.f32 %v2652_v45  ;;  %v1063_v43 = vld [vmem:[#allocation14 + $0x280] sm:$0xff] }
 0x50a   :  { %vm958_vm1 = vmor %vm956_vm0, %vm957_vm15  ;;  %1133 = vmatpush.msrb.mxu0 %v1063_v43  ;;  %v1392_v43 = vld [vmem:[#allocation16 + $0x268] sm:$0xff] }
 0x50b   :  { %v952_v47 = vmul.f32 %v2652_v45, %v951_v46  ;;  %v1065_v46 = vld [vmem:[#allocation14 + $0x290] sm:$0xff] }
 0x50c   :  { %1173 = vmatpush.msrb.mxu2 %v1065_v46 }
 0x50d   :  { %v953_v1 = vmul.f32 0.5, %v952_v47  ;;  %v1066_v47 = vld [vmem:[#allocation14 + $0x298] sm:$0xff] }
 0x50e   :  { %1193 = vmatpush.msrb.mxu3 %v1066_v47 }
 0x50f   :  { %v954_v3 = vsub.f32 1.5, %v953_v1  ;;  %v1059_v1 = vld [vmem:[#allocation14 + $0x260] sm:$0xff] }
 0x510   :  { %1134 = vmatpush.msrb.mxu0 %v1059_v1 }
 0x511   :  { %v955_v48 = vmul.f32 %v2652_v45, %v954_v3  ;;  %v1060_v3 = vld [vmem:[#allocation14 + $0x268] sm:$0xff] }
 0x513   :  { %v959_v51 = vsel %vm958_vm1, %v2652_v45, %v955_v48  ;;  %v1064_v45 = vld [vmem:[#allocation14 + $0x288] sm:$0xff]  ;;  %v1061_v48 = vld [vmem:[#allocation14 + $0x270] sm:$0xff] }
 0x514   :  { %v960_v54 = vmul.f32 %v959_v51, %v948_v49  ;;  %1153 = vmatpush.msrb.mxu1 %v1064_v45  ;;  %v1062_v49 = vld [vmem:[#allocation14 + $0x278] sm:$0xff]  ;;  %v1055_v51 = vld [vmem:[#allocation14 + $0x240] sm:$0xff]  ;;  %1174 = vmatpush.msrb.mxu2 %v1061_v48  ;;  %v1408_v45 = vld [vmem:[#allocation16 + $0x2e8] sm:$0xff] }
 0x515   :  { %1194 = vmatpush.msrb.mxu3 %v1062_v49  ;;  %1135 = vmatpush.msrb.mxu0 %v1055_v51 }
 0x516   :  { %v964_v57 = vmul.f32 %v2620_v50, %v960_v54  ;;  %v1056_v54 = vld [vmem:[#allocation14 + $0x248] sm:$0xff]  ;;  %1154 = vmatpush.msrb.mxu1 %v1060_v3 }
 0x518   :  { %v968_v58 = vadd.f32 %v2621_v55, %v964_v57  ;;  %v1057_v57 = vld [vmem:[#allocation14 + $0x250] sm:$0xff]  ;;  %1155 = vmatpush.msrb.mxu1 %v1056_v54 }
 0x519   :  { %1175 = vmatpush.msrb.mxu2 %v1057_v57 }
 0x51a   :  { %1007 = vmatmul.f32.vlgmr.msra.gmra.mxu3 %v968_v58 }
 0x51b   :  { %1176 = vmatpush.msrb.mxu2 %v1053_v63  ;;  %v1442_v63 = vld [vmem:[#allocation16 + $0x3f8] sm:$0xff] }
 0x51d   :  { %1177 = vmatpush.msrb.mxu2 %v1049_v6  ;;  %v1406_v6 = vld [vmem:[#allocation16 + $0x2d8] sm:$0xff] }
 0x59d   :  { %v1008_v38 = vpop.f32.mrf.mxu3 }
 0x59e   :  { %v1009_v52 = vadd.f32 %v2622_v60, %v1008_v38  ;;  %v1051_v38 = vld [vmem:[#allocation14 + $0x220] sm:$0xff] }
 0x59f   :  { %1136 = vmatpush.msrb.mxu0 %v1051_v38 }
 0x5a0   :  { %v3430_v62 = vadd.f32 %v1009_v52, %v968_v58  ;;  %v1058_v58 = vld [vmem:[#allocation14 + $0x258] sm:$0xff]  ;;  %v1052_v52 = vld [vmem:[#allocation14 + $0x228] sm:$0xff] }
 0x5a1   :  { %1195 = vmatpush.msrb.mxu3 %v1058_v58  ;;  %1156 = vmatpush.msrb.mxu1 %v1052_v52  ;;  %v1391_v58 = vld [vmem:[#allocation16 + $0x260] sm:$0xff] }
 0x5a2   :  { %1016 = vadd.xlane.f32.xlu0 %v3430_v62  ;;  %v1019_v59 = vmul.f32 %v3430_v62, %v3430_v62  ;;  %1137 = vmatpush.msrb.mxu0 %v1047_v0 }
 0x5a3   :  { %1196 = vmatpush.msrb.mxu3 %v1054_v28  ;;  %1157 = vmatpush.msrb.mxu1 %v1048_v2  ;;  %v1390_v28 = vld [vmem:[#allocation16 + $0x258] sm:$0xff] }
 0x5a4   :  { %1020 = vadd.xlane.f32.xlu1 %v1019_v59  ;;  %1448 = vmatpush.msra.mxu0 %v1394_v31 }
 0x5a5   :  { %1197 = vmatpush.msrb.mxu3 %v1050_v7  ;;  %1468 = vmatpush.msra.mxu1 %v1410_v32  ;;  %v1425_v7 = vld [vmem:[#allocation16 + $0x370] sm:$0xff] }
 0x5a6   :  { %1449 = vmatpush.msra.mxu0 %v1393_v21 }
 0x5a7   :  { %1469 = vmatpush.msra.mxu1 %v1409_v36  ;;  %1508 = vmatpush.msra.mxu3 %v1442_v63 }
 0x5a8   :  { %1450 = vmatpush.msra.mxu0 %v1392_v43 }
 0x5a9   :  { %1470 = vmatpush.msra.mxu1 %v1408_v45 }
 0x5aa   :  { %1451 = vmatpush.msra.mxu0 %v1391_v58 }
 0x5ac   :  { %1452 = vmatpush.msra.mxu0 %v1390_v28 }
 0x615   :  { %v1017_v50 = vpop.xlane.xlu0 %1016 }
 0x616   :  { %v1018_v55 = vmul.f32 %v1017_v50, %v3219_v13 }
 0x617   :  { %v1021_v60 = vpop.xlane.xlu1 %1020 }
 0x618   :  { %v1023_v59 = vmul.f32 %v1018_v55, %v1018_v55  ;;  %v1022_v4 = vmul.f32 %v1021_v60, %v3219_v13  ;;  %v1025_v15 = vsub.f32 %v3430_v62, %v1018_v55  ;;  %v2560_v62 = vld [vmem:[%s4134_s12 + $0x4] sm:$0xf]  ;;  %v1407_v60 = vld [vmem:[#allocation16 + $0x2e0] sm:$0xff] }
 0x619   :  { %v1114_v22 = vperm.slane %v2560_v62, 0  ;;  %v1115_v24 = vperm.slane %v2560_v62, 1  ;;  %v1116_v8 = vperm.slane %v2560_v62, 2  ;;  %v1117_v30 = vperm.slane %v2560_v62, 3  ;;  %1471 = vmatpush.msra.mxu1 %v1407_v60  ;;  %v1424_v62 = vld [vmem:[#allocation16 + $0x368] sm:$0xff] }
 0x61a   :  { %v1024_v5 = vsub.f32 %v1022_v4, %v1023_v59  ;;  %v1426_v4 = vld [vmem:[#allocation16 + $0x378] sm:$0xff] }
 0x61b   :  { %1488 = vmatpush.msra.mxu2 %v1426_v4  ;;  %1472 = vmatpush.msra.mxu1 %v1406_v6  ;;  %v1437_v6 = vld [vmem:[#allocation16 + $0x3d0] sm:$0xff] }
 0x61c   :  { %v1026_v9 = vadd.f32 1e-05, %v1024_v5 }
 0x61d   :  { %1489 = vmatpush.msra.mxu2 %v1425_v7 }
 0x61e   :  { %2653 = vrsqrt.f32 %v1026_v9  ;;  %vm1033_vm3 = vweird.f32 %v1026_v9 }
 0x61f   :  { %1490 = vmatpush.msra.mxu2 %v1424_v62 }
 0x624   :  { %v2654_v10 = vpop.eup %2653 }
 0x625   :  { %v1028_v11 = vmul.f32 %v2654_v10, %v1026_v9  ;;  %vm1034_vm2 = vweird.f32 %v2654_v10  ;;  %v1441_v9 = vld [vmem:[#allocation16 + $0x3f0] sm:$0xff] }
 0x626   :  { %vm1035_vm4 = vmor %vm1033_vm3, %vm1034_vm2  ;;  %1509 = vmatpush.msra.mxu3 %v1441_v9 }
 0x627   :  { %v1029_v12 = vmul.f32 %v2654_v10, %v1028_v11 }
 0x629   :  { %v1030_v16 = vmul.f32 0.5, %v1029_v12 }
 0x62b   :  { %v1031_v17 = vsub.f32 1.5, %v1030_v16 }
 0x62d   :  { %v1032_v14 = vmul.f32 %v2654_v10, %v1031_v17 }
 0x62f   :  { %v1036_v53 = vsel %vm1035_vm4, %v2654_v10, %v1032_v14 }
 0x630   :  { %v1037_v35 = vmul.f32 %v1036_v53, %v1025_v15 }
 0x632   :  { %v1041_v20 = vmul.f32 %v2623_v18, %v1037_v35 }
 0x634   :  { %v3438_v23 = vadd.f32 %v2624_v19, %v1041_v20  ;;  %v1389_v19 = vld [vmem:[#allocation16 + $0x250] sm:$0xff] }
 0x635   :  { %v1405_v20 = vld [vmem:[#allocation16 + $0x2d0] sm:$0xff]  ;;  %1453 = vmatpush.msra.mxu0 %v1389_v19 }
 0x636   :  { %1138 = vmatmul.f32.vlgmr.msrb.gmra.mxu0 %v3438_v23  ;;  %1158 = vmatmul.f32.vlgmr.msrb.gmra.mxu1 %v3438_v23 }
 0x637   :  { %1178 = vmatmul.f32.vlgmr.msrb.gmra.mxu2 %v3438_v23  ;;  %1198 = vmatmul.f32.vlgmr.msrb.gmra.mxu3 %v3438_v23 }
 0x638   :  { %1473 = vmatpush.msra.mxu1 %v1405_v20 }
 0x6b3   :  { %v1139_v56 = vpop.f32.mrf.mxu0  ;;  %v1159_v61 = vpop.f32.mrf.mxu1 }
 0x6b4   :  { %v3447_v25 = vadd.f32 %v1139_v56, %v1114_v22  ;;  %v3449_v26 = vadd.f32 %v1159_v61, %v1115_v24  ;;  %v1440_v61 = vld [vmem:[#allocation16 + $0x3e8] sm:$0xff] }
 0x6b5   :  { %1510 = vmatpush.msra.mxu3 %v1440_v61 }
 0x6b6   :  { %v3452_v27 = vmul.f32 0.70710677, %v3447_v25  ;;  %v3455_v29 = vmul.f32 0.70710677, %v3449_v26 }
 0x6b8   :  { %v1210_v33 = vmul.f32 %v3452_v27, %v3452_v27  ;;  %v1250_v34 = vmul.f32 %v3455_v29, %v3455_v29 }
 0x6ba   :  { %v3461_v37 = vmin.f32 %v1210_v33, 16.0  ;;  %v3463_v39 = vmin.f32 %v1250_v34, 16.0  ;;  %v1179_v40 = vpop.f32.mrf.mxu2  ;;  %v1199_v44 = vpop.f32.mrf.mxu3 }
 0x6bb   :  { %v3465_v41 = vadd.f32 %v1179_v40, %v1116_v8  ;;  %v3467_v42 = vadd.f32 %v1199_v44, %v1117_v30  ;;  %v1388_v8 = vld [vmem:[#allocation16 + $0x248] sm:$0xff]  ;;  %v1423_v44 = vld [vmem:[#allocation16 + $0x360] sm:$0xff] }
 0x6bc   :  { %v1212_v46 = vmul.f32 2.1237322e-06, %v3461_v37  ;;  %v1223_v47 = vmul.f32 3.8918573e-05, %v3461_v37  ;;  %v1252_v1 = vmul.f32 2.1237322e-06, %v3463_v39  ;;  %1454 = vmatpush.msra.mxu0 %v1388_v8  ;;  %1491 = vmatpush.msra.mxu2 %v1423_v44 }
 0x6bd   :  { %v1263_v3 = vmul.f32 3.8918573e-05, %v3463_v39  ;;  %v3474_v48 = vmul.f32 0.70710677, %v3465_v41  ;;  %v3479_v57 = vmul.f32 0.70710677, %v3467_v42 }
 0x6be   :  { %v1213_v49 = vadd.f32 0.00028619796, %v1212_v46  ;;  %v1224_v50 = vadd.f32 0.001143296, %v1223_v47  ;;  %v1253_v51 = vadd.f32 0.00028619796, %v1252_v1 }
 0x6bf   :  { %v1264_v54 = vadd.f32 0.001143296, %v1263_v3  ;;  %v1290_v55 = vmul.f32 %v3474_v48, %v3474_v48  ;;  %v1330_v5 = vmul.f32 %v3479_v57, %v3479_v57  ;;  %v1404_v40 = vld [vmem:[#allocation16 + $0x2c8] sm:$0xff]  ;;  %v1439_v46 = vld [vmem:[#allocation16 + $0x3e0] sm:$0xff]  ;;  %v1382_v44 = vld [vmem:[#allocation16 + $0x218] sm:$0xff] }
 0x6c0   :  { %v1214_v38 = vmul.f32 %v1213_v49, %v3461_v37  ;;  %v1225_v52 = vmul.f32 %v1224_v50, %v3461_v37  ;;  %v1254_v59 = vmul.f32 %v1253_v51, %v3463_v39  ;;  %1474 = vmatpush.msra.mxu1 %v1404_v40  ;;  %v1387_v47 = vld [vmem:[#allocation16 + $0x240] sm:$0xff]  ;;  %1511 = vmatpush.msra.mxu3 %v1439_v46  ;;  %v1398_v46 = vld [vmem:[#allocation16 + $0x298] sm:$0xff] }
 0x6c1   :  { %v1265_v0 = vmul.f32 %v1264_v54, %v3463_v39  ;;  %v3485_v2 = vmin.f32 %v1290_v55, 16.0  ;;  %v3494_v35 = vmin.f32 %v1330_v5, 16.0  ;;  %v1403_v1 = vld [vmem:[#allocation16 + $0x2c0] sm:$0xff]  ;;  %1455 = vmatpush.msra.mxu0 %v1387_v47  ;;  %v1421_v5 = vld [vmem:[#allocation16 + $0x350] sm:$0xff] }
 0x6c2   :  { %v1215_v10 = vadd.f32 0.0036580483, %v1214_v38  ;;  %v1226_v11 = vadd.f32 0.014752088, %v1225_v52  ;;  %v1255_v12 = vadd.f32 0.0036580483, %v1254_v59  ;;  %1475 = vmatpush.msra.mxu1 %v1403_v1 }
 0x6c3   :  { %v1266_v16 = vadd.f32 0.014752088, %v1265_v0  ;;  %v1292_v17 = vmul.f32 2.1237322e-06, %v3485_v2  ;;  %v1303_v14 = vmul.f32 3.8918573e-05, %v3485_v2 }
 0x6c4   :  { %v1216_v15 = vmul.f32 %v1215_v10, %v3461_v37  ;;  %v1227_v18 = vmul.f32 %v1226_v11, %v3461_v37  ;;  %v1256_v53 = vmul.f32 %v1255_v12, %v3463_v39  ;;  %v1332_v36 = vmul.f32 2.1237322e-06, %v3494_v35  ;;  %v1422_v38 = vld [vmem:[#allocation16 + $0x358] sm:$0xff]  ;;  %v1385_v12 = vld [vmem:[#allocation16 + $0x230] sm:$0xff]  ;;  %v1435_v8 = vld [vmem:[#allocation16 + $0x3c0] sm:$0xff] }
 0x6c5   :  { %v1267_v22 = vmul.f32 %v1266_v16, %v3463_v39  ;;  %v1293_v24 = vadd.f32 0.00028619796, %v1292_v17  ;;  %v1304_v56 = vadd.f32 0.001143296, %v1303_v14  ;;  %v1343_v45 = vmul.f32 3.8918573e-05, %v3494_v35  ;;  %1492 = vmatpush.msra.mxu2 %v1422_v38 }
 0x6c6   :  { %v1217_v30 = vadd.f32 0.05243302, %v1216_v15  ;;  %v1228_v31 = vadd.f32 0.112945676, %v1227_v18  ;;  %v1257_v32 = vadd.f32 0.05243302, %v1256_v53 }
 0x6c7   :  { %v1268_v33 = vadd.f32 0.112945676, %v1267_v22  ;;  %v1294_v34 = vmul.f32 %v1293_v24, %v3485_v2  ;;  %v1305_v21 = vmul.f32 %v1304_v56, %v3485_v2  ;;  %v1333_v55 = vadd.f32 0.00028619796, %v1332_v36  ;;  %v1438_v52 = vld [vmem:[#allocation16 + $0x3d8] sm:$0xff]  ;;  %1493 = vmatpush.msra.mxu2 %v1421_v5  ;;  %v1401_v15 = vld [vmem:[#allocation16 + $0x2b0] sm:$0xff] }
 0x6c8   :  { %v1229_v43 = vmul.f32 %v1228_v31, %v3461_v37  ;;  %v1218_v3 = vmul.f32 %v1217_v30, %v3461_v37  ;;  %v1386_v59 = vld [vmem:[#allocation16 + $0x238] sm:$0xff]  ;;  %v1258_v63 = vmul.f32 %v1257_v32, %v3463_v39  ;;  %v1344_v28 = vadd.f32 0.001143296, %v1343_v45  ;;  %1512 = vmatpush.msra.mxu3 %v1438_v52  ;;  %v1420_v18 = vld [vmem:[#allocation16 + $0x348] sm:$0xff]  ;;  %v1419_v56 = vld [vmem:[#allocation16 + $0x340] sm:$0xff] }
 0x6c9   :  { %v1269_v49 = vmul.f32 %v1268_v33, %v3463_v39  ;;  %v1306_v50 = vadd.f32 0.014752088, %v1305_v21  ;;  %v1295_v54 = vadd.f32 0.0036580483, %v1294_v34  ;;  %v1402_v0 = vld [vmem:[#allocation16 + $0x2b8] sm:$0xff]  ;;  %1456 = vmatpush.msra.mxu0 %v1386_v59  ;;  %v1436_v53 = vld [vmem:[#allocation16 + $0x3c8] sm:$0xff]  ;;  %v1334_v20 = vmul.f32 %v1333_v55, %v3494_v35  ;;  %1494 = vmatpush.msra.mxu2 %v1420_v18 }
 0x6ca   :  { %v1230_v51 = vadd.f32 0.4994258, %v1229_v43  ;;  %v1219_v7 = vadd.f32 0.18741608, %v1218_v3  ;;  %1476 = vmatpush.msra.mxu1 %v1402_v0  ;;  %1513 = vmatpush.msra.mxu3 %v1437_v6  ;;  %v1259_v19 = vadd.f32 0.18741608, %v1258_v63  ;;  %v1345_v62 = vmul.f32 %v1344_v28, %v3494_v35 }
 0x6cb   :  { %v1270_v58 = vadd.f32 0.4994258, %v1269_v49  ;;  %v1307_v60 = vmul.f32 %v1306_v50, %v3485_v2  ;;  %v1296_v17 = vmul.f32 %v1295_v54, %v3485_v2  ;;  %1457 = vmatpush.msra.mxu0 %v1385_v12  ;;  %v1384_v22 = vld [vmem:[#allocation16 + $0x228] sm:$0xff]  ;;  %v1383_v30 = vld [vmem:[#allocation16 + $0x220] sm:$0xff]  ;;  %1495 = vmatpush.msra.mxu2 %v1419_v56  ;;  %v1418_v34 = vld [vmem:[#allocation16 + $0x338] sm:$0xff] }
 0x6cc   :  { %v1231_v4 = vmul.f32 %v1230_v51, %v3461_v37  ;;  %1477 = vmatpush.msra.mxu1 %v1401_v15  ;;  %v1400_v24 = vld [vmem:[#allocation16 + $0x2a8] sm:$0xff]  ;;  %v1220_v61 = vmul.f32 %v1219_v7, %v3461_v37  ;;  %1514 = vmatpush.msra.mxu3 %v1436_v53  ;;  %v1399_v31 = vld [vmem:[#allocation16 + $0x2a0] sm:$0xff]  ;;  %v1260_v21 = vmul.f32 %v1259_v19, %v3463_v39  ;;  %v1335_v36 = vadd.f32 0.0036580483, %v1334_v20  ;;  %v1434_v37 = vld [vmem:[#allocation16 + $0x3b8] sm:$0xff] }
 0x6cd   :  { %v1271_v9 = vmul.f32 %v1270_v58, %v3463_v39  ;;  %v1308_v10 = vadd.f32 0.112945676, %v1307_v60  ;;  %1458 = vmatpush.msra.mxu0 %v1384_v22  ;;  %v1297_v32 = vadd.f32 0.05243302, %v1296_v17  ;;  %v1346_v40 = vadd.f32 0.014752088, %v1345_v62  ;;  %1496 = vmatpush.msra.mxu2 %v1418_v34 }
 0x6ce   :  { %v3508_v11 = vadd.f32 1.0, %v1231_v4  ;;  %1478 = vmatpush.msra.mxu1 %v1400_v24  ;;  %1515 = vmatpush.msra.mxu3 %v1435_v8  ;;  %v1221_v43 = vadd.f32 1.1283791, %v1220_v61  ;;  %v1417_v47 = vld [vmem:[#allocation16 + $0x330] sm:$0xff]  ;;  %v1416_v51 = vld [vmem:[#allocation16 + $0x328] sm:$0xff]  ;;  %v1415_v0 = vld [vmem:[#allocation16 + $0x320] sm:$0xff] }
 0x6cf   :  { %v3510_v16 = vadd.f32 1.0, %v1271_v9  ;;  %v1309_v14 = vmul.f32 %v1308_v10, %v3485_v2  ;;  %1459 = vmatpush.msra.mxu0 %v1383_v30  ;;  %v1433_v1 = vld [vmem:[#allocation16 + $0x3b0] sm:$0xff]  ;;  %v1347_v49 = vmul.f32 %v1346_v40, %v3494_v35  ;;  %1497 = vmatpush.msra.mxu2 %v1417_v47  ;;  %v1298_v58 = vmul.f32 %v1297_v32, %v3485_v2  ;;  %v1432_v38 = vld [vmem:[#allocation16 + $0x3a8] sm:$0xff]  ;;  %v1431_v5 = vld [vmem:[#allocation16 + $0x3a0] sm:$0xff] }
 0x6d0   :  { %2655 = vrcp.f32 %v3508_v11  ;;  %1479 = vmatpush.msra.mxu1 %v1399_v31  ;;  %1516 = vmatpush.msra.mxu3 %v1434_v37  ;;  %v1381_v39 = vld [vmem:[#allocation16 + $0x210] sm:$0xff]  ;;  %v1380_v52 = vld [vmem:[#allocation16 + $0x208] sm:$0xff]  ;;  %v1261_v4 = vadd.f32 1.1283791, %v1260_v21  ;;  %v1222_v6 = vmul.f32 %v1221_v43, %v3452_v27  ;;  %v1336_v9 = vmul.f32 %v1335_v36, %v3494_v35  ;;  %v1379_v10 = vld [vmem:[#allocation16 + $0x200] sm:$0xff] }
 0x6d1   :  { %2657 = vrcp.f32 %v3510_v16  ;;  %v1310_v33 = vadd.f32 0.4994258, %v1309_v14  ;;  %1460 = vmatpush.msra.mxu0 %v1382_v44  ;;  %v1397_v50 = vld [vmem:[#allocation16 + $0x290] sm:$0xff]  ;;  %v1396_v59 = vld [vmem:[#allocation16 + $0x288] sm:$0xff]  ;;  %v1348_v28 = vadd.f32 0.112945676, %v1347_v49  ;;  %1498 = vmatpush.msra.mxu2 %v1416_v51  ;;  %vm1238_vm8 = vweird.f32 %v3508_v11 }
 0x6d2   :  { %1480 = vmatpush.msra.mxu1 %v1398_v46  ;;  %1517 = vmatpush.msra.mxu3 %v1433_v1  ;;  %v1395_v12 = vld [vmem:[#allocation16 + $0x280] sm:$0xff]  ;;  %v1242_v17 = vand.u32 2147483647, %v3508_v11  ;;  %v1244_v14 = vand.u32 2147483648, %v3508_v11  ;;  %v1414_v53 = vld [vmem:[#allocation16 + $0x318] sm:$0xff]  ;;  %v1284_v20 = vand.u32 2147483648, %v3510_v16  ;;  %v1262_v31 = vmul.f32 %v1261_v4, %v3455_v29 }
 0x6d3   :  { %v1311_v45 = vmul.f32 %v1310_v33, %v3485_v2  ;;  %1461 = vmatpush.msra.mxu0 %v1381_v39  ;;  %v1349_v18 = vmul.f32 %v1348_v28, %v3494_v35  ;;  %1499 = vmatpush.msra.mxu2 %v1415_v0  ;;  %v1430_v27 = vld [vmem:[#allocation16 + $0x398] sm:$0xff]  ;;  %v1299_v62 = vadd.f32 0.18741608, %v1298_v58  ;;  %v1413_v22 = vld [vmem:[#allocation16 + $0x310] sm:$0xff]  ;;  %v1282_v56 = vand.u32 2147483647, %v3510_v16 }
 0x6d4   :  { %1481 = vmatpush.msra.mxu1 %v1397_v50  ;;  %1518 = vmatpush.msra.mxu3 %v1432_v38  ;;  %v1429_v8 = vld [vmem:[#allocation16 + $0x390] sm:$0xff]  ;;  %v1337_v32 = vadd.f32 0.05243302, %v1336_v9  ;;  %v1412_v33 = vld [vmem:[#allocation16 + $0x308] sm:$0xff]  ;;  %v1245_v21 = vor.u32 1.1754944e-38, %v1244_v14  ;;  %vm1278_vm10 = vweird.f32 %v3510_v16  ;;  %vm1243_vm11 = vcmp.eq.f32.partialorder %v1242_v17, 8.507059e+37 }
 0x6d5   :  { %v3529_v60 = vadd.f32 1.0, %v1311_v45  ;;  %1462 = vmatpush.msra.mxu0 %v1380_v52  ;;  %v1350_v61 = vadd.f32 0.4994258, %v1349_v18  ;;  %1500 = vmatpush.msra.mxu2 %v1414_v53  ;;  %v1285_v44 = vor.u32 1.1754944e-38, %v1284_v20  ;;  %v1300_v43 = vmul.f32 %v1299_v62, %v3485_v2  ;;  %v1411_v45 = vld [vmem:[#allocation16 + $0x300] sm:$0xff] }
 0x6d6   :  { %v3521_v3 = vpop.eup %2655  ;;  %1482 = vmatpush.msra.mxu1 %v1396_v59  ;;  %1519 = vmatpush.msra.mxu3 %v1431_v5  ;;  %vm1283_vm13 = vcmp.eq.f32.partialorder %v1282_v56, 8.507059e+37  ;;  %v1427_v1 = vld [vmem:[#allocation16 + $0x380] sm:$0xff]  ;;  %v1202_v4 = vmul.f32 0.5, %v3447_v25  ;;  %v1203_v0 = vmul.f32 0.5, %v3449_v26 }
 0x6d7   :  { %v3524_v54 = vpop.eup %2657  ;;  %v1234_v55 = vmul.f32 %v3521_v3, %v3508_v11  ;;  %2659 = vrcp.f32 %v3529_v60  ;;  %vm1239_vm5 = vweird.f32 %v3521_v3  ;;  %1463 = vmatpush.msra.mxu0 %v1379_v10  ;;  %v1351_v40 = vmul.f32 %v1350_v61, %v3494_v35  ;;  %1501 = vmatpush.msra.mxu2 %v1413_v22  ;;  %v1428_v11 = vld [vmem:[#allocation16 + $0x388] sm:$0xff] }
 0x6d8   :  { %v1274_v63 = vmul.f32 %v3524_v54, %v3510_v16  ;;  %vm1279_vm7 = vweird.f32 %v3524_v54  ;;  %1483 = vmatpush.msra.mxu1 %v1395_v12  ;;  %1520 = vmatpush.msra.mxu3 %v1430_v27  ;;  %vm3550_vm9 = vmor %vm1238_vm8, %vm1239_vm5  ;;  %v1301_v58 = vadd.f32 1.1283791, %v1300_v43  ;;  %v1324_v38 = vand.u32 2147483648, %v3529_v60 }
 0x6d9   :  { %v1235_v7 = vsub.f32 1.0, %v1234_v55  ;;  %vm1280_vm12 = vmor %vm1278_vm10, %vm1279_vm7  ;;  %1502 = vmatpush.msra.mxu2 %v1412_v33  ;;  %v1352_v50 = vadd.f32 1.0, %v1351_v40  ;;  %v1322_v59 = vand.u32 2147483647, %v3529_v60  ;;  %vm1318_vm15 = vweird.f32 %v3529_v60 }
 0x6da   :  { %v1275_v15 = vsub.f32 1.0, %v1274_v63  ;;  %1521 = vmatpush.msra.mxu3 %v1429_v8  ;;  %v1325_v9 = vor.u32 1.1754944e-38, %v1324_v38  ;;  %v1302_v12 = vmul.f32 %v1301_v58, %v3474_v48  ;;  %v2569_v58 = vld [vmem:[%s4129_s7 + $0x118] sm:$0xff]  ;;  %v2568_v38 = vld [vmem:[%s4129_s7 + $0x110] sm:$0xff] }
 0x6db   :  { %v1236_v19 = vmul.f32 %v3521_v3, %v1235_v7  ;;  %1503 = vmatpush.msra.mxu2 %v1411_v45  ;;  %2661 = vrcp.f32 %v1352_v50  ;;  %vm1323_vm1 = vcmp.eq.f32.partialorder %v1322_v59, 8.507059e+37  ;;  %v1364_v20 = vand.u32 2147483648, %v1352_v50  ;;  %v2566_v59 = vld [vmem:[%s4129_s7 + $0x100] sm:$0xff] }
 0x6dc   :  { %v1276_v24 = vmul.f32 %v3524_v54, %v1275_v15  ;;  %1522 = vmatpush.msra.mxu3 %v1428_v11  ;;  %v1362_v48 = vand.u32 2147483647, %v1352_v50  ;;  %vm1358_vm3 = vweird.f32 %v1352_v50 }
 0x6dd   :  { %v1237_v30 = vadd.f32 %v3521_v3, %v1236_v19  ;;  %v2660_v37 = vpop.eup %2659  ;;  %v1365_v61 = vor.u32 1.1754944e-38, %v1364_v20 }
 0x6de   :  { %v1277_v36 = vadd.f32 %v3524_v54, %v1276_v24  ;;  %v1314_v47 = vmul.f32 %v2660_v37, %v3529_v60  ;;  %1523 = vmatpush.msra.mxu3 %v1427_v1  ;;  %vm1319_vm14 = vweird.f32 %v2660_v37  ;;  %v1204_v60 = vmul.f32 0.5, %v3465_v41  ;;  %v2577_v1 = vld [vmem:[%s4129_s7 + $0x158] sm:$0xff] }
 0x6df   :  { %v1241_v29 = vsel %vm3550_vm9, %v3521_v3, %v1237_v30  ;;  %v1338_v3 = vmul.f32 %v1337_v32, %v3494_v35  ;;  %vm1320_vm0 = vmor %vm1318_vm15, %vm1319_vm14  ;;  %vm1363_vm5 = vcmp.eq.f32.partialorder %v1362_v48, 8.507059e+37  ;;  %v1205_v41 = vmul.f32 0.5, %v3467_v42  ;;  %v2581_v42 = vld [vmem:[%s4129_s7 + $0x178] sm:$0xff] }
 0x6e0   :  { %v1246_v46 = vsel %vm1243_vm11, %v1245_v21, %v1241_v29  ;;  %v1281_v16 = vsel %vm1280_vm12, %v3524_v54, %v1277_v36  ;;  %v1315_v55 = vsub.f32 1.0, %v1314_v47  ;;  %v2625_v21 = vld [vmem:[#allocation17 + $0x1] ss:$0 sm:$0xff]  ;;  %1585 = vmatpush.msrb.mxu0 %v2581_v42  ;;  %v2579_v47 = vld [vmem:[%s4129_s7 + $0x168] sm:$0xff]  ;;  %v1683_v42 = vld [vmem:[#allocation14 + $0x550] sm:$0xff] }
 0x6e1   :  { %v1247_v49 = vmul.f32 %v1246_v46, %v1222_v6  ;;  %v1286_v39 = vsel %vm1283_vm13, %v1285_v44, %v1281_v16  ;;  %v1339_v28 = vadd.f32 0.18741608, %v1338_v3  ;;  %v2662_v14 = vpop.eup %2661  ;;  %v2580_v16 = vld [vmem:[%s4129_s7 + $0x170] sm:$0xff]  ;;  %v2574_v3 = vld [vmem:[%s4129_s7 + $0x140] sm:$0xff] }
 0x6e2   :  { %v1287_v51 = vmul.f32 %v1286_v39, %v1262_v31  ;;  %v1316_v52 = vmul.f32 %v2660_v37, %v1315_v55  ;;  %v1354_v53 = vmul.f32 %v2662_v14, %v1352_v50  ;;  %vm1359_vm2 = vweird.f32 %v2662_v14  ;;  %1586 = vmatpush.msrb.mxu0 %v2580_v16  ;;  %v2575_v39 = vld [vmem:[%s4129_s7 + $0x148] sm:$0xff]  ;;  %v2573_v50 = vld [vmem:[%s4129_s7 + $0x138] sm:$0xff] }
 0x6e3   :  { %v2561_v2 = vclamps-f32 %v1247_v49, 1.0  ;;  %v1340_v25 = vmul.f32 %v1339_v28, %v3494_v35  ;;  %vm1360_vm4 = vmor %vm1358_vm3, %vm1359_vm2  ;;  %v2576_v49 = vld [vmem:[%s4129_s7 + $0x150] sm:$0xff]  ;;  %v2571_v55 = vld [vmem:[%s4129_s7 + $0x128] sm:$0xff] }
 0x6e4   :  { %v2562_v54 = vclamps-f32 %v1287_v51, 1.0  ;;  %v1317_v6 = vadd.f32 %v2660_v37, %v1316_v52  ;;  %v1355_v27 = vsub.f32 1.0, %v1354_v53  ;;  %1587 = vmatpush.msrb.mxu0 %v2579_v47  ;;  %v2572_v51 = vld [vmem:[%s4129_s7 + $0x130] sm:$0xff]  ;;  %v1684_v16 = vld [vmem:[#allocation14 + $0x558] sm:$0xff] }
 0x6e5   :  { %v1370_v63 = vadd.f32 1.0, %v2561_v2  ;;  %v1341_v19 = vadd.f32 1.1283791, %v1340_v25  ;;  %v2570_v2 = vld [vmem:[%s4129_s7 + $0x120] sm:$0xff]  ;;  %v2626_v25 = vld [vmem:[#allocation19 + $0x1] ss:$0 sm:$0xff] }
 0x6e6   :  { %v1371_v5 = vadd.f32 1.0, %v2562_v54  ;;  %v1321_v17 = vsel %vm1320_vm0, %v2660_v37, %v1317_v6  ;;  %v1356_v22 = vmul.f32 %v2662_v14, %v1355_v27  ;;  %v2567_v54 = vld [vmem:[%s4129_s7 + $0x108] sm:$0xff]  ;;  %v1677_v47 = vld [vmem:[#allocation14 + $0x520] sm:$0xff] }
 0x6e7   :  { %v1374_v7 = vmul.f32 %v1370_v63, %v1202_v4  ;;  %v1326_v15 = vsel %vm1323_vm1, %v1325_v9, %v1321_v17  ;;  %v1342_v35 = vmul.f32 %v1341_v19, %v3479_v57  ;;  %v2628_v19 = vld [vmem:[%s4130_s8 + $0x2] ss:$0 sm:$0xff] }
 0x6e8   :  { %v1375_v10 = vmul.f32 %v1371_v5, %v1203_v0  ;;  %v1327_v18 = vmul.f32 %v1326_v15, %v1302_v12  ;;  %v1357_v56 = vadd.f32 %v2662_v14, %v1356_v22 }
 0x6e9   :  { %1464 = vmatmul.f32.vlgmr.msra.gmra.mxu0 %v1374_v7 }
 0x6ea   :  { %1484 = vmatmul.f32.vlgmr.msra.gmra.mxu1 %v1375_v10  ;;  %v2563_v26 = vclamps-f32 %v1327_v18, 1.0  ;;  %v1361_v8 = vsel %vm1360_vm4, %v2662_v14, %v1357_v56  ;;  %v1702_v56 = vld [vmem:[#allocation14 + $0x5e8] sm:$0xff] }
 0x6eb   :  { %v1366_v30 = vsel %vm1363_vm5, %v1365_v61, %v1361_v8  ;;  %v1703_v61 = vld [vmem:[#allocation14 + $0x5f0] sm:$0xff]  ;;  %1736 = vmatpush.msrb.mxu2 %v1702_v56  ;;  %v1697_v8 = vld [vmem:[#allocation14 + $0x5c0] sm:$0xff] }
 0x6ec   :  { %v1372_v62 = vadd.f32 1.0, %v2563_v26  ;;  %v1367_v31 = vmul.f32 %v1366_v30, %v1342_v35  ;;  %v2627_v26 = vld [vmem:[%s4138_s16 + $0x1] ss:$0 sm:$0xff]  ;;  %v1704_v35 = vld [vmem:[#allocation14 + $0x5f8] sm:$0xff]  ;;  %1756 = vmatpush.msrb.mxu3 %v1703_v61  ;;  %v1698_v30 = vld [vmem:[#allocation14 + $0x5c8] sm:$0xff] }
 0x6ed   :  { %1737 = vmatpush.msrb.mxu2 %v1698_v30  ;;  %v1643_v61 = vld [vmem:[#allocation14 + $0x410] sm:$0xff] }
 0x6ee   :  { %v1376_v24 = vmul.f32 %v1372_v62, %v1204_v60  ;;  %v2564_v32 = vclamps-f32 %v1367_v31, 1.0  ;;  %v1699_v31 = vld [vmem:[#allocation14 + $0x5d0] sm:$0xff] }
 0x6ef   :  { %1757 = vmatpush.msrb.mxu3 %v1699_v31 }
 0x6f0   :  { %1504 = vmatmul.f32.vlgmr.msra.gmra.mxu2 %v1376_v24  ;;  %v1373_v33 = vadd.f32 1.0, %v2564_v32  ;;  %v1701_v24 = vld [vmem:[#allocation14 + $0x5e0] sm:$0xff]  ;;  %v1700_v32 = vld [vmem:[#allocation14 + $0x5d8] sm:$0xff] }
 0x6f1   :  { %1716 = vmatpush.msrb.mxu1 %v1701_v24  ;;  %v1642_v24 = vld [vmem:[#allocation14 + $0x408] sm:$0xff] }
 0x6f2   :  { %v1377_v34 = vmul.f32 %v1373_v33, %v1205_v41  ;;  %v1693_v41 = vld [vmem:[#allocation14 + $0x5a0] sm:$0xff]  ;;  %v1694_v33 = vld [vmem:[#allocation14 + $0x5a8] sm:$0xff] }
 0x6f3   :  { %1717 = vmatpush.msrb.mxu1 %v1697_v8  ;;  %1738 = vmatpush.msrb.mxu2 %v1694_v33 }
 0x6f4   :  { %1524 = vmatmul.f32.vlgmr.msra.gmra.mxu3 %v1377_v34  ;;  %v1695_v34 = vld [vmem:[#allocation14 + $0x5b0] sm:$0xff] }
 0x6f5   :  { %1718 = vmatpush.msrb.mxu1 %v1693_v41  ;;  %1758 = vmatpush.msrb.mxu3 %v1695_v34 }
 0x766   :  { %v1465_v36 = vpop.f32.mrf.mxu0 }
 0x767   :  { %v1466_v40 = vadd.f32 %v2625_v21, %v1465_v36  ;;  %v1485_v11 = vpop.f32.mrf.mxu1  ;;  %v1696_v21 = vld [vmem:[#allocation14 + $0x5b8] sm:$0xff]  ;;  %v1689_v36 = vld [vmem:[#allocation14 + $0x580] sm:$0xff] }
 0x768   :  { %1719 = vmatpush.msrb.mxu1 %v1689_v36 }
 0x769   :  { %v1486_v29 = vadd.f32 %v1485_v11, %v1466_v40  ;;  %v1690_v40 = vld [vmem:[#allocation14 + $0x588] sm:$0xff]  ;;  %v1691_v11 = vld [vmem:[#allocation14 + $0x590] sm:$0xff] }
 0x76a   :  { %1739 = vmatpush.msrb.mxu2 %v1690_v40  ;;  %1759 = vmatpush.msrb.mxu3 %v1691_v11 }
 0x773   :  { %v1505_v37 = vpop.f32.mrf.mxu2 }
 0x774   :  { %v1506_v44 = vadd.f32 %v1505_v37, %v1486_v29  ;;  %v1692_v37 = vld [vmem:[#allocation14 + $0x598] sm:$0xff]  ;;  %v1685_v29 = vld [vmem:[#allocation14 + $0x560] sm:$0xff] }
 0x775   :  { %1720 = vmatpush.msrb.mxu1 %v1685_v29  ;;  %v2629_v29 = vld [vmem:[#allocation11 + $0x2] ss:$0 sm:$0xff] }
 0x777   :  { %v1525_v43 = vpop.f32.mrf.mxu3 }
 0x778   :  { %v1526_v57 = vadd.f32 %v1525_v43, %v1506_v44  ;;  %v1686_v44 = vld [vmem:[#allocation14 + $0x568] sm:$0xff]  ;;  %v1687_v43 = vld [vmem:[#allocation14 + $0x570] sm:$0xff] }
 0x779   :  { %1740 = vmatpush.msrb.mxu2 %v1686_v44  ;;  %1760 = vmatpush.msrb.mxu3 %v1687_v43 }
 0x77a   :  { %v1528_v45 = vadd.f32 %v1526_v57, %v3438_v23  ;;  %v2578_v23 = vld [vmem:[%s4129_s7 + $0x160] sm:$0xff]  ;;  %v1688_v57 = vld [vmem:[#allocation14 + $0x578] sm:$0xff] }
 0x77b   :  { %1588 = vmatpush.msrb.mxu0 %v2578_v23  ;;  %1761 = vmatpush.msrb.mxu3 %v1683_v42  ;;  %v1678_v23 = vld [vmem:[#allocation14 + $0x528] sm:$0xff] }
 0x77c   :  { %1533 = vadd.xlane.f32.xlu2 %v1528_v45  ;;  %v1536_v46 = vmul.f32 %v1528_v45, %v1528_v45 }
 0x77d   :  { %1589 = vmatpush.msrb.mxu0 %v2577_v1  ;;  %v1679_v1 = vld [vmem:[#allocation14 + $0x530] sm:$0xff] }
 0x77e   :  { %1537 = vadd.xlane.f32.xlu0 %v1536_v46  ;;  %v1682_v46 = vld [vmem:[#allocation14 + $0x548] sm:$0xff]  ;;  %1762 = vmatpush.msrb.mxu3 %v1679_v1 }
 0x77f   :  { %1590 = vmatpush.msrb.mxu0 %v2576_v49  ;;  %1741 = vmatpush.msrb.mxu2 %v1682_v46  ;;  %v1680_v49 = vld [vmem:[#allocation14 + $0x538] sm:$0xff] }
 0x781   :  { %1591 = vmatpush.msrb.mxu0 %v2575_v39  ;;  %1742 = vmatpush.msrb.mxu2 %v1678_v23  ;;  %v1673_v39 = vld [vmem:[#allocation14 + $0x500] sm:$0xff] }
 0x783   :  { %1592 = vmatpush.msrb.mxu0 %v2574_v3  ;;  %v1674_v3 = vld [vmem:[#allocation14 + $0x508] sm:$0xff] }
 0x784   :  { %1743 = vmatpush.msrb.mxu2 %v1674_v3 }
 0x785   :  { %1593 = vmatpush.msrb.mxu0 %v2573_v50  ;;  %v1675_v50 = vld [vmem:[#allocation14 + $0x510] sm:$0xff] }
 0x786   :  { %1763 = vmatpush.msrb.mxu3 %v1675_v50  ;;  %v1988_v50 = vld [vmem:[#allocation16 + $0x478] sm:$0xff] }
 0x787   :  { %1594 = vmatpush.msrb.mxu0 %v2572_v51  ;;  %v1676_v51 = vld [vmem:[#allocation14 + $0x518] sm:$0xff] }
 0x789   :  { %1595 = vmatpush.msrb.mxu0 %v2571_v55  ;;  %v1669_v55 = vld [vmem:[#allocation14 + $0x4e0] sm:$0xff] }
 0x78b   :  { %1596 = vmatpush.msrb.mxu0 %v2570_v2  ;;  %v1670_v2 = vld [vmem:[#allocation14 + $0x4e8] sm:$0xff] }
 0x78c   :  { %1744 = vmatpush.msrb.mxu2 %v1670_v2 }
 0x78d   :  { %1597 = vmatpush.msrb.mxu0 %v2569_v58  ;;  %v1671_v58 = vld [vmem:[#allocation14 + $0x4f0] sm:$0xff] }
 0x78e   :  { %1764 = vmatpush.msrb.mxu3 %v1671_v58 }
 0x78f   :  { %1598 = vmatpush.msrb.mxu0 %v2568_v38  ;;  %v1672_v38 = vld [vmem:[#allocation14 + $0x4f8] sm:$0xff] }
 0x791   :  { %1599 = vmatpush.msrb.mxu0 %v2567_v54  ;;  %v1665_v54 = vld [vmem:[#allocation14 + $0x4c0] sm:$0xff] }
 0x793   :  { %1600 = vmatpush.msrb.mxu0 %v2566_v59  ;;  %v1667_v59 = vld [vmem:[#allocation14 + $0x4d0] sm:$0xff] }
 0x794   :  { %1765 = vmatpush.msrb.mxu3 %v1667_v59 }
 0x795   :  { %1776 = vmatpush.msra.mxu0 %v1704_v35  ;;  %v1644_v35 = vld [vmem:[#allocation14 + $0x418] sm:$0xff] }
 0x797   :  { %1777 = vmatpush.msra.mxu0 %v1700_v32 }
 0x799   :  { %1778 = vmatpush.msra.mxu0 %v1696_v21 }
 0x79b   :  { %1779 = vmatpush.msra.mxu0 %v1692_v37 }
 0x79d   :  { %1780 = vmatpush.msra.mxu0 %v1688_v57  ;;  %v2630_v57 = vld [vmem:[#allocation13 + $0x2] ss:$0 sm:$0xff] }
 0x79f   :  { %1781 = vmatpush.msra.mxu0 %v1684_v16 }
 0x7a1   :  { %1782 = vmatpush.msra.mxu0 %v1680_v49 }
 0x7a3   :  { %1783 = vmatpush.msra.mxu0 %v1676_v51  ;;  %v2036_v51 = vld [vmem:[#allocation16 + $0x5f8] sm:$0xff] }
 0x7a5   :  { %1784 = vmatpush.msra.mxu0 %v1672_v38  ;;  %v1987_v38 = vld [vmem:[#allocation16 + $0x470] sm:$0xff] }
 0x7ef   :  { %v1534_v52 = vpop.xlane.xlu2 %1533 }
 0x7f0   :  { %v1535_v4 = vmul.f32 %v1534_v52, %v3219_v13  ;;  %v1666_v52 = vld [vmem:[#allocation14 + $0x4c8] sm:$0xff] }
 0x7f1   :  { %v1538_v63 = vpop.xlane.xlu0 %1537  ;;  %1745 = vmatpush.msrb.mxu2 %v1666_v52 }
 0x7f2   :  { %v1540_v28 = vmul.f32 %v1535_v4, %v1535_v4  ;;  %v1539_v0 = vmul.f32 %v1538_v63, %v3219_v13  ;;  %v1542_v15 = vsub.f32 %v1528_v45, %v1535_v4  ;;  %v1681_v45 = vld [vmem:[#allocation14 + $0x540] sm:$0xff]  ;;  %v1668_v4 = vld [vmem:[#allocation14 + $0x4d8] sm:$0xff] }
 0x7f3   :  { %1721 = vmatpush.msrb.mxu1 %v1681_v45  ;;  %1785 = vmatpush.msra.mxu0 %v1668_v4  ;;  %v1661_v63 = vld [vmem:[#allocation14 + $0x4a0] sm:$0xff] }
 0x7f4   :  { %v1541_v5 = vsub.f32 %v1539_v0, %v1540_v28  ;;  %v1662_v28 = vld [vmem:[#allocation14 + $0x4a8] sm:$0xff]  ;;  %v1663_v0 = vld [vmem:[#allocation14 + $0x4b0] sm:$0xff] }
 0x7f5   :  { %1722 = vmatpush.msrb.mxu1 %v1677_v47  ;;  %1746 = vmatpush.msrb.mxu2 %v1662_v28 }
 0x7f6   :  { %v1543_v6 = vadd.f32 1e-05, %v1541_v5  ;;  %v1664_v5 = vld [vmem:[#allocation14 + $0x4b8] sm:$0xff]  ;;  %1766 = vmatpush.msrb.mxu3 %v1663_v0  ;;  %v1986_v0 = vld [vmem:[#allocation16 + $0x468] sm:$0xff] }
 0x7f7   :  { %1723 = vmatpush.msrb.mxu1 %v1673_v39  ;;  %1786 = vmatpush.msra.mxu0 %v1664_v5  ;;  %v2034_v5 = vld [vmem:[#allocation16 + $0x5e8] sm:$0xff] }
 0x7f8   :  { %2663 = vrsqrt.f32 %v1543_v6  ;;  %vm1550_vm8 = vweird.f32 %v1543_v6 }
 0x7f9   :  { %1724 = vmatpush.msrb.mxu1 %v1669_v55 }
 0x7fb   :  { %1725 = vmatpush.msrb.mxu1 %v1665_v54  ;;  %v2035_v54 = vld [vmem:[#allocation16 + $0x5f0] sm:$0xff] }
 0x7fd   :  { %1726 = vmatpush.msrb.mxu1 %v1661_v63 }
 0x7fe   :  { %v2664_v7 = vpop.eup %2663 }
 0x7ff   :  { %v1545_v9 = vmul.f32 %v2664_v7, %v1543_v6  ;;  %vm1551_vm7 = vweird.f32 %v2664_v7  ;;  %v1657_v6 = vld [vmem:[#allocation14 + $0x480] sm:$0xff] }
 0x800   :  { %vm1552_vm9 = vmor %vm1550_vm8, %vm1551_vm7  ;;  %1727 = vmatpush.msrb.mxu1 %v1657_v6 }
 0x801   :  { %v1546_v10 = vmul.f32 %v2664_v7, %v1545_v9  ;;  %v1659_v9 = vld [vmem:[#allocation14 + $0x490] sm:$0xff] }
 0x802   :  { %1767 = vmatpush.msrb.mxu3 %v1659_v9 }
 0x803   :  { %v1547_v12 = vmul.f32 0.5, %v1546_v10  ;;  %v1660_v10 = vld [vmem:[#allocation14 + $0x498] sm:$0xff] }
 0x804   :  { %1787 = vmatpush.msra.mxu0 %v1660_v10 }
 0x805   :  { %v1548_v17 = vsub.f32 1.5, %v1547_v12  ;;  %v1653_v12 = vld [vmem:[#allocation14 + $0x460] sm:$0xff] }
 0x806   :  { %1728 = vmatpush.msrb.mxu1 %v1653_v12  ;;  %v1985_v12 = vld [vmem:[#allocation16 + $0x460] sm:$0xff] }
 0x807   :  { %v1549_v14 = vmul.f32 %v2664_v7, %v1548_v17  ;;  %v1654_v17 = vld [vmem:[#allocation14 + $0x468] sm:$0xff] }
 0x809   :  { %v1553_v18 = vsel %vm1552_vm9, %v2664_v7, %v1549_v14  ;;  %v1658_v7 = vld [vmem:[#allocation14 + $0x488] sm:$0xff]  ;;  %v1655_v14 = vld [vmem:[#allocation14 + $0x470] sm:$0xff] }
 0x80a   :  { %v1554_v53 = vmul.f32 %v1553_v18, %v1542_v15  ;;  %1747 = vmatpush.msrb.mxu2 %v1658_v7  ;;  %v1656_v15 = vld [vmem:[#allocation14 + $0x478] sm:$0xff]  ;;  %v1650_v18 = vld [vmem:[#allocation14 + $0x448] sm:$0xff]  ;;  %1768 = vmatpush.msrb.mxu3 %v1655_v14 }
 0x80b   :  { %1788 = vmatpush.msra.mxu0 %v1656_v15 }
 0x80c   :  { %v1558_v27 = vmul.f32 %v2626_v25, %v1554_v53  ;;  %1748 = vmatpush.msrb.mxu2 %v1654_v17  ;;  %v1649_v25 = vld [vmem:[#allocation14 + $0x440] sm:$0xff]  ;;  %v1651_v53 = vld [vmem:[#allocation14 + $0x450] sm:$0xff] }
 0x80d   :  { %1729 = vmatpush.msrb.mxu1 %v1649_v25  ;;  %1769 = vmatpush.msrb.mxu3 %v1651_v53  ;;  %v2004_v53 = vld [vmem:[#allocation16 + $0x4f8] sm:$0xff] }
 0x80e   :  { %v1562_v60 = vadd.f32 %v2627_v26, %v1558_v27  ;;  %v1652_v26 = vld [vmem:[#allocation14 + $0x458] sm:$0xff]  ;;  %v1645_v27 = vld [vmem:[#allocation14 + $0x420] sm:$0xff]  ;;  %1749 = vmatpush.msrb.mxu2 %v1650_v18 }
 0x80f   :  { %1789 = vmatpush.msra.mxu0 %v1652_v26  ;;  %1730 = vmatpush.msrb.mxu1 %v1645_v27 }
 0x810   :  { %1601 = vmatmul.f32.vlgmr.msrb.gmra.mxu0 %v1562_v60 }
 0x88d   :  { %v1602_v20 = vpop.f32.mrf.mxu0 }
 0x88e   :  { %v1603_v62 = vadd.f32 %v2628_v19, %v1602_v20  ;;  %v1647_v19 = vld [vmem:[#allocation14 + $0x430] sm:$0xff]  ;;  %v1648_v20 = vld [vmem:[#allocation14 + $0x438] sm:$0xff] }
 0x88f   :  { %1770 = vmatpush.msrb.mxu3 %v1647_v19  ;;  %1790 = vmatpush.msra.mxu0 %v1648_v20 }
 0x890   :  { %v3633_v22 = vadd.f32 %v1603_v62, %v1562_v60  ;;  %v1646_v60 = vld [vmem:[#allocation14 + $0x428] sm:$0xff] }
 0x891   :  { %1750 = vmatpush.msrb.mxu2 %v1646_v60  ;;  %1771 = vmatpush.msrb.mxu3 %v1643_v61 }
 0x892   :  { %1610 = vadd.xlane.f32.xlu1 %v3633_v22  ;;  %v1613_v48 = vmul.f32 %v3633_v22, %v3633_v22  ;;  %1791 = vmatpush.msra.mxu0 %v1644_v35 }
 0x893   :  { %1751 = vmatpush.msrb.mxu2 %v1642_v24  ;;  %v2033_v24 = vld [vmem:[#allocation16 + $0x5e0] sm:$0xff] }
 0x894   :  { %1614 = vadd.xlane.f32.xlu2 %v1613_v48  ;;  %v1641_v48 = vld [vmem:[#allocation14 + $0x400] sm:$0xff]  ;;  %2102 = vmatpush.msrb.mxu0 %v2036_v51  ;;  %v2030_v51 = vld [vmem:[#allocation16 + $0x5c8] sm:$0xff] }
 0x895   :  { %1731 = vmatpush.msrb.mxu1 %v1641_v48  ;;  %2062 = vmatpush.msra.mxu2 %v2004_v53  ;;  %v2020_v48 = vld [vmem:[#allocation16 + $0x578] sm:$0xff]  ;;  %v2029_v53 = vld [vmem:[#allocation16 + $0x5c0] sm:$0xff] }
 0x896   :  { %2103 = vmatpush.msrb.mxu0 %v2035_v54  ;;  %2082 = vmatpush.msra.mxu3 %v2020_v48 }
 0x897   :  { %2042 = vmatpush.msra.mxu1 %v1988_v50  ;;  %v2017_v50 = vld [vmem:[#allocation16 + $0x560] sm:$0xff] }
 0x898   :  { %2104 = vmatpush.msrb.mxu0 %v2034_v5 }
 0x899   :  { %2043 = vmatpush.msra.mxu1 %v1987_v38 }
 0x89a   :  { %2105 = vmatpush.msrb.mxu0 %v2033_v24  ;;  %v1999_v24 = vld [vmem:[#allocation16 + $0x4d0] sm:$0xff] }
 0x89b   :  { %2044 = vmatpush.msra.mxu1 %v1986_v0 }
 0x89d   :  { %2045 = vmatpush.msra.mxu1 %v1985_v12  ;;  %v1981_v12 = vld [vmem:[#allocation16 + $0x440] sm:$0xff] }
 0x905   :  { %v1611_v62 = vpop.xlane.xlu1 %1610 }
 0x906   :  { %v1612_v56 = vmul.f32 %v1611_v62, %v3219_v13 }
 0x907   :  { %v1615_v8 = vpop.xlane.xlu2 %1614 }
 0x908   :  { %v1617_v30 = vmul.f32 %v1612_v56, %v1612_v56  ;;  %v1616_v31 = vmul.f32 %v1615_v8, %v3219_v13  ;;  %v1619_v37 = vsub.f32 %v3633_v22, %v1612_v56  ;;  %v2583_v22 = vld [vmem:[%s4134_s12 + $0x8] sm:$0xf] }
 0x909   :  { %v1708_v42 = vperm.slane %v2583_v22, 0  ;;  %v1711_v16 = vperm.slane %v2583_v22, 3  ;;  %v1709_v3 = vperm.slane %v2583_v22, 1  ;;  %v1710_v2 = vperm.slane %v2583_v22, 2  ;;  %v1984_v56 = vld [vmem:[#allocation16 + $0x458] sm:$0xff]  ;;  %v2031_v22 = vld [vmem:[#allocation16 + $0x5d0] sm:$0xff] }
 0x90a   :  { %v1618_v32 = vsub.f32 %v1616_v31, %v1617_v30  ;;  %v2003_v31 = vld [vmem:[#allocation16 + $0x4f0] sm:$0xff]  ;;  %2046 = vmatpush.msra.mxu1 %v1984_v56 }
 0x90b   :  { %2063 = vmatpush.msra.mxu2 %v2003_v31  ;;  %v2015_v56 = vld [vmem:[#allocation16 + $0x550] sm:$0xff] }
 0x90c   :  { %v1620_v41 = vadd.f32 1e-05, %v1618_v32  ;;  %v2019_v32 = vld [vmem:[#allocation16 + $0x570] sm:$0xff] }
 0x90d   :  { %2083 = vmatpush.msra.mxu3 %v2019_v32  ;;  %v2028_v32 = vld [vmem:[#allocation16 + $0x5b8] sm:$0xff] }
 0x90e   :  { %2665 = vrsqrt.f32 %v1620_v41  ;;  %vm1627_vm11 = vweird.f32 %v1620_v41 }
 0x914   :  { %v2666_v33 = vpop.eup %2665 }
 0x915   :  { %v1622_v34 = vmul.f32 %v2666_v33, %v1620_v41  ;;  %vm1628_vm10 = vweird.f32 %v2666_v33  ;;  %v2032_v41 = vld [vmem:[#allocation16 + $0x5d8] sm:$0xff] }
 0x916   :  { %vm1629_vm12 = vmor %vm1627_vm11, %vm1628_vm10  ;;  %2106 = vmatpush.msrb.mxu0 %v2032_v41  ;;  %v1979_v41 = vld [vmem:[#allocation16 + $0x430] sm:$0xff] }
 0x917   :  { %v1623_v21 = vmul.f32 %v2666_v33, %v1622_v34 }
 0x918   :  { %2107 = vmatpush.msrb.mxu0 %v2031_v22  ;;  %v1997_v22 = vld [vmem:[#allocation16 + $0x4c0] sm:$0xff] }
 0x919   :  { %v1624_v36 = vmul.f32 0.5, %v1623_v21  ;;  %v1983_v21 = vld [vmem:[#allocation16 + $0x450] sm:$0xff] }
 0x91a   :  { %2047 = vmatpush.msra.mxu1 %v1983_v21  ;;  %2108 = vmatpush.msrb.mxu0 %v2030_v51  ;;  %v2014_v21 = vld [vmem:[#allocation16 + $0x548] sm:$0xff]  ;;  %v2012_v51 = vld [vmem:[#allocation16 + $0x538] sm:$0xff] }
 0x91b   :  { %v1625_v40 = vsub.f32 1.5, %v1624_v36  ;;  %v2002_v36 = vld [vmem:[#allocation16 + $0x4e8] sm:$0xff] }
 0x91c   :  { %2064 = vmatpush.msra.mxu2 %v2002_v36  ;;  %2109 = vmatpush.msrb.mxu0 %v2029_v53  ;;  %v2027_v36 = vld [vmem:[#allocation16 + $0x5b0] sm:$0xff]  ;;  %v1974_v53 = vld [vmem:[#allocation16 + $0x408] sm:$0xff] }
 0x91d   :  { %v1626_v11 = vmul.f32 %v2666_v33, %v1625_v40 }
 0x91e   :  { %2110 = vmatpush.msrb.mxu0 %v2028_v32 }
 0x91f   :  { %v1630_v44 = vsel %vm1629_vm12, %v2666_v33, %v1626_v11 }
 0x920   :  { %v1631_v43 = vmul.f32 %v1630_v44, %v1619_v37  ;;  %2111 = vmatpush.msrb.mxu0 %v2027_v36 }
 0x922   :  { %v1635_v45 = vmul.f32 %v2629_v29, %v1631_v43 }
 0x924   :  { %v3641_v46 = vadd.f32 %v2630_v57, %v1635_v45  ;;  %v2018_v45 = vld [vmem:[#allocation16 + $0x568] sm:$0xff] }
 0x925   :  { %2084 = vmatpush.msra.mxu3 %v2018_v45 }
 0x926   :  { %1732 = vmatmul.f32.vlgmr.msrb.gmra.mxu1 %v3641_v46  ;;  %1752 = vmatmul.f32.vlgmr.msrb.gmra.mxu2 %v3641_v46 }
 0x927   :  { %1772 = vmatmul.f32.vlgmr.msrb.gmra.mxu3 %v3641_v46  ;;  %1792 = vmatmul.f32.vlgmr.msra.gmra.mxu0 %v3641_v46 }
 0x928   :  { %2085 = vmatpush.msra.mxu3 %v2017_v50  ;;  %v1996_v50 = vld [vmem:[#allocation16 + $0x4b8] sm:$0xff] }
 0x9a3   :  { %v1733_v47 = vpop.f32.mrf.mxu1 }
 0x9a4   :  { %v3650_v23 = vadd.f32 %v1733_v47, %v1708_v42  ;;  %v1793_v1 = vpop.f32.mrf.mxu0  ;;  %v1982_v42 = vld [vmem:[#allocation16 + $0x448] sm:$0xff] }
 0x9a5   :  { %v3652_v49 = vadd.f32 %v1793_v1, %v1711_v16  ;;  %2048 = vmatpush.msra.mxu1 %v1982_v42  ;;  %v2013_v42 = vld [vmem:[#allocation16 + $0x540] sm:$0xff] }
 0x9a6   :  { %v3655_v39 = vmul.f32 0.70710677, %v3650_v23 }
 0x9a7   :  { %v3658_v55 = vmul.f32 0.70710677, %v3652_v49  ;;  %2049 = vmatpush.msra.mxu1 %v1981_v12  ;;  %v1994_v12 = vld [vmem:[#allocation16 + $0x4a8] sm:$0xff] }
 0x9a8   :  { %v1804_v58 = vmul.f32 %v3655_v39, %v3655_v39 }
 0x9a9   :  { %v1924_v52 = vmul.f32 %v3658_v55, %v3658_v55  ;;  %v1753_v59 = vpop.f32.mrf.mxu2 }
 0x9aa   :  { %v3664_v4 = vmin.f32 %v1804_v58, 16.0  ;;  %v3666_v63 = vadd.f32 %v1753_v59, %v1709_v3  ;;  %v1773_v28 = vpop.f32.mrf.mxu3  ;;  %v2001_v3 = vld [vmem:[#allocation16 + $0x4e0] sm:$0xff] }
 0x9ab   :  { %v3668_v6 = vmin.f32 %v1924_v52, 16.0  ;;  %v3670_v7 = vadd.f32 %v1773_v28, %v1710_v2  ;;  %2065 = vmatpush.msra.mxu2 %v2001_v3  ;;  %v1977_v3 = vld [vmem:[#allocation16 + $0x420] sm:$0xff] }
 0x9ac   :  { %v1806_v9 = vmul.f32 2.1237322e-06, %v3664_v4  ;;  %v1817_v10 = vmul.f32 3.8918573e-05, %v3664_v4  ;;  %v3677_v15 = vmul.f32 0.70710677, %v3666_v63 }
 0x9ad   :  { %v1926_v17 = vmul.f32 2.1237322e-06, %v3668_v6  ;;  %v1937_v14 = vmul.f32 3.8918573e-05, %v3668_v6  ;;  %v3682_v19 = vmul.f32 0.70710677, %v3670_v7 }
 0x9ae   :  { %v1807_v25 = vadd.f32 0.00028619796, %v1806_v9  ;;  %v1818_v18 = vadd.f32 0.001143296, %v1817_v10  ;;  %v1844_v60 = vmul.f32 %v3677_v15, %v3677_v15 }
 0x9af   :  { %v1927_v26 = vadd.f32 0.00028619796, %v1926_v17  ;;  %v1938_v27 = vadd.f32 0.001143296, %v1937_v14  ;;  %v1884_v30 = vmul.f32 %v3682_v19, %v3682_v19  ;;  %v2000_v17 = vld [vmem:[#allocation16 + $0x4d8] sm:$0xff] }
 0x9b0   :  { %v1808_v20 = vmul.f32 %v1807_v25, %v3664_v4  ;;  %v1819_v62 = vmul.f32 %v1818_v18, %v3664_v4  ;;  %v3688_v8 = vmin.f32 %v1844_v60, 16.0  ;;  %v2016_v14 = vld [vmem:[#allocation16 + $0x558] sm:$0xff]  ;;  %2066 = vmatpush.msra.mxu2 %v2000_v17 }
 0x9b1   :  { %v1928_v61 = vmul.f32 %v1927_v26, %v3668_v6  ;;  %v1939_v35 = vmul.f32 %v1938_v27, %v3668_v6  ;;  %v3696_v57 = vmin.f32 %v1884_v30, 16.0  ;;  %v1980_v26 = vld [vmem:[#allocation16 + $0x438] sm:$0xff]  ;;  %2086 = vmatpush.msra.mxu3 %v2016_v14 }
 0x9b2   :  { %v1809_v33 = vadd.f32 0.0036580483, %v1808_v20  ;;  %v1820_v34 = vadd.f32 0.014752088, %v1819_v62  ;;  %v1846_v37 = vmul.f32 2.1237322e-06, %v3688_v8  ;;  %2050 = vmatpush.msra.mxu1 %v1980_v26  ;;  %2067 = vmatpush.msra.mxu2 %v1999_v24 }
 0x9b3   :  { %v1929_v40 = vadd.f32 0.0036580483, %v1928_v61  ;;  %v1940_v11 = vadd.f32 0.014752088, %v1939_v35  ;;  %v1857_v43 = vmul.f32 3.8918573e-05, %v3688_v8  ;;  %2087 = vmatpush.msra.mxu3 %v2015_v56 }
 0x9b4   :  { %v1810_v29 = vmul.f32 %v1809_v33, %v3664_v4  ;;  %v1821_v44 = vmul.f32 %v1820_v34, %v3664_v4  ;;  %v1847_v1 = vadd.f32 0.00028619796, %v1846_v37  ;;  %v1886_v28 = vmul.f32 2.1237322e-06, %v3696_v57  ;;  %v1998_v33 = vld [vmem:[#allocation16 + $0x4c8] sm:$0xff]  ;;  %2051 = vmatpush.msra.mxu1 %v1979_v41  ;;  %v1973_v24 = vld [vmem:[#allocation16 + $0x400] sm:$0xff] }
 0x9b5   :  { %v1930_v16 = vmul.f32 %v1929_v40, %v3668_v6  ;;  %v1941_v47 = vmul.f32 %v1940_v11, %v3668_v6  ;;  %v1858_v38 = vadd.f32 0.001143296, %v1857_v43  ;;  %v1897_v10 = vmul.f32 3.8918573e-05, %v3696_v57  ;;  %2068 = vmatpush.msra.mxu2 %v1998_v33  ;;  %2088 = vmatpush.msra.mxu3 %v2014_v21  ;;  %v1978_v37 = vld [vmem:[#allocation16 + $0x428] sm:$0xff]  ;;  %v1992_v56 = vld [vmem:[#allocation16 + $0x498] sm:$0xff] }
 0x9b6   :  { %v1811_v2 = vadd.f32 0.05243302, %v1810_v29  ;;  %v1822_v58 = vadd.f32 0.112945676, %v1821_v44  ;;  %v1848_v59 = vmul.f32 %v1847_v1, %v3688_v8  ;;  %v1887_v20 = vadd.f32 0.00028619796, %v1886_v28  ;;  %2052 = vmatpush.msra.mxu1 %v1978_v37 }
 0x9b7   :  { %v1931_v54 = vadd.f32 0.05243302, %v1930_v16  ;;  %v1942_v52 = vadd.f32 0.112945676, %v1941_v47  ;;  %v1859_v9 = vmul.f32 %v1858_v38, %v3688_v8  ;;  %v1898_v31 = vadd.f32 0.001143296, %v1897_v10  ;;  %2069 = vmatpush.msra.mxu2 %v1997_v22  ;;  %2089 = vmatpush.msra.mxu3 %v2013_v42 }
 0x9b8   :  { %v1812_v0 = vmul.f32 %v1811_v2, %v3664_v4  ;;  %v1823_v5 = vmul.f32 %v1822_v58, %v3664_v4  ;;  %v1849_v18 = vadd.f32 0.0036580483, %v1848_v59  ;;  %v1888_v43 = vmul.f32 %v1887_v20, %v3696_v57  ;;  %v2026_v16 = vld [vmem:[#allocation16 + $0x5a8] sm:$0xff]  ;;  %2053 = vmatpush.msra.mxu1 %v1977_v3  ;;  %v2025_v2 = vld [vmem:[#allocation16 + $0x5a0] sm:$0xff]  ;;  %v1976_v58 = vld [vmem:[#allocation16 + $0x418] sm:$0xff] }
 0x9b9   :  { %v1943_v25 = vmul.f32 %v1942_v52, %v3668_v6  ;;  %v1860_v60 = vadd.f32 0.014752088, %v1859_v9  ;;  %v1932_v35 = vmul.f32 %v1931_v54, %v3668_v6  ;;  %v1899_v45 = vmul.f32 %v1898_v31, %v3696_v57  ;;  %2112 = vmatpush.msrb.mxu0 %v2026_v16  ;;  %v1995_v38 = vld [vmem:[#allocation16 + $0x4b0] sm:$0xff]  ;;  %2070 = vmatpush.msra.mxu2 %v1996_v50  ;;  %v2024_v9 = vld [vmem:[#allocation16 + $0x598] sm:$0xff]  ;;  %v2021_v41 = vld [vmem:[#allocation16 + $0x580] sm:$0xff] }
 0x9ba   :  { %v1824_v27 = vadd.f32 0.4994258, %v1823_v5  ;;  %v1813_v62 = vadd.f32 0.18741608, %v1812_v0  ;;  %v1850_v11 = vmul.f32 %v1849_v18, %v3688_v8  ;;  %2090 = vmatpush.msra.mxu3 %v2012_v51  ;;  %v1889_v52 = vadd.f32 0.0036580483, %v1888_v43  ;;  %2054 = vmatpush.msra.mxu1 %v1976_v58 }
 0x9bb   :  { %v1944_v48 = vadd.f32 0.4994258, %v1943_v25  ;;  %v1861_v30 = vmul.f32 %v1860_v60, %v3688_v8  ;;  %v1933_v1 = vadd.f32 0.18741608, %v1932_v35  ;;  %v1900_v59 = vadd.f32 0.014752088, %v1899_v45  ;;  %2113 = vmatpush.msrb.mxu0 %v2025_v2  ;;  %2071 = vmatpush.msra.mxu2 %v1995_v38 }
 0x9bc   :  { %v1825_v61 = vmul.f32 %v1824_v27, %v3664_v4  ;;  %v1814_v47 = vmul.f32 %v1813_v62, %v3664_v4  ;;  %v1851_v54 = vadd.f32 0.05243302, %v1850_v11  ;;  %v2011_v28 = vld [vmem:[#allocation16 + $0x530] sm:$0xff]  ;;  %v2010_v25 = vld [vmem:[#allocation16 + $0x528] sm:$0xff]  ;;  %v1993_v27 = vld [vmem:[#allocation16 + $0x4a0] sm:$0xff]  ;;  %v1890_v36 = vmul.f32 %v1889_v52, %v3696_v57 }
 0x9bd   :  { %v1945_v34 = vmul.f32 %v1944_v48, %v3668_v6  ;;  %v1862_v44 = vadd.f32 0.112945676, %v1861_v30  ;;  %v1934_v5 = vmul.f32 %v1933_v1, %v3668_v6  ;;  %2091 = vmatpush.msra.mxu3 %v2011_v28  ;;  %v1975_v10 = vld [vmem:[#allocation16 + $0x410] sm:$0xff]  ;;  %v1901_v14 = vmul.f32 %v1900_v59, %v3696_v57  ;;  %2114 = vmatpush.msrb.mxu0 %v2024_v9  ;;  %v2009_v60 = vld [vmem:[#allocation16 + $0x520] sm:$0xff]  ;;  %v2022_v6 = vld [vmem:[#allocation16 + $0x588] sm:$0xff] }
 0x9be   :  { %v3711_v40 = vadd.f32 1.0, %v1825_v61  ;;  %v1815_v0 = vadd.f32 1.1283791, %v1814_v47  ;;  %2055 = vmatpush.msra.mxu1 %v1975_v10  ;;  %v2023_v18 = vld [vmem:[#allocation16 + $0x590] sm:$0xff]  ;;  %2072 = vmatpush.msra.mxu2 %v1994_v12  ;;  %v2008_v61 = vld [vmem:[#allocation16 + $0x518] sm:$0xff]  ;;  %v1852_v31 = vmul.f32 %v1851_v54, %v3688_v8  ;;  %v1990_v16 = vld [vmem:[#allocation16 + $0x488] sm:$0xff] }
 0x9bf   :  { %v3714_v29 = vadd.f32 1.0, %v1945_v34  ;;  %v1863_v4 = vmul.f32 %v1862_v44, %v3688_v8  ;;  %2092 = vmatpush.msra.mxu3 %v2010_v25  ;;  %2115 = vmatpush.msrb.mxu0 %v2023_v18  ;;  %v1935_v35 = vadd.f32 1.1283791, %v1934_v5  ;;  %v1902_v32 = vadd.f32 0.112945676, %v1901_v14  ;;  %v1991_v11 = vld [vmem:[#allocation16 + $0x490] sm:$0xff] }
 0x9c0   :  { %2667 = vrcp.f32 %v3711_v40  ;;  %2056 = vmatpush.msra.mxu1 %v1974_v53  ;;  %2073 = vmatpush.msra.mxu2 %v1993_v27  ;;  %v1816_v33 = vmul.f32 %v1815_v0, %v3655_v39  ;;  %v2007_v37 = vld [vmem:[#allocation16 + $0x510] sm:$0xff]  ;;  %v1836_v44 = vand.u32 2147483647, %v3711_v40  ;;  %v1838_v43 = vand.u32 2147483648, %v3711_v40  ;;  %v2006_v47 = vld [vmem:[#allocation16 + $0x508] sm:$0xff]  ;;  %v1989_v38 = vld [vmem:[#allocation16 + $0x480] sm:$0xff] }
 0x9c1   :  { %2669 = vrcp.f32 %v3714_v29  ;;  %v1864_v17 = vadd.f32 0.4994258, %v1863_v4  ;;  %2093 = vmatpush.msra.mxu3 %v2009_v60  ;;  %2116 = vmatpush.msrb.mxu0 %v2022_v6  ;;  %v1903_v22 = vmul.f32 %v1902_v32, %v3696_v57  ;;  %v1958_v42 = vand.u32 2147483648, %v3714_v29  ;;  %v2005_v54 = vld [vmem:[#allocation16 + $0x500] sm:$0xff] }
 0x9c2   :  { %2057 = vmatpush.msra.mxu1 %v1973_v24  ;;  %2074 = vmatpush.msra.mxu2 %v1992_v56  ;;  %v1956_v3 = vand.u32 2147483647, %v3714_v29  ;;  %vm1832_vm15 = vweird.f32 %v3711_v40  ;;  %v1853_v2 = vadd.f32 0.18741608, %v1852_v31  ;;  %v1891_v58 = vadd.f32 0.05243302, %v1890_v36 }
 0x9c3   :  { %v1865_v48 = vmul.f32 %v1864_v17, %v3688_v8  ;;  %2094 = vmatpush.msra.mxu3 %v2008_v61  ;;  %2117 = vmatpush.msrb.mxu0 %v2021_v41  ;;  %v1904_v50 = vadd.f32 0.4994258, %v1903_v22  ;;  %v1839_v4 = vor.u32 1.1754944e-38, %v1838_v43  ;;  %vm1952_vm1 = vweird.f32 %v3714_v29 }
 0x9c4   :  { %2075 = vmatpush.msra.mxu2 %v1991_v11  ;;  %vm1837_vm2 = vcmp.eq.f32.partialorder %v1836_v44, 8.507059e+37  ;;  %v1959_v0 = vor.u32 1.1754944e-38, %v1958_v42  ;;  %vm1957_vm4 = vcmp.eq.f32.partialorder %v1956_v3, 8.507059e+37  ;;  %v1854_v14 = vmul.f32 %v1853_v2, %v3688_v8 }
 0x9c5   :  { %v3735_v21 = vadd.f32 1.0, %v1865_v48  ;;  %2095 = vmatpush.msra.mxu3 %v2007_v37  ;;  %v1905_v59 = vmul.f32 %v1904_v50, %v3696_v57  ;;  %v1892_v25 = vmul.f32 %v1891_v58, %v3696_v57  ;;  %v1799_v27 = vmul.f32 0.5, %v3652_v49 }
 0x9c6   :  { %v3724_v26 = vpop.eup %2667  ;;  %2076 = vmatpush.msra.mxu2 %v1990_v16  ;;  %v1798_v2 = vmul.f32 0.5, %v3670_v7 }
 0x9c7   :  { %v3726_v20 = vpop.eup %2669  ;;  %v1828_v62 = vmul.f32 %v3724_v26, %v3711_v40  ;;  %vm1833_vm13 = vweird.f32 %v3724_v26  ;;  %2671 = vrcp.f32 %v3735_v21  ;;  %2096 = vmatpush.msra.mxu3 %v2006_v47  ;;  %v1936_v40 = vmul.f32 %v1935_v35, %v3658_v55 }
 0x9c8   :  { %v1948_v30 = vmul.f32 %v3726_v20, %v3714_v29  ;;  %vm1953_vm14 = vweird.f32 %v3726_v20  ;;  %vm1834_vm0 = vmor %vm1832_vm15, %vm1833_vm13  ;;  %v1906_v10 = vadd.f32 1.0, %v1905_v59  ;;  %2077 = vmatpush.msra.mxu2 %v1989_v38  ;;  %v1878_v48 = vand.u32 2147483648, %v3735_v21 }
 0x9c9   :  { %v1829_v34 = vsub.f32 1.0, %v1828_v62  ;;  %vm1954_vm3 = vmor %vm1952_vm1, %vm1953_vm14  ;;  %2097 = vmatpush.msra.mxu3 %v2005_v54  ;;  %v1855_v62 = vadd.f32 1.1283791, %v1854_v14  ;;  %v1893_v24 = vadd.f32 0.18741608, %v1892_v25  ;;  %vm1872_vm7 = vweird.f32 %v3735_v21  ;;  %v2196_v14 = vld [vmem:[%s4139_s17 + $0x138] sm:$0xff] }
 0x9ca   :  { %v1949_v45 = vsub.f32 1.0, %v1948_v30  ;;  %2673 = vrcp.f32 %v1906_v10  ;;  %v1876_v61 = vand.u32 2147483647, %v3735_v21  ;;  %v1918_v44 = vand.u32 2147483648, %v1906_v10  ;;  %v2631_v54 = vld [vmem:[#allocation17 + $0x2] ss:$0 sm:$0xff] }
 0x9cb   :  { %v1830_v39 = vmul.f32 %v3724_v26, %v1829_v34  ;;  %v1894_v49 = vmul.f32 %v1893_v24, %v3696_v57  ;;  %v1916_v22 = vand.u32 2147483647, %v1906_v10  ;;  %vm1912_vm11 = vweird.f32 %v1906_v10  ;;  %v2197_v25 = vld [vmem:[%s4139_s17 + $0x140] sm:$0xff]  ;;  %v2184_v24 = vld [vmem:[%s4139_s17 + $0xd8] sm:$0xff] }
 0x9cc   :  { %v1950_v1 = vmul.f32 %v3726_v20, %v1949_v45  ;;  %vm1877_vm9 = vcmp.eq.f32.partialorder %v1876_v61, 8.507059e+37  ;;  %v1797_v57 = vmul.f32 0.5, %v3666_v63  ;;  %v1919_v16 = vor.u32 1.1754944e-38, %v1918_v44  ;;  %v2181_v61 = vld [vmem:[%s4139_s17 + $0xc0] sm:$0xff]  ;;  %v2170_v44 = vld [vmem:[%s4139_s17 + $0x68] sm:$0xff] }
 0x9cd   :  { %v1831_v51 = vadd.f32 %v3724_v26, %v1830_v39  ;;  %v2672_v29 = vpop.eup %2671  ;;  %v1895_v43 = vadd.f32 1.1283791, %v1894_v49  ;;  %vm1917_vm13 = vcmp.eq.f32.partialorder %v1916_v22, 8.507059e+37  ;;  %v2175_v49 = vld [vmem:[%s4139_s17 + $0x90] sm:$0xff] }
 0x9ce   :  { %v1951_v52 = vadd.f32 %v3726_v20, %v1950_v1  ;;  %v1868_v55 = vmul.f32 %v2672_v29, %v3735_v21  ;;  %vm1873_vm5 = vweird.f32 %v2672_v29  ;;  %v2167_v22 = vld [vmem:[%s4139_s17 + $0x50] sm:$0xff] }
 0x9cf   :  { %v1835_v28 = vsel %vm1834_vm0, %v3724_v26, %v1831_v51  ;;  %v1796_v26 = vmul.f32 0.5, %v3650_v23  ;;  %vm1874_vm8 = vmor %vm1872_vm7, %vm1873_vm5  ;;  %v1879_v23 = vor.u32 1.1754944e-38, %v1878_v48  ;;  %v2189_v48 = vld [vmem:[%s4139_s17 + $0x100] sm:$0xff] }
 0x9d0   :  { %v1840_v5 = vsel %vm1837_vm2, %v1839_v4, %v1835_v28  ;;  %v1955_v9 = vsel %vm1954_vm3, %v3726_v20, %v1951_v52  ;;  %v1869_v6 = vsub.f32 1.0, %v1868_v55  ;;  %v2674_v30 = vpop.eup %2673  ;;  %v2193_v55 = vld [vmem:[%s4139_s17 + $0x120] sm:$0xff] }
 0x9d1   :  { %v1841_v12 = vmul.f32 %v1840_v5, %v1816_v33  ;;  %v1960_v17 = vsel %vm1957_vm4, %v1959_v0, %v1955_v9  ;;  %v1908_v41 = vmul.f32 %v2674_v30, %v1906_v10  ;;  %v1856_v33 = vmul.f32 %v1855_v62, %v3677_v15  ;;  %v2202_v9 = vld [vmem:[%s4139_s17 + $0x168] sm:$0xff]  ;;  %v2203_v10 = vld [vmem:[%s4139_s17 + $0x170] sm:$0xff]  ;;  %v2188_v62 = vld [vmem:[%s4139_s17 + $0xf8] sm:$0xff] }
 0x9d2   :  { %v1961_v18 = vmul.f32 %v1960_v17, %v1936_v40  ;;  %v1870_v8 = vmul.f32 %v2672_v29, %v1869_v6  ;;  %vm1913_vm10 = vweird.f32 %v2674_v30  ;;  %v1896_v15 = vmul.f32 %v1895_v43, %v3682_v19  ;;  %2213 = vmatpush.msrb.mxu1 %v2202_v9  ;;  %2233 = vmatpush.msrb.mxu2 %v2203_v10  ;;  %v2201_v17 = vld [vmem:[%s4139_s17 + $0x160] sm:$0xff]  ;;  %v2192_v6 = vld [vmem:[%s4139_s17 + $0x118] sm:$0xff]  ;;  %v2171_v43 = vld [vmem:[%s4139_s17 + $0x70] sm:$0xff] }
 0x9d3   :  { %v2584_v53 = vclamps-f32 %v1841_v12, 1.0  ;;  %v1909_v11 = vsub.f32 1.0, %v1908_v41  ;;  %vm1914_vm12 = vmor %vm1912_vm11, %vm1913_vm10  ;;  %v2200_v12 = vld [vmem:[%s4139_s17 + $0x158] sm:$0xff]  ;;  %v2632_v9 = vld [vmem:[#allocation19 + $0x2] ss:$0 sm:$0xff] }
 0x9d4   :  { %v2587_v60 = vclamps-f32 %v1961_v18, 1.0  ;;  %v1871_v32 = vadd.f32 %v2672_v29, %v1870_v8  ;;  %2234 = vmatpush.msrb.mxu2 %v2200_v12  ;;  %v2198_v18 = vld [vmem:[%s4139_s17 + $0x148] sm:$0xff]  ;;  %v2176_v41 = vld [vmem:[%s4139_s17 + $0x98] sm:$0xff] }
 0x9d5   :  { %v1964_v20 = vadd.f32 1.0, %v2584_v53  ;;  %v1910_v45 = vmul.f32 %v2674_v30, %v1909_v11  ;;  %v2194_v53 = vld [vmem:[%s4139_s17 + $0x128] sm:$0xff] }
 0x9d6   :  { %v1967_v56 = vadd.f32 1.0, %v2587_v60  ;;  %v1875_v34 = vsel %vm1874_vm8, %v2672_v29, %v1871_v32  ;;  %v2204_v29 = vld [vmem:[%s4139_s17 + $0x178] sm:$0xff]  ;;  %2235 = vmatpush.msrb.mxu2 %v2197_v25  ;;  %v2191_v60 = vld [vmem:[%s4139_s17 + $0x110] sm:$0xff]  ;;  %v2186_v8 = vld [vmem:[%s4139_s17 + $0xe8] sm:$0xff] }
 0x9d7   :  { %v1968_v35 = vmul.f32 %v1964_v20, %v1796_v26  ;;  %v1880_v36 = vsel %vm1877_vm9, %v1879_v23, %v1875_v34  ;;  %v1911_v39 = vadd.f32 %v2674_v30, %v1910_v45  ;;  %2253 = vmatpush.msrb.mxu3 %v2204_v29  ;;  %v2195_v26 = vld [vmem:[%s4139_s17 + $0x130] sm:$0xff]  ;;  %v2180_v23 = vld [vmem:[%s4139_s17 + $0xb8] sm:$0xff]  ;;  %v2174_v11 = vld [vmem:[%s4139_s17 + $0x88] sm:$0xff] }
 0x9d8   :  { %v1971_v31 = vmul.f32 %v1967_v56, %v1799_v27  ;;  %v1881_v37 = vmul.f32 %v1880_v36, %v1856_v33  ;;  %2236 = vmatpush.msrb.mxu2 %v2194_v53  ;;  %v2190_v27 = vld [vmem:[%s4139_s17 + $0x108] sm:$0xff]  ;;  %v2187_v20 = vld [vmem:[%s4139_s17 + $0xf0] sm:$0xff]  ;;  %v2185_v56 = vld [vmem:[%s4139_s17 + $0xe0] sm:$0xff] }
 0x9d9   :  { %2058 = vmatmul.f32.vlgmr.msra.gmra.mxu1 %v1968_v35  ;;  %v1915_v47 = vsel %vm1914_vm12, %v2674_v30, %v1911_v39  ;;  %2254 = vmatpush.msrb.mxu3 %v2201_v17  ;;  %v2182_v35 = vld [vmem:[%s4139_s17 + $0xc8] sm:$0xff]  ;;  %v2183_v30 = vld [vmem:[%s4139_s17 + $0xd0] sm:$0xff]  ;;  %v2177_v33 = vld [vmem:[%s4139_s17 + $0xa0] sm:$0xff] }
 0x9da   :  { %2118 = vmatmul.f32.vlgmr.msrb.gmra.mxu0 %v1971_v31  ;;  %v2585_v21 = vclamps-f32 %v1881_v37, 1.0  ;;  %v1920_v3 = vsel %vm1917_vm13, %v1919_v16, %v1915_v47  ;;  %2237 = vmatpush.msrb.mxu2 %v2191_v60  ;;  %v2178_v31 = vld [vmem:[%s4139_s17 + $0xa8] sm:$0xff]  ;;  %v2179_v32 = vld [vmem:[%s4139_s17 + $0xb0] sm:$0xff]  ;;  %v2172_v34 = vld [vmem:[%s4139_s17 + $0x78] sm:$0xff] }
 0x9db   :  { %v1921_v50 = vmul.f32 %v1920_v3, %v1896_v15  ;;  %2255 = vmatpush.msrb.mxu3 %v2198_v18  ;;  %v2173_v36 = vld [vmem:[%s4139_s17 + $0x80] sm:$0xff]  ;;  %v2166_v45 = vld [vmem:[%s4139_s17 + $0x48] sm:$0xff]  ;;  %v2163_v39 = vld [vmem:[%s4139_s17 + $0x30] sm:$0xff] }
 0x9dc   :  { %v1965_v42 = vadd.f32 1.0, %v2585_v21  ;;  %2238 = vmatpush.msrb.mxu2 %v2188_v62  ;;  %v2169_v37 = vld [vmem:[%s4139_s17 + $0x60] sm:$0xff]  ;;  %v2168_v21 = vld [vmem:[%s4139_s17 + $0x58] sm:$0xff]  ;;  %v2162_v47 = vld [vmem:[%s4139_s17 + $0x28] sm:$0xff] }
 0x9dd   :  { %v2586_v51 = vclamps-f32 %v1921_v50, 1.0  ;;  %2256 = vmatpush.msrb.mxu3 %v2195_v26  ;;  %v2160_v16 = vld [vmem:[%s4139_s17 + $0x18] sm:$0xff]  ;;  %v2161_v15 = vld [vmem:[%s4139_s17 + $0x20] sm:$0xff]  ;;  %v2158_v50 = vld [vmem:[%s4139_s17 + $0x8] sm:$0xff] }
 0x9de   :  { %v1969_v1 = vmul.f32 %v1965_v42, %v1797_v57  ;;  %2239 = vmatpush.msrb.mxu2 %v2185_v56  ;;  %v2164_v57 = vld [vmem:[%s4139_s17 + $0x38] sm:$0xff]  ;;  %v2165_v42 = vld [vmem:[%s4139_s17 + $0x40] sm:$0xff]  ;;  %v2419_v25 = vld [vmem:[%s4141_s19 + $0x70] sm:$0xff] }
 0x9df   :  { %v1966_v58 = vadd.f32 1.0, %v2586_v51  ;;  %2257 = vmatpush.msrb.mxu3 %v2192_v6  ;;  %v2157_v3 = vld [vmem:[%s4139_s17] sm:$0xff]  ;;  %v2416_v62 = vld [vmem:[%s4141_s19 + $0x58] sm:$0xff] }
 0x9e0   :  { %2078 = vmatmul.f32.vlgmr.msra.gmra.mxu2 %v1969_v1  ;;  %v2633_v29 = vld [vmem:[%s4138_s16 + $0x2] ss:$0 sm:$0xff] }
 0x9e1   :  { %v1970_v38 = vmul.f32 %v1966_v58, %v1798_v2  ;;  %2258 = vmatpush.msrb.mxu3 %v2189_v48  ;;  %2240 = vmatpush.msrb.mxu2 %v2182_v35  ;;  %v2159_v2 = vld [vmem:[%s4139_s17 + $0x10] sm:$0xff]  ;;  %v2205_v17 = vld [vmem:[%s4140_s18] sm:$0x7] }
 0x9e2   :  { %v2417_v26 = vld [vmem:[%s4141_s19 + $0x60] sm:$0xff]  ;;  %v2208_v6 = vperm.slane %v2205_v17, 1  ;;  %v2435_v48 = vld [vmem:[%s4141_s19 + $0xf0] sm:$0xff] }
 0x9e3   :  { %2098 = vmatmul.f32.vlgmr.msra.gmra.mxu3 %v1970_v38  ;;  %2241 = vmatpush.msrb.mxu2 %v2179_v32 }
 0x9e4   :  { %2259 = vmatpush.msrb.mxu3 %v2186_v8  ;;  %v2415_v8 = vld [vmem:[%s4141_s19 + $0x50] sm:$0xff] }
 0x9e5   :  { %2242 = vmatpush.msrb.mxu2 %v2176_v41 }
 0x9e6   :  { %2260 = vmatpush.msrb.mxu3 %v2183_v30 }
 0x9e7   :  { %2243 = vmatpush.msrb.mxu2 %v2173_v36 }
 0x9e8   :  { %2261 = vmatpush.msrb.mxu3 %v2180_v23  ;;  %v2414_v23 = vld [vmem:[%s4141_s19 + $0x48] sm:$0xff] }
 0x9e9   :  { %2244 = vmatpush.msrb.mxu2 %v2170_v44 }
 0x9ea   :  { %2262 = vmatpush.msrb.mxu3 %v2177_v33 }
 0x9eb   :  { %2245 = vmatpush.msrb.mxu2 %v2167_v22 }
 0x9ec   :  { %2263 = vmatpush.msrb.mxu3 %v2174_v11  ;;  %v2413_v11 = vld [vmem:[%s4141_s19 + $0x40] sm:$0xff] }
 0x9ed   :  { %2246 = vmatpush.msrb.mxu2 %v2164_v57 }
 0x9ee   :  { %2264 = vmatpush.msrb.mxu3 %v2171_v43  ;;  %v2432_v43 = vld [vmem:[%s4141_s19 + $0xd8] sm:$0xff] }
 0x9ef   :  { %2247 = vmatpush.msrb.mxu2 %v2161_v15 }
 0x9f0   :  { %2265 = vmatpush.msrb.mxu3 %v2168_v21  ;;  %v2412_v21 = vld [vmem:[%s4141_s19 + $0x38] sm:$0xff] }
 0x9f1   :  { %2248 = vmatpush.msrb.mxu2 %v2158_v50 }
 0x9f2   :  { %2266 = vmatpush.msrb.mxu3 %v2165_v42 }
 0x9f4   :  { %2267 = vmatpush.msrb.mxu3 %v2162_v47  ;;  %v2411_v47 = vld [vmem:[%s4141_s19 + $0x30] sm:$0xff] }
 0x9f6   :  { %2268 = vmatpush.msrb.mxu3 %v2159_v2 }
 0xa56   :  { %v2059_v4 = vpop.f32.mrf.mxu1 }
 0xa57   :  { %v2060_v52 = vadd.f32 %v2631_v54, %v2059_v4  ;;  %v2119_v19 = vpop.f32.mrf.mxu0 }
 0xa63   :  { %v2079_v63 = vpop.f32.mrf.mxu2 }
 0xa64   :  { %v2080_v59 = vadd.f32 %v2079_v63, %v2060_v52 }
 0xa66   :  { %v2099_v28 = vpop.f32.mrf.mxu3 }
 0xa67   :  { %v2100_v40 = vadd.f32 %v2099_v28, %v2080_v59 }
 0xa69   :  { %v2120_v0 = vadd.f32 %v2119_v19, %v2100_v40 }
 0xa6b   :  { %v3774_v5 = vadd.f32 %v2120_v0, %v3641_v46  ;;  %v2199_v46 = vld [vmem:[%s4139_s17 + $0x150] sm:$0xff]  ;;  %s4163_s17 = sld [smem:[#allocation35_spill]] }
 0xa6c   :  { %2214 = vmatpush.msrb.mxu1 %v2199_v46 }
 0xa6d   :  { %2127 = vadd.xlane.f32.xlu0 %v3774_v5  ;;  %v2130_v7 = vmul.f32 %v3774_v5, %v3774_v5 }
 0xa6e   :  { %2215 = vmatpush.msrb.mxu1 %v2196_v14  ;;  %v2207_v14 = vperm.slane %v2205_v17, 0 }
 0xa6f   :  { %2131 = vadd.xlane.f32.xlu1 %v2130_v7 }
 0xa70   :  { %2216 = vmatpush.msrb.mxu1 %v2193_v55  ;;  %v2418_v55 = vld [vmem:[%s4141_s19 + $0x68] sm:$0xff] }
 0xa71   :  { %s2520_s0 = sshll.u32 %s4163_s17, 4  ;;  %s2521_s0 = int_to_ptr.hbm [resolvable:$true] %s2520_s0 }
 0xa72   :  { %2217 = vmatpush.msrb.mxu1 %v2190_v27  ;;  %v2436_v27 = vld [vmem:[%s4141_s19 + $0xf8] sm:$0xff] }
 0xa74   :  { %2218 = vmatpush.msrb.mxu1 %v2187_v20  ;;  %v2209_v20 = vperm.slane %v2205_v17, 2 }
 0xa76   :  { %2219 = vmatpush.msrb.mxu1 %v2184_v24 }
 0xa78   :  { %2220 = vmatpush.msrb.mxu1 %v2181_v61  ;;  %v2434_v61 = vld [vmem:[%s4141_s19 + $0xe8] sm:$0xff] }
 0xa7a   :  { %2221 = vmatpush.msrb.mxu1 %v2178_v31 }
 0xa7c   :  { %2222 = vmatpush.msrb.mxu1 %v2175_v49  ;;  %v2433_v49 = vld [vmem:[%s4141_s19 + $0xe0] sm:$0xff] }
 0xa7e   :  { %2223 = vmatpush.msrb.mxu1 %v2172_v34 }
 0xa80   :  { %2224 = vmatpush.msrb.mxu1 %v2169_v37 }
 0xa82   :  { %2225 = vmatpush.msrb.mxu1 %v2166_v45 }
 0xa84   :  { %2226 = vmatpush.msrb.mxu1 %v2163_v39  ;;  %v2431_v39 = vld [vmem:[%s4141_s19 + $0xd0] sm:$0xff] }
 0xa86   :  { %2227 = vmatpush.msrb.mxu1 %v2160_v16 }
 0xa88   :  { %2228 = vmatpush.msrb.mxu1 %v2157_v3 }
 0xa8a   :  { %2472 = vmatpush.msra.mxu1 %v2436_v27 }
 0xa8c   :  { %2473 = vmatpush.msra.mxu1 %v2435_v48  ;;  %v2407_v48 = vld [vmem:[%s4141_s19 + $0x10] sm:$0xff] }
 0xa8e   :  { %2474 = vmatpush.msra.mxu1 %v2434_v61 }
 0xa90   :  { %2475 = vmatpush.msra.mxu1 %v2433_v49  ;;  %v2425_v49 = vld [vmem:[%s4141_s19 + $0xa0] sm:$0xff] }
 0xa92   :  { %2476 = vmatpush.msra.mxu1 %v2432_v43  ;;  %v2405_v43 = vld [vmem:[%s4141_s19] sm:$0xff] }
 0xa94   :  { %2477 = vmatpush.msra.mxu1 %v2431_v39  ;;  %v2440_v39 = vld [vmem:[%s4141_s19 + $0x118] sm:$0xff] }
 0xae0   :  { %v2128_v1 = vpop.xlane.xlu0 %2127 }
 0xae1   :  { %v2129_v51 = vmul.f32 %v2128_v1, %v3219_v13  ;;  %v2430_v1 = vld [vmem:[%s4141_s19 + $0xc8] sm:$0xff] }
 0xae2   :  { %v2132_v58 = vpop.xlane.xlu1 %2131  ;;  %2478 = vmatpush.msra.mxu1 %v2430_v1 }
 0xae3   :  { %v2134_v38 = vmul.f32 %v2129_v51, %v2129_v51  ;;  %v2133_v54 = vmul.f32 %v2132_v58, %v3219_v13  ;;  %v2136_v7 = vsub.f32 %v3774_v5, %v2129_v51  ;;  %v2420_v5 = vld [vmem:[%s4141_s19 + $0x78] sm:$0xff] }
 0xae4   :  { %2452 = vmatpush.msra.mxu0 %v2420_v5  ;;  %v2408_v5 = vld [vmem:[%s4141_s19 + $0x18] sm:$0xff] }
 0xae5   :  { %v2135_v4 = vsub.f32 %v2133_v54, %v2134_v38 }
 0xae6   :  { %2453 = vmatpush.msra.mxu0 %v2419_v25  ;;  %v2443_v25 = vld [vmem:[%s4141_s19 + $0x130] sm:$0xff] }
 0xae7   :  { %v2137_v63 = vadd.f32 1e-05, %v2135_v4  ;;  %v2410_v4 = vld [vmem:[%s4141_s19 + $0x28] sm:$0xff] }
 0xae8   :  { %2454 = vmatpush.msra.mxu0 %v2418_v55 }
 0xae9   :  { %2675 = vrsqrt.f32 %v2137_v63  ;;  %vm2144_vm15 = vweird.f32 %v2137_v63 }
 0xaea   :  { %2455 = vmatpush.msra.mxu0 %v2417_v26 }
 0xaec   :  { %2456 = vmatpush.msra.mxu0 %v2416_v62 }
 0xaee   :  { %2457 = vmatpush.msra.mxu0 %v2415_v8 }
 0xaef   :  { %v2676_v52 = vpop.eup %2675 }
 0xaf0   :  { %v2139_v59 = vmul.f32 %v2676_v52, %v2137_v63  ;;  %vm2145_vm14 = vweird.f32 %v2676_v52  ;;  %2458 = vmatpush.msra.mxu0 %v2414_v23  ;;  %v2429_v63 = vld [vmem:[%s4141_s19 + $0xc0] sm:$0xff]  ;;  %v2406_v23 = vld [vmem:[%s4141_s19 + $0x8] sm:$0xff] }
 0xaf1   :  { %vm2146_vm0 = vmor %vm2144_vm15, %vm2145_vm14  ;;  %2479 = vmatpush.msra.mxu1 %v2429_v63 }
 0xaf2   :  { %v2140_v28 = vmul.f32 %v2676_v52, %v2139_v59  ;;  %2459 = vmatpush.msra.mxu0 %v2413_v11 }
 0xaf4   :  { %v2141_v40 = vmul.f32 0.5, %v2140_v28  ;;  %2460 = vmatpush.msra.mxu0 %v2412_v21  ;;  %v2424_v21 = vld [vmem:[%s4141_s19 + $0x98] sm:$0xff] }
 0xaf6   :  { %v2142_v19 = vsub.f32 1.5, %v2141_v40  ;;  %2461 = vmatpush.msra.mxu0 %v2411_v47  ;;  %v2439_v47 = vld [vmem:[%s4141_s19 + $0x110] sm:$0xff] }
 0xaf8   :  { %v2143_v0 = vmul.f32 %v2676_v52, %v2142_v19  ;;  %2462 = vmatpush.msra.mxu0 %v2410_v4  ;;  %v2421_v4 = vld [vmem:[%s4141_s19 + $0x80] sm:$0xff] }
 0xafa   :  { %v2147_v10 = vsel %vm2146_vm0, %v2676_v52, %v2143_v0 }
 0xafb   :  { %v2148_v13 = vmul.f32 %v2147_v10, %v2136_v7 }
 0xafd   :  { %v2152_v46 = vmul.f32 %v2632_v9, %v2148_v13  ;;  %v2409_v13 = vld [vmem:[%s4141_s19 + $0x20] sm:$0xff] }
 0xafe   :  { %2463 = vmatpush.msra.mxu0 %v2409_v13 }
 0xaff   :  { %v2156_v12 = vadd.f32 %v2633_v29, %v2152_v46  ;;  %v2428_v29 = vld [vmem:[%s4141_s19 + $0xb8] sm:$0xff] }
 0xb00   :  { %v2444_v46 = vld [vmem:[%s4141_s19 + $0x138] sm:$0xff]  ;;  %2480 = vmatpush.msra.mxu1 %v2428_v29  ;;  %2464 = vmatpush.msra.mxu0 %v2408_v5 }
 0xb01   :  { %2229 = vmatmul.f32.vlgmr.msrb.gmra.mxu1 %v2156_v12  ;;  %2249 = vmatmul.f32.vlgmr.msrb.gmra.mxu2 %v2156_v12 }
 0xb02   :  { %2269 = vmatmul.f32.vlgmr.msrb.gmra.mxu3 %v2156_v12  ;;  %2500 = vmatpush.msra.mxu2 %v2444_v46 }
 0xb03   :  { %2465 = vmatpush.msra.mxu0 %v2407_v48 }
 0xb04   :  { %2501 = vmatpush.msra.mxu2 %v2443_v25 }
 0xb05   :  { %2466 = vmatpush.msra.mxu0 %v2406_v23 }
 0xb07   :  { %2467 = vmatpush.msra.mxu0 %v2405_v43 }
 0xb7e   :  { %v2230_v18 = vpop.f32.mrf.mxu1 }
 0xb7f   :  { %v3941_v53 = vadd.f32 %v2230_v18, %v2207_v14  ;;  %v2427_v14 = vld [vmem:[%s4141_s19 + $0xb0] sm:$0xff] }
 0xb80   :  { %2481 = vmatpush.msra.mxu1 %v2427_v14 }
 0xb81   :  { %v3950_v60 = vmul.f32 0.70710677, %v3941_v53  ;;  %v2273_v23 = vmul.f32 0.5, %v3941_v53 }
 0xb83   :  { %v2279_v24 = vmul.f32 %v3950_v60, %v3950_v60 }
 0xb84   :  { %v2250_v56 = vpop.f32.mrf.mxu2 }
 0xb85   :  { %v3966_v35 = vmin.f32 %v2279_v24, 16.0  ;;  %v3968_v30 = vadd.f32 %v2250_v56, %v2208_v6  ;;  %v2270_v31 = vpop.f32.mrf.mxu3  ;;  %v2426_v24 = vld [vmem:[%s4141_s19 + $0xa8] sm:$0xff] }
 0xb86   :  { %v3970_v32 = vadd.f32 %v2270_v31, %v2209_v20  ;;  %v2442_v56 = vld [vmem:[%s4141_s19 + $0x128] sm:$0xff]  ;;  %2482 = vmatpush.msra.mxu1 %v2426_v24 }
 0xb87   :  { %v2281_v41 = vmul.f32 2.1237322e-06, %v3966_v35  ;;  %v2292_v33 = vmul.f32 3.8918573e-05, %v3966_v35  ;;  %v3981_v34 = vmul.f32 0.70710677, %v3968_v30  ;;  %2502 = vmatpush.msra.mxu2 %v2442_v56 }
 0xb88   :  { %v3984_v36 = vmul.f32 0.70710677, %v3970_v32  ;;  %2483 = vmatpush.msra.mxu1 %v2425_v49 }
 0xb89   :  { %v2282_v37 = vadd.f32 0.00028619796, %v2281_v41  ;;  %v2293_v44 = vadd.f32 0.001143296, %v2292_v33  ;;  %v2319_v45 = vmul.f32 %v3981_v34, %v3981_v34  ;;  %v2441_v41 = vld [vmem:[%s4141_s19 + $0x120] sm:$0xff] }
 0xb8a   :  { %v2359_v22 = vmul.f32 %v3984_v36, %v3984_v36  ;;  %2503 = vmatpush.msra.mxu2 %v2441_v41  ;;  %2484 = vmatpush.msra.mxu1 %v2424_v21 }
 0xb8b   :  { %v2283_v57 = vmul.f32 %v2282_v37, %v3966_v35  ;;  %v2294_v42 = vmul.f32 %v2293_v44, %v3966_v35  ;;  %v4004_v16 = vmin.f32 %v2319_v45, 16.0 }
 0xb8c   :  { %v4006_v15 = vmin.f32 %v2359_v22, 16.0  ;;  %2504 = vmatpush.msra.mxu2 %v2440_v39 }
 0xb8d   :  { %v2284_v3 = vadd.f32 0.0036580483, %v2283_v57  ;;  %v2295_v50 = vadd.f32 0.014752088, %v2294_v42  ;;  %v2321_v51 = vmul.f32 2.1237322e-06, %v4004_v16 }
 0xb8e   :  { %v2332_v2 = vmul.f32 3.8918573e-05, %v4004_v16  ;;  %v2361_v58 = vmul.f32 2.1237322e-06, %v4006_v15  ;;  %v2372_v54 = vmul.f32 3.8918573e-05, %v4006_v15  ;;  %2505 = vmatpush.msra.mxu2 %v2439_v47 }
 0xb8f   :  { %v2296_v38 = vmul.f32 %v2295_v50, %v3966_v35  ;;  %v2322_v52 = vadd.f32 0.00028619796, %v2321_v51  ;;  %v2285_v40 = vmul.f32 %v2284_v3, %v3966_v35  ;;  %v2423_v57 = vld [vmem:[%s4141_s19 + $0x90] sm:$0xff]  ;;  %v2422_v50 = vld [vmem:[%s4141_s19 + $0x88] sm:$0xff] }
 0xb90   :  { %v2333_v59 = vadd.f32 0.001143296, %v2332_v2  ;;  %v2362_v28 = vadd.f32 0.00028619796, %v2361_v58  ;;  %v2373_v0 = vadd.f32 0.001143296, %v2372_v54  ;;  %2485 = vmatpush.msra.mxu1 %v2423_v57 }
 0xb91   :  { %v2297_v19 = vadd.f32 0.112945676, %v2296_v38  ;;  %v2323_v7 = vmul.f32 %v2322_v52, %v4004_v16  ;;  %v2286_v26 = vadd.f32 0.05243302, %v2285_v40  ;;  %v2438_v2 = vld [vmem:[%s4141_s19 + $0x108] sm:$0xff]  ;;  %v2437_v52 = vld [vmem:[%s4141_s19 + $0x100] sm:$0xff] }
 0xb92   :  { %v2334_v9 = vmul.f32 %v2333_v59, %v4004_v16  ;;  %v2363_v10 = vmul.f32 %v2362_v28, %v4006_v15  ;;  %v2374_v17 = vmul.f32 %v2373_v0, %v4006_v15  ;;  %2486 = vmatpush.msra.mxu1 %v2422_v50  ;;  %2506 = vmatpush.msra.mxu2 %v2438_v2  ;;  %v2274_v50 = vmul.f32 0.5, %v3968_v30 }
 0xb93   :  { %v2298_v12 = vmul.f32 %v2297_v19, %v3966_v35  ;;  %v2324_v18 = vadd.f32 0.0036580483, %v2323_v7  ;;  %v2287_v11 = vmul.f32 %v2286_v26, %v3966_v35 }
 0xb94   :  { %v2335_v55 = vadd.f32 0.014752088, %v2334_v9  ;;  %v2375_v6 = vadd.f32 0.014752088, %v2374_v17  ;;  %v2364_v62 = vadd.f32 0.0036580483, %v2363_v10  ;;  %2487 = vmatpush.msra.mxu1 %v2421_v4  ;;  %2507 = vmatpush.msra.mxu2 %v2437_v52 }
 0xb95   :  { %v2299_v27 = vadd.f32 0.4994258, %v2298_v12  ;;  %v2325_v61 = vmul.f32 %v2324_v18, %v4004_v16  ;;  %v2288_v51 = vadd.f32 0.18741608, %v2287_v11 }
 0xb96   :  { %v2336_v20 = vmul.f32 %v2335_v55, %v4004_v16  ;;  %v2376_v31 = vmul.f32 %v2375_v6, %v4006_v15  ;;  %v2365_v22 = vmul.f32 %v2364_v62, %v4006_v15 }
 0xb97   :  { %v2300_v8 = vmul.f32 %v2299_v27, %v3966_v35  ;;  %v2326_v42 = vadd.f32 0.05243302, %v2325_v61  ;;  %v2289_v19 = vmul.f32 %v2288_v51, %v3966_v35 }
 0xb98   :  { %v2337_v33 = vadd.f32 0.112945676, %v2336_v20  ;;  %v2377_v44 = vadd.f32 0.112945676, %v2376_v31  ;;  %v2366_v38 = vadd.f32 0.05243302, %v2365_v22 }
 0xb99   :  { %v2301_v37 = vadd.f32 1.0, %v2300_v8  ;;  %v2327_v63 = vmul.f32 %v2326_v42, %v4004_v16  ;;  %v2290_v29 = vadd.f32 1.1283791, %v2289_v19 }
 0xb9a   :  { %v2338_v45 = vmul.f32 %v2337_v33, %v4004_v16  ;;  %v2378_v3 = vmul.f32 %v2377_v44, %v4006_v15  ;;  %v2367_v7 = vmul.f32 %v2366_v38, %v4006_v15 }
 0xb9b   :  { %2677 = vrcp.f32 %v2301_v37  ;;  %v2328_v9 = vadd.f32 0.18741608, %v2327_v63  ;;  %v2311_v46 = vand.u32 2147483647, %v2301_v37  ;;  %v2313_v12 = vand.u32 2147483648, %v2301_v37 }
 0xb9c   :  { %v2339_v1 = vadd.f32 0.4994258, %v2338_v45  ;;  %v2379_v54 = vadd.f32 0.4994258, %v2378_v3  ;;  %v2368_v5 = vadd.f32 0.18741608, %v2367_v7  ;;  %vm2307_vm2 = vweird.f32 %v2301_v37 }
 0xb9d   :  { %v2329_v14 = vmul.f32 %v2328_v9, %v4004_v16  ;;  %v2314_v18 = vor.u32 1.1754944e-38, %v2313_v12  ;;  %v2291_v26 = vmul.f32 %v2290_v29, %v3950_v60  ;;  %vm2312_vm4 = vcmp.eq.f32.partialorder %v2311_v46, 8.507059e+37 }
 0xb9e   :  { %v2340_v58 = vmul.f32 %v2339_v1, %v4004_v16  ;;  %v2380_v28 = vmul.f32 %v2379_v54, %v4006_v15  ;;  %v2369_v6 = vmul.f32 %v2368_v5, %v4006_v15  ;;  %v2275_v54 = vmul.f32 0.5, %v3970_v32 }
 0xb9f   :  { %v2330_v62 = vadd.f32 1.1283791, %v2329_v14 }
 0xba0   :  { %v2341_v59 = vadd.f32 1.0, %v2340_v58  ;;  %v2381_v13 = vadd.f32 1.0, %v2380_v28  ;;  %v2370_v41 = vadd.f32 1.1283791, %v2369_v6 }
 0xba1   :  { %v2678_v40 = vpop.eup %2677  ;;  %v2331_v60 = vmul.f32 %v2330_v62, %v3981_v34 }
 0xba2   :  { %v2303_v0 = vmul.f32 %v2678_v40, %v2301_v37  ;;  %2679 = vrcp.f32 %v2341_v59  ;;  %vm2308_vm1 = vweird.f32 %v2678_v40  ;;  %v2351_v8 = vand.u32 2147483647, %v2341_v59 }
 0xba3   :  { %2681 = vrcp.f32 %v2381_v13  ;;  %vm2309_vm3 = vmor %vm2307_vm2, %vm2308_vm1  ;;  %v2353_v61 = vand.u32 2147483648, %v2341_v59  ;;  %vm2347_vm7 = vweird.f32 %v2341_v59  ;;  %v2393_v44 = vand.u32 2147483648, %v2381_v13 }
 0xba4   :  { %v2304_v10 = vsub.f32 1.0, %v2303_v0  ;;  %vm2352_vm9 = vcmp.eq.f32.partialorder %v2351_v8, 8.507059e+37  ;;  %v2391_v22 = vand.u32 2147483647, %v2381_v13  ;;  %vm2387_vm11 = vweird.f32 %v2381_v13 }
 0xba5   :  { %v2354_v37 = vor.u32 1.1754944e-38, %v2353_v61  ;;  %v2394_v42 = vor.u32 1.1754944e-38, %v2393_v44  ;;  %v2371_v47 = vmul.f32 %v2370_v41, %v3984_v36  ;;  %v2634_v36 = vld [vmem:[%s4162_s21] ss:$0 sm:$0xff] }
 0xba6   :  { %v2305_v17 = vmul.f32 %v2678_v40, %v2304_v10  ;;  %vm2392_vm13 = vcmp.eq.f32.partialorder %v2391_v22, 8.507059e+37 }
 0xba8   :  { %v2680_v25 = vpop.eup %2679  ;;  %v2306_v35 = vadd.f32 %v2678_v40, %v2305_v17 }
 0xba9   :  { %v2343_v55 = vmul.f32 %v2680_v25, %v2341_v59  ;;  %v2682_v24 = vpop.eup %2681  ;;  %vm2348_vm5 = vweird.f32 %v2680_v25 }
 0xbaa   :  { %v2310_v27 = vsel %vm2309_vm3, %v2678_v40, %v2306_v35  ;;  %v2383_v31 = vmul.f32 %v2682_v24, %v2381_v13  ;;  %vm2349_vm8 = vmor %vm2347_vm7, %vm2348_vm5  ;;  %vm2388_vm10 = vweird.f32 %v2682_v24 }
 0xbab   :  { %v2315_v20 = vsel %vm2312_vm4, %v2314_v18, %v2310_v27  ;;  %v2344_v48 = vsub.f32 1.0, %v2343_v55  ;;  %vm2389_vm12 = vmor %vm2387_vm11, %vm2388_vm10 }
 0xbac   :  { %v2316_v56 = vmul.f32 %v2315_v20, %v2291_v26  ;;  %v2384_v11 = vsub.f32 1.0, %v2383_v31 }
 0xbad   :  { %v2345_v16 = vmul.f32 %v2680_v25, %v2344_v48 }
 0xbae   :  { %v2589_v49 = vclamps-f32 %v2316_v56, 1.0  ;;  %v2385_v45 = vmul.f32 %v2682_v24, %v2384_v11 }
 0xbaf   :  { %v2346_v33 = vadd.f32 %v2680_v25, %v2345_v16 }
 0xbb0   :  { %v2399_v15 = vadd.f32 1.0, %v2589_v49  ;;  %v2386_v53 = vadd.f32 %v2682_v24, %v2385_v45 }
 0xbb1   :  { %v2350_v43 = vsel %vm2349_vm8, %v2680_v25, %v2346_v33 }
 0xbb2   :  { %v2402_v21 = vmul.f32 %v2399_v15, %v2273_v23  ;;  %v2355_v39 = vsel %vm2352_vm9, %v2354_v37, %v2350_v43  ;;  %v2390_v1 = vsel %vm2389_vm12, %v2682_v24, %v2386_v53 }
 0xbb3   :  { %v2356_v57 = vmul.f32 %v2355_v39, %v2331_v60  ;;  %v2395_v3 = vsel %vm2392_vm13, %v2394_v42, %v2390_v1 }
 0xbb4   :  { %2468 = vmatmul.f32.vlgmr.msra.gmra.mxu0 %v2402_v21  ;;  %v2396_v2 = vmul.f32 %v2395_v3, %v2371_v47 }
 0xbb5   :  { %v2590_v34 = vclamps-f32 %v2356_v57, 1.0 }
 0xbb6   :  { %v2591_v38 = vclamps-f32 %v2396_v2, 1.0 }
 0xbb7   :  { %v2400_v51 = vadd.f32 1.0, %v2590_v34 }
 0xbb8   :  { %v2401_v4 = vadd.f32 1.0, %v2591_v38 }
 0xbb9   :  { %v2403_v58 = vmul.f32 %v2400_v51, %v2274_v50 }
 0xbba   :  { %v2404_v63 = vmul.f32 %v2401_v4, %v2275_v54 }
 0xbbb   :  { %2488 = vmatmul.f32.vlgmr.msra.gmra.mxu1 %v2403_v58 }
 0xbbc   :  { %2592 = vmatmul.msk.f32.vlgmr.msra.gmra.mxu2 %vm322_vm6, %v2404_v63 }
 0xc31   :  { %v2469_v52 = vpop.f32.mrf.mxu0 }
 0xc32   :  { %v2470_v28 = vadd.f32 %v2634_v36, %v2469_v52 }
 0xc38   :  { %v2489_v59 = vpop.f32.mrf.mxu1 }
 0xc39   :  { %v2490_v30 = vadd.f32 %v2489_v59, %v2470_v28 }
 0xc3f   :  { %v2509_v32 = vpop.f32.mrf.mxu2 }
 0xc40   :  { %v2510_v40 = vadd.f32 %v2509_v32, %v2490_v30 }
 0xc42   :  { %2512 = vst [vmem:[#allocation20] sm:$0xff] %v2510_v40 }
 0xc43   :  { %2523 = dma.vmem_to_hbm [thread:$0]  %s2519_s11, 128, %s2521_s0, [#allocation4]  }
 0xc44   :  { %2983 = dma.done.wait [#allocation4], 128  }
 0xc45   :  { %2984 = vsyncadd [#allocation4], 4294967168 }
 0xc46   :  { %2528 = vsyncpa [#allocation3], 1 }
 0xc47   :  { %2529 = vsyncpa [#allocation6], 1 }
 0xc48   :  { %2530 = vsyncpa [#allocation9], 1 }
 0xc49   :  { %2531 = vsyncpa [#allocation12], 1 }
 0xc4a   :  { %2532 = vsyncpa [#allocation15], 1 }
 0xc4b   :  { %2533 = vsyncpa [#allocation18], 1 }
 0xc4c   :  { %2534 = vsyncpa [#allocation4], 1 }

// kernel: tpu_custom_call.1
= control target key start
LH: loop header
LB: loop body
LE: loop exit
PB: predicated region body
PF: predicated region fallthrough
CT: control target
= control target key end

     0   :  { %s4122_s0 = inlined_call_operand.vmem [shape: f32[8,4], index: 0, kind: input, shape index: {}]   ;;  %s4123_s1 = inlined_call_operand.vmem [shape: f32[4,64], index: 1, kind: input, shape index: {}]   ;;  %s4124_s2 = inlined_call_operand.hbm [shape: f32[1,64], index: 2, kind: input, shape index: {}]   ;;  %s4125_s3 = inlined_call_operand.hbm [shape: f32[64,128], index: 3, kind: input, shape index: {}]   ;;  %s4126_s4 = inlined_call_operand.hbm [shape: f32[1,128], index: 4, kind: input, shape index: {}]   ;;  %s4127_s5 = inlined_call_operand.hbm [shape: f32[1,128], index: 5, kind: input, shape index: {}]   ;;  %s4128_s6 = inlined_call_operand.hbm [shape: f32[1,128], index: 6, kind: input, shape index: {}]   ;;  %s4129_s7 = inlined_call_operand.vmem [shape: f32[3,128,128], index: 7, kind: input, shape index: {}]   ;;  %s4130_s8 = inlined_call_operand.vmem [shape: f32[3,1,128], index: 8, kind: input, shape index: {}]   ;;  %s4131_s9 = inlined_call_operand.hbm [shape: f32[3,1,128], index: 9, kind: input, shape index: {}]   ;;  %s4132_s10 = inlined_call_operand.hbm [shape: f32[3,1,128], index: 10, kind: input, shape index: {}]   ;;  %s4133_s11 = inlined_call_operand.hbm [shape: f32[3,128,512], index: 11, kind: input, shape index: {}]   ;;  %s4134_s12 = inlined_call_operand.vmem [shape: f32[3,1,512], index: 12, kind: input, shape index: {}]   ;;  %s4135_s13 = inlined_call_operand.hbm [shape: f32[3,512,128], index: 13, kind: input, shape index: {}]   ;;  %s4136_s14 = inlined_call_operand.hbm [shape: f32[3,1,128], index: 14, kind: input, shape index: {}]   ;;  %s4137_s15 = inlined_call_operand.hbm [shape: f32[3,1,128], index: 15, kind: input, shape index: {}]   ;;  %s4138_s16 = inlined_call_operand.vmem [shape: f32[3,1,128], index: 16, kind: input, shape index: {}]   ;;  %s4139_s17 = inlined_call_operand.vmem [shape: f32[128,320], index: 17, kind: input, shape index: {}]   ;;  %s4140_s18 = inlined_call_operand.vmem [shape: f32[1,320], index: 18, kind: input, shape index: {}]   ;;  %s4141_s19 = inlined_call_operand.vmem [shape: f32[320,128], index: 19, kind: input, shape index: {}]   ;;  %s4142_s20 = inlined_call_operand.vmem [shape: f32[1,128], index: 20, kind: input, shape index: {}]   ;;  %s4143_s21 = inlined_call_operand.hbm [shape: f32[8,128], index: 21, kind: output, shape index: {}]  }
   0x1   :  { %4145 = sst [smem:[#allocation28_spill]] %s4122_s0 }
   0x2   :  { %4146 = sst [smem:[#allocation29_spill]] %s4123_s1 }
   0x3   :  { %4147 = sst [smem:[#allocation30_spill]] %s4124_s2 }
   0x4   :  { %4148 = sst [smem:[#allocation31_spill]] %s4125_s3 }
   0x5   :  { %4149 = sst [smem:[#allocation32_spill]] %s4126_s4 }
   0x6   :  { %4150 = sst [smem:[#allocation33_spill]] %s4127_s5 }
   0x7   :  { %4151 = sst [smem:[#allocation34_spill]] %s4142_s20 }
   0x8   :  { %4152 = sst [smem:[#allocation35_spill]] %s4143_s21 }
   0x9   :  { %26 = vsyncpa [#allocation3], 0 }
   0xa   :  { %27 = vsyncpa [#allocation6], 0 }
   0xb   :  { %28 = vsyncpa [#allocation9], 0 }
   0xc   :  { %29 = vsyncpa [#allocation12], 0 }
   0xd   :  { %30 = vsyncpa [#allocation15], 0 }
   0xe   :  { %31 = vsyncpa [#allocation18], 0  ;;  %s4153_s26 = sld [smem:[#allocation31_spill]] }
  0x14   :  { %s52_s27 = sshll.u32 %s4153_s26, 4  ;;  %s53_s27 = int_to_ptr.hbm [resolvable:$true] %s52_s27 }
  0x15   :  { %32 = vsyncpa [#allocation4], 0  ;;  %s2985_s3 = smov [#allocation5]   ;;  %s4154_s4 = sld [smem:[#allocation33_spill]] }
  0x16   :  { %s54_s28 = sshll.u32 %s2985_s3, 4  ;;  %s4144_s5 = smov 128   ;;  %s55_s28 = int_to_ptr.vmem [resolvable:$true] %s54_s28 }
  0x17   :  { %s2987_s22 = smov 8   ;;  %s2988_s23 = smov [#allocation8]  }
  0x18   :  { %60 = dma.hbm_to_vmem [thread:$0]  %s53_s27, 1024, %s55_s28, [#allocation6], %s4144_s5, %s4144_s5, %s2987_s22  }
  0x19   :  { %s79_s1 = sshll.u32 %s2988_s23, 4  ;;  %s102_s25 = sshll.u32 %s4131_s9, 4  ;;  %s80_s1 = int_to_ptr.vmem [resolvable:$true] %s79_s1  ;;  %s103_s25 = int_to_ptr.hbm [resolvable:$true] %s102_s25 }
  0x1a   :  { %s2989_s26 = smov [#allocation11]   ;;  %s2990_s21 = smov 16  }
  0x1b   :  { %s77_s30 = sshll.u32 %s4154_s4, 4  ;;  %s104_s3 = sshll.u32 %s2989_s26, 4  ;;  %s78_s30 = int_to_ptr.hbm [resolvable:$true] %s77_s30  ;;  %s105_s3 = int_to_ptr.vmem [resolvable:$true] %s104_s3 }
  0x1c   :  { %82 = dma.hbm_to_vmem [thread:$0]  %s78_s30, 16, %s80_s1, [#allocation9]  }
  0x1d   :  { %s128_s4 = sshll.u32 %s4133_s11, 4  ;;  %s2991_s20 = smov 1   ;;  %s129_s4 = int_to_ptr.hbm [resolvable:$true] %s128_s4 }
  0x1e   :  { %110 = dma.hbm_to_vmem [thread:$0]  %s103_s25, 48, %s105_s3, [#allocation12], %s2990_s21, %s2990_s21, %s2991_s20  }
  0x1f   :  { %s2992_s27 = smov [#allocation14]   ;;  %s2993_s9 = smov 512  }
  0x20   :  { %s130_s28 = sshll.u32 %s2992_s27, 4  ;;  %s2994_s23 = smov 32   ;;  %s131_s28 = int_to_ptr.vmem [resolvable:$true] %s130_s28 }
  0x21   :  { %136 = dma.hbm_to_vmem [thread:$0]  %s129_s4, 24576, %s131_s28, [#allocation15], %s2993_s9, %s2993_s9, %s2994_s23  }
  0x22   :  { %s156_s24 = sshll.u32 %s4136_s14, 4  ;;  %s2995_s2 = smov [#allocation17]   ;;  %s157_s24 = int_to_ptr.hbm [resolvable:$true] %s156_s24 }
  0x23   :  { %s158_s11 = sshll.u32 %s2995_s2, 4  ;;  %s4155_s0 = sld [smem:[#allocation30_spill]]  ;;  %s159_s11 = int_to_ptr.vmem [resolvable:$true] %s158_s11 }
  0x24   :  { %164 = dma.hbm_to_vmem [thread:$0]  %s157_s24, 48, %s159_s11, [#allocation18], %s2990_s21, %s2990_s21, %s2991_s20  }
  0x25   :  { %s2996_s25 = smov [#allocation2]   ;;  %s4156_s28 = sld [smem:[#allocation32_spill]] }
  0x26   :  { %s44_s3 = sshll.u32 %s2996_s25, 4  ;;  %s88_s30 = sshll.u32 %s4128_s6, 4  ;;  %s45_s3 = int_to_ptr.vmem [resolvable:$true] %s44_s3  ;;  %s89_s30 = int_to_ptr.hbm [resolvable:$true] %s88_s30 }
  0x27   :  { %s2997_s1 = smov [#allocation7]   ;;  %s2998_s24 = smov [#allocation10]  }
  0x28   :  { %s68_s2 = sshll.u32 %s2997_s1, 4  ;;  %s90_s11 = sshll.u32 %s2998_s24, 4  ;;  %s69_s2 = int_to_ptr.vmem [resolvable:$true] %s68_s2  ;;  %s91_s11 = int_to_ptr.vmem [resolvable:$true] %s90_s11 }
  0x29   :  { %s42_s5 = sshll.u32 %s4155_s0, 4  ;;  %s115_s0 = sshll.u32 %s4132_s10, 4  ;;  %s43_s5 = int_to_ptr.hbm [resolvable:$true] %s42_s5  ;;  %s116_s0 = int_to_ptr.hbm [resolvable:$true] %s115_s0 }
  0x2a   :  { %47 = dma.hbm_to_vmem [thread:$0]  %s43_s5, 16, %s45_s3, [#allocation3]  }
  0x2b   :  { %s66_s9 = sshll.u32 %s4156_s28, 4  ;;  %s143_s3 = sshll.u32 %s4135_s13, 4  ;;  %s67_s9 = int_to_ptr.hbm [resolvable:$true] %s66_s9  ;;  %s144_s3 = int_to_ptr.hbm [resolvable:$true] %s143_s3 }
  0x2c   :  { %71 = dma.hbm_to_vmem [thread:$0]  %s67_s9, 16, %s69_s2, [#allocation6]  }
  0x2d   :  { %93 = dma.hbm_to_vmem [thread:$0]  %s89_s30, 16, %s91_s11, [#allocation9]  }
  0x2e   :  { %s2999_s4 = smov [#allocation13]   ;;  %s3000_s27 = smov [#allocation16]  }
  0x2f   :  { %s117_s6 = sshll.u32 %s2999_s4, 4  ;;  %s145_s28 = sshll.u32 %s3000_s27, 4  ;;  %s118_s6 = int_to_ptr.vmem [resolvable:$true] %s117_s6  ;;  %s146_s28 = int_to_ptr.vmem [resolvable:$true] %s145_s28 }
  0x30   :  { %123 = dma.hbm_to_vmem [thread:$0]  %s116_s0, 48, %s118_s6, [#allocation12], %s2990_s21, %s2990_s21, %s2991_s20  }
  0x31   :  { %s169_s10 = sshll.u32 %s4137_s15, 4  ;;  %s4157_s23 = smov 128   ;;  %s170_s10 = int_to_ptr.hbm [resolvable:$true] %s169_s10 }
  0x32   :  { %151 = dma.hbm_to_vmem [thread:$0]  %s144_s3, 24576, %s146_s28, [#allocation15], %s4157_s23, %s4157_s23, %s2987_s22  }
  0x33   :  { %s3001_s13 = smov [#allocation19]  }
  0x34   :  { %s171_s30 = sshll.u32 %s3001_s13, 4  ;;  %s172_s30 = int_to_ptr.vmem [resolvable:$true] %s171_s30 }
  0x35   :  { %177 = dma.hbm_to_vmem [thread:$0]  %s170_s10, 48, %s172_s30, [#allocation18], %s2990_s21, %s2990_s21, %s2991_s20  }
  0x36   :  { %2971 = dma.done.wait [#allocation3], 16  }
  0x37   :  { %2972 = vsyncadd [#allocation3], 4294967280 }
  0x38   :  { %2973 = dma.done.wait [#allocation6], 1040  }
  0x39   :  { %2974 = vsyncadd [#allocation6], 4294966256 }
  0x3a   :  { %2975 = dma.done.wait [#allocation9], 32  }
  0x3b   :  { %2976 = vsyncadd [#allocation9], 4294967264 }
  0x3c   :  { %2977 = dma.done.wait [#allocation12], 96  }
  0x3d   :  { %2978 = vsyncadd [#allocation12], 4294967200 }
  0x3e   :  { %2979 = dma.done.wait [#allocation15], 49152  }
  0x3f   :  { %2980 = vsyncadd [#allocation15], 4294918144 }
  0x40   :  { %2981 = dma.done.wait [#allocation18], 96  }
  0x41   :  { %2982 = vsyncadd [#allocation18], 4294967200  ;;  %vm242_vm0 = vcmask 1043456   ;;  %vm238_vm1 = vcmask 31744   ;;  %s4158_s1 = sld [smem:[#allocation29_spill]]  ;;  %v317_v8 = vld [vmem:[#allocation5 + $0x38] sm:$0xff] }
  0x42   :  { %s4159_s21 = sld [smem:[#allocation28_spill]]  ;;  %v2612_v2 = vld [vmem:[#allocation2] ss:$0 sm:$0xff]  ;;  %334 = vmatpush.msra.mxu1 %v317_v8  ;;  %v316_v11 = vld [vmem:[#allocation5 + $0x30] sm:$0xff]  ;;  %v315_v14 = vld [vmem:[#allocation5 + $0x28] sm:$0xff]  ;;  %vm322_vm6 = vcmask 523264  }
  0x43   :  { %v314_v17 = vld [vmem:[#allocation5 + $0x20] sm:$0xff]  ;;  %v313_v18 = vld [vmem:[#allocation5 + $0x18] sm:$0xff]  ;;  %v312_v20 = vld [vmem:[#allocation5 + $0x10] sm:$0xff]  ;;  %v3002_v57 = vmov 128.0   ;;  %s3003_s24 = smov [#allocation20]  }
  0x44   :  { %335 = vmatpush.msra.mxu1 %v316_v11  ;;  %v311_v23 = vld [vmem:[#allocation5 + $0x8] sm:$0xff]  ;;  %v310_v25 = vld [vmem:[#allocation5] sm:$0xff]  ;;  %v400_v56 = vld [vmem:[%s4129_s7 + $0x78] sm:$0xff]  ;;  %s2518_s11 = sshll.u32 %s3003_s24, 4  ;;  %s2519_s11 = int_to_ptr.vmem [resolvable:$true] %s2518_s11 }
  0x45   :  { %v2613_v52 = vld [vmem:[#allocation7] ss:$0 sm:$0xff]  ;;  %405 = vmatpush.msra.mxu2 %v400_v56  ;;  %v399_v58 = vld [vmem:[%s4129_s7 + $0x70] sm:$0xff]  ;;  %v398_v59 = vld [vmem:[%s4129_s7 + $0x68] sm:$0xff] }
  0x46   :  { %336 = vmatpush.msra.mxu1 %v315_v14  ;;  %v397_v60 = vld [vmem:[%s4129_s7 + $0x60] sm:$0xff]  ;;  %v396_v62 = vld [vmem:[%s4129_s7 + $0x58] sm:$0xff]  ;;  %v386_v14 = vld [vmem:[%s4129_s7 + $0x8] sm:$0xff] }
  0x47   :  { %v233_v0 = vld [vmem:[%s4158_s1] sm:$0xf]  ;;  %406 = vmatpush.msra.mxu2 %v399_v58  ;;  %v502_v56 = vld [vmem:[#allocation14 + $0x160] sm:$0xff] }
  0x48   :  { %v232_v1 = vld [vmem:[%s4159_s21] sm:$0xff]  ;;  %2535 = vmatpush.msk.msra.mxu0 %vm242_vm0, %v233_v0  ;;  %337 = vmatpush.msra.mxu1 %v314_v17  ;;  %v395_v0 = vld [vmem:[%s4129_s7 + $0x50] sm:$0xff]  ;;  %s4162_s21 = sld [smem:[#allocation34_spill]] }
  0x49   :  { %2536 = vmatmul.msk.f32.vlgmr.msra.gmra.mxu0 %vm238_vm1, %v232_v1  ;;  %407 = vmatpush.msra.mxu2 %v398_v59  ;;  %v394_v1 = vld [vmem:[%s4129_s7 + $0x48] sm:$0xff]  ;;  %v389_v8 = vld [vmem:[%s4129_s7 + $0x20] sm:$0xff] }
  0x4a   :  { %338 = vmatpush.msra.mxu1 %v313_v18  ;;  %v504_v58 = vld [vmem:[#allocation14 + $0x170] sm:$0xff]  ;;  %v505_v59 = vld [vmem:[#allocation14 + $0x178] sm:$0xff] }
  0x4b   :  { %408 = vmatpush.msra.mxu2 %v397_v60  ;;  %v498_v60 = vld [vmem:[#allocation14 + $0x140] sm:$0xff] }
  0x4c   :  { %339 = vmatpush.msra.mxu1 %v312_v20 }
  0x4d   :  { %409 = vmatpush.msra.mxu2 %v396_v62  ;;  %v500_v62 = vld [vmem:[#allocation14 + $0x150] sm:$0xff] }
  0x4e   :  { %340 = vmatpush.msra.mxu1 %v311_v23 }
  0x4f   :  { %410 = vmatpush.msra.mxu2 %v395_v0  ;;  %v494_v0 = vld [vmem:[#allocation14 + $0x120] sm:$0xff] }
  0x50   :  { %341 = vmatpush.msra.mxu1 %v310_v25 }
  0x51   :  { %411 = vmatpush.msra.mxu2 %v394_v1  ;;  %v495_v1 = vld [vmem:[#allocation14 + $0x128] sm:$0xff] }
  0xc6   :  { %v263_v3 = vpop.f32.mrf.mxu0 }
  0xc7   :  { %v264_v4 = vadd.f32 %v2612_v2, %v263_v3  ;;  %v393_v3 = vld [vmem:[%s4129_s7 + $0x40] sm:$0xff] }
  0xc8   :  { %412 = vmatpush.msra.mxu2 %v393_v3  ;;  %v497_v3 = vld [vmem:[#allocation14 + $0x138] sm:$0xff] }
  0xc9   :  { %v267_v5 = vmul.f32 0.70710677, %v264_v4  ;;  %v266_v49 = vmul.f32 0.5, %v264_v4  ;;  %v392_v4 = vld [vmem:[%s4129_s7 + $0x38] sm:$0xff] }
  0xca   :  { %413 = vmatpush.msra.mxu2 %v392_v4  ;;  %v490_v4 = vld [vmem:[#allocation14 + $0x100] sm:$0xff] }
  0xcb   :  { %v268_v6 = vmul.f32 %v267_v5, %v267_v5 }
  0xcd   :  { %v269_v7 = vmin.f32 %v268_v6, 16.0  ;;  %v391_v6 = vld [vmem:[%s4129_s7 + $0x30] sm:$0xff] }
  0xce   :  { %414 = vmatpush.msra.mxu2 %v391_v6  ;;  %v492_v6 = vld [vmem:[#allocation14 + $0x110] sm:$0xff] }
  0xcf   :  { %v270_v9 = vmul.f32 2.1237322e-06, %v269_v7  ;;  %v281_v10 = vmul.f32 3.8918573e-05, %v269_v7 }
  0xd1   :  { %v271_v12 = vadd.f32 0.00028619796, %v270_v9  ;;  %v282_v13 = vadd.f32 0.001143296, %v281_v10  ;;  %v388_v10 = vld [vmem:[%s4129_s7 + $0x18] sm:$0xff] }
  0xd3   :  { %v272_v15 = vmul.f32 %v271_v12, %v269_v7  ;;  %v283_v16 = vmul.f32 %v282_v13, %v269_v7  ;;  %v387_v12 = vld [vmem:[%s4129_s7 + $0x10] sm:$0xff] }
  0xd5   :  { %v284_v19 = vadd.f32 0.014752088, %v283_v16  ;;  %v273_v21 = vadd.f32 0.0036580483, %v272_v15  ;;  %v385_v15 = vld [vmem:[%s4129_s7] sm:$0xff] }
  0xd7   :  { %v285_v22 = vmul.f32 %v284_v19, %v269_v7  ;;  %v274_v26 = vmul.f32 %v273_v21, %v269_v7 }
  0xd9   :  { %v286_v24 = vadd.f32 0.112945676, %v285_v22  ;;  %v275_v29 = vadd.f32 0.05243302, %v274_v26 }
  0xdb   :  { %v287_v27 = vmul.f32 %v286_v24, %v269_v7  ;;  %v276_v32 = vmul.f32 %v275_v29, %v269_v7  ;;  %v2614_v29 = vld [vmem:[#allocation8] ss:$0 sm:$0xff] }
  0xdd   :  { %v288_v28 = vadd.f32 0.4994258, %v287_v27  ;;  %v277_v33 = vadd.f32 0.18741608, %v276_v32  ;;  %v2615_v32 = vld [vmem:[#allocation10] ss:$0 sm:$0xff] }
  0xdf   :  { %v289_v30 = vmul.f32 %v288_v28, %v269_v7  ;;  %v278_v35 = vmul.f32 %v277_v33, %v269_v7  ;;  %v390_v7 = vld [vmem:[%s4129_s7 + $0x28] sm:$0xff] }
  0xe0   :  { %415 = vmatpush.msra.mxu2 %v390_v7  ;;  %v493_v7 = vld [vmem:[#allocation14 + $0x118] sm:$0xff] }
  0xe1   :  { %v290_v31 = vadd.f32 1.0, %v289_v30  ;;  %v279_v39 = vadd.f32 1.1283791, %v278_v35  ;;  %v2616_v35 = vld [vmem:[%s4130_s8] ss:$0 sm:$0xff] }
  0xe2   :  { %416 = vmatpush.msra.mxu2 %v389_v8  ;;  %v486_v8 = vld [vmem:[#allocation14 + $0xe0] sm:$0xff] }
  0xe3   :  { %2635 = vrcp.f32 %v290_v31  ;;  %v302_v38 = vand.u32 2147483648, %v290_v31  ;;  %v300_v41 = vand.u32 2147483647, %v290_v31  ;;  %vm296_vm3 = vweird.f32 %v290_v31 }
  0xe4   :  { %v280_v44 = vmul.f32 %v279_v39, %v267_v5  ;;  %2637 = vrcp.f32 %v3002_v57  ;;  %417 = vmatpush.msra.mxu2 %v388_v10  ;;  %v503_v57 = vld [vmem:[#allocation14 + $0x168] sm:$0xff]  ;;  %v488_v10 = vld [vmem:[#allocation14 + $0xf0] sm:$0xff] }
  0xe5   :  { %v303_v43 = vor.u32 1.1754944e-38, %v302_v38  ;;  %vm301_vm5 = vcmp.eq.f32.partialorder %v300_v41, 8.507059e+37  ;;  %v519_v41 = vld [vmem:[#allocation14 + $0x1e8] sm:$0xff] }
  0xe6   :  { %418 = vmatpush.msra.mxu2 %v387_v12  ;;  %552 = vmatpush.msrb.mxu0 %v519_v41  ;;  %v482_v12 = vld [vmem:[#allocation14 + $0xc0] sm:$0xff]  ;;  %v459_v41 = vld [vmem:[#allocation14 + $0x8] sm:$0xff] }
  0xe8   :  { %419 = vmatpush.msra.mxu2 %v386_v14  ;;  %v483_v14 = vld [vmem:[#allocation14 + $0xc8] sm:$0xff] }
  0xe9   :  { %v2636_v34 = vpop.eup %2635 }
  0xea   :  { %v292_v36 = vmul.f32 %v2636_v34, %v290_v31  ;;  %vm297_vm2 = vweird.f32 %v2636_v34  ;;  %v2638_v61 = vpop.eup %2637  ;;  %420 = vmatpush.msra.mxu2 %v385_v15  ;;  %v484_v15 = vld [vmem:[#allocation14 + $0xd0] sm:$0xff] }
  0xeb   :  { %vm298_vm4 = vmor %vm296_vm3, %vm297_vm2  ;;  %v351_v63 = vmul.f32 128.0, %v2638_v61  ;;  %vm355_vm7 = vweird.f32 %v2638_v61 }
  0xec   :  { %v293_v37 = vsub.f32 1.0, %v292_v36 }
  0xed   :  { %v352_v2 = vsub.f32 1.0, %v351_v63  ;;  %v501_v63 = vld [vmem:[#allocation14 + $0x158] sm:$0xff] }
  0xee   :  { %v294_v40 = vmul.f32 %v2636_v34, %v293_v37 }
  0xef   :  { %v353_v5 = vmul.f32 %v2638_v61, %v352_v2  ;;  %v496_v2 = vld [vmem:[#allocation14 + $0x130] sm:$0xff] }
  0xf0   :  { %v295_v42 = vadd.f32 %v2636_v34, %v294_v40  ;;  %v518_v40 = vld [vmem:[#allocation14 + $0x1e0] sm:$0xff] }
  0xf1   :  { %v354_v9 = vadd.f32 %v2638_v61, %v353_v5  ;;  %532 = vmatpush.msra.mxu3 %v518_v40  ;;  %v491_v5 = vld [vmem:[#allocation14 + $0x108] sm:$0xff] }
  0xf2   :  { %v299_v45 = vsel %vm298_vm4, %v2636_v34, %v295_v42  ;;  %v520_v42 = vld [vmem:[#allocation14 + $0x1f0] sm:$0xff] }
  0xf3   :  { %v304_v46 = vsel %vm301_vm5, %v303_v43, %v299_v45  ;;  %v3219_v13 = vsel %vm355_vm7, %v2638_v61, %v354_v9  ;;  %v521_v43 = vld [vmem:[#allocation14 + $0x1f8] sm:$0xff]  ;;  %572 = vmatpush.msrb.mxu1 %v520_v42  ;;  %v515_v45 = vld [vmem:[#allocation14 + $0x1c8] sm:$0xff]  ;;  %v460_v42 = vld [vmem:[#allocation14 + $0x10] sm:$0xff] }
  0xf4   :  { %v305_v47 = vmul.f32 %v304_v46, %v280_v44  ;;  %592 = vmatpush.msrb.mxu2 %v521_v43  ;;  %v514_v44 = vld [vmem:[#allocation14 + $0x1c0] sm:$0xff]  ;;  %v516_v46 = vld [vmem:[#allocation14 + $0x1d0] sm:$0xff]  ;;  %553 = vmatpush.msrb.mxu0 %v515_v45  ;;  %v499_v61 = vld [vmem:[#allocation14 + $0x148] sm:$0xff] }
  0xf5   :  { %533 = vmatpush.msra.mxu3 %v514_v44  ;;  %573 = vmatpush.msrb.mxu1 %v516_v46  ;;  %v487_v9 = vld [vmem:[#allocation14 + $0xe8] sm:$0xff]  ;;  %v461_v43 = vld [vmem:[#allocation14 + $0x18] sm:$0xff] }
  0xf6   :  { %v2537_v48 = vclamps-f32 %v305_v47, 1.0  ;;  %v517_v47 = vld [vmem:[#allocation14 + $0x1d8] sm:$0xff] }
  0xf7   :  { %593 = vmatpush.msrb.mxu2 %v517_v47 }
  0xf8   :  { %v308_v50 = vadd.f32 1.0, %v2537_v48  ;;  %v510_v48 = vld [vmem:[#allocation14 + $0x1a0] sm:$0xff] }
  0xf9   :  { %534 = vmatpush.msra.mxu3 %v510_v48 }
  0xfa   :  { %v309_v51 = vmul.f32 %v308_v50, %v266_v49  ;;  %v511_v49 = vld [vmem:[#allocation14 + $0x1a8] sm:$0xff]  ;;  %v512_v50 = vld [vmem:[#allocation14 + $0x1b0] sm:$0xff] }
  0xfb   :  { %554 = vmatpush.msrb.mxu0 %v511_v49  ;;  %574 = vmatpush.msrb.mxu1 %v512_v50 }
  0xfc   :  { %2538 = vmatmul.msk.f32.vlgmr.msra.gmra.mxu1 %vm322_vm6, %v309_v51  ;;  %v513_v51 = vld [vmem:[#allocation14 + $0x1b8] sm:$0xff] }
  0xfd   :  { %594 = vmatpush.msrb.mxu2 %v513_v51 }
 0x179   :  { %v343_v53 = vpop.f32.mrf.mxu1 }
 0x17a   :  { %v3172_v54 = vadd.f32 %v2613_v52, %v343_v53  ;;  %v506_v52 = vld [vmem:[#allocation14 + $0x180] sm:$0xff]  ;;  %v507_v53 = vld [vmem:[#allocation14 + $0x188] sm:$0xff] }
 0x17b   :  { %535 = vmatpush.msra.mxu3 %v506_v52  ;;  %555 = vmatpush.msrb.mxu0 %v507_v53 }
 0x17c   :  { %348 = vadd.xlane.f32.xlu0 %v3172_v54  ;;  %v358_v55 = vmul.f32 %v3172_v54, %v3172_v54 }
 0x17d   :  { %536 = vmatpush.msra.mxu3 %v502_v56  ;;  %556 = vmatpush.msrb.mxu0 %v503_v57  ;;  %v2617_v56 = vld [vmem:[#allocation11] ss:$0 sm:$0xff] }
 0x17f   :  { %537 = vmatpush.msra.mxu3 %v498_v60  ;;  %557 = vmatpush.msrb.mxu0 %v499_v61 }
 0x181   :  { %538 = vmatpush.msra.mxu3 %v494_v0  ;;  %558 = vmatpush.msrb.mxu0 %v495_v1 }
 0x183   :  { %539 = vmatpush.msra.mxu3 %v490_v4  ;;  %559 = vmatpush.msrb.mxu0 %v491_v5 }
 0x184   :  { %359 = vadd.xlane.f32.xlu0 %v358_v55  ;;  %v509_v55 = vld [vmem:[#allocation14 + $0x198] sm:$0xff] }
 0x185   :  { %595 = vmatpush.msrb.mxu2 %v509_v55  ;;  %540 = vmatpush.msra.mxu3 %v486_v8 }
 0x186   :  { %560 = vmatpush.msrb.mxu0 %v487_v9 }
 0x187   :  { %596 = vmatpush.msrb.mxu2 %v505_v59  ;;  %541 = vmatpush.msra.mxu3 %v482_v12  ;;  %v2618_v59 = vld [vmem:[#allocation13] ss:$0 sm:$0xff]  ;;  %v834_v12 = vld [vmem:[#allocation16 + $0x170] sm:$0xff] }
 0x188   :  { %561 = vmatpush.msrb.mxu0 %v483_v14 }
 0x189   :  { %597 = vmatpush.msrb.mxu2 %v501_v63 }
 0x18b   :  { %598 = vmatpush.msrb.mxu2 %v497_v3 }
 0x18d   :  { %599 = vmatpush.msrb.mxu2 %v493_v7  ;;  %v835_v7 = vld [vmem:[#allocation16 + $0x178] sm:$0xff] }
 0x1ef   :  { %v349_v11 = vpop.xlane.xlu0 %348 }
 0x1f0   :  { %v357_v16 = vmul.f32 %v3219_v13, %v349_v11  ;;  %v489_v11 = vld [vmem:[#allocation14 + $0xf8] sm:$0xff] }
 0x1f1   :  { %600 = vmatpush.msrb.mxu2 %v489_v11  ;;  %v818_v11 = vld [vmem:[#allocation16 + $0xf0] sm:$0xff] }
 0x1f2   :  { %v362_v18 = vmul.f32 %v357_v16, %v357_v16  ;;  %v364_v28 = vsub.f32 %v3172_v54, %v357_v16  ;;  %v508_v54 = vld [vmem:[#allocation14 + $0x190] sm:$0xff]  ;;  %v485_v16 = vld [vmem:[#allocation14 + $0xd8] sm:$0xff] }
 0x1f3   :  { %575 = vmatpush.msrb.mxu1 %v508_v54  ;;  %601 = vmatpush.msrb.mxu2 %v485_v16 }
 0x1f5   :  { %576 = vmatpush.msrb.mxu1 %v504_v58 }
 0x1f7   :  { %v360_v17 = vpop.xlane.xlu0 %359  ;;  %577 = vmatpush.msrb.mxu1 %v500_v62 }
 0x1f8   :  { %v361_v19 = vmul.f32 %v360_v17, %v3219_v13  ;;  %v478_v17 = vld [vmem:[#allocation14 + $0xa0] sm:$0xff] }
 0x1f9   :  { %578 = vmatpush.msrb.mxu1 %v496_v2  ;;  %542 = vmatpush.msra.mxu3 %v478_v17 }
 0x1fa   :  { %v363_v20 = vsub.f32 %v361_v19, %v362_v18  ;;  %v479_v18 = vld [vmem:[#allocation14 + $0xa8] sm:$0xff]  ;;  %v480_v19 = vld [vmem:[#allocation14 + $0xb0] sm:$0xff] }
 0x1fb   :  { %579 = vmatpush.msrb.mxu1 %v492_v6  ;;  %562 = vmatpush.msrb.mxu0 %v479_v18  ;;  %v819_v6 = vld [vmem:[#allocation16 + $0xf8] sm:$0xff] }
 0x1fc   :  { %v365_v21 = vadd.f32 1e-05, %v363_v20  ;;  %v481_v20 = vld [vmem:[#allocation14 + $0xb8] sm:$0xff] }
 0x1fd   :  { %580 = vmatpush.msrb.mxu1 %v488_v10  ;;  %602 = vmatpush.msrb.mxu2 %v481_v20  ;;  %v833_v20 = vld [vmem:[#allocation16 + $0x168] sm:$0xff] }
 0x1fe   :  { %2639 = vrsqrt.f32 %v365_v21  ;;  %vm372_vm9 = vweird.f32 %v365_v21 }
 0x1ff   :  { %581 = vmatpush.msrb.mxu1 %v484_v15 }
 0x201   :  { %582 = vmatpush.msrb.mxu1 %v480_v19  ;;  %v817_v19 = vld [vmem:[#allocation16 + $0xe8] sm:$0xff] }
 0x204   :  { %v2640_v22 = vpop.eup %2639 }
 0x205   :  { %v367_v23 = vmul.f32 %v2640_v22, %v365_v21  ;;  %vm373_vm8 = vweird.f32 %v2640_v22  ;;  %v474_v21 = vld [vmem:[#allocation14 + $0x80] sm:$0xff] }
 0x206   :  { %vm374_vm10 = vmor %vm372_vm9, %vm373_vm8  ;;  %543 = vmatpush.msra.mxu3 %v474_v21 }
 0x207   :  { %v368_v24 = vmul.f32 %v2640_v22, %v367_v23  ;;  %v476_v23 = vld [vmem:[#allocation14 + $0x90] sm:$0xff] }
 0x208   :  { %583 = vmatpush.msrb.mxu1 %v476_v23 }
 0x209   :  { %v369_v25 = vmul.f32 0.5, %v368_v24  ;;  %v477_v24 = vld [vmem:[#allocation14 + $0x98] sm:$0xff] }
 0x20a   :  { %603 = vmatpush.msrb.mxu2 %v477_v24 }
 0x20b   :  { %v370_v26 = vsub.f32 1.5, %v369_v25 }
 0x20d   :  { %v371_v27 = vmul.f32 %v2640_v22, %v370_v26  ;;  %v470_v26 = vld [vmem:[#allocation14 + $0x60] sm:$0xff] }
 0x20e   :  { %544 = vmatpush.msra.mxu3 %v470_v26 }
 0x20f   :  { %v375_v30 = vsel %vm374_vm10, %v2640_v22, %v371_v27  ;;  %v475_v22 = vld [vmem:[#allocation14 + $0x88] sm:$0xff] }
 0x210   :  { %v376_v31 = vmul.f32 %v375_v30, %v364_v28  ;;  %563 = vmatpush.msrb.mxu0 %v475_v22  ;;  %v471_v27 = vld [vmem:[#allocation14 + $0x68] sm:$0xff]  ;;  %v472_v28 = vld [vmem:[#allocation14 + $0x70] sm:$0xff]  ;;  %v466_v30 = vld [vmem:[#allocation14 + $0x40] sm:$0xff] }
 0x211   :  { %584 = vmatpush.msrb.mxu1 %v472_v28  ;;  %545 = vmatpush.msra.mxu3 %v466_v30 }
 0x212   :  { %v380_v33 = vmul.f32 %v2614_v29, %v376_v31  ;;  %564 = vmatpush.msrb.mxu0 %v471_v27  ;;  %v473_v29 = vld [vmem:[#allocation14 + $0x78] sm:$0xff]  ;;  %v467_v31 = vld [vmem:[#allocation14 + $0x48] sm:$0xff] }
 0x213   :  { %604 = vmatpush.msrb.mxu2 %v473_v29 }
 0x214   :  { %v384_v34 = vadd.f32 %v2615_v32, %v380_v33  ;;  %v468_v32 = vld [vmem:[#allocation14 + $0x50] sm:$0xff]  ;;  %565 = vmatpush.msrb.mxu0 %v467_v31  ;;  %v469_v33 = vld [vmem:[#allocation14 + $0x58] sm:$0xff]  ;;  %v816_v31 = vld [vmem:[#allocation16 + $0xe0] sm:$0xff] }
 0x215   :  { %585 = vmatpush.msrb.mxu1 %v468_v32  ;;  %605 = vmatpush.msrb.mxu2 %v469_v33 }
 0x216   :  { %421 = vmatmul.f32.vlgmr.msra.gmra.mxu2 %v384_v34 }
 0x299   :  { %v422_v36 = vpop.f32.mrf.mxu2 }
 0x29a   :  { %v423_v37 = vadd.f32 %v2616_v35, %v422_v36  ;;  %v463_v35 = vld [vmem:[#allocation14 + $0x28] sm:$0xff]  ;;  %v464_v36 = vld [vmem:[#allocation14 + $0x30] sm:$0xff] }
 0x29b   :  { %566 = vmatpush.msrb.mxu0 %v463_v35  ;;  %586 = vmatpush.msrb.mxu1 %v464_v36 }
 0x29c   :  { %v3233_v38 = vadd.f32 %v423_v37, %v384_v34  ;;  %v462_v34 = vld [vmem:[#allocation14 + $0x20] sm:$0xff]  ;;  %v465_v37 = vld [vmem:[#allocation14 + $0x38] sm:$0xff] }
 0x29d   :  { %546 = vmatpush.msra.mxu3 %v462_v34  ;;  %606 = vmatpush.msrb.mxu2 %v465_v37 }
 0x29e   :  { %428 = vadd.xlane.f32.xlu1 %v3233_v38  ;;  %v431_v39 = vmul.f32 %v3233_v38, %v3233_v38  ;;  %567 = vmatpush.msrb.mxu0 %v459_v41  ;;  %v802_v41 = vld [vmem:[#allocation16 + $0x70] sm:$0xff] }
 0x29f   :  { %587 = vmatpush.msrb.mxu1 %v460_v42  ;;  %607 = vmatpush.msrb.mxu2 %v461_v43 }
 0x2a0   :  { %876 = vmatpush.msra.mxu0 %v819_v6  ;;  %v829_v6 = vld [vmem:[#allocation16 + $0x148] sm:$0xff] }
 0x2a1   :  { %896 = vmatpush.msra.mxu1 %v835_v7  ;;  %v848_v7 = vld [vmem:[#allocation16 + $0x1e0] sm:$0xff] }
 0x2a2   :  { %877 = vmatpush.msra.mxu0 %v818_v11 }
 0x2a3   :  { %897 = vmatpush.msra.mxu1 %v834_v12 }
 0x2a4   :  { %878 = vmatpush.msra.mxu0 %v817_v19 }
 0x2a5   :  { %898 = vmatpush.msra.mxu1 %v833_v20 }
 0x2a6   :  { %432 = vadd.xlane.f32.xlu1 %v431_v39  ;;  %v458_v39 = vld [vmem:[#allocation14] sm:$0xff]  ;;  %879 = vmatpush.msra.mxu0 %v816_v31  ;;  %v847_v31 = vld [vmem:[#allocation16 + $0x1d8] sm:$0xff] }
 0x2a7   :  { %547 = vmatpush.msra.mxu3 %v458_v39  ;;  %v832_v39 = vld [vmem:[#allocation16 + $0x160] sm:$0xff] }
 0x2a8   :  { %899 = vmatpush.msra.mxu1 %v832_v39 }
 0x311   :  { %v429_v25 = vpop.xlane.xlu1 %428 }
 0x312   :  { %v430_v40 = vmul.f32 %v429_v25, %v3219_v13  ;;  %v803_v25 = vld [vmem:[#allocation16 + $0x78] sm:$0xff] }
 0x313   :  { %856 = vmatpush.msrb.mxu3 %v803_v25  ;;  %v799_v25 = vld [vmem:[#allocation16 + $0x58] sm:$0xff] }
 0x314   :  { %v435_v45 = vmul.f32 %v430_v40, %v430_v40  ;;  %v437_v55 = vsub.f32 %v3233_v38, %v430_v40  ;;  %v522_v38 = vld [vmem:[%s4134_s12] sm:$0xf]  ;;  %v851_v40 = vld [vmem:[#allocation16 + $0x1f8] sm:$0xff] }
 0x315   :  { %v525_v62 = vperm.slane %v522_v38, 1  ;;  %v526_v63 = vperm.slane %v522_v38, 2  ;;  %v524_v5 = vperm.slane %v522_v38, 0  ;;  %v527_v9 = vperm.slane %v522_v38, 3  ;;  %916 = vmatpush.msra.mxu2 %v851_v40  ;;  %857 = vmatpush.msrb.mxu3 %v802_v41  ;;  %v849_v38 = vld [vmem:[#allocation16 + $0x1e8] sm:$0xff]  ;;  %v811_v40 = vld [vmem:[#allocation16 + $0xb8] sm:$0xff] }
 0x316   :  { %v827_v41 = vld [vmem:[#allocation16 + $0x138] sm:$0xff] }
 0x319   :  { %v433_v44 = vpop.xlane.xlu1 %432 }
 0x31a   :  { %v434_v46 = vmul.f32 %v433_v44, %v3219_v13 }
 0x31c   :  { %v436_v47 = vsub.f32 %v434_v46, %v435_v45  ;;  %v815_v46 = vld [vmem:[#allocation16 + $0xd8] sm:$0xff] }
 0x31d   :  { %880 = vmatpush.msra.mxu0 %v815_v46 }
 0x31e   :  { %v438_v48 = vadd.f32 1e-05, %v436_v47  ;;  %v831_v47 = vld [vmem:[#allocation16 + $0x158] sm:$0xff] }
 0x31f   :  { %900 = vmatpush.msra.mxu1 %v831_v47  ;;  %v846_v47 = vld [vmem:[#allocation16 + $0x1d0] sm:$0xff] }
 0x320   :  { %2641 = vrsqrt.f32 %v438_v48  ;;  %vm445_vm12 = vweird.f32 %v438_v48 }
 0x326   :  { %v2642_v49 = vpop.eup %2641 }
 0x327   :  { %v440_v50 = vmul.f32 %v2642_v49, %v438_v48  ;;  %vm446_vm11 = vweird.f32 %v2642_v49  ;;  %v850_v48 = vld [vmem:[#allocation16 + $0x1f0] sm:$0xff] }
 0x328   :  { %vm447_vm13 = vmor %vm445_vm12, %vm446_vm11  ;;  %917 = vmatpush.msra.mxu2 %v850_v48  ;;  %v797_v48 = vld [vmem:[#allocation16 + $0x48] sm:$0xff] }
 0x329   :  { %v441_v51 = vmul.f32 %v2642_v49, %v440_v50 }
 0x32a   :  { %918 = vmatpush.msra.mxu2 %v849_v38  ;;  %v809_v38 = vld [vmem:[#allocation16 + $0xa8] sm:$0xff] }
 0x32b   :  { %v442_v52 = vmul.f32 0.5, %v441_v51  ;;  %v801_v51 = vld [vmem:[#allocation16 + $0x68] sm:$0xff] }
 0x32c   :  { %858 = vmatpush.msrb.mxu3 %v801_v51  ;;  %919 = vmatpush.msra.mxu2 %v848_v7  ;;  %v826_v51 = vld [vmem:[#allocation16 + $0x130] sm:$0xff]  ;;  %v824_v7 = vld [vmem:[#allocation16 + $0x120] sm:$0xff] }
 0x32d   :  { %v443_v53 = vsub.f32 1.5, %v442_v52  ;;  %v814_v52 = vld [vmem:[#allocation16 + $0xd0] sm:$0xff] }
 0x32e   :  { %881 = vmatpush.msra.mxu0 %v814_v52  ;;  %920 = vmatpush.msra.mxu2 %v847_v31  ;;  %v845_v52 = vld [vmem:[#allocation16 + $0x1c8] sm:$0xff]  ;;  %v792_v31 = vld [vmem:[#allocation16 + $0x20] sm:$0xff] }
 0x32f   :  { %v444_v54 = vmul.f32 %v2642_v49, %v443_v53 }
 0x330   :  { %921 = vmatpush.msra.mxu2 %v846_v47 }
 0x331   :  { %v448_v57 = vsel %vm447_vm13, %v2642_v49, %v444_v54 }
 0x332   :  { %v449_v58 = vmul.f32 %v448_v57, %v437_v55  ;;  %922 = vmatpush.msra.mxu2 %v845_v52 }
 0x334   :  { %v453_v60 = vmul.f32 %v2617_v56, %v449_v58 }
 0x336   :  { %v3241_v61 = vadd.f32 %v2618_v59, %v453_v60  ;;  %v830_v60 = vld [vmem:[#allocation16 + $0x150] sm:$0xff] }
 0x337   :  { %901 = vmatpush.msra.mxu1 %v830_v60 }
 0x338   :  { %548 = vmatmul.f32.vlgmr.msra.gmra.mxu3 %v3241_v61  ;;  %568 = vmatmul.f32.vlgmr.msrb.gmra.mxu0 %v3241_v61 }
 0x339   :  { %588 = vmatmul.f32.vlgmr.msrb.gmra.mxu1 %v3241_v61  ;;  %608 = vmatmul.f32.vlgmr.msrb.gmra.mxu2 %v3241_v61 }
 0x33a   :  { %902 = vmatpush.msra.mxu1 %v829_v6  ;;  %v808_v6 = vld [vmem:[#allocation16 + $0xa0] sm:$0xff] }
 0x3b5   :  { %v569_v0 = vpop.f32.mrf.mxu0 }
 0x3b6   :  { %v3250_v1 = vadd.f32 %v569_v0, %v525_v62  ;;  %v589_v2 = vpop.f32.mrf.mxu1  ;;  %v800_v62 = vld [vmem:[#allocation16 + $0x60] sm:$0xff] }
 0x3b7   :  { %v3252_v3 = vadd.f32 %v589_v2, %v526_v63  ;;  %859 = vmatpush.msrb.mxu3 %v800_v62  ;;  %v825_v62 = vld [vmem:[#allocation16 + $0x128] sm:$0xff] }
 0x3b8   :  { %v3255_v4 = vmul.f32 0.70710677, %v3250_v1 }
 0x3b9   :  { %v3258_v8 = vmul.f32 0.70710677, %v3252_v3  ;;  %860 = vmatpush.msrb.mxu3 %v799_v25  ;;  %v806_v25 = vld [vmem:[#allocation16 + $0x90] sm:$0xff] }
 0x3ba   :  { %v660_v10 = vmul.f32 %v3255_v4, %v3255_v4 }
 0x3bb   :  { %v700_v14 = vmul.f32 %v3258_v8, %v3258_v8  ;;  %v549_v15 = vpop.f32.mrf.mxu3 }
 0x3bc   :  { %v3264_v16 = vmin.f32 %v660_v10, 16.0  ;;  %v3266_v17 = vadd.f32 %v549_v15, %v524_v5  ;;  %v609_v18 = vpop.f32.mrf.mxu2  ;;  %v813_v5 = vld [vmem:[#allocation16 + $0xc8] sm:$0xff] }
 0x3bd   :  { %v3268_v21 = vmin.f32 %v700_v14, 16.0  ;;  %v3270_v22 = vadd.f32 %v609_v18, %v527_v9  ;;  %882 = vmatpush.msra.mxu0 %v813_v5  ;;  %v795_v5 = vld [vmem:[#allocation16 + $0x38] sm:$0xff] }
 0x3be   :  { %v662_v23 = vmul.f32 2.1237322e-06, %v3264_v16  ;;  %v673_v24 = vmul.f32 3.8918573e-05, %v3264_v16  ;;  %v3277_v28 = vmul.f32 0.70710677, %v3266_v17 }
 0x3bf   :  { %v702_v26 = vmul.f32 2.1237322e-06, %v3268_v21  ;;  %v713_v27 = vmul.f32 3.8918573e-05, %v3268_v21  ;;  %v3282_v35 = vmul.f32 0.70710677, %v3270_v22 }
 0x3c0   :  { %v663_v29 = vadd.f32 0.00028619796, %v662_v23  ;;  %v674_v30 = vadd.f32 0.001143296, %v673_v24  ;;  %v620_v34 = vmul.f32 %v3277_v28, %v3277_v28 }
 0x3c1   :  { %v703_v32 = vadd.f32 0.00028619796, %v702_v26  ;;  %v714_v33 = vadd.f32 0.001143296, %v713_v27  ;;  %v740_v45 = vmul.f32 %v3282_v35, %v3282_v35  ;;  %v812_v26 = vld [vmem:[#allocation16 + $0xc0] sm:$0xff] }
 0x3c2   :  { %v664_v36 = vmul.f32 %v663_v29, %v3264_v16  ;;  %v675_v37 = vmul.f32 %v674_v30, %v3264_v16  ;;  %v3288_v44 = vmin.f32 %v620_v34, 16.0  ;;  %v828_v27 = vld [vmem:[#allocation16 + $0x140] sm:$0xff]  ;;  %883 = vmatpush.msra.mxu0 %v812_v26 }
 0x3c3   :  { %v704_v42 = vmul.f32 %v703_v32, %v3268_v21  ;;  %v715_v43 = vmul.f32 %v714_v33, %v3268_v21  ;;  %v3296_v59 = vmin.f32 %v740_v45, 16.0  ;;  %v798_v32 = vld [vmem:[#allocation16 + $0x50] sm:$0xff]  ;;  %903 = vmatpush.msra.mxu1 %v828_v27 }
 0x3c4   :  { %v665_v49 = vadd.f32 0.0036580483, %v664_v36  ;;  %v676_v50 = vadd.f32 0.014752088, %v675_v37  ;;  %v622_v55 = vmul.f32 2.1237322e-06, %v3288_v44  ;;  %861 = vmatpush.msrb.mxu3 %v798_v32  ;;  %884 = vmatpush.msra.mxu0 %v811_v40 }
 0x3c5   :  { %v705_v53 = vadd.f32 0.0036580483, %v704_v42  ;;  %v716_v54 = vadd.f32 0.014752088, %v715_v43  ;;  %v633_v58 = vmul.f32 3.8918573e-05, %v3288_v44  ;;  %904 = vmatpush.msra.mxu1 %v827_v41 }
 0x3c6   :  { %v666_v56 = vmul.f32 %v665_v49, %v3264_v16  ;;  %v677_v57 = vmul.f32 %v676_v50, %v3264_v16  ;;  %v623_v2 = vadd.f32 0.00028619796, %v622_v55  ;;  %v742_v18 = vmul.f32 2.1237322e-06, %v3296_v59  ;;  %v810_v49 = vld [vmem:[#allocation16 + $0xb0] sm:$0xff]  ;;  %862 = vmatpush.msrb.mxu3 %v797_v48  ;;  %v796_v55 = vld [vmem:[#allocation16 + $0x40] sm:$0xff] }
 0x3c7   :  { %v706_v63 = vmul.f32 %v705_v53, %v3268_v21  ;;  %v717_v0 = vmul.f32 %v716_v54, %v3268_v21  ;;  %v634_v11 = vadd.f32 0.001143296, %v633_v58  ;;  %v753_v24 = vmul.f32 3.8918573e-05, %v3296_v59  ;;  %885 = vmatpush.msra.mxu0 %v810_v49  ;;  %905 = vmatpush.msra.mxu1 %v826_v51  ;;  %v791_v40 = vld [vmem:[#allocation16 + $0x18] sm:$0xff]  ;;  %v804_v41 = vld [vmem:[#allocation16 + $0x80] sm:$0xff] }
 0x3c8   :  { %v667_v9 = vadd.f32 0.05243302, %v666_v56  ;;  %v678_v10 = vadd.f32 0.112945676, %v677_v57  ;;  %v624_v15 = vmul.f32 %v623_v2, %v3288_v44  ;;  %v743_v36 = vadd.f32 0.00028619796, %v742_v18  ;;  %863 = vmatpush.msrb.mxu3 %v796_v55 }
 0x3c9   :  { %v707_v12 = vadd.f32 0.05243302, %v706_v63  ;;  %v718_v14 = vadd.f32 0.112945676, %v717_v0  ;;  %v635_v23 = vmul.f32 %v634_v11, %v3288_v44  ;;  %v754_v46 = vadd.f32 0.001143296, %v753_v24  ;;  %886 = vmatpush.msra.mxu0 %v809_v38  ;;  %906 = vmatpush.msra.mxu1 %v825_v62 }
 0x3ca   :  { %v668_v19 = vmul.f32 %v667_v9, %v3264_v16  ;;  %v679_v20 = vmul.f32 %v678_v10, %v3264_v16  ;;  %v625_v30 = vadd.f32 0.0036580483, %v624_v15  ;;  %v744_v58 = vmul.f32 %v743_v36, %v3296_v59  ;;  %v844_v63 = vld [vmem:[#allocation16 + $0x1c0] sm:$0xff]  ;;  %864 = vmatpush.msrb.mxu3 %v795_v5  ;;  %v843_v9 = vld [vmem:[#allocation16 + $0x1b8] sm:$0xff]  ;;  %v794_v10 = vld [vmem:[#allocation16 + $0x30] sm:$0xff] }
 0x3cb   :  { %v719_v29 = vmul.f32 %v718_v14, %v3268_v21  ;;  %v636_v34 = vadd.f32 0.014752088, %v635_v23  ;;  %v708_v43 = vmul.f32 %v707_v12, %v3268_v21  ;;  %v755_v60 = vmul.f32 %v754_v46, %v3296_v59  ;;  %923 = vmatpush.msra.mxu2 %v844_v63  ;;  %v807_v11 = vld [vmem:[#allocation16 + $0x98] sm:$0xff]  ;;  %887 = vmatpush.msra.mxu0 %v808_v6  ;;  %v842_v23 = vld [vmem:[#allocation16 + $0x1b0] sm:$0xff]  ;;  %v793_v24 = vld [vmem:[#allocation16 + $0x28] sm:$0xff] }
 0x3cc   :  { %v680_v33 = vadd.f32 0.4994258, %v679_v20  ;;  %v669_v37 = vadd.f32 0.18741608, %v668_v19  ;;  %v626_v54 = vmul.f32 %v625_v30, %v3288_v44  ;;  %907 = vmatpush.msra.mxu1 %v824_v7  ;;  %v745_v14 = vadd.f32 0.0036580483, %v744_v58  ;;  %865 = vmatpush.msrb.mxu3 %v794_v10 }
 0x3cd   :  { %v720_v39 = vadd.f32 0.4994258, %v719_v29  ;;  %v637_v45 = vmul.f32 %v636_v34, %v3288_v44  ;;  %v709_v2 = vadd.f32 0.18741608, %v708_v43  ;;  %v756_v15 = vadd.f32 0.014752088, %v755_v60  ;;  %924 = vmatpush.msra.mxu2 %v843_v9  ;;  %888 = vmatpush.msra.mxu0 %v807_v11 }
 0x3ce   :  { %v681_v42 = vmul.f32 %v680_v33, %v3264_v16  ;;  %v670_v0 = vmul.f32 %v669_v37, %v3264_v16  ;;  %v627_v12 = vadd.f32 0.05243302, %v626_v54  ;;  %v823_v18 = vld [vmem:[#allocation16 + $0x118] sm:$0xff]  ;;  %866 = vmatpush.msrb.mxu3 %v793_v24  ;;  %v822_v29 = vld [vmem:[#allocation16 + $0x110] sm:$0xff]  ;;  %v841_v30 = vld [vmem:[#allocation16 + $0x1a8] sm:$0xff]  ;;  %v746_v54 = vmul.f32 %v745_v14, %v3296_v59 }
 0x3cf   :  { %v721_v50 = vmul.f32 %v720_v39, %v3268_v21  ;;  %v638_v57 = vadd.f32 0.112945676, %v637_v45  ;;  %v710_v20 = vmul.f32 %v709_v2, %v3268_v21  ;;  %908 = vmatpush.msra.mxu1 %v823_v18  ;;  %v757_v27 = vmul.f32 %v756_v15, %v3296_v59  ;;  %925 = vmatpush.msra.mxu2 %v842_v23  ;;  %v805_v33 = vld [vmem:[#allocation16 + $0x88] sm:$0xff]  ;;  %v840_v21 = vld [vmem:[#allocation16 + $0x1a0] sm:$0xff]  ;;  %v839_v48 = vld [vmem:[#allocation16 + $0x198] sm:$0xff] }
 0x3d0   :  { %v3311_v53 = vadd.f32 1.0, %v681_v42  ;;  %v671_v19 = vadd.f32 1.1283791, %v670_v0  ;;  %889 = vmatpush.msra.mxu0 %v806_v25  ;;  %v821_v34 = vld [vmem:[#allocation16 + $0x108] sm:$0xff]  ;;  %867 = vmatpush.msrb.mxu3 %v792_v31  ;;  %v820_v42 = vld [vmem:[#allocation16 + $0x100] sm:$0xff]  ;;  %v628_v46 = vmul.f32 %v627_v12, %v3288_v44  ;;  %v790_v49 = vld [vmem:[#allocation16 + $0x10] sm:$0xff] }
 0x3d1   :  { %v3314_v56 = vadd.f32 1.0, %v721_v50  ;;  %v639_v16 = vmul.f32 %v638_v57, %v3288_v44  ;;  %909 = vmatpush.msra.mxu1 %v822_v29  ;;  %926 = vmatpush.msra.mxu2 %v841_v30  ;;  %v711_v43 = vadd.f32 1.1283791, %v710_v20  ;;  %v758_v47 = vadd.f32 0.112945676, %v757_v27  ;;  %v838_v38 = vld [vmem:[#allocation16 + $0x190] sm:$0xff] }
 0x3d2   :  { %2643 = vrcp.f32 %v3311_v53  ;;  %890 = vmatpush.msra.mxu0 %v805_v33  ;;  %v672_v50 = vmul.f32 %v671_v19, %v3255_v4  ;;  %868 = vmatpush.msrb.mxu3 %v791_v40  ;;  %v692_v55 = vand.u32 2147483647, %v3311_v53  ;;  %v694_v57 = vand.u32 2147483648, %v3311_v53  ;;  %v789_v62 = vld [vmem:[#allocation16 + $0x8] sm:$0xff]  ;;  %v788_v7 = vld [vmem:[#allocation16] sm:$0xff] }
 0x3d3   :  { %2645 = vrcp.f32 %v3314_v56  ;;  %v640_v26 = vadd.f32 0.4994258, %v639_v16  ;;  %910 = vmatpush.msra.mxu1 %v821_v34  ;;  %927 = vmatpush.msra.mxu2 %v840_v21  ;;  %v759_v60 = vmul.f32 %v758_v47, %v3296_v59  ;;  %v734_v63 = vand.u32 2147483648, %v3314_v56  ;;  %v837_v6 = vld [vmem:[#allocation16 + $0x188] sm:$0xff]  ;;  %v836_v15 = vld [vmem:[#allocation16 + $0x180] sm:$0xff] }
 0x3d4   :  { %891 = vmatpush.msra.mxu0 %v804_v41  ;;  %869 = vmatpush.msrb.mxu3 %v790_v49  ;;  %v732_v2 = vand.u32 2147483647, %v3314_v56  ;;  %vm688_vm0 = vweird.f32 %v3311_v53  ;;  %v629_v10 = vadd.f32 0.18741608, %v628_v46  ;;  %v747_v11 = vadd.f32 0.05243302, %v746_v54 }
 0x3d5   :  { %v641_v39 = vmul.f32 %v640_v26, %v3288_v44  ;;  %911 = vmatpush.msra.mxu1 %v820_v42  ;;  %928 = vmatpush.msra.mxu2 %v839_v48  ;;  %v760_v5 = vadd.f32 0.4994258, %v759_v60  ;;  %v695_v12 = vor.u32 1.1754944e-38, %v694_v57  ;;  %vm728_vm2 = vweird.f32 %v3314_v56 }
 0x3d6   :  { %870 = vmatpush.msrb.mxu3 %v789_v62  ;;  %vm693_vm3 = vcmp.eq.f32.partialorder %v692_v55, 8.507059e+37  ;;  %v735_v19 = vor.u32 1.1754944e-38, %v734_v63  ;;  %vm733_vm5 = vcmp.eq.f32.partialorder %v732_v2, 8.507059e+37  ;;  %v630_v27 = vmul.f32 %v629_v10, %v3288_v44 }
 0x3d7   :  { %v3335_v52 = vadd.f32 1.0, %v641_v39  ;;  %929 = vmatpush.msra.mxu2 %v838_v38  ;;  %v761_v14 = vmul.f32 %v760_v5, %v3296_v59  ;;  %v748_v29 = vmul.f32 %v747_v11, %v3296_v59  ;;  %v614_v33 = vmul.f32 0.5, %v3252_v3 }
 0x3d8   :  { %v3324_v32 = vpop.eup %2643  ;;  %871 = vmatpush.msrb.mxu3 %v788_v7 }
 0x3d9   :  { %v3326_v36 = vpop.eup %2645  ;;  %v684_v37 = vmul.f32 %v3324_v32, %v3311_v53  ;;  %vm689_vm14 = vweird.f32 %v3324_v32  ;;  %2647 = vrcp.f32 %v3335_v52  ;;  %v712_v53 = vmul.f32 %v711_v43, %v3258_v8  ;;  %930 = vmatpush.msra.mxu2 %v837_v6 }
 0x3da   :  { %v724_v45 = vmul.f32 %v3326_v36, %v3314_v56  ;;  %vm729_vm15 = vweird.f32 %v3326_v36  ;;  %vm690_vm1 = vmor %vm688_vm0, %vm689_vm14  ;;  %v762_v24 = vadd.f32 1.0, %v761_v14  ;;  %v654_v39 = vand.u32 2147483648, %v3335_v52 }
 0x3db   :  { %v685_v51 = vsub.f32 1.0, %v684_v37  ;;  %vm730_vm4 = vmor %vm728_vm2, %vm729_vm15  ;;  %931 = vmatpush.msra.mxu2 %v836_v15  ;;  %v631_v37 = vadd.f32 1.1283791, %v630_v27  ;;  %v749_v40 = vadd.f32 0.18741608, %v748_v29  ;;  %vm648_vm8 = vweird.f32 %v3335_v52  ;;  %v2552_v27 = vld [vmem:[%s4129_s7 + $0xc8] sm:$0xff] }
 0x3dc   :  { %v725_v58 = vsub.f32 1.0, %v724_v45  ;;  %2649 = vrcp.f32 %v762_v24  ;;  %v652_v42 = vand.u32 2147483647, %v3335_v52  ;;  %v774_v57 = vand.u32 2147483648, %v762_v24  ;;  %v2551_v29 = vld [vmem:[%s4129_s7 + $0xc0] sm:$0xff] }
 0x3dd   :  { %v686_v4 = vmul.f32 %v3324_v32, %v685_v51  ;;  %v750_v3 = vmul.f32 %v749_v40, %v3296_v59  ;;  %v632_v49 = vmul.f32 %v631_v37, %v3277_v28  ;;  %v772_v38 = vand.u32 2147483647, %v762_v24 }
 0x3de   :  { %v726_v0 = vmul.f32 %v3326_v36, %v725_v58  ;;  %vm653_vm10 = vcmp.eq.f32.partialorder %v652_v42, 8.507059e+37  ;;  %vm768_vm12 = vweird.f32 %v762_v24  ;;  %v612_v59 = vmul.f32 0.5, %v3266_v17 }
 0x3df   :  { %v687_v9 = vadd.f32 %v3324_v32, %v686_v4  ;;  %v2648_v56 = vpop.eup %2647  ;;  %v751_v58 = vadd.f32 1.1283791, %v750_v3  ;;  %v775_v4 = vor.u32 1.1754944e-38, %v774_v57  ;;  %vm773_vm14 = vcmp.eq.f32.partialorder %v772_v38, 8.507059e+37 }
 0x3e0   :  { %v727_v16 = vadd.f32 %v3326_v36, %v726_v0  ;;  %v644_v30 = vmul.f32 %v2648_v56, %v3335_v52  ;;  %vm649_vm7 = vweird.f32 %v2648_v56 }
 0x3e1   :  { %v691_v18 = vsel %vm690_vm1, %v3324_v32, %v687_v9  ;;  %v613_v32 = vmul.f32 0.5, %v3250_v1  ;;  %vm650_vm9 = vmor %vm648_vm8, %vm649_vm7  ;;  %v655_v1 = vor.u32 1.1754944e-38, %v654_v39  ;;  %v752_v28 = vmul.f32 %v751_v58, %v3282_v35  ;;  %v2544_v39 = vld [vmem:[%s4129_s7 + $0x88] sm:$0xff] }
 0x3e2   :  { %v696_v20 = vsel %vm693_vm3, %v695_v12, %v691_v18  ;;  %v731_v23 = vsel %vm730_vm4, %v3326_v36, %v727_v16  ;;  %v645_v21 = vsub.f32 1.0, %v644_v30  ;;  %v2650_v45 = vpop.eup %2649  ;;  %v615_v9 = vmul.f32 0.5, %v3270_v22  ;;  %v2619_v12 = vld [vmem:[#allocation17] ss:$0 sm:$0xff]  ;;  %v2558_v22 = vld [vmem:[%s4129_s7 + $0xf8] sm:$0xff] }
 0x3e3   :  { %v697_v25 = vmul.f32 %v696_v20, %v672_v50  ;;  %v736_v26 = vsel %vm733_vm5, %v735_v19, %v731_v23  ;;  %v764_v48 = vmul.f32 %v2650_v45, %v762_v24  ;;  %vm769_vm11 = vweird.f32 %v2650_v45  ;;  %991 = vmatpush.msra.mxu3 %v2558_v22  ;;  %v2557_v24 = vld [vmem:[%s4129_s7 + $0xf0] sm:$0xff]  ;;  %v1089_v22 = vld [vmem:[#allocation14 + $0x350] sm:$0xff] }
 0x3e4   :  { %v737_v8 = vmul.f32 %v736_v26, %v712_v53  ;;  %v646_v41 = vmul.f32 %v2648_v56, %v645_v21  ;;  %vm770_vm13 = vmor %vm768_vm12, %vm769_vm11  ;;  %v2553_v26 = vld [vmem:[%s4129_s7 + $0xd0] sm:$0xff] }
 0x3e5   :  { %v2540_v31 = vclamps-f32 %v697_v25, 1.0  ;;  %v765_v54 = vsub.f32 1.0, %v764_v48  ;;  %992 = vmatpush.msra.mxu3 %v2557_v24  ;;  %v2554_v25 = vld [vmem:[%s4129_s7 + $0xd8] sm:$0xff]  ;;  %v1090_v24 = vld [vmem:[#allocation14 + $0x358] sm:$0xff] }
 0x3e6   :  { %v2541_v34 = vclamps-f32 %v737_v8, 1.0  ;;  %v647_v47 = vadd.f32 %v2648_v56, %v646_v41  ;;  %v2550_v8 = vld [vmem:[%s4129_s7 + $0xb8] sm:$0xff]  ;;  %v2543_v41 = vld [vmem:[%s4129_s7 + $0x80] sm:$0xff] }
 0x3e7   :  { %v781_v36 = vadd.f32 1.0, %v2540_v31  ;;  %v766_v60 = vmul.f32 %v2650_v45, %v765_v54  ;;  %v2549_v31 = vld [vmem:[%s4129_s7 + $0xb0] sm:$0xff] }
 0x3e8   :  { %v782_v44 = vadd.f32 1.0, %v2541_v34  ;;  %v651_v50 = vsel %vm650_vm9, %v2648_v56, %v647_v47  ;;  %v2556_v56 = vld [vmem:[%s4129_s7 + $0xe8] sm:$0xff]  ;;  %v2546_v34 = vld [vmem:[%s4129_s7 + $0x98] sm:$0xff] }
 0x3e9   :  { %v785_v43 = vmul.f32 %v781_v36, %v613_v32  ;;  %v656_v51 = vsel %vm653_vm10, %v655_v1, %v651_v50  ;;  %v767_v62 = vadd.f32 %v2650_v45, %v766_v60  ;;  %993 = vmatpush.msra.mxu3 %v2556_v56  ;;  %v2548_v32 = vld [vmem:[%s4129_s7 + $0xa8] sm:$0xff]  ;;  %v2545_v36 = vld [vmem:[%s4129_s7 + $0x90] sm:$0xff]  ;;  %v2622_v60 = vld [vmem:[%s4130_s8 + $0x1] ss:$0 sm:$0xff] }
 0x3ea   :  { %v786_v46 = vmul.f32 %v782_v44, %v614_v33  ;;  %v657_v55 = vmul.f32 %v656_v51, %v632_v49  ;;  %v2547_v33 = vld [vmem:[%s4129_s7 + $0xa0] sm:$0xff]  ;;  %v2620_v50 = vld [vmem:[#allocation19] ss:$0 sm:$0xff] }
 0x3eb   :  { %892 = vmatmul.f32.vlgmr.msra.gmra.mxu0 %v785_v43  ;;  %v771_v0 = vsel %vm770_vm13, %v2650_v45, %v767_v62  ;;  %v1083_v56 = vld [vmem:[#allocation14 + $0x320] sm:$0xff] }
 0x3ec   :  { %912 = vmatmul.f32.vlgmr.msra.gmra.mxu1 %v786_v46  ;;  %v2539_v52 = vclamps-f32 %v657_v55, 1.0  ;;  %v776_v2 = vsel %vm773_vm14, %v775_v4, %v771_v0  ;;  %v2621_v55 = vld [vmem:[%s4138_s16] ss:$0 sm:$0xff]  ;;  %v1107_v4 = vld [vmem:[#allocation14 + $0x3e0] sm:$0xff]  ;;  %v1110_v0 = vld [vmem:[#allocation14 + $0x3f8] sm:$0xff] }
 0x3ed   :  { %v777_v6 = vmul.f32 %v776_v2, %v752_v28  ;;  %v1109_v28 = vld [vmem:[#allocation14 + $0x3f0] sm:$0xff]  ;;  %1122 = vmatpush.msrb.mxu0 %v1107_v4  ;;  %v1103_v2 = vld [vmem:[#allocation14 + $0x3c0] sm:$0xff] }
 0x3ee   :  { %v780_v63 = vadd.f32 1.0, %v2539_v52  ;;  %1162 = vmatpush.msrb.mxu2 %v1109_v28  ;;  %v1054_v28 = vld [vmem:[#allocation14 + $0x238] sm:$0xff] }
 0x3ef   :  { %v2542_v7 = vclamps-f32 %v777_v6, 1.0  ;;  %v1105_v6 = vld [vmem:[#allocation14 + $0x3d0] sm:$0xff]  ;;  %1123 = vmatpush.msrb.mxu0 %v1103_v2  ;;  %v1048_v2 = vld [vmem:[#allocation14 + $0x208] sm:$0xff] }
 0x3f0   :  { %v784_v5 = vmul.f32 %v780_v63, %v612_v59  ;;  %v1108_v63 = vld [vmem:[#allocation14 + $0x3e8] sm:$0xff]  ;;  %1163 = vmatpush.msrb.mxu2 %v1105_v6  ;;  %v1049_v6 = vld [vmem:[#allocation14 + $0x210] sm:$0xff] }
 0x3f1   :  { %v783_v10 = vadd.f32 1.0, %v2542_v7  ;;  %1142 = vmatpush.msrb.mxu1 %v1108_v63  ;;  %v1106_v7 = vld [vmem:[#allocation14 + $0x3d8] sm:$0xff]  ;;  %v1053_v63 = vld [vmem:[#allocation14 + $0x230] sm:$0xff] }
 0x3f2   :  { %872 = vmatmul.f32.vlgmr.msrb.gmra.mxu3 %v784_v5  ;;  %v1104_v5 = vld [vmem:[#allocation14 + $0x3c8] sm:$0xff] }
 0x3f3   :  { %v787_v11 = vmul.f32 %v783_v10, %v615_v9  ;;  %1143 = vmatpush.msrb.mxu1 %v1104_v5  ;;  %v1099_v9 = vld [vmem:[#allocation14 + $0x3a0] sm:$0xff]  ;;  %v1100_v10 = vld [vmem:[#allocation14 + $0x3a8] sm:$0xff] }
 0x3f4   :  { %1124 = vmatpush.msrb.mxu0 %v1099_v9 }
 0x3f5   :  { %932 = vmatmul.f32.vlgmr.msra.gmra.mxu2 %v787_v11  ;;  %v1101_v11 = vld [vmem:[#allocation14 + $0x3b0] sm:$0xff]  ;;  %1144 = vmatpush.msrb.mxu1 %v1100_v10 }
 0x3f6   :  { %1164 = vmatpush.msrb.mxu2 %v1101_v11 }
 0x468   :  { %v893_v14 = vpop.f32.mrf.mxu0 }
 0x469   :  { %v913_v18 = vpop.f32.mrf.mxu1 }
 0x475   :  { %v873_v16 = vpop.f32.mrf.mxu3 }
 0x476   :  { %v874_v17 = vadd.f32 %v2619_v12, %v873_v16  ;;  %v1102_v12 = vld [vmem:[#allocation14 + $0x3b8] sm:$0xff]  ;;  %v1095_v16 = vld [vmem:[#allocation14 + $0x380] sm:$0xff] }
 0x477   :  { %1125 = vmatpush.msrb.mxu0 %v1095_v16 }
 0x478   :  { %v894_v15 = vadd.f32 %v893_v14, %v874_v17  ;;  %v933_v35 = vpop.f32.mrf.mxu2  ;;  %v1096_v17 = vld [vmem:[#allocation14 + $0x388] sm:$0xff]  ;;  %v1097_v14 = vld [vmem:[#allocation14 + $0x390] sm:$0xff] }
 0x479   :  { %1145 = vmatpush.msrb.mxu1 %v1096_v17  ;;  %1165 = vmatpush.msrb.mxu2 %v1097_v14 }
 0x47a   :  { %v914_v53 = vadd.f32 %v913_v18, %v894_v15  ;;  %v1098_v15 = vld [vmem:[#allocation14 + $0x398] sm:$0xff]  ;;  %v1091_v18 = vld [vmem:[#allocation14 + $0x360] sm:$0xff] }
 0x47b   :  { %1126 = vmatpush.msrb.mxu0 %v1091_v18  ;;  %v2623_v18 = vld [vmem:[#allocation11 + $0x1] ss:$0 sm:$0xff] }
 0x47c   :  { %v934_v19 = vadd.f32 %v933_v35, %v914_v53  ;;  %v1092_v53 = vld [vmem:[#allocation14 + $0x368] sm:$0xff]  ;;  %v1093_v35 = vld [vmem:[#allocation14 + $0x370] sm:$0xff] }
 0x47d   :  { %1146 = vmatpush.msrb.mxu1 %v1092_v53  ;;  %1166 = vmatpush.msrb.mxu2 %v1093_v35 }
 0x47e   :  { %v936_v20 = vadd.f32 %v934_v19, %v3241_v61  ;;  %v2555_v61 = vld [vmem:[%s4129_s7 + $0xe0] sm:$0xff]  ;;  %v1094_v19 = vld [vmem:[#allocation14 + $0x378] sm:$0xff] }
 0x47f   :  { %994 = vmatpush.msra.mxu3 %v2555_v61  ;;  %1167 = vmatpush.msrb.mxu2 %v1089_v22  ;;  %v1084_v61 = vld [vmem:[#allocation14 + $0x328] sm:$0xff] }
 0x480   :  { %939 = vadd.xlane.f32.xlu2 %v936_v20  ;;  %v942_v23 = vmul.f32 %v936_v20, %v936_v20 }
 0x481   :  { %995 = vmatpush.msra.mxu3 %v2554_v25  ;;  %v1085_v25 = vld [vmem:[#allocation14 + $0x330] sm:$0xff] }
 0x482   :  { %1168 = vmatpush.msrb.mxu2 %v1085_v25 }
 0x483   :  { %996 = vmatpush.msra.mxu3 %v2553_v26  ;;  %v1086_v26 = vld [vmem:[#allocation14 + $0x338] sm:$0xff] }
 0x485   :  { %997 = vmatpush.msra.mxu3 %v2552_v27  ;;  %v1079_v27 = vld [vmem:[#allocation14 + $0x300] sm:$0xff] }
 0x487   :  { %998 = vmatpush.msra.mxu3 %v2551_v29  ;;  %v1080_v29 = vld [vmem:[#allocation14 + $0x308] sm:$0xff] }
 0x488   :  { %943 = vadd.xlane.f32.xlu2 %v942_v23  ;;  %v1088_v23 = vld [vmem:[#allocation14 + $0x348] sm:$0xff] }
 0x489   :  { %999 = vmatpush.msra.mxu3 %v2550_v8  ;;  %1147 = vmatpush.msrb.mxu1 %v1088_v23  ;;  %v1081_v8 = vld [vmem:[#allocation14 + $0x310] sm:$0xff] }
 0x48a   :  { %1169 = vmatpush.msrb.mxu2 %v1081_v8 }
 0x48b   :  { %1000 = vmatpush.msra.mxu3 %v2549_v31  ;;  %1148 = vmatpush.msrb.mxu1 %v1084_v61  ;;  %v1075_v31 = vld [vmem:[#allocation14 + $0x2e0] sm:$0xff] }
 0x48d   :  { %1001 = vmatpush.msra.mxu3 %v2548_v32  ;;  %1149 = vmatpush.msrb.mxu1 %v1080_v29  ;;  %v1076_v32 = vld [vmem:[#allocation14 + $0x2e8] sm:$0xff] }
 0x48f   :  { %1002 = vmatpush.msra.mxu3 %v2547_v33  ;;  %v1077_v33 = vld [vmem:[#allocation14 + $0x2f0] sm:$0xff]  ;;  %1150 = vmatpush.msrb.mxu1 %v1076_v32  ;;  %v1410_v32 = vld [vmem:[#allocation16 + $0x2f8] sm:$0xff] }
 0x490   :  { %1170 = vmatpush.msrb.mxu2 %v1077_v33 }
 0x491   :  { %1003 = vmatpush.msra.mxu3 %v2546_v34  ;;  %v1078_v34 = vld [vmem:[#allocation14 + $0x2f8] sm:$0xff] }
 0x493   :  { %1004 = vmatpush.msra.mxu3 %v2545_v36  ;;  %v1072_v36 = vld [vmem:[#allocation14 + $0x2c8] sm:$0xff] }
 0x494   :  { %1151 = vmatpush.msrb.mxu1 %v1072_v36  ;;  %v1409_v36 = vld [vmem:[#allocation16 + $0x2f0] sm:$0xff] }
 0x495   :  { %1005 = vmatpush.msra.mxu3 %v2544_v39  ;;  %v1074_v39 = vld [vmem:[#allocation14 + $0x2d8] sm:$0xff] }
 0x497   :  { %1006 = vmatpush.msra.mxu3 %v2543_v41  ;;  %v1069_v41 = vld [vmem:[#allocation14 + $0x2b0] sm:$0xff] }
 0x499   :  { %1182 = vmatpush.msrb.mxu3 %v1110_v0  ;;  %v1047_v0 = vld [vmem:[#allocation14 + $0x200] sm:$0xff] }
 0x49b   :  { %1183 = vmatpush.msrb.mxu3 %v1106_v7  ;;  %v1050_v7 = vld [vmem:[#allocation14 + $0x218] sm:$0xff] }
 0x49d   :  { %1184 = vmatpush.msrb.mxu3 %v1102_v12 }
 0x49f   :  { %1185 = vmatpush.msrb.mxu3 %v1098_v15 }
 0x4a1   :  { %1186 = vmatpush.msrb.mxu3 %v1094_v19  ;;  %v2624_v19 = vld [vmem:[#allocation13 + $0x1] ss:$0 sm:$0xff] }
 0x4a3   :  { %1187 = vmatpush.msrb.mxu3 %v1090_v24 }
 0x4a5   :  { %1188 = vmatpush.msrb.mxu3 %v1086_v26 }
 0x4f3   :  { %v940_v30 = vpop.xlane.xlu2 %939 }
 0x4f4   :  { %v941_v21 = vmul.f32 %v940_v30, %v3219_v13  ;;  %v1082_v30 = vld [vmem:[#allocation14 + $0x318] sm:$0xff] }
 0x4f5   :  { %1189 = vmatpush.msrb.mxu3 %v1082_v30 }
 0x4f6   :  { %v946_v40 = vmul.f32 %v941_v21, %v941_v21  ;;  %v948_v49 = vsub.f32 %v936_v20, %v941_v21  ;;  %v1087_v20 = vld [vmem:[#allocation14 + $0x340] sm:$0xff] }
 0x4f7   :  { %1127 = vmatpush.msrb.mxu0 %v1087_v20  ;;  %1190 = vmatpush.msrb.mxu3 %v1078_v34  ;;  %v1071_v21 = vld [vmem:[#allocation14 + $0x2c0] sm:$0xff] }
 0x4f9   :  { %1128 = vmatpush.msrb.mxu0 %v1083_v56  ;;  %1191 = vmatpush.msrb.mxu3 %v1074_v39 }
 0x4fb   :  { %v944_v37 = vpop.xlane.xlu2 %943  ;;  %1129 = vmatpush.msrb.mxu0 %v1079_v27 }
 0x4fc   :  { %v945_v44 = vmul.f32 %v944_v37, %v3219_v13  ;;  %v1073_v37 = vld [vmem:[#allocation14 + $0x2d0] sm:$0xff] }
 0x4fd   :  { %1130 = vmatpush.msrb.mxu0 %v1075_v31  ;;  %1171 = vmatpush.msrb.mxu2 %v1073_v37  ;;  %v1394_v31 = vld [vmem:[#allocation16 + $0x278] sm:$0xff] }
 0x4fe   :  { %v947_v42 = vsub.f32 %v945_v44, %v946_v40  ;;  %v1067_v40 = vld [vmem:[#allocation14 + $0x2a0] sm:$0xff]  ;;  %v1068_v44 = vld [vmem:[#allocation14 + $0x2a8] sm:$0xff] }
 0x4ff   :  { %1131 = vmatpush.msrb.mxu0 %v1071_v21  ;;  %1152 = vmatpush.msrb.mxu1 %v1068_v44  ;;  %v1393_v21 = vld [vmem:[#allocation16 + $0x270] sm:$0xff] }
 0x500   :  { %v949_v43 = vadd.f32 1e-05, %v947_v42  ;;  %v1070_v42 = vld [vmem:[#allocation14 + $0x2b8] sm:$0xff]  ;;  %1172 = vmatpush.msrb.mxu2 %v1069_v41 }
 0x501   :  { %1132 = vmatpush.msrb.mxu0 %v1067_v40  ;;  %1192 = vmatpush.msrb.mxu3 %v1070_v42 }
 0x502   :  { %2651 = vrsqrt.f32 %v949_v43  ;;  %vm956_vm0 = vweird.f32 %v949_v43 }
 0x508   :  { %v2652_v45 = vpop.eup %2651 }
 0x509   :  { %v951_v46 = vmul.f32 %v2652_v45, %v949_v43  ;;  %vm957_vm15 = vweird.f32 %v2652_v45  ;;  %v1063_v43 = vld [vmem:[#allocation14 + $0x280] sm:$0xff] }
 0x50a   :  { %vm958_vm1 = vmor %vm956_vm0, %vm957_vm15  ;;  %1133 = vmatpush.msrb.mxu0 %v1063_v43  ;;  %v1392_v43 = vld [vmem:[#allocation16 + $0x268] sm:$0xff] }
 0x50b   :  { %v952_v47 = vmul.f32 %v2652_v45, %v951_v46  ;;  %v1065_v46 = vld [vmem:[#allocation14 + $0x290] sm:$0xff] }
 0x50c   :  { %1173 = vmatpush.msrb.mxu2 %v1065_v46 }
 0x50d   :  { %v953_v1 = vmul.f32 0.5, %v952_v47  ;;  %v1066_v47 = vld [vmem:[#allocation14 + $0x298] sm:$0xff] }
 0x50e   :  { %1193 = vmatpush.msrb.mxu3 %v1066_v47 }
 0x50f   :  { %v954_v3 = vsub.f32 1.5, %v953_v1  ;;  %v1059_v1 = vld [vmem:[#allocation14 + $0x260] sm:$0xff] }
 0x510   :  { %1134 = vmatpush.msrb.mxu0 %v1059_v1 }
 0x511   :  { %v955_v48 = vmul.f32 %v2652_v45, %v954_v3  ;;  %v1060_v3 = vld [vmem:[#allocation14 + $0x268] sm:$0xff] }
 0x513   :  { %v959_v51 = vsel %vm958_vm1, %v2652_v45, %v955_v48  ;;  %v1064_v45 = vld [vmem:[#allocation14 + $0x288] sm:$0xff]  ;;  %v1061_v48 = vld [vmem:[#allocation14 + $0x270] sm:$0xff] }
 0x514   :  { %v960_v54 = vmul.f32 %v959_v51, %v948_v49  ;;  %1153 = vmatpush.msrb.mxu1 %v1064_v45  ;;  %v1062_v49 = vld [vmem:[#allocation14 + $0x278] sm:$0xff]  ;;  %v1055_v51 = vld [vmem:[#allocation14 + $0x240] sm:$0xff]  ;;  %1174 = vmatpush.msrb.mxu2 %v1061_v48  ;;  %v1408_v45 = vld [vmem:[#allocation16 + $0x2e8] sm:$0xff] }
 0x515   :  { %1194 = vmatpush.msrb.mxu3 %v1062_v49  ;;  %1135 = vmatpush.msrb.mxu0 %v1055_v51 }
 0x516   :  { %v964_v57 = vmul.f32 %v2620_v50, %v960_v54  ;;  %v1056_v54 = vld [vmem:[#allocation14 + $0x248] sm:$0xff]  ;;  %1154 = vmatpush.msrb.mxu1 %v1060_v3 }
 0x518   :  { %v968_v58 = vadd.f32 %v2621_v55, %v964_v57  ;;  %v1057_v57 = vld [vmem:[#allocation14 + $0x250] sm:$0xff]  ;;  %1155 = vmatpush.msrb.mxu1 %v1056_v54 }
 0x519   :  { %1175 = vmatpush.msrb.mxu2 %v1057_v57 }
 0x51a   :  { %1007 = vmatmul.f32.vlgmr.msra.gmra.mxu3 %v968_v58 }
 0x51b   :  { %1176 = vmatpush.msrb.mxu2 %v1053_v63  ;;  %v1442_v63 = vld [vmem:[#allocation16 + $0x3f8] sm:$0xff] }
 0x51d   :  { %1177 = vmatpush.msrb.mxu2 %v1049_v6  ;;  %v1406_v6 = vld [vmem:[#allocation16 + $0x2d8] sm:$0xff] }
 0x59d   :  { %v1008_v38 = vpop.f32.mrf.mxu3 }
 0x59e   :  { %v1009_v52 = vadd.f32 %v2622_v60, %v1008_v38  ;;  %v1051_v38 = vld [vmem:[#allocation14 + $0x220] sm:$0xff] }
 0x59f   :  { %1136 = vmatpush.msrb.mxu0 %v1051_v38 }
 0x5a0   :  { %v3430_v62 = vadd.f32 %v1009_v52, %v968_v58  ;;  %v1058_v58 = vld [vmem:[#allocation14 + $0x258] sm:$0xff]  ;;  %v1052_v52 = vld [vmem:[#allocation14 + $0x228] sm:$0xff] }
 0x5a1   :  { %1195 = vmatpush.msrb.mxu3 %v1058_v58  ;;  %1156 = vmatpush.msrb.mxu1 %v1052_v52  ;;  %v1391_v58 = vld [vmem:[#allocation16 + $0x260] sm:$0xff] }
 0x5a2   :  { %1016 = vadd.xlane.f32.xlu0 %v3430_v62  ;;  %v1019_v59 = vmul.f32 %v3430_v62, %v3430_v62  ;;  %1137 = vmatpush.msrb.mxu0 %v1047_v0 }
 0x5a3   :  { %1196 = vmatpush.msrb.mxu3 %v1054_v28  ;;  %1157 = vmatpush.msrb.mxu1 %v1048_v2  ;;  %v1390_v28 = vld [vmem:[#allocation16 + $0x258] sm:$0xff] }
 0x5a4   :  { %1020 = vadd.xlane.f32.xlu1 %v1019_v59  ;;  %1448 = vmatpush.msra.mxu0 %v1394_v31 }
 0x5a5   :  { %1197 = vmatpush.msrb.mxu3 %v1050_v7  ;;  %1468 = vmatpush.msra.mxu1 %v1410_v32  ;;  %v1425_v7 = vld [vmem:[#allocation16 + $0x370] sm:$0xff] }
 0x5a6   :  { %1449 = vmatpush.msra.mxu0 %v1393_v21 }
 0x5a7   :  { %1469 = vmatpush.msra.mxu1 %v1409_v36  ;;  %1508 = vmatpush.msra.mxu3 %v1442_v63 }
 0x5a8   :  { %1450 = vmatpush.msra.mxu0 %v1392_v43 }
 0x5a9   :  { %1470 = vmatpush.msra.mxu1 %v1408_v45 }
 0x5aa   :  { %1451 = vmatpush.msra.mxu0 %v1391_v58 }
 0x5ac   :  { %1452 = vmatpush.msra.mxu0 %v1390_v28 }
 0x615   :  { %v1017_v50 = vpop.xlane.xlu0 %1016 }
 0x616   :  { %v1018_v55 = vmul.f32 %v1017_v50, %v3219_v13 }
 0x617   :  { %v1021_v60 = vpop.xlane.xlu1 %1020 }
 0x618   :  { %v1023_v59 = vmul.f32 %v1018_v55, %v1018_v55  ;;  %v1022_v4 = vmul.f32 %v1021_v60, %v3219_v13  ;;  %v1025_v15 = vsub.f32 %v3430_v62, %v1018_v55  ;;  %v2560_v62 = vld [vmem:[%s4134_s12 + $0x4] sm:$0xf]  ;;  %v1407_v60 = vld [vmem:[#allocation16 + $0x2e0] sm:$0xff] }
 0x619   :  { %v1114_v22 = vperm.slane %v2560_v62, 0  ;;  %v1115_v24 = vperm.slane %v2560_v62, 1  ;;  %v1116_v8 = vperm.slane %v2560_v62, 2  ;;  %v1117_v30 = vperm.slane %v2560_v62, 3  ;;  %1471 = vmatpush.msra.mxu1 %v1407_v60  ;;  %v1424_v62 = vld [vmem:[#allocation16 + $0x368] sm:$0xff] }
 0x61a   :  { %v1024_v5 = vsub.f32 %v1022_v4, %v1023_v59  ;;  %v1426_v4 = vld [vmem:[#allocation16 + $0x378] sm:$0xff] }
 0x61b   :  { %1488 = vmatpush.msra.mxu2 %v1426_v4  ;;  %1472 = vmatpush.msra.mxu1 %v1406_v6  ;;  %v1437_v6 = vld [vmem:[#allocation16 + $0x3d0] sm:$0xff] }
 0x61c   :  { %v1026_v9 = vadd.f32 1e-05, %v1024_v5 }
 0x61d   :  { %1489 = vmatpush.msra.mxu2 %v1425_v7 }
 0x61e   :  { %2653 = vrsqrt.f32 %v1026_v9  ;;  %vm1033_vm3 = vweird.f32 %v1026_v9 }
 0x61f   :  { %1490 = vmatpush.msra.mxu2 %v1424_v62 }
 0x624   :  { %v2654_v10 = vpop.eup %2653 }
 0x625   :  { %v1028_v11 = vmul.f32 %v2654_v10, %v1026_v9  ;;  %vm1034_vm2 = vweird.f32 %v2654_v10  ;;  %v1441_v9 = vld [vmem:[#allocation16 + $0x3f0] sm:$0xff] }
 0x626   :  { %vm1035_vm4 = vmor %vm1033_vm3, %vm1034_vm2  ;;  %1509 = vmatpush.msra.mxu3 %v1441_v9 }
 0x627   :  { %v1029_v12 = vmul.f32 %v2654_v10, %v1028_v11 }
 0x629   :  { %v1030_v16 = vmul.f32 0.5, %v1029_v12 }
 0x62b   :  { %v1031_v17 = vsub.f32 1.5, %v1030_v16 }
 0x62d   :  { %v1032_v14 = vmul.f32 %v2654_v10, %v1031_v17 }
 0x62f   :  { %v1036_v53 = vsel %vm1035_vm4, %v2654_v10, %v1032_v14 }
 0x630   :  { %v1037_v35 = vmul.f32 %v1036_v53, %v1025_v15 }
 0x632   :  { %v1041_v20 = vmul.f32 %v2623_v18, %v1037_v35 }
 0x634   :  { %v3438_v23 = vadd.f32 %v2624_v19, %v1041_v20  ;;  %v1389_v19 = vld [vmem:[#allocation16 + $0x250] sm:$0xff] }
 0x635   :  { %v1405_v20 = vld [vmem:[#allocation16 + $0x2d0] sm:$0xff]  ;;  %1453 = vmatpush.msra.mxu0 %v1389_v19 }
 0x636   :  { %1138 = vmatmul.f32.vlgmr.msrb.gmra.mxu0 %v3438_v23  ;;  %1158 = vmatmul.f32.vlgmr.msrb.gmra.mxu1 %v3438_v23 }
 0x637   :  { %1178 = vmatmul.f32.vlgmr.msrb.gmra.mxu2 %v3438_v23  ;;  %1198 = vmatmul.f32.vlgmr.msrb.gmra.mxu3 %v3438_v23 }
 0x638   :  { %1473 = vmatpush.msra.mxu1 %v1405_v20 }
 0x6b3   :  { %v1139_v56 = vpop.f32.mrf.mxu0  ;;  %v1159_v61 = vpop.f32.mrf.mxu1 }
 0x6b4   :  { %v3447_v25 = vadd.f32 %v1139_v56, %v1114_v22  ;;  %v3449_v26 = vadd.f32 %v1159_v61, %v1115_v24  ;;  %v1440_v61 = vld [vmem:[#allocation16 + $0x3e8] sm:$0xff] }
 0x6b5   :  { %1510 = vmatpush.msra.mxu3 %v1440_v61 }
 0x6b6   :  { %v3452_v27 = vmul.f32 0.70710677, %v3447_v25  ;;  %v3455_v29 = vmul.f32 0.70710677, %v3449_v26 }
 0x6b8   :  { %v1210_v33 = vmul.f32 %v3452_v27, %v3452_v27  ;;  %v1250_v34 = vmul.f32 %v3455_v29, %v3455_v29 }
 0x6ba   :  { %v3461_v37 = vmin.f32 %v1210_v33, 16.0  ;;  %v3463_v39 = vmin.f32 %v1250_v34, 16.0  ;;  %v1179_v40 = vpop.f32.mrf.mxu2  ;;  %v1199_v44 = vpop.f32.mrf.mxu3 }
 0x6bb   :  { %v3465_v41 = vadd.f32 %v1179_v40, %v1116_v8  ;;  %v3467_v42 = vadd.f32 %v1199_v44, %v1117_v30  ;;  %v1388_v8 = vld [vmem:[#allocation16 + $0x248] sm:$0xff]  ;;  %v1423_v44 = vld [vmem:[#allocation16 + $0x360] sm:$0xff] }
 0x6bc   :  { %v1212_v46 = vmul.f32 2.1237322e-06, %v3461_v37  ;;  %v1223_v47 = vmul.f32 3.8918573e-05, %v3461_v37  ;;  %v1252_v1 = vmul.f32 2.1237322e-06, %v3463_v39  ;;  %1454 = vmatpush.msra.mxu0 %v1388_v8  ;;  %1491 = vmatpush.msra.mxu2 %v1423_v44 }
 0x6bd   :  { %v1263_v3 = vmul.f32 3.8918573e-05, %v3463_v39  ;;  %v3474_v48 = vmul.f32 0.70710677, %v3465_v41  ;;  %v3479_v57 = vmul.f32 0.70710677, %v3467_v42 }
 0x6be   :  { %v1213_v49 = vadd.f32 0.00028619796, %v1212_v46  ;;  %v1224_v50 = vadd.f32 0.001143296, %v1223_v47  ;;  %v1253_v51 = vadd.f32 0.00028619796, %v1252_v1 }
 0x6bf   :  { %v1264_v54 = vadd.f32 0.001143296, %v1263_v3  ;;  %v1290_v55 = vmul.f32 %v3474_v48, %v3474_v48  ;;  %v1330_v5 = vmul.f32 %v3479_v57, %v3479_v57  ;;  %v1404_v40 = vld [vmem:[#allocation16 + $0x2c8] sm:$0xff]  ;;  %v1439_v46 = vld [vmem:[#allocation16 + $0x3e0] sm:$0xff]  ;;  %v1382_v44 = vld [vmem:[#allocation16 + $0x218] sm:$0xff] }
 0x6c0   :  { %v1214_v38 = vmul.f32 %v1213_v49, %v3461_v37  ;;  %v1225_v52 = vmul.f32 %v1224_v50, %v3461_v37  ;;  %v1254_v59 = vmul.f32 %v1253_v51, %v3463_v39  ;;  %1474 = vmatpush.msra.mxu1 %v1404_v40  ;;  %v1387_v47 = vld [vmem:[#allocation16 + $0x240] sm:$0xff]  ;;  %1511 = vmatpush.msra.mxu3 %v1439_v46  ;;  %v1398_v46 = vld [vmem:[#allocation16 + $0x298] sm:$0xff] }
 0x6c1   :  { %v1265_v0 = vmul.f32 %v1264_v54, %v3463_v39  ;;  %v3485_v2 = vmin.f32 %v1290_v55, 16.0  ;;  %v3494_v35 = vmin.f32 %v1330_v5, 16.0  ;;  %v1403_v1 = vld [vmem:[#allocation16 + $0x2c0] sm:$0xff]  ;;  %1455 = vmatpush.msra.mxu0 %v1387_v47  ;;  %v1421_v5 = vld [vmem:[#allocation16 + $0x350] sm:$0xff] }
 0x6c2   :  { %v1215_v10 = vadd.f32 0.0036580483, %v1214_v38  ;;  %v1226_v11 = vadd.f32 0.014752088, %v1225_v52  ;;  %v1255_v12 = vadd.f32 0.0036580483, %v1254_v59  ;;  %1475 = vmatpush.msra.mxu1 %v1403_v1 }
 0x6c3   :  { %v1266_v16 = vadd.f32 0.014752088, %v1265_v0  ;;  %v1292_v17 = vmul.f32 2.1237322e-06, %v3485_v2  ;;  %v1303_v14 = vmul.f32 3.8918573e-05, %v3485_v2 }
 0x6c4   :  { %v1216_v15 = vmul.f32 %v1215_v10, %v3461_v37  ;;  %v1227_v18 = vmul.f32 %v1226_v11, %v3461_v37  ;;  %v1256_v53 = vmul.f32 %v1255_v12, %v3463_v39  ;;  %v1332_v36 = vmul.f32 2.1237322e-06, %v3494_v35  ;;  %v1422_v38 = vld [vmem:[#allocation16 + $0x358] sm:$0xff]  ;;  %v1385_v12 = vld [vmem:[#allocation16 + $0x230] sm:$0xff]  ;;  %v1435_v8 = vld [vmem:[#allocation16 + $0x3c0] sm:$0xff] }
 0x6c5   :  { %v1267_v22 = vmul.f32 %v1266_v16, %v3463_v39  ;;  %v1293_v24 = vadd.f32 0.00028619796, %v1292_v17  ;;  %v1304_v56 = vadd.f32 0.001143296, %v1303_v14  ;;  %v1343_v45 = vmul.f32 3.8918573e-05, %v3494_v35  ;;  %1492 = vmatpush.msra.mxu2 %v1422_v38 }
 0x6c6   :  { %v1217_v30 = vadd.f32 0.05243302, %v1216_v15  ;;  %v1228_v31 = vadd.f32 0.112945676, %v1227_v18  ;;  %v1257_v32 = vadd.f32 0.05243302, %v1256_v53 }
 0x6c7   :  { %v1268_v33 = vadd.f32 0.112945676, %v1267_v22  ;;  %v1294_v34 = vmul.f32 %v1293_v24, %v3485_v2  ;;  %v1305_v21 = vmul.f32 %v1304_v56, %v3485_v2  ;;  %v1333_v55 = vadd.f32 0.00028619796, %v1332_v36  ;;  %v1438_v52 = vld [vmem:[#allocation16 + $0x3d8] sm:$0xff]  ;;  %1493 = vmatpush.msra.mxu2 %v1421_v5  ;;  %v1401_v15 = vld [vmem:[#allocation16 + $0x2b0] sm:$0xff] }
 0x6c8   :  { %v1229_v43 = vmul.f32 %v1228_v31, %v3461_v37  ;;  %v1218_v3 = vmul.f32 %v1217_v30, %v3461_v37  ;;  %v1386_v59 = vld [vmem:[#allocation16 + $0x238] sm:$0xff]  ;;  %v1258_v63 = vmul.f32 %v1257_v32, %v3463_v39  ;;  %v1344_v28 = vadd.f32 0.001143296, %v1343_v45  ;;  %1512 = vmatpush.msra.mxu3 %v1438_v52  ;;  %v1420_v18 = vld [vmem:[#allocation16 + $0x348] sm:$0xff]  ;;  %v1419_v56 = vld [vmem:[#allocation16 + $0x340] sm:$0xff] }
 0x6c9   :  { %v1269_v49 = vmul.f32 %v1268_v33, %v3463_v39  ;;  %v1306_v50 = vadd.f32 0.014752088, %v1305_v21  ;;  %v1295_v54 = vadd.f32 0.0036580483, %v1294_v34  ;;  %v1402_v0 = vld [vmem:[#allocation16 + $0x2b8] sm:$0xff]  ;;  %1456 = vmatpush.msra.mxu0 %v1386_v59  ;;  %v1436_v53 = vld [vmem:[#allocation16 + $0x3c8] sm:$0xff]  ;;  %v1334_v20 = vmul.f32 %v1333_v55, %v3494_v35  ;;  %1494 = vmatpush.msra.mxu2 %v1420_v18 }
 0x6ca   :  { %v1230_v51 = vadd.f32 0.4994258, %v1229_v43  ;;  %v1219_v7 = vadd.f32 0.18741608, %v1218_v3  ;;  %1476 = vmatpush.msra.mxu1 %v1402_v0  ;;  %1513 = vmatpush.msra.mxu3 %v1437_v6  ;;  %v1259_v19 = vadd.f32 0.18741608, %v1258_v63  ;;  %v1345_v62 = vmul.f32 %v1344_v28, %v3494_v35 }
 0x6cb   :  { %v1270_v58 = vadd.f32 0.4994258, %v1269_v49  ;;  %v1307_v60 = vmul.f32 %v1306_v50, %v3485_v2  ;;  %v1296_v17 = vmul.f32 %v1295_v54, %v3485_v2  ;;  %1457 = vmatpush.msra.mxu0 %v1385_v12  ;;  %v1384_v22 = vld [vmem:[#allocation16 + $0x228] sm:$0xff]  ;;  %v1383_v30 = vld [vmem:[#allocation16 + $0x220] sm:$0xff]  ;;  %1495 = vmatpush.msra.mxu2 %v1419_v56  ;;  %v1418_v34 = vld [vmem:[#allocation16 + $0x338] sm:$0xff] }
 0x6cc   :  { %v1231_v4 = vmul.f32 %v1230_v51, %v3461_v37  ;;  %1477 = vmatpush.msra.mxu1 %v1401_v15  ;;  %v1400_v24 = vld [vmem:[#allocation16 + $0x2a8] sm:$0xff]  ;;  %v1220_v61 = vmul.f32 %v1219_v7, %v3461_v37  ;;  %1514 = vmatpush.msra.mxu3 %v1436_v53  ;;  %v1399_v31 = vld [vmem:[#allocation16 + $0x2a0] sm:$0xff]  ;;  %v1260_v21 = vmul.f32 %v1259_v19, %v3463_v39  ;;  %v1335_v36 = vadd.f32 0.0036580483, %v1334_v20  ;;  %v1434_v37 = vld [vmem:[#allocation16 + $0x3b8] sm:$0xff] }
 0x6cd   :  { %v1271_v9 = vmul.f32 %v1270_v58, %v3463_v39  ;;  %v1308_v10 = vadd.f32 0.112945676, %v1307_v60  ;;  %1458 = vmatpush.msra.mxu0 %v1384_v22  ;;  %v1297_v32 = vadd.f32 0.05243302, %v1296_v17  ;;  %v1346_v40 = vadd.f32 0.014752088, %v1345_v62  ;;  %1496 = vmatpush.msra.mxu2 %v1418_v34 }
 0x6ce   :  { %v3508_v11 = vadd.f32 1.0, %v1231_v4  ;;  %1478 = vmatpush.msra.mxu1 %v1400_v24  ;;  %1515 = vmatpush.msra.mxu3 %v1435_v8  ;;  %v1221_v43 = vadd.f32 1.1283791, %v1220_v61  ;;  %v1417_v47 = vld [vmem:[#allocation16 + $0x330] sm:$0xff]  ;;  %v1416_v51 = vld [vmem:[#allocation16 + $0x328] sm:$0xff]  ;;  %v1415_v0 = vld [vmem:[#allocation16 + $0x320] sm:$0xff] }
 0x6cf   :  { %v3510_v16 = vadd.f32 1.0, %v1271_v9  ;;  %v1309_v14 = vmul.f32 %v1308_v10, %v3485_v2  ;;  %1459 = vmatpush.msra.mxu0 %v1383_v30  ;;  %v1433_v1 = vld [vmem:[#allocation16 + $0x3b0] sm:$0xff]  ;;  %v1347_v49 = vmul.f32 %v1346_v40, %v3494_v35  ;;  %1497 = vmatpush.msra.mxu2 %v1417_v47  ;;  %v1298_v58 = vmul.f32 %v1297_v32, %v3485_v2  ;;  %v1432_v38 = vld [vmem:[#allocation16 + $0x3a8] sm:$0xff]  ;;  %v1431_v5 = vld [vmem:[#allocation16 + $0x3a0] sm:$0xff] }
 0x6d0   :  { %2655 = vrcp.f32 %v3508_v11  ;;  %1479 = vmatpush.msra.mxu1 %v1399_v31  ;;  %1516 = vmatpush.msra.mxu3 %v1434_v37  ;;  %v1381_v39 = vld [vmem:[#allocation16 + $0x210] sm:$0xff]  ;;  %v1380_v52 = vld [vmem:[#allocation16 + $0x208] sm:$0xff]  ;;  %v1261_v4 = vadd.f32 1.1283791, %v1260_v21  ;;  %v1222_v6 = vmul.f32 %v1221_v43, %v3452_v27  ;;  %v1336_v9 = vmul.f32 %v1335_v36, %v3494_v35  ;;  %v1379_v10 = vld [vmem:[#allocation16 + $0x200] sm:$0xff] }
 0x6d1   :  { %2657 = vrcp.f32 %v3510_v16  ;;  %v1310_v33 = vadd.f32 0.4994258, %v1309_v14  ;;  %1460 = vmatpush.msra.mxu0 %v1382_v44  ;;  %v1397_v50 = vld [vmem:[#allocation16 + $0x290] sm:$0xff]  ;;  %v1396_v59 = vld [vmem:[#allocation16 + $0x288] sm:$0xff]  ;;  %v1348_v28 = vadd.f32 0.112945676, %v1347_v49  ;;  %1498 = vmatpush.msra.mxu2 %v1416_v51  ;;  %vm1238_vm8 = vweird.f32 %v3508_v11 }
 0x6d2   :  { %1480 = vmatpush.msra.mxu1 %v1398_v46  ;;  %1517 = vmatpush.msra.mxu3 %v1433_v1  ;;  %v1395_v12 = vld [vmem:[#allocation16 + $0x280] sm:$0xff]  ;;  %v1242_v17 = vand.u32 2147483647, %v3508_v11  ;;  %v1244_v14 = vand.u32 2147483648, %v3508_v11  ;;  %v1414_v53 = vld [vmem:[#allocation16 + $0x318] sm:$0xff]  ;;  %v1284_v20 = vand.u32 2147483648, %v3510_v16  ;;  %v1262_v31 = vmul.f32 %v1261_v4, %v3455_v29 }
 0x6d3   :  { %v1311_v45 = vmul.f32 %v1310_v33, %v3485_v2  ;;  %1461 = vmatpush.msra.mxu0 %v1381_v39  ;;  %v1349_v18 = vmul.f32 %v1348_v28, %v3494_v35  ;;  %1499 = vmatpush.msra.mxu2 %v1415_v0  ;;  %v1430_v27 = vld [vmem:[#allocation16 + $0x398] sm:$0xff]  ;;  %v1299_v62 = vadd.f32 0.18741608, %v1298_v58  ;;  %v1413_v22 = vld [vmem:[#allocation16 + $0x310] sm:$0xff]  ;;  %v1282_v56 = vand.u32 2147483647, %v3510_v16 }
 0x6d4   :  { %1481 = vmatpush.msra.mxu1 %v1397_v50  ;;  %1518 = vmatpush.msra.mxu3 %v1432_v38  ;;  %v1429_v8 = vld [vmem:[#allocation16 + $0x390] sm:$0xff]  ;;  %v1337_v32 = vadd.f32 0.05243302, %v1336_v9  ;;  %v1412_v33 = vld [vmem:[#allocation16 + $0x308] sm:$0xff]  ;;  %v1245_v21 = vor.u32 1.1754944e-38, %v1244_v14  ;;  %vm1278_vm10 = vweird.f32 %v3510_v16  ;;  %vm1243_vm11 = vcmp.eq.f32.partialorder %v1242_v17, 8.507059e+37 }
 0x6d5   :  { %v3529_v60 = vadd.f32 1.0, %v1311_v45  ;;  %1462 = vmatpush.msra.mxu0 %v1380_v52  ;;  %v1350_v61 = vadd.f32 0.4994258, %v1349_v18  ;;  %1500 = vmatpush.msra.mxu2 %v1414_v53  ;;  %v1285_v44 = vor.u32 1.1754944e-38, %v1284_v20  ;;  %v1300_v43 = vmul.f32 %v1299_v62, %v3485_v2  ;;  %v1411_v45 = vld [vmem:[#allocation16 + $0x300] sm:$0xff] }
 0x6d6   :  { %v3521_v3 = vpop.eup %2655  ;;  %1482 = vmatpush.msra.mxu1 %v1396_v59  ;;  %1519 = vmatpush.msra.mxu3 %v1431_v5  ;;  %vm1283_vm13 = vcmp.eq.f32.partialorder %v1282_v56, 8.507059e+37  ;;  %v1427_v1 = vld [vmem:[#allocation16 + $0x380] sm:$0xff]  ;;  %v1202_v4 = vmul.f32 0.5, %v3447_v25  ;;  %v1203_v0 = vmul.f32 0.5, %v3449_v26 }
 0x6d7   :  { %v3524_v54 = vpop.eup %2657  ;;  %v1234_v55 = vmul.f32 %v3521_v3, %v3508_v11  ;;  %2659 = vrcp.f32 %v3529_v60  ;;  %vm1239_vm5 = vweird.f32 %v3521_v3  ;;  %1463 = vmatpush.msra.mxu0 %v1379_v10  ;;  %v1351_v40 = vmul.f32 %v1350_v61, %v3494_v35  ;;  %1501 = vmatpush.msra.mxu2 %v1413_v22  ;;  %v1428_v11 = vld [vmem:[#allocation16 + $0x388] sm:$0xff] }
 0x6d8   :  { %v1274_v63 = vmul.f32 %v3524_v54, %v3510_v16  ;;  %vm1279_vm7 = vweird.f32 %v3524_v54  ;;  %1483 = vmatpush.msra.mxu1 %v1395_v12  ;;  %1520 = vmatpush.msra.mxu3 %v1430_v27  ;;  %vm3550_vm9 = vmor %vm1238_vm8, %vm1239_vm5  ;;  %v1301_v58 = vadd.f32 1.1283791, %v1300_v43  ;;  %v1324_v38 = vand.u32 2147483648, %v3529_v60 }
 0x6d9   :  { %v1235_v7 = vsub.f32 1.0, %v1234_v55  ;;  %vm1280_vm12 = vmor %vm1278_vm10, %vm1279_vm7  ;;  %1502 = vmatpush.msra.mxu2 %v1412_v33  ;;  %v1352_v50 = vadd.f32 1.0, %v1351_v40  ;;  %v1322_v59 = vand.u32 2147483647, %v3529_v60  ;;  %vm1318_vm15 = vweird.f32 %v3529_v60 }
 0x6da   :  { %v1275_v15 = vsub.f32 1.0, %v1274_v63  ;;  %1521 = vmatpush.msra.mxu3 %v1429_v8  ;;  %v1325_v9 = vor.u32 1.1754944e-38, %v1324_v38  ;;  %v1302_v12 = vmul.f32 %v1301_v58, %v3474_v48  ;;  %v2569_v58 = vld [vmem:[%s4129_s7 + $0x118] sm:$0xff]  ;;  %v2568_v38 = vld [vmem:[%s4129_s7 + $0x110] sm:$0xff] }
 0x6db   :  { %v1236_v19 = vmul.f32 %v3521_v3, %v1235_v7  ;;  %1503 = vmatpush.msra.mxu2 %v1411_v45  ;;  %2661 = vrcp.f32 %v1352_v50  ;;  %vm1323_vm1 = vcmp.eq.f32.partialorder %v1322_v59, 8.507059e+37  ;;  %v1364_v20 = vand.u32 2147483648, %v1352_v50  ;;  %v2566_v59 = vld [vmem:[%s4129_s7 + $0x100] sm:$0xff] }
 0x6dc   :  { %v1276_v24 = vmul.f32 %v3524_v54, %v1275_v15  ;;  %1522 = vmatpush.msra.mxu3 %v1428_v11  ;;  %v1362_v48 = vand.u32 2147483647, %v1352_v50  ;;  %vm1358_vm3 = vweird.f32 %v1352_v50 }
 0x6dd   :  { %v1237_v30 = vadd.f32 %v3521_v3, %v1236_v19  ;;  %v2660_v37 = vpop.eup %2659  ;;  %v1365_v61 = vor.u32 1.1754944e-38, %v1364_v20 }
 0x6de   :  { %v1277_v36 = vadd.f32 %v3524_v54, %v1276_v24  ;;  %v1314_v47 = vmul.f32 %v2660_v37, %v3529_v60  ;;  %1523 = vmatpush.msra.mxu3 %v1427_v1  ;;  %vm1319_vm14 = vweird.f32 %v2660_v37  ;;  %v1204_v60 = vmul.f32 0.5, %v3465_v41  ;;  %v2577_v1 = vld [vmem:[%s4129_s7 + $0x158] sm:$0xff] }
 0x6df   :  { %v1241_v29 = vsel %vm3550_vm9, %v3521_v3, %v1237_v30  ;;  %v1338_v3 = vmul.f32 %v1337_v32, %v3494_v35  ;;  %vm1320_vm0 = vmor %vm1318_vm15, %vm1319_vm14  ;;  %vm1363_vm5 = vcmp.eq.f32.partialorder %v1362_v48, 8.507059e+37  ;;  %v1205_v41 = vmul.f32 0.5, %v3467_v42  ;;  %v2581_v42 = vld [vmem:[%s4129_s7 + $0x178] sm:$0xff] }
 0x6e0   :  { %v1246_v46 = vsel %vm1243_vm11, %v1245_v21, %v1241_v29  ;;  %v1281_v16 = vsel %vm1280_vm12, %v3524_v54, %v1277_v36  ;;  %v1315_v55 = vsub.f32 1.0, %v1314_v47  ;;  %v2625_v21 = vld [vmem:[#allocation17 + $0x1] ss:$0 sm:$0xff]  ;;  %1585 = vmatpush.msrb.mxu0 %v2581_v42  ;;  %v2579_v47 = vld [vmem:[%s4129_s7 + $0x168] sm:$0xff]  ;;  %v1683_v42 = vld [vmem:[#allocation14 + $0x550] sm:$0xff] }
 0x6e1   :  { %v1247_v49 = vmul.f32 %v1246_v46, %v1222_v6  ;;  %v1286_v39 = vsel %vm1283_vm13, %v1285_v44, %v1281_v16  ;;  %v1339_v28 = vadd.f32 0.18741608, %v1338_v3  ;;  %v2662_v14 = vpop.eup %2661  ;;  %v2580_v16 = vld [vmem:[%s4129_s7 + $0x170] sm:$0xff]  ;;  %v2574_v3 = vld [vmem:[%s4129_s7 + $0x140] sm:$0xff] }
 0x6e2   :  { %v1287_v51 = vmul.f32 %v1286_v39, %v1262_v31  ;;  %v1316_v52 = vmul.f32 %v2660_v37, %v1315_v55  ;;  %v1354_v53 = vmul.f32 %v2662_v14, %v1352_v50  ;;  %vm1359_vm2 = vweird.f32 %v2662_v14  ;;  %1586 = vmatpush.msrb.mxu0 %v2580_v16  ;;  %v2575_v39 = vld [vmem:[%s4129_s7 + $0x148] sm:$0xff]  ;;  %v2573_v50 = vld [vmem:[%s4129_s7 + $0x138] sm:$0xff] }
 0x6e3   :  { %v2561_v2 = vclamps-f32 %v1247_v49, 1.0  ;;  %v1340_v25 = vmul.f32 %v1339_v28, %v3494_v35  ;;  %vm1360_vm4 = vmor %vm1358_vm3, %vm1359_vm2  ;;  %v2576_v49 = vld [vmem:[%s4129_s7 + $0x150] sm:$0xff]  ;;  %v2571_v55 = vld [vmem:[%s4129_s7 + $0x128] sm:$0xff] }
 0x6e4   :  { %v2562_v54 = vclamps-f32 %v1287_v51, 1.0  ;;  %v1317_v6 = vadd.f32 %v2660_v37, %v1316_v52  ;;  %v1355_v27 = vsub.f32 1.0, %v1354_v53  ;;  %1587 = vmatpush.msrb.mxu0 %v2579_v47  ;;  %v2572_v51 = vld [vmem:[%s4129_s7 + $0x130] sm:$0xff]  ;;  %v1684_v16 = vld [vmem:[#allocation14 + $0x558] sm:$0xff] }
 0x6e5   :  { %v1370_v63 = vadd.f32 1.0, %v2561_v2  ;;  %v1341_v19 = vadd.f32 1.1283791, %v1340_v25  ;;  %v2570_v2 = vld [vmem:[%s4129_s7 + $0x120] sm:$0xff]  ;;  %v2626_v25 = vld [vmem:[#allocation19 + $0x1] ss:$0 sm:$0xff] }
 0x6e6   :  { %v1371_v5 = vadd.f32 1.0, %v2562_v54  ;;  %v1321_v17 = vsel %vm1320_vm0, %v2660_v37, %v1317_v6  ;;  %v1356_v22 = vmul.f32 %v2662_v14, %v1355_v27  ;;  %v2567_v54 = vld [vmem:[%s4129_s7 + $0x108] sm:$0xff]  ;;  %v1677_v47 = vld [vmem:[#allocation14 + $0x520] sm:$0xff] }
 0x6e7   :  { %v1374_v7 = vmul.f32 %v1370_v63, %v1202_v4  ;;  %v1326_v15 = vsel %vm1323_vm1, %v1325_v9, %v1321_v17  ;;  %v1342_v35 = vmul.f32 %v1341_v19, %v3479_v57  ;;  %v2628_v19 = vld [vmem:[%s4130_s8 + $0x2] ss:$0 sm:$0xff] }
 0x6e8   :  { %v1375_v10 = vmul.f32 %v1371_v5, %v1203_v0  ;;  %v1327_v18 = vmul.f32 %v1326_v15, %v1302_v12  ;;  %v1357_v56 = vadd.f32 %v2662_v14, %v1356_v22 }
 0x6e9   :  { %1464 = vmatmul.f32.vlgmr.msra.gmra.mxu0 %v1374_v7 }
 0x6ea   :  { %1484 = vmatmul.f32.vlgmr.msra.gmra.mxu1 %v1375_v10  ;;  %v2563_v26 = vclamps-f32 %v1327_v18, 1.0  ;;  %v1361_v8 = vsel %vm1360_vm4, %v2662_v14, %v1357_v56  ;;  %v1702_v56 = vld [vmem:[#allocation14 + $0x5e8] sm:$0xff] }
 0x6eb   :  { %v1366_v30 = vsel %vm1363_vm5, %v1365_v61, %v1361_v8  ;;  %v1703_v61 = vld [vmem:[#allocation14 + $0x5f0] sm:$0xff]  ;;  %1736 = vmatpush.msrb.mxu2 %v1702_v56  ;;  %v1697_v8 = vld [vmem:[#allocation14 + $0x5c0] sm:$0xff] }
 0x6ec   :  { %v1372_v62 = vadd.f32 1.0, %v2563_v26  ;;  %v1367_v31 = vmul.f32 %v1366_v30, %v1342_v35  ;;  %v2627_v26 = vld [vmem:[%s4138_s16 + $0x1] ss:$0 sm:$0xff]  ;;  %v1704_v35 = vld [vmem:[#allocation14 + $0x5f8] sm:$0xff]  ;;  %1756 = vmatpush.msrb.mxu3 %v1703_v61  ;;  %v1698_v30 = vld [vmem:[#allocation14 + $0x5c8] sm:$0xff] }
 0x6ed   :  { %1737 = vmatpush.msrb.mxu2 %v1698_v30  ;;  %v1643_v61 = vld [vmem:[#allocation14 + $0x410] sm:$0xff] }
 0x6ee   :  { %v1376_v24 = vmul.f32 %v1372_v62, %v1204_v60  ;;  %v2564_v32 = vclamps-f32 %v1367_v31, 1.0  ;;  %v1699_v31 = vld [vmem:[#allocation14 + $0x5d0] sm:$0xff] }
 0x6ef   :  { %1757 = vmatpush.msrb.mxu3 %v1699_v31 }
 0x6f0   :  { %1504 = vmatmul.f32.vlgmr.msra.gmra.mxu2 %v1376_v24  ;;  %v1373_v33 = vadd.f32 1.0, %v2564_v32  ;;  %v1701_v24 = vld [vmem:[#allocation14 + $0x5e0] sm:$0xff]  ;;  %v1700_v32 = vld [vmem:[#allocation14 + $0x5d8] sm:$0xff] }
 0x6f1   :  { %1716 = vmatpush.msrb.mxu1 %v1701_v24  ;;  %v1642_v24 = vld [vmem:[#allocation14 + $0x408] sm:$0xff] }
 0x6f2   :  { %v1377_v34 = vmul.f32 %v1373_v33, %v1205_v41  ;;  %v1693_v41 = vld [vmem:[#allocation14 + $0x5a0] sm:$0xff]  ;;  %v1694_v33 = vld [vmem:[#allocation14 + $0x5a8] sm:$0xff] }
 0x6f3   :  { %1717 = vmatpush.msrb.mxu1 %v1697_v8  ;;  %1738 = vmatpush.msrb.mxu2 %v1694_v33 }
 0x6f4   :  { %1524 = vmatmul.f32.vlgmr.msra.gmra.mxu3 %v1377_v34  ;;  %v1695_v34 = vld [vmem:[#allocation14 + $0x5b0] sm:$0xff] }
 0x6f5   :  { %1718 = vmatpush.msrb.mxu1 %v1693_v41  ;;  %1758 = vmatpush.msrb.mxu3 %v1695_v34 }
 0x766   :  { %v1465_v36 = vpop.f32.mrf.mxu0 }
 0x767   :  { %v1466_v40 = vadd.f32 %v2625_v21, %v1465_v36  ;;  %v1485_v11 = vpop.f32.mrf.mxu1  ;;  %v1696_v21 = vld [vmem:[#allocation14 + $0x5b8] sm:$0xff]  ;;  %v1689_v36 = vld [vmem:[#allocation14 + $0x580] sm:$0xff] }
 0x768   :  { %1719 = vmatpush.msrb.mxu1 %v1689_v36 }
 0x769   :  { %v1486_v29 = vadd.f32 %v1485_v11, %v1466_v40  ;;  %v1690_v40 = vld [vmem:[#allocation14 + $0x588] sm:$0xff]  ;;  %v1691_v11 = vld [vmem:[#allocation14 + $0x590] sm:$0xff] }
 0x76a   :  { %1739 = vmatpush.msrb.mxu2 %v1690_v40  ;;  %1759 = vmatpush.msrb.mxu3 %v1691_v11 }
 0x773   :  { %v1505_v37 = vpop.f32.mrf.mxu2 }
 0x774   :  { %v1506_v44 = vadd.f32 %v1505_v37, %v1486_v29  ;;  %v1692_v37 = vld [vmem:[#allocation14 + $0x598] sm:$0xff]  ;;  %v1685_v29 = vld [vmem:[#allocation14 + $0x560] sm:$0xff] }
 0x775   :  { %1720 = vmatpush.msrb.mxu1 %v1685_v29  ;;  %v2629_v29 = vld [vmem:[#allocation11 + $0x2] ss:$0 sm:$0xff] }
 0x777   :  { %v1525_v43 = vpop.f32.mrf.mxu3 }
 0x778   :  { %v1526_v57 = vadd.f32 %v1525_v43, %v1506_v44  ;;  %v1686_v44 = vld [vmem:[#allocation14 + $0x568] sm:$0xff]  ;;  %v1687_v43 = vld [vmem:[#allocation14 + $0x570] sm:$0xff] }
 0x779   :  { %1740 = vmatpush.msrb.mxu2 %v1686_v44  ;;  %1760 = vmatpush.msrb.mxu3 %v1687_v43 }
 0x77a   :  { %v1528_v45 = vadd.f32 %v1526_v57, %v3438_v23  ;;  %v2578_v23 = vld [vmem:[%s4129_s7 + $0x160] sm:$0xff]  ;;  %v1688_v57 = vld [vmem:[#allocation14 + $0x578] sm:$0xff] }
 0x77b   :  { %1588 = vmatpush.msrb.mxu0 %v2578_v23  ;;  %1761 = vmatpush.msrb.mxu3 %v1683_v42  ;;  %v1678_v23 = vld [vmem:[#allocation14 + $0x528] sm:$0xff] }
 0x77c   :  { %1533 = vadd.xlane.f32.xlu2 %v1528_v45  ;;  %v1536_v46 = vmul.f32 %v1528_v45, %v1528_v45 }
 0x77d   :  { %1589 = vmatpush.msrb.mxu0 %v2577_v1  ;;  %v1679_v1 = vld [vmem:[#allocation14 + $0x530] sm:$0xff] }
 0x77e   :  { %1537 = vadd.xlane.f32.xlu0 %v1536_v46  ;;  %v1682_v46 = vld [vmem:[#allocation14 + $0x548] sm:$0xff]  ;;  %1762 = vmatpush.msrb.mxu3 %v1679_v1 }
 0x77f   :  { %1590 = vmatpush.msrb.mxu0 %v2576_v49  ;;  %1741 = vmatpush.msrb.mxu2 %v1682_v46  ;;  %v1680_v49 = vld [vmem:[#allocation14 + $0x538] sm:$0xff] }
 0x781   :  { %1591 = vmatpush.msrb.mxu0 %v2575_v39  ;;  %1742 = vmatpush.msrb.mxu2 %v1678_v23  ;;  %v1673_v39 = vld [vmem:[#allocation14 + $0x500] sm:$0xff] }
 0x783   :  { %1592 = vmatpush.msrb.mxu0 %v2574_v3  ;;  %v1674_v3 = vld [vmem:[#allocation14 + $0x508] sm:$0xff] }
 0x784   :  { %1743 = vmatpush.msrb.mxu2 %v1674_v3 }
 0x785   :  { %1593 = vmatpush.msrb.mxu0 %v2573_v50  ;;  %v1675_v50 = vld [vmem:[#allocation14 + $0x510] sm:$0xff] }
 0x786   :  { %1763 = vmatpush.msrb.mxu3 %v1675_v50  ;;  %v1988_v50 = vld [vmem:[#allocation16 + $0x478] sm:$0xff] }
 0x787   :  { %1594 = vmatpush.msrb.mxu0 %v2572_v51  ;;  %v1676_v51 = vld [vmem:[#allocation14 + $0x518] sm:$0xff] }
 0x789   :  { %1595 = vmatpush.msrb.mxu0 %v2571_v55  ;;  %v1669_v55 = vld [vmem:[#allocation14 + $0x4e0] sm:$0xff] }
 0x78b   :  { %1596 = vmatpush.msrb.mxu0 %v2570_v2  ;;  %v1670_v2 = vld [vmem:[#allocation14 + $0x4e8] sm:$0xff] }
 0x78c   :  { %1744 = vmatpush.msrb.mxu2 %v1670_v2 }
 0x78d   :  { %1597 = vmatpush.msrb.mxu0 %v2569_v58  ;;  %v1671_v58 = vld [vmem:[#allocation14 + $0x4f0] sm:$0xff] }
 0x78e   :  { %1764 = vmatpush.msrb.mxu3 %v1671_v58 }
 0x78f   :  { %1598 = vmatpush.msrb.mxu0 %v2568_v38  ;;  %v1672_v38 = vld [vmem:[#allocation14 + $0x4f8] sm:$0xff] }
 0x791   :  { %1599 = vmatpush.msrb.mxu0 %v2567_v54  ;;  %v1665_v54 = vld [vmem:[#allocation14 + $0x4c0] sm:$0xff] }
 0x793   :  { %1600 = vmatpush.msrb.mxu0 %v2566_v59  ;;  %v1667_v59 = vld [vmem:[#allocation14 + $0x4d0] sm:$0xff] }
 0x794   :  { %1765 = vmatpush.msrb.mxu3 %v1667_v59 }
 0x795   :  { %1776 = vmatpush.msra.mxu0 %v1704_v35  ;;  %v1644_v35 = vld [vmem:[#allocation14 + $0x418] sm:$0xff] }
 0x797   :  { %1777 = vmatpush.msra.mxu0 %v1700_v32 }
 0x799   :  { %1778 = vmatpush.msra.mxu0 %v1696_v21 }
 0x79b   :  { %1779 = vmatpush.msra.mxu0 %v1692_v37 }
 0x79d   :  { %1780 = vmatpush.msra.mxu0 %v1688_v57  ;;  %v2630_v57 = vld [vmem:[#allocation13 + $0x2] ss:$0 sm:$0xff] }
 0x79f   :  { %1781 = vmatpush.msra.mxu0 %v1684_v16 }
 0x7a1   :  { %1782 = vmatpush.msra.mxu0 %v1680_v49 }
 0x7a3   :  { %1783 = vmatpush.msra.mxu0 %v1676_v51  ;;  %v2036_v51 = vld [vmem:[#allocation16 + $0x5f8] sm:$0xff] }
 0x7a5   :  { %1784 = vmatpush.msra.mxu0 %v1672_v38  ;;  %v1987_v38 = vld [vmem:[#allocation16 + $0x470] sm:$0xff] }
 0x7ef   :  { %v1534_v52 = vpop.xlane.xlu2 %1533 }
 0x7f0   :  { %v1535_v4 = vmul.f32 %v1534_v52, %v3219_v13  ;;  %v1666_v52 = vld [vmem:[#allocation14 + $0x4c8] sm:$0xff] }
 0x7f1   :  { %v1538_v63 = vpop.xlane.xlu0 %1537  ;;  %1745 = vmatpush.msrb.mxu2 %v1666_v52 }
 0x7f2   :  { %v1540_v28 = vmul.f32 %v1535_v4, %v1535_v4  ;;  %v1539_v0 = vmul.f32 %v1538_v63, %v3219_v13  ;;  %v1542_v15 = vsub.f32 %v1528_v45, %v1535_v4  ;;  %v1681_v45 = vld [vmem:[#allocation14 + $0x540] sm:$0xff]  ;;  %v1668_v4 = vld [vmem:[#allocation14 + $0x4d8] sm:$0xff] }
 0x7f3   :  { %1721 = vmatpush.msrb.mxu1 %v1681_v45  ;;  %1785 = vmatpush.msra.mxu0 %v1668_v4  ;;  %v1661_v63 = vld [vmem:[#allocation14 + $0x4a0] sm:$0xff] }
 0x7f4   :  { %v1541_v5 = vsub.f32 %v1539_v0, %v1540_v28  ;;  %v1662_v28 = vld [vmem:[#allocation14 + $0x4a8] sm:$0xff]  ;;  %v1663_v0 = vld [vmem:[#allocation14 + $0x4b0] sm:$0xff] }
 0x7f5   :  { %1722 = vmatpush.msrb.mxu1 %v1677_v47  ;;  %1746 = vmatpush.msrb.mxu2 %v1662_v28 }
 0x7f6   :  { %v1543_v6 = vadd.f32 1e-05, %v1541_v5  ;;  %v1664_v5 = vld [vmem:[#allocation14 + $0x4b8] sm:$0xff]  ;;  %1766 = vmatpush.msrb.mxu3 %v1663_v0  ;;  %v1986_v0 = vld [vmem:[#allocation16 + $0x468] sm:$0xff] }
 0x7f7   :  { %1723 = vmatpush.msrb.mxu1 %v1673_v39  ;;  %1786 = vmatpush.msra.mxu0 %v1664_v5  ;;  %v2034_v5 = vld [vmem:[#allocation16 + $0x5e8] sm:$0xff] }
 0x7f8   :  { %2663 = vrsqrt.f32 %v1543_v6  ;;  %vm1550_vm8 = vweird.f32 %v1543_v6 }
 0x7f9   :  { %1724 = vmatpush.msrb.mxu1 %v1669_v55 }
 0x7fb   :  { %1725 = vmatpush.msrb.mxu1 %v1665_v54  ;;  %v2035_v54 = vld [vmem:[#allocation16 + $0x5f0] sm:$0xff] }
 0x7fd   :  { %1726 = vmatpush.msrb.mxu1 %v1661_v63 }
 0x7fe   :  { %v2664_v7 = vpop.eup %2663 }
 0x7ff   :  { %v1545_v9 = vmul.f32 %v2664_v7, %v1543_v6  ;;  %vm1551_vm7 = vweird.f32 %v2664_v7  ;;  %v1657_v6 = vld [vmem:[#allocation14 + $0x480] sm:$0xff] }
 0x800   :  { %vm1552_vm9 = vmor %vm1550_vm8, %vm1551_vm7  ;;  %1727 = vmatpush.msrb.mxu1 %v1657_v6 }
 0x801   :  { %v1546_v10 = vmul.f32 %v2664_v7, %v1545_v9  ;;  %v1659_v9 = vld [vmem:[#allocation14 + $0x490] sm:$0xff] }
 0x802   :  { %1767 = vmatpush.msrb.mxu3 %v1659_v9 }
 0x803   :  { %v1547_v12 = vmul.f32 0.5, %v1546_v10  ;;  %v1660_v10 = vld [vmem:[#allocation14 + $0x498] sm:$0xff] }
 0x804   :  { %1787 = vmatpush.msra.mxu0 %v1660_v10 }
 0x805   :  { %v1548_v17 = vsub.f32 1.5, %v1547_v12  ;;  %v1653_v12 = vld [vmem:[#allocation14 + $0x460] sm:$0xff] }
 0x806   :  { %1728 = vmatpush.msrb.mxu1 %v1653_v12  ;;  %v1985_v12 = vld [vmem:[#allocation16 + $0x460] sm:$0xff] }
 0x807   :  { %v1549_v14 = vmul.f32 %v2664_v7, %v1548_v17  ;;  %v1654_v17 = vld [vmem:[#allocation14 + $0x468] sm:$0xff] }
 0x809   :  { %v1553_v18 = vsel %vm1552_vm9, %v2664_v7, %v1549_v14  ;;  %v1658_v7 = vld [vmem:[#allocation14 + $0x488] sm:$0xff]  ;;  %v1655_v14 = vld [vmem:[#allocation14 + $0x470] sm:$0xff] }
 0x80a   :  { %v1554_v53 = vmul.f32 %v1553_v18, %v1542_v15  ;;  %1747 = vmatpush.msrb.mxu2 %v1658_v7  ;;  %v1656_v15 = vld [vmem:[#allocation14 + $0x478] sm:$0xff]  ;;  %v1650_v18 = vld [vmem:[#allocation14 + $0x448] sm:$0xff]  ;;  %1768 = vmatpush.msrb.mxu3 %v1655_v14 }
 0x80b   :  { %1788 = vmatpush.msra.mxu0 %v1656_v15 }
 0x80c   :  { %v1558_v27 = vmul.f32 %v2626_v25, %v1554_v53  ;;  %1748 = vmatpush.msrb.mxu2 %v1654_v17  ;;  %v1649_v25 = vld [vmem:[#allocation14 + $0x440] sm:$0xff]  ;;  %v1651_v53 = vld [vmem:[#allocation14 + $0x450] sm:$0xff] }
 0x80d   :  { %1729 = vmatpush.msrb.mxu1 %v1649_v25  ;;  %1769 = vmatpush.msrb.mxu3 %v1651_v53  ;;  %v2004_v53 = vld [vmem:[#allocation16 + $0x4f8] sm:$0xff] }
 0x80e   :  { %v1562_v60 = vadd.f32 %v2627_v26, %v1558_v27  ;;  %v1652_v26 = vld [vmem:[#allocation14 + $0x458] sm:$0xff]  ;;  %v1645_v27 = vld [vmem:[#allocation14 + $0x420] sm:$0xff]  ;;  %1749 = vmatpush.msrb.mxu2 %v1650_v18 }
 0x80f   :  { %1789 = vmatpush.msra.mxu0 %v1652_v26  ;;  %1730 = vmatpush.msrb.mxu1 %v1645_v27 }
 0x810   :  { %1601 = vmatmul.f32.vlgmr.msrb.gmra.mxu0 %v1562_v60 }
 0x88d   :  { %v1602_v20 = vpop.f32.mrf.mxu0 }
 0x88e   :  { %v1603_v62 = vadd.f32 %v2628_v19, %v1602_v20  ;;  %v1647_v19 = vld [vmem:[#allocation14 + $0x430] sm:$0xff]  ;;  %v1648_v20 = vld [vmem:[#allocation14 + $0x438] sm:$0xff] }
 0x88f   :  { %1770 = vmatpush.msrb.mxu3 %v1647_v19  ;;  %1790 = vmatpush.msra.mxu0 %v1648_v20 }
 0x890   :  { %v3633_v22 = vadd.f32 %v1603_v62, %v1562_v60  ;;  %v1646_v60 = vld [vmem:[#allocation14 + $0x428] sm:$0xff] }
 0x891   :  { %1750 = vmatpush.msrb.mxu2 %v1646_v60  ;;  %1771 = vmatpush.msrb.mxu3 %v1643_v61 }
 0x892   :  { %1610 = vadd.xlane.f32.xlu1 %v3633_v22  ;;  %v1613_v48 = vmul.f32 %v3633_v22, %v3633_v22  ;;  %1791 = vmatpush.msra.mxu0 %v1644_v35 }
 0x893   :  { %1751 = vmatpush.msrb.mxu2 %v1642_v24  ;;  %v2033_v24 = vld [vmem:[#allocation16 + $0x5e0] sm:$0xff] }
 0x894   :  { %1614 = vadd.xlane.f32.xlu2 %v1613_v48  ;;  %v1641_v48 = vld [vmem:[#allocation14 + $0x400] sm:$0xff]  ;;  %2102 = vmatpush.msrb.mxu0 %v2036_v51  ;;  %v2030_v51 = vld [vmem:[#allocation16 + $0x5c8] sm:$0xff] }
 0x895   :  { %1731 = vmatpush.msrb.mxu1 %v1641_v48  ;;  %2062 = vmatpush.msra.mxu2 %v2004_v53  ;;  %v2020_v48 = vld [vmem:[#allocation16 + $0x578] sm:$0xff]  ;;  %v2029_v53 = vld [vmem:[#allocation16 + $0x5c0] sm:$0xff] }
 0x896   :  { %2103 = vmatpush.msrb.mxu0 %v2035_v54  ;;  %2082 = vmatpush.msra.mxu3 %v2020_v48 }
 0x897   :  { %2042 = vmatpush.msra.mxu1 %v1988_v50  ;;  %v2017_v50 = vld [vmem:[#allocation16 + $0x560] sm:$0xff] }
 0x898   :  { %2104 = vmatpush.msrb.mxu0 %v2034_v5 }
 0x899   :  { %2043 = vmatpush.msra.mxu1 %v1987_v38 }
 0x89a   :  { %2105 = vmatpush.msrb.mxu0 %v2033_v24  ;;  %v1999_v24 = vld [vmem:[#allocation16 + $0x4d0] sm:$0xff] }
 0x89b   :  { %2044 = vmatpush.msra.mxu1 %v1986_v0 }
 0x89d   :  { %2045 = vmatpush.msra.mxu1 %v1985_v12  ;;  %v1981_v12 = vld [vmem:[#allocation16 + $0x440] sm:$0xff] }
 0x905   :  { %v1611_v62 = vpop.xlane.xlu1 %1610 }
 0x906   :  { %v1612_v56 = vmul.f32 %v1611_v62, %v3219_v13 }
 0x907   :  { %v1615_v8 = vpop.xlane.xlu2 %1614 }
 0x908   :  { %v1617_v30 = vmul.f32 %v1612_v56, %v1612_v56  ;;  %v1616_v31 = vmul.f32 %v1615_v8, %v3219_v13  ;;  %v1619_v37 = vsub.f32 %v3633_v22, %v1612_v56  ;;  %v2583_v22 = vld [vmem:[%s4134_s12 + $0x8] sm:$0xf] }
 0x909   :  { %v1708_v42 = vperm.slane %v2583_v22, 0  ;;  %v1711_v16 = vperm.slane %v2583_v22, 3  ;;  %v1709_v3 = vperm.slane %v2583_v22, 1  ;;  %v1710_v2 = vperm.slane %v2583_v22, 2  ;;  %v1984_v56 = vld [vmem:[#allocation16 + $0x458] sm:$0xff]  ;;  %v2031_v22 = vld [vmem:[#allocation16 + $0x5d0] sm:$0xff] }
 0x90a   :  { %v1618_v32 = vsub.f32 %v1616_v31, %v1617_v30  ;;  %v2003_v31 = vld [vmem:[#allocation16 + $0x4f0] sm:$0xff]  ;;  %2046 = vmatpush.msra.mxu1 %v1984_v56 }
 0x90b   :  { %2063 = vmatpush.msra.mxu2 %v2003_v31  ;;  %v2015_v56 = vld [vmem:[#allocation16 + $0x550] sm:$0xff] }
 0x90c   :  { %v1620_v41 = vadd.f32 1e-05, %v1618_v32  ;;  %v2019_v32 = vld [vmem:[#allocation16 + $0x570] sm:$0xff] }
 0x90d   :  { %2083 = vmatpush.msra.mxu3 %v2019_v32  ;;  %v2028_v32 = vld [vmem:[#allocation16 + $0x5b8] sm:$0xff] }
 0x90e   :  { %2665 = vrsqrt.f32 %v1620_v41  ;;  %vm1627_vm11 = vweird.f32 %v1620_v41 }
 0x914   :  { %v2666_v33 = vpop.eup %2665 }
 0x915   :  { %v1622_v34 = vmul.f32 %v2666_v33, %v1620_v41  ;;  %vm1628_vm10 = vweird.f32 %v2666_v33  ;;  %v2032_v41 = vld [vmem:[#allocation16 + $0x5d8] sm:$0xff] }
 0x916   :  { %vm1629_vm12 = vmor %vm1627_vm11, %vm1628_vm10  ;;  %2106 = vmatpush.msrb.mxu0 %v2032_v41  ;;  %v1979_v41 = vld [vmem:[#allocation16 + $0x430] sm:$0xff] }
 0x917   :  { %v1623_v21 = vmul.f32 %v2666_v33, %v1622_v34 }
 0x918   :  { %2107 = vmatpush.msrb.mxu0 %v2031_v22  ;;  %v1997_v22 = vld [vmem:[#allocation16 + $0x4c0] sm:$0xff] }
 0x919   :  { %v1624_v36 = vmul.f32 0.5, %v1623_v21  ;;  %v1983_v21 = vld [vmem:[#allocation16 + $0x450] sm:$0xff] }
 0x91a   :  { %2047 = vmatpush.msra.mxu1 %v1983_v21  ;;  %2108 = vmatpush.msrb.mxu0 %v2030_v51  ;;  %v2014_v21 = vld [vmem:[#allocation16 + $0x548] sm:$0xff]  ;;  %v2012_v51 = vld [vmem:[#allocation16 + $0x538] sm:$0xff] }
 0x91b   :  { %v1625_v40 = vsub.f32 1.5, %v1624_v36  ;;  %v2002_v36 = vld [vmem:[#allocation16 + $0x4e8] sm:$0xff] }
 0x91c   :  { %2064 = vmatpush.msra.mxu2 %v2002_v36  ;;  %2109 = vmatpush.msrb.mxu0 %v2029_v53  ;;  %v2027_v36 = vld [vmem:[#allocation16 + $0x5b0] sm:$0xff]  ;;  %v1974_v53 = vld [vmem:[#allocation16 + $0x408] sm:$0xff] }
 0x91d   :  { %v1626_v11 = vmul.f32 %v2666_v33, %v1625_v40 }
 0x91e   :  { %2110 = vmatpush.msrb.mxu0 %v2028_v32 }
 0x91f   :  { %v1630_v44 = vsel %vm1629_vm12, %v2666_v33, %v1626_v11 }
 0x920   :  { %v1631_v43 = vmul.f32 %v1630_v44, %v1619_v37  ;;  %2111 = vmatpush.msrb.mxu0 %v2027_v36 }
 0x922   :  { %v1635_v45 = vmul.f32 %v2629_v29, %v1631_v43 }
 0x924   :  { %v3641_v46 = vadd.f32 %v2630_v57, %v1635_v45  ;;  %v2018_v45 = vld [vmem:[#allocation16 + $0x568] sm:$0xff] }
 0x925   :  { %2084 = vmatpush.msra.mxu3 %v2018_v45 }
 0x926   :  { %1732 = vmatmul.f32.vlgmr.msrb.gmra.mxu1 %v3641_v46  ;;  %1752 = vmatmul.f32.vlgmr.msrb.gmra.mxu2 %v3641_v46 }
 0x927   :  { %1772 = vmatmul.f32.vlgmr.msrb.gmra.mxu3 %v3641_v46  ;;  %1792 = vmatmul.f32.vlgmr.msra.gmra.mxu0 %v3641_v46 }
 0x928   :  { %2085 = vmatpush.msra.mxu3 %v2017_v50  ;;  %v1996_v50 = vld [vmem:[#allocation16 + $0x4b8] sm:$0xff] }
 0x9a3   :  { %v1733_v47 = vpop.f32.mrf.mxu1 }
 0x9a4   :  { %v3650_v23 = vadd.f32 %v1733_v47, %v1708_v42  ;;  %v1793_v1 = vpop.f32.mrf.mxu0  ;;  %v1982_v42 = vld [vmem:[#allocation16 + $0x448] sm:$0xff] }
 0x9a5   :  { %v3652_v49 = vadd.f32 %v1793_v1, %v1711_v16  ;;  %2048 = vmatpush.msra.mxu1 %v1982_v42  ;;  %v2013_v42 = vld [vmem:[#allocation16 + $0x540] sm:$0xff] }
 0x9a6   :  { %v3655_v39 = vmul.f32 0.70710677, %v3650_v23 }
 0x9a7   :  { %v3658_v55 = vmul.f32 0.70710677, %v3652_v49  ;;  %2049 = vmatpush.msra.mxu1 %v1981_v12  ;;  %v1994_v12 = vld [vmem:[#allocation16 + $0x4a8] sm:$0xff] }
 0x9a8   :  { %v1804_v58 = vmul.f32 %v3655_v39, %v3655_v39 }
 0x9a9   :  { %v1924_v52 = vmul.f32 %v3658_v55, %v3658_v55  ;;  %v1753_v59 = vpop.f32.mrf.mxu2 }
 0x9aa   :  { %v3664_v4 = vmin.f32 %v1804_v58, 16.0  ;;  %v3666_v63 = vadd.f32 %v1753_v59, %v1709_v3  ;;  %v1773_v28 = vpop.f32.mrf.mxu3  ;;  %v2001_v3 = vld [vmem:[#allocation16 + $0x4e0] sm:$0xff] }
 0x9ab   :  { %v3668_v6 = vmin.f32 %v1924_v52, 16.0  ;;  %v3670_v7 = vadd.f32 %v1773_v28, %v1710_v2  ;;  %2065 = vmatpush.msra.mxu2 %v2001_v3  ;;  %v1977_v3 = vld [vmem:[#allocation16 + $0x420] sm:$0xff] }
 0x9ac   :  { %v1806_v9 = vmul.f32 2.1237322e-06, %v3664_v4  ;;  %v1817_v10 = vmul.f32 3.8918573e-05, %v3664_v4  ;;  %v3677_v15 = vmul.f32 0.70710677, %v3666_v63 }
 0x9ad   :  { %v1926_v17 = vmul.f32 2.1237322e-06, %v3668_v6  ;;  %v1937_v14 = vmul.f32 3.8918573e-05, %v3668_v6  ;;  %v3682_v19 = vmul.f32 0.70710677, %v3670_v7 }
 0x9ae   :  { %v1807_v25 = vadd.f32 0.00028619796, %v1806_v9  ;;  %v1818_v18 = vadd.f32 0.001143296, %v1817_v10  ;;  %v1844_v60 = vmul.f32 %v3677_v15, %v3677_v15 }
 0x9af   :  { %v1927_v26 = vadd.f32 0.00028619796, %v1926_v17  ;;  %v1938_v27 = vadd.f32 0.001143296, %v1937_v14  ;;  %v1884_v30 = vmul.f32 %v3682_v19, %v3682_v19  ;;  %v2000_v17 = vld [vmem:[#allocation16 + $0x4d8] sm:$0xff] }
 0x9b0   :  { %v1808_v20 = vmul.f32 %v1807_v25, %v3664_v4  ;;  %v1819_v62 = vmul.f32 %v1818_v18, %v3664_v4  ;;  %v3688_v8 = vmin.f32 %v1844_v60, 16.0  ;;  %v2016_v14 = vld [vmem:[#allocation16 + $0x558] sm:$0xff]  ;;  %2066 = vmatpush.msra.mxu2 %v2000_v17 }
 0x9b1   :  { %v1928_v61 = vmul.f32 %v1927_v26, %v3668_v6  ;;  %v1939_v35 = vmul.f32 %v1938_v27, %v3668_v6  ;;  %v3696_v57 = vmin.f32 %v1884_v30, 16.0  ;;  %v1980_v26 = vld [vmem:[#allocation16 + $0x438] sm:$0xff]  ;;  %2086 = vmatpush.msra.mxu3 %v2016_v14 }
 0x9b2   :  { %v1809_v33 = vadd.f32 0.0036580483, %v1808_v20  ;;  %v1820_v34 = vadd.f32 0.014752088, %v1819_v62  ;;  %v1846_v37 = vmul.f32 2.1237322e-06, %v3688_v8  ;;  %2050 = vmatpush.msra.mxu1 %v1980_v26  ;;  %2067 = vmatpush.msra.mxu2 %v1999_v24 }
 0x9b3   :  { %v1929_v40 = vadd.f32 0.0036580483, %v1928_v61  ;;  %v1940_v11 = vadd.f32 0.014752088, %v1939_v35  ;;  %v1857_v43 = vmul.f32 3.8918573e-05, %v3688_v8  ;;  %2087 = vmatpush.msra.mxu3 %v2015_v56 }
 0x9b4   :  { %v1810_v29 = vmul.f32 %v1809_v33, %v3664_v4  ;;  %v1821_v44 = vmul.f32 %v1820_v34, %v3664_v4  ;;  %v1847_v1 = vadd.f32 0.00028619796, %v1846_v37  ;;  %v1886_v28 = vmul.f32 2.1237322e-06, %v3696_v57  ;;  %v1998_v33 = vld [vmem:[#allocation16 + $0x4c8] sm:$0xff]  ;;  %2051 = vmatpush.msra.mxu1 %v1979_v41  ;;  %v1973_v24 = vld [vmem:[#allocation16 + $0x400] sm:$0xff] }
 0x9b5   :  { %v1930_v16 = vmul.f32 %v1929_v40, %v3668_v6  ;;  %v1941_v47 = vmul.f32 %v1940_v11, %v3668_v6  ;;  %v1858_v38 = vadd.f32 0.001143296, %v1857_v43  ;;  %v1897_v10 = vmul.f32 3.8918573e-05, %v3696_v57  ;;  %2068 = vmatpush.msra.mxu2 %v1998_v33  ;;  %2088 = vmatpush.msra.mxu3 %v2014_v21  ;;  %v1978_v37 = vld [vmem:[#allocation16 + $0x428] sm:$0xff]  ;;  %v1992_v56 = vld [vmem:[#allocation16 + $0x498] sm:$0xff] }
 0x9b6   :  { %v1811_v2 = vadd.f32 0.05243302, %v1810_v29  ;;  %v1822_v58 = vadd.f32 0.112945676, %v1821_v44  ;;  %v1848_v59 = vmul.f32 %v1847_v1, %v3688_v8  ;;  %v1887_v20 = vadd.f32 0.00028619796, %v1886_v28  ;;  %2052 = vmatpush.msra.mxu1 %v1978_v37 }
 0x9b7   :  { %v1931_v54 = vadd.f32 0.05243302, %v1930_v16  ;;  %v1942_v52 = vadd.f32 0.112945676, %v1941_v47  ;;  %v1859_v9 = vmul.f32 %v1858_v38, %v3688_v8  ;;  %v1898_v31 = vadd.f32 0.001143296, %v1897_v10  ;;  %2069 = vmatpush.msra.mxu2 %v1997_v22  ;;  %2089 = vmatpush.msra.mxu3 %v2013_v42 }
 0x9b8   :  { %v1812_v0 = vmul.f32 %v1811_v2, %v3664_v4  ;;  %v1823_v5 = vmul.f32 %v1822_v58, %v3664_v4  ;;  %v1849_v18 = vadd.f32 0.0036580483, %v1848_v59  ;;  %v1888_v43 = vmul.f32 %v1887_v20, %v3696_v57  ;;  %v2026_v16 = vld [vmem:[#allocation16 + $0x5a8] sm:$0xff]  ;;  %2053 = vmatpush.msra.mxu1 %v1977_v3  ;;  %v2025_v2 = vld [vmem:[#allocation16 + $0x5a0] sm:$0xff]  ;;  %v1976_v58 = vld [vmem:[#allocation16 + $0x418] sm:$0xff] }
 0x9b9   :  { %v1943_v25 = vmul.f32 %v1942_v52, %v3668_v6  ;;  %v1860_v60 = vadd.f32 0.014752088, %v1859_v9  ;;  %v1932_v35 = vmul.f32 %v1931_v54, %v3668_v6  ;;  %v1899_v45 = vmul.f32 %v1898_v31, %v3696_v57  ;;  %2112 = vmatpush.msrb.mxu0 %v2026_v16  ;;  %v1995_v38 = vld [vmem:[#allocation16 + $0x4b0] sm:$0xff]  ;;  %2070 = vmatpush.msra.mxu2 %v1996_v50  ;;  %v2024_v9 = vld [vmem:[#allocation16 + $0x598] sm:$0xff]  ;;  %v2021_v41 = vld [vmem:[#allocation16 + $0x580] sm:$0xff] }
 0x9ba   :  { %v1824_v27 = vadd.f32 0.4994258, %v1823_v5  ;;  %v1813_v62 = vadd.f32 0.18741608, %v1812_v0  ;;  %v1850_v11 = vmul.f32 %v1849_v18, %v3688_v8  ;;  %2090 = vmatpush.msra.mxu3 %v2012_v51  ;;  %v1889_v52 = vadd.f32 0.0036580483, %v1888_v43  ;;  %2054 = vmatpush.msra.mxu1 %v1976_v58 }
 0x9bb   :  { %v1944_v48 = vadd.f32 0.4994258, %v1943_v25  ;;  %v1861_v30 = vmul.f32 %v1860_v60, %v3688_v8  ;;  %v1933_v1 = vadd.f32 0.18741608, %v1932_v35  ;;  %v1900_v59 = vadd.f32 0.014752088, %v1899_v45  ;;  %2113 = vmatpush.msrb.mxu0 %v2025_v2  ;;  %2071 = vmatpush.msra.mxu2 %v1995_v38 }
 0x9bc   :  { %v1825_v61 = vmul.f32 %v1824_v27, %v3664_v4  ;;  %v1814_v47 = vmul.f32 %v1813_v62, %v3664_v4  ;;  %v1851_v54 = vadd.f32 0.05243302, %v1850_v11  ;;  %v2011_v28 = vld [vmem:[#allocation16 + $0x530] sm:$0xff]  ;;  %v2010_v25 = vld [vmem:[#allocation16 + $0x528] sm:$0xff]  ;;  %v1993_v27 = vld [vmem:[#allocation16 + $0x4a0] sm:$0xff]  ;;  %v1890_v36 = vmul.f32 %v1889_v52, %v3696_v57 }
 0x9bd   :  { %v1945_v34 = vmul.f32 %v1944_v48, %v3668_v6  ;;  %v1862_v44 = vadd.f32 0.112945676, %v1861_v30  ;;  %v1934_v5 = vmul.f32 %v1933_v1, %v3668_v6  ;;  %2091 = vmatpush.msra.mxu3 %v2011_v28  ;;  %v1975_v10 = vld [vmem:[#allocation16 + $0x410] sm:$0xff]  ;;  %v1901_v14 = vmul.f32 %v1900_v59, %v3696_v57  ;;  %2114 = vmatpush.msrb.mxu0 %v2024_v9  ;;  %v2009_v60 = vld [vmem:[#allocation16 + $0x520] sm:$0xff]  ;;  %v2022_v6 = vld [vmem:[#allocation16 + $0x588] sm:$0xff] }
 0x9be   :  { %v3711_v40 = vadd.f32 1.0, %v1825_v61  ;;  %v1815_v0 = vadd.f32 1.1283791, %v1814_v47  ;;  %2055 = vmatpush.msra.mxu1 %v1975_v10  ;;  %v2023_v18 = vld [vmem:[#allocation16 + $0x590] sm:$0xff]  ;;  %2072 = vmatpush.msra.mxu2 %v1994_v12  ;;  %v2008_v61 = vld [vmem:[#allocation16 + $0x518] sm:$0xff]  ;;  %v1852_v31 = vmul.f32 %v1851_v54, %v3688_v8  ;;  %v1990_v16 = vld [vmem:[#allocation16 + $0x488] sm:$0xff] }
 0x9bf   :  { %v3714_v29 = vadd.f32 1.0, %v1945_v34  ;;  %v1863_v4 = vmul.f32 %v1862_v44, %v3688_v8  ;;  %2092 = vmatpush.msra.mxu3 %v2010_v25  ;;  %2115 = vmatpush.msrb.mxu0 %v2023_v18  ;;  %v1935_v35 = vadd.f32 1.1283791, %v1934_v5  ;;  %v1902_v32 = vadd.f32 0.112945676, %v1901_v14  ;;  %v1991_v11 = vld [vmem:[#allocation16 + $0x490] sm:$0xff] }
 0x9c0   :  { %2667 = vrcp.f32 %v3711_v40  ;;  %2056 = vmatpush.msra.mxu1 %v1974_v53  ;;  %2073 = vmatpush.msra.mxu2 %v1993_v27  ;;  %v1816_v33 = vmul.f32 %v1815_v0, %v3655_v39  ;;  %v2007_v37 = vld [vmem:[#allocation16 + $0x510] sm:$0xff]  ;;  %v1836_v44 = vand.u32 2147483647, %v3711_v40  ;;  %v1838_v43 = vand.u32 2147483648, %v3711_v40  ;;  %v2006_v47 = vld [vmem:[#allocation16 + $0x508] sm:$0xff]  ;;  %v1989_v38 = vld [vmem:[#allocation16 + $0x480] sm:$0xff] }
 0x9c1   :  { %2669 = vrcp.f32 %v3714_v29  ;;  %v1864_v17 = vadd.f32 0.4994258, %v1863_v4  ;;  %2093 = vmatpush.msra.mxu3 %v2009_v60  ;;  %2116 = vmatpush.msrb.mxu0 %v2022_v6  ;;  %v1903_v22 = vmul.f32 %v1902_v32, %v3696_v57  ;;  %v1958_v42 = vand.u32 2147483648, %v3714_v29  ;;  %v2005_v54 = vld [vmem:[#allocation16 + $0x500] sm:$0xff] }
 0x9c2   :  { %2057 = vmatpush.msra.mxu1 %v1973_v24  ;;  %2074 = vmatpush.msra.mxu2 %v1992_v56  ;;  %v1956_v3 = vand.u32 2147483647, %v3714_v29  ;;  %vm1832_vm15 = vweird.f32 %v3711_v40  ;;  %v1853_v2 = vadd.f32 0.18741608, %v1852_v31  ;;  %v1891_v58 = vadd.f32 0.05243302, %v1890_v36 }
 0x9c3   :  { %v1865_v48 = vmul.f32 %v1864_v17, %v3688_v8  ;;  %2094 = vmatpush.msra.mxu3 %v2008_v61  ;;  %2117 = vmatpush.msrb.mxu0 %v2021_v41  ;;  %v1904_v50 = vadd.f32 0.4994258, %v1903_v22  ;;  %v1839_v4 = vor.u32 1.1754944e-38, %v1838_v43  ;;  %vm1952_vm1 = vweird.f32 %v3714_v29 }
 0x9c4   :  { %2075 = vmatpush.msra.mxu2 %v1991_v11  ;;  %vm1837_vm2 = vcmp.eq.f32.partialorder %v1836_v44, 8.507059e+37  ;;  %v1959_v0 = vor.u32 1.1754944e-38, %v1958_v42  ;;  %vm1957_vm4 = vcmp.eq.f32.partialorder %v1956_v3, 8.507059e+37  ;;  %v1854_v14 = vmul.f32 %v1853_v2, %v3688_v8 }
 0x9c5   :  { %v3735_v21 = vadd.f32 1.0, %v1865_v48  ;;  %2095 = vmatpush.msra.mxu3 %v2007_v37  ;;  %v1905_v59 = vmul.f32 %v1904_v50, %v3696_v57  ;;  %v1892_v25 = vmul.f32 %v1891_v58, %v3696_v57  ;;  %v1799_v27 = vmul.f32 0.5, %v3652_v49 }
 0x9c6   :  { %v3724_v26 = vpop.eup %2667  ;;  %2076 = vmatpush.msra.mxu2 %v1990_v16  ;;  %v1798_v2 = vmul.f32 0.5, %v3670_v7 }
 0x9c7   :  { %v3726_v20 = vpop.eup %2669  ;;  %v1828_v62 = vmul.f32 %v3724_v26, %v3711_v40  ;;  %vm1833_vm13 = vweird.f32 %v3724_v26  ;;  %2671 = vrcp.f32 %v3735_v21  ;;  %2096 = vmatpush.msra.mxu3 %v2006_v47  ;;  %v1936_v40 = vmul.f32 %v1935_v35, %v3658_v55 }
 0x9c8   :  { %v1948_v30 = vmul.f32 %v3726_v20, %v3714_v29  ;;  %vm1953_vm14 = vweird.f32 %v3726_v20  ;;  %vm1834_vm0 = vmor %vm1832_vm15, %vm1833_vm13  ;;  %v1906_v10 = vadd.f32 1.0, %v1905_v59  ;;  %2077 = vmatpush.msra.mxu2 %v1989_v38  ;;  %v1878_v48 = vand.u32 2147483648, %v3735_v21 }
 0x9c9   :  { %v1829_v34 = vsub.f32 1.0, %v1828_v62  ;;  %vm1954_vm3 = vmor %vm1952_vm1, %vm1953_vm14  ;;  %2097 = vmatpush.msra.mxu3 %v2005_v54  ;;  %v1855_v62 = vadd.f32 1.1283791, %v1854_v14  ;;  %v1893_v24 = vadd.f32 0.18741608, %v1892_v25  ;;  %vm1872_vm7 = vweird.f32 %v3735_v21  ;;  %v2196_v14 = vld [vmem:[%s4139_s17 + $0x138] sm:$0xff] }
 0x9ca   :  { %v1949_v45 = vsub.f32 1.0, %v1948_v30  ;;  %2673 = vrcp.f32 %v1906_v10  ;;  %v1876_v61 = vand.u32 2147483647, %v3735_v21  ;;  %v1918_v44 = vand.u32 2147483648, %v1906_v10  ;;  %v2631_v54 = vld [vmem:[#allocation17 + $0x2] ss:$0 sm:$0xff] }
 0x9cb   :  { %v1830_v39 = vmul.f32 %v3724_v26, %v1829_v34  ;;  %v1894_v49 = vmul.f32 %v1893_v24, %v3696_v57  ;;  %v1916_v22 = vand.u32 2147483647, %v1906_v10  ;;  %vm1912_vm11 = vweird.f32 %v1906_v10  ;;  %v2197_v25 = vld [vmem:[%s4139_s17 + $0x140] sm:$0xff]  ;;  %v2184_v24 = vld [vmem:[%s4139_s17 + $0xd8] sm:$0xff] }
 0x9cc   :  { %v1950_v1 = vmul.f32 %v3726_v20, %v1949_v45  ;;  %vm1877_vm9 = vcmp.eq.f32.partialorder %v1876_v61, 8.507059e+37  ;;  %v1797_v57 = vmul.f32 0.5, %v3666_v63  ;;  %v1919_v16 = vor.u32 1.1754944e-38, %v1918_v44  ;;  %v2181_v61 = vld [vmem:[%s4139_s17 + $0xc0] sm:$0xff]  ;;  %v2170_v44 = vld [vmem:[%s4139_s17 + $0x68] sm:$0xff] }
 0x9cd   :  { %v1831_v51 = vadd.f32 %v3724_v26, %v1830_v39  ;;  %v2672_v29 = vpop.eup %2671  ;;  %v1895_v43 = vadd.f32 1.1283791, %v1894_v49  ;;  %vm1917_vm13 = vcmp.eq.f32.partialorder %v1916_v22, 8.507059e+37  ;;  %v2175_v49 = vld [vmem:[%s4139_s17 + $0x90] sm:$0xff] }
 0x9ce   :  { %v1951_v52 = vadd.f32 %v3726_v20, %v1950_v1  ;;  %v1868_v55 = vmul.f32 %v2672_v29, %v3735_v21  ;;  %vm1873_vm5 = vweird.f32 %v2672_v29  ;;  %v2167_v22 = vld [vmem:[%s4139_s17 + $0x50] sm:$0xff] }
 0x9cf   :  { %v1835_v28 = vsel %vm1834_vm0, %v3724_v26, %v1831_v51  ;;  %v1796_v26 = vmul.f32 0.5, %v3650_v23  ;;  %vm1874_vm8 = vmor %vm1872_vm7, %vm1873_vm5  ;;  %v1879_v23 = vor.u32 1.1754944e-38, %v1878_v48  ;;  %v2189_v48 = vld [vmem:[%s4139_s17 + $0x100] sm:$0xff] }
 0x9d0   :  { %v1840_v5 = vsel %vm1837_vm2, %v1839_v4, %v1835_v28  ;;  %v1955_v9 = vsel %vm1954_vm3, %v3726_v20, %v1951_v52  ;;  %v1869_v6 = vsub.f32 1.0, %v1868_v55  ;;  %v2674_v30 = vpop.eup %2673  ;;  %v2193_v55 = vld [vmem:[%s4139_s17 + $0x120] sm:$0xff] }
 0x9d1   :  { %v1841_v12 = vmul.f32 %v1840_v5, %v1816_v33  ;;  %v1960_v17 = vsel %vm1957_vm4, %v1959_v0, %v1955_v9  ;;  %v1908_v41 = vmul.f32 %v2674_v30, %v1906_v10  ;;  %v1856_v33 = vmul.f32 %v1855_v62, %v3677_v15  ;;  %v2202_v9 = vld [vmem:[%s4139_s17 + $0x168] sm:$0xff]  ;;  %v2203_v10 = vld [vmem:[%s4139_s17 + $0x170] sm:$0xff]  ;;  %v2188_v62 = vld [vmem:[%s4139_s17 + $0xf8] sm:$0xff] }
 0x9d2   :  { %v1961_v18 = vmul.f32 %v1960_v17, %v1936_v40  ;;  %v1870_v8 = vmul.f32 %v2672_v29, %v1869_v6  ;;  %vm1913_vm10 = vweird.f32 %v2674_v30  ;;  %v1896_v15 = vmul.f32 %v1895_v43, %v3682_v19  ;;  %2213 = vmatpush.msrb.mxu1 %v2202_v9  ;;  %2233 = vmatpush.msrb.mxu2 %v2203_v10  ;;  %v2201_v17 = vld [vmem:[%s4139_s17 + $0x160] sm:$0xff]  ;;  %v2192_v6 = vld [vmem:[%s4139_s17 + $0x118] sm:$0xff]  ;;  %v2171_v43 = vld [vmem:[%s4139_s17 + $0x70] sm:$0xff] }
 0x9d3   :  { %v2584_v53 = vclamps-f32 %v1841_v12, 1.0  ;;  %v1909_v11 = vsub.f32 1.0, %v1908_v41  ;;  %vm1914_vm12 = vmor %vm1912_vm11, %vm1913_vm10  ;;  %v2200_v12 = vld [vmem:[%s4139_s17 + $0x158] sm:$0xff]  ;;  %v2632_v9 = vld [vmem:[#allocation19 + $0x2] ss:$0 sm:$0xff] }
 0x9d4   :  { %v2587_v60 = vclamps-f32 %v1961_v18, 1.0  ;;  %v1871_v32 = vadd.f32 %v2672_v29, %v1870_v8  ;;  %2234 = vmatpush.msrb.mxu2 %v2200_v12  ;;  %v2198_v18 = vld [vmem:[%s4139_s17 + $0x148] sm:$0xff]  ;;  %v2176_v41 = vld [vmem:[%s4139_s17 + $0x98] sm:$0xff] }
 0x9d5   :  { %v1964_v20 = vadd.f32 1.0, %v2584_v53  ;;  %v1910_v45 = vmul.f32 %v2674_v30, %v1909_v11  ;;  %v2194_v53 = vld [vmem:[%s4139_s17 + $0x128] sm:$0xff] }
 0x9d6   :  { %v1967_v56 = vadd.f32 1.0, %v2587_v60  ;;  %v1875_v34 = vsel %vm1874_vm8, %v2672_v29, %v1871_v32  ;;  %v2204_v29 = vld [vmem:[%s4139_s17 + $0x178] sm:$0xff]  ;;  %2235 = vmatpush.msrb.mxu2 %v2197_v25  ;;  %v2191_v60 = vld [vmem:[%s4139_s17 + $0x110] sm:$0xff]  ;;  %v2186_v8 = vld [vmem:[%s4139_s17 + $0xe8] sm:$0xff] }
 0x9d7   :  { %v1968_v35 = vmul.f32 %v1964_v20, %v1796_v26  ;;  %v1880_v36 = vsel %vm1877_vm9, %v1879_v23, %v1875_v34  ;;  %v1911_v39 = vadd.f32 %v2674_v30, %v1910_v45  ;;  %2253 = vmatpush.msrb.mxu3 %v2204_v29  ;;  %v2195_v26 = vld [vmem:[%s4139_s17 + $0x130] sm:$0xff]  ;;  %v2180_v23 = vld [vmem:[%s4139_s17 + $0xb8] sm:$0xff]  ;;  %v2174_v11 = vld [vmem:[%s4139_s17 + $0x88] sm:$0xff] }
 0x9d8   :  { %v1971_v31 = vmul.f32 %v1967_v56, %v1799_v27  ;;  %v1881_v37 = vmul.f32 %v1880_v36, %v1856_v33  ;;  %2236 = vmatpush.msrb.mxu2 %v2194_v53  ;;  %v2190_v27 = vld [vmem:[%s4139_s17 + $0x108] sm:$0xff]  ;;  %v2187_v20 = vld [vmem:[%s4139_s17 + $0xf0] sm:$0xff]  ;;  %v2185_v56 = vld [vmem:[%s4139_s17 + $0xe0] sm:$0xff] }
 0x9d9   :  { %2058 = vmatmul.f32.vlgmr.msra.gmra.mxu1 %v1968_v35  ;;  %v1915_v47 = vsel %vm1914_vm12, %v2674_v30, %v1911_v39  ;;  %2254 = vmatpush.msrb.mxu3 %v2201_v17  ;;  %v2182_v35 = vld [vmem:[%s4139_s17 + $0xc8] sm:$0xff]  ;;  %v2183_v30 = vld [vmem:[%s4139_s17 + $0xd0] sm:$0xff]  ;;  %v2177_v33 = vld [vmem:[%s4139_s17 + $0xa0] sm:$0xff] }
 0x9da   :  { %2118 = vmatmul.f32.vlgmr.msrb.gmra.mxu0 %v1971_v31  ;;  %v2585_v21 = vclamps-f32 %v1881_v37, 1.0  ;;  %v1920_v3 = vsel %vm1917_vm13, %v1919_v16, %v1915_v47  ;;  %2237 = vmatpush.msrb.mxu2 %v2191_v60  ;;  %v2178_v31 = vld [vmem:[%s4139_s17 + $0xa8] sm:$0xff]  ;;  %v2179_v32 = vld [vmem:[%s4139_s17 + $0xb0] sm:$0xff]  ;;  %v2172_v34 = vld [vmem:[%s4139_s17 + $0x78] sm:$0xff] }
 0x9db   :  { %v1921_v50 = vmul.f32 %v1920_v3, %v1896_v15  ;;  %2255 = vmatpush.msrb.mxu3 %v2198_v18  ;;  %v2173_v36 = vld [vmem:[%s4139_s17 + $0x80] sm:$0xff]  ;;  %v2166_v45 = vld [vmem:[%s4139_s17 + $0x48] sm:$0xff]  ;;  %v2163_v39 = vld [vmem:[%s4139_s17 + $0x30] sm:$0xff] }
 0x9dc   :  { %v1965_v42 = vadd.f32 1.0, %v2585_v21  ;;  %2238 = vmatpush.msrb.mxu2 %v2188_v62  ;;  %v2169_v37 = vld [vmem:[%s4139_s17 + $0x60] sm:$0xff]  ;;  %v2168_v21 = vld [vmem:[%s4139_s17 + $0x58] sm:$0xff]  ;;  %v2162_v47 = vld [vmem:[%s4139_s17 + $0x28] sm:$0xff] }
 0x9dd   :  { %v2586_v51 = vclamps-f32 %v1921_v50, 1.0  ;;  %2256 = vmatpush.msrb.mxu3 %v2195_v26  ;;  %v2160_v16 = vld [vmem:[%s4139_s17 + $0x18] sm:$0xff]  ;;  %v2161_v15 = vld [vmem:[%s4139_s17 + $0x20] sm:$0xff]  ;;  %v2158_v50 = vld [vmem:[%s4139_s17 + $0x8] sm:$0xff] }
 0x9de   :  { %v1969_v1 = vmul.f32 %v1965_v42, %v1797_v57  ;;  %2239 = vmatpush.msrb.mxu2 %v2185_v56  ;;  %v2164_v57 = vld [vmem:[%s4139_s17 + $0x38] sm:$0xff]  ;;  %v2165_v42 = vld [vmem:[%s4139_s17 + $0x40] sm:$0xff]  ;;  %v2419_v25 = vld [vmem:[%s4141_s19 + $0x70] sm:$0xff] }
 0x9df   :  { %v1966_v58 = vadd.f32 1.0, %v2586_v51  ;;  %2257 = vmatpush.msrb.mxu3 %v2192_v6  ;;  %v2157_v3 = vld [vmem:[%s4139_s17] sm:$0xff]  ;;  %v2416_v62 = vld [vmem:[%s4141_s19 + $0x58] sm:$0xff] }
 0x9e0   :  { %2078 = vmatmul.f32.vlgmr.msra.gmra.mxu2 %v1969_v1  ;;  %v2633_v29 = vld [vmem:[%s4138_s16 + $0x2] ss:$0 sm:$0xff] }
 0x9e1   :  { %v1970_v38 = vmul.f32 %v1966_v58, %v1798_v2  ;;  %2258 = vmatpush.msrb.mxu3 %v2189_v48  ;;  %2240 = vmatpush.msrb.mxu2 %v2182_v35  ;;  %v2159_v2 = vld [vmem:[%s4139_s17 + $0x10] sm:$0xff]  ;;  %v2205_v17 = vld [vmem:[%s4140_s18] sm:$0x7] }
 0x9e2   :  { %v2417_v26 = vld [vmem:[%s4141_s19 + $0x60] sm:$0xff]  ;;  %v2208_v6 = vperm.slane %v2205_v17, 1  ;;  %v2435_v48 = vld [vmem:[%s4141_s19 + $0xf0] sm:$0xff] }
 0x9e3   :  { %2098 = vmatmul.f32.vlgmr.msra.gmra.mxu3 %v1970_v38  ;;  %2241 = vmatpush.msrb.mxu2 %v2179_v32 }
 0x9e4   :  { %2259 = vmatpush.msrb.mxu3 %v2186_v8  ;;  %v2415_v8 = vld [vmem:[%s4141_s19 + $0x50] sm:$0xff] }
 0x9e5   :  { %2242 = vmatpush.msrb.mxu2 %v2176_v41 }
 0x9e6   :  { %2260 = vmatpush.msrb.mxu3 %v2183_v30 }
 0x9e7   :  { %2243 = vmatpush.msrb.mxu2 %v2173_v36 }
 0x9e8   :  { %2261 = vmatpush.msrb.mxu3 %v2180_v23  ;;  %v2414_v23 = vld [vmem:[%s4141_s19 + $0x48] sm:$0xff] }
 0x9e9   :  { %2244 = vmatpush.msrb.mxu2 %v2170_v44 }
 0x9ea   :  { %2262 = vmatpush.msrb.mxu3 %v2177_v33 }
 0x9eb   :  { %2245 = vmatpush.msrb.mxu2 %v2167_v22 }
 0x9ec   :  { %2263 = vmatpush.msrb.mxu3 %v2174_v11  ;;  %v2413_v11 = vld [vmem:[%s4141_s19 + $0x40] sm:$0xff] }
 0x9ed   :  { %2246 = vmatpush.msrb.mxu2 %v2164_v57 }
 0x9ee   :  { %2264 = vmatpush.msrb.mxu3 %v2171_v43  ;;  %v2432_v43 = vld [vmem:[%s4141_s19 + $0xd8] sm:$0xff] }
 0x9ef   :  { %2247 = vmatpush.msrb.mxu2 %v2161_v15 }
 0x9f0   :  { %2265 = vmatpush.msrb.mxu3 %v2168_v21  ;;  %v2412_v21 = vld [vmem:[%s4141_s19 + $0x38] sm:$0xff] }
 0x9f1   :  { %2248 = vmatpush.msrb.mxu2 %v2158_v50 }
 0x9f2   :  { %2266 = vmatpush.msrb.mxu3 %v2165_v42 }
 0x9f4   :  { %2267 = vmatpush.msrb.mxu3 %v2162_v47  ;;  %v2411_v47 = vld [vmem:[%s4141_s19 + $0x30] sm:$0xff] }
 0x9f6   :  { %2268 = vmatpush.msrb.mxu3 %v2159_v2 }
 0xa56   :  { %v2059_v4 = vpop.f32.mrf.mxu1 }
 0xa57   :  { %v2060_v52 = vadd.f32 %v2631_v54, %v2059_v4  ;;  %v2119_v19 = vpop.f32.mrf.mxu0 }
 0xa63   :  { %v2079_v63 = vpop.f32.mrf.mxu2 }
 0xa64   :  { %v2080_v59 = vadd.f32 %v2079_v63, %v2060_v52 }
 0xa66   :  { %v2099_v28 = vpop.f32.mrf.mxu3 }
 0xa67   :  { %v2100_v40 = vadd.f32 %v2099_v28, %v2080_v59 }
 0xa69   :  { %v2120_v0 = vadd.f32 %v2119_v19, %v2100_v40 }
 0xa6b   :  { %v3774_v5 = vadd.f32 %v2120_v0, %v3641_v46  ;;  %v2199_v46 = vld [vmem:[%s4139_s17 + $0x150] sm:$0xff]  ;;  %s4163_s17 = sld [smem:[#allocation35_spill]] }
 0xa6c   :  { %2214 = vmatpush.msrb.mxu1 %v2199_v46 }
 0xa6d   :  { %2127 = vadd.xlane.f32.xlu0 %v3774_v5  ;;  %v2130_v7 = vmul.f32 %v3774_v5, %v3774_v5 }
 0xa6e   :  { %2215 = vmatpush.msrb.mxu1 %v2196_v14  ;;  %v2207_v14 = vperm.slane %v2205_v17, 0 }
 0xa6f   :  { %2131 = vadd.xlane.f32.xlu1 %v2130_v7 }
 0xa70   :  { %2216 = vmatpush.msrb.mxu1 %v2193_v55  ;;  %v2418_v55 = vld [vmem:[%s4141_s19 + $0x68] sm:$0xff] }
 0xa71   :  { %s2520_s0 = sshll.u32 %s4163_s17, 4  ;;  %s2521_s0 = int_to_ptr.hbm [resolvable:$true] %s2520_s0 }
 0xa72   :  { %2217 = vmatpush.msrb.mxu1 %v2190_v27  ;;  %v2436_v27 = vld [vmem:[%s4141_s19 + $0xf8] sm:$0xff] }
 0xa74   :  { %2218 = vmatpush.msrb.mxu1 %v2187_v20  ;;  %v2209_v20 = vperm.slane %v2205_v17, 2 }
 0xa76   :  { %2219 = vmatpush.msrb.mxu1 %v2184_v24 }
 0xa78   :  { %2220 = vmatpush.msrb.mxu1 %v2181_v61  ;;  %v2434_v61 = vld [vmem:[%s4141_s19 + $0xe8] sm:$0xff] }
 0xa7a   :  { %2221 = vmatpush.msrb.mxu1 %v2178_v31 }
 0xa7c   :  { %2222 = vmatpush.msrb.mxu1 %v2175_v49  ;;  %v2433_v49 = vld [vmem:[%s4141_s19 + $0xe0] sm:$0xff] }
 0xa7e   :  { %2223 = vmatpush.msrb.mxu1 %v2172_v34 }
 0xa80   :  { %2224 = vmatpush.msrb.mxu1 %v2169_v37 }
 0xa82   :  { %2225 = vmatpush.msrb.mxu1 %v2166_v45 }
 0xa84   :  { %2226 = vmatpush.msrb.mxu1 %v2163_v39  ;;  %v2431_v39 = vld [vmem:[%s4141_s19 + $0xd0] sm:$0xff] }
 0xa86   :  { %2227 = vmatpush.msrb.mxu1 %v2160_v16 }
 0xa88   :  { %2228 = vmatpush.msrb.mxu1 %v2157_v3 }
 0xa8a   :  { %2472 = vmatpush.msra.mxu1 %v2436_v27 }
 0xa8c   :  { %2473 = vmatpush.msra.mxu1 %v2435_v48  ;;  %v2407_v48 = vld [vmem:[%s4141_s19 + $0x10] sm:$0xff] }
 0xa8e   :  { %2474 = vmatpush.msra.mxu1 %v2434_v61 }
 0xa90   :  { %2475 = vmatpush.msra.mxu1 %v2433_v49  ;;  %v2425_v49 = vld [vmem:[%s4141_s19 + $0xa0] sm:$0xff] }
 0xa92   :  { %2476 = vmatpush.msra.mxu1 %v2432_v43  ;;  %v2405_v43 = vld [vmem:[%s4141_s19] sm:$0xff] }
 0xa94   :  { %2477 = vmatpush.msra.mxu1 %v2431_v39  ;;  %v2440_v39 = vld [vmem:[%s4141_s19 + $0x118] sm:$0xff] }
 0xae0   :  { %v2128_v1 = vpop.xlane.xlu0 %2127 }
 0xae1   :  { %v2129_v51 = vmul.f32 %v2128_v1, %v3219_v13  ;;  %v2430_v1 = vld [vmem:[%s4141_s19 + $0xc8] sm:$0xff] }
 0xae2   :  { %v2132_v58 = vpop.xlane.xlu1 %2131  ;;  %2478 = vmatpush.msra.mxu1 %v2430_v1 }
 0xae3   :  { %v2134_v38 = vmul.f32 %v2129_v51, %v2129_v51  ;;  %v2133_v54 = vmul.f32 %v2132_v58, %v3219_v13  ;;  %v2136_v7 = vsub.f32 %v3774_v5, %v2129_v51  ;;  %v2420_v5 = vld [vmem:[%s4141_s19 + $0x78] sm:$0xff] }
 0xae4   :  { %2452 = vmatpush.msra.mxu0 %v2420_v5  ;;  %v2408_v5 = vld [vmem:[%s4141_s19 + $0x18] sm:$0xff] }
 0xae5   :  { %v2135_v4 = vsub.f32 %v2133_v54, %v2134_v38 }
 0xae6   :  { %2453 = vmatpush.msra.mxu0 %v2419_v25  ;;  %v2443_v25 = vld [vmem:[%s4141_s19 + $0x130] sm:$0xff] }
 0xae7   :  { %v2137_v63 = vadd.f32 1e-05, %v2135_v4  ;;  %v2410_v4 = vld [vmem:[%s4141_s19 + $0x28] sm:$0xff] }
 0xae8   :  { %2454 = vmatpush.msra.mxu0 %v2418_v55 }
 0xae9   :  { %2675 = vrsqrt.f32 %v2137_v63  ;;  %vm2144_vm15 = vweird.f32 %v2137_v63 }
 0xaea   :  { %2455 = vmatpush.msra.mxu0 %v2417_v26 }
 0xaec   :  { %2456 = vmatpush.msra.mxu0 %v2416_v62 }
 0xaee   :  { %2457 = vmatpush.msra.mxu0 %v2415_v8 }
 0xaef   :  { %v2676_v52 = vpop.eup %2675 }
 0xaf0   :  { %v2139_v59 = vmul.f32 %v2676_v52, %v2137_v63  ;;  %vm2145_vm14 = vweird.f32 %v2676_v52  ;;  %2458 = vmatpush.msra.mxu0 %v2414_v23  ;;  %v2429_v63 = vld [vmem:[%s4141_s19 + $0xc0] sm:$0xff]  ;;  %v2406_v23 = vld [vmem:[%s4141_s19 + $0x8] sm:$0xff] }
 0xaf1   :  { %vm2146_vm0 = vmor %vm2144_vm15, %vm2145_vm14  ;;  %2479 = vmatpush.msra.mxu1 %v2429_v63 }
 0xaf2   :  { %v2140_v28 = vmul.f32 %v2676_v52, %v2139_v59  ;;  %2459 = vmatpush.msra.mxu0 %v2413_v11 }
 0xaf4   :  { %v2141_v40 = vmul.f32 0.5, %v2140_v28  ;;  %2460 = vmatpush.msra.mxu0 %v2412_v21  ;;  %v2424_v21 = vld [vmem:[%s4141_s19 + $0x98] sm:$0xff] }
 0xaf6   :  { %v2142_v19 = vsub.f32 1.5, %v2141_v40  ;;  %2461 = vmatpush.msra.mxu0 %v2411_v47  ;;  %v2439_v47 = vld [vmem:[%s4141_s19 + $0x110] sm:$0xff] }
 0xaf8   :  { %v2143_v0 = vmul.f32 %v2676_v52, %v2142_v19  ;;  %2462 = vmatpush.msra.mxu0 %v2410_v4  ;;  %v2421_v4 = vld [vmem:[%s4141_s19 + $0x80] sm:$0xff] }
 0xafa   :  { %v2147_v10 = vsel %vm2146_vm0, %v2676_v52, %v2143_v0 }
 0xafb   :  { %v2148_v13 = vmul.f32 %v2147_v10, %v2136_v7 }
 0xafd   :  { %v2152_v46 = vmul.f32 %v2632_v9, %v2148_v13  ;;  %v2409_v13 = vld [vmem:[%s4141_s19 + $0x20] sm:$0xff] }
 0xafe   :  { %2463 = vmatpush.msra.mxu0 %v2409_v13 }
 0xaff   :  { %v2156_v12 = vadd.f32 %v2633_v29, %v2152_v46  ;;  %v2428_v29 = vld [vmem:[%s4141_s19 + $0xb8] sm:$0xff] }
 0xb00   :  { %v2444_v46 = vld [vmem:[%s4141_s19 + $0x138] sm:$0xff]  ;;  %2480 = vmatpush.msra.mxu1 %v2428_v29  ;;  %2464 = vmatpush.msra.mxu0 %v2408_v5 }
 0xb01   :  { %2229 = vmatmul.f32.vlgmr.msrb.gmra.mxu1 %v2156_v12  ;;  %2249 = vmatmul.f32.vlgmr.msrb.gmra.mxu2 %v2156_v12 }
 0xb02   :  { %2269 = vmatmul.f32.vlgmr.msrb.gmra.mxu3 %v2156_v12  ;;  %2500 = vmatpush.msra.mxu2 %v2444_v46 }
 0xb03   :  { %2465 = vmatpush.msra.mxu0 %v2407_v48 }
 0xb04   :  { %2501 = vmatpush.msra.mxu2 %v2443_v25 }
 0xb05   :  { %2466 = vmatpush.msra.mxu0 %v2406_v23 }
 0xb07   :  { %2467 = vmatpush.msra.mxu0 %v2405_v43 }
 0xb7e   :  { %v2230_v18 = vpop.f32.mrf.mxu1 }
 0xb7f   :  { %v3941_v53 = vadd.f32 %v2230_v18, %v2207_v14  ;;  %v2427_v14 = vld [vmem:[%s4141_s19 + $0xb0] sm:$0xff] }
 0xb80   :  { %2481 = vmatpush.msra.mxu1 %v2427_v14 }
 0xb81   :  { %v3950_v60 = vmul.f32 0.70710677, %v3941_v53  ;;  %v2273_v23 = vmul.f32 0.5, %v3941_v53 }
 0xb83   :  { %v2279_v24 = vmul.f32 %v3950_v60, %v3950_v60 }
 0xb84   :  { %v2250_v56 = vpop.f32.mrf.mxu2 }
 0xb85   :  { %v3966_v35 = vmin.f32 %v2279_v24, 16.0  ;;  %v3968_v30 = vadd.f32 %v2250_v56, %v2208_v6  ;;  %v2270_v31 = vpop.f32.mrf.mxu3  ;;  %v2426_v24 = vld [vmem:[%s4141_s19 + $0xa8] sm:$0xff] }
 0xb86   :  { %v3970_v32 = vadd.f32 %v2270_v31, %v2209_v20  ;;  %v2442_v56 = vld [vmem:[%s4141_s19 + $0x128] sm:$0xff]  ;;  %2482 = vmatpush.msra.mxu1 %v2426_v24 }
 0xb87   :  { %v2281_v41 = vmul.f32 2.1237322e-06, %v3966_v35  ;;  %v2292_v33 = vmul.f32 3.8918573e-05, %v3966_v35  ;;  %v3981_v34 = vmul.f32 0.70710677, %v3968_v30  ;;  %2502 = vmatpush.msra.mxu2 %v2442_v56 }
 0xb88   :  { %v3984_v36 = vmul.f32 0.70710677, %v3970_v32  ;;  %2483 = vmatpush.msra.mxu1 %v2425_v49 }
 0xb89   :  { %v2282_v37 = vadd.f32 0.00028619796, %v2281_v41  ;;  %v2293_v44 = vadd.f32 0.001143296, %v2292_v33  ;;  %v2319_v45 = vmul.f32 %v3981_v34, %v3981_v34  ;;  %v2441_v41 = vld [vmem:[%s4141_s19 + $0x120] sm:$0xff] }
 0xb8a   :  { %v2359_v22 = vmul.f32 %v3984_v36, %v3984_v36  ;;  %2503 = vmatpush.msra.mxu2 %v2441_v41  ;;  %2484 = vmatpush.msra.mxu1 %v2424_v21 }
 0xb8b   :  { %v2283_v57 = vmul.f32 %v2282_v37, %v3966_v35  ;;  %v2294_v42 = vmul.f32 %v2293_v44, %v3966_v35  ;;  %v4004_v16 = vmin.f32 %v2319_v45, 16.0 }
 0xb8c   :  { %v4006_v15 = vmin.f32 %v2359_v22, 16.0  ;;  %2504 = vmatpush.msra.mxu2 %v2440_v39 }
 0xb8d   :  { %v2284_v3 = vadd.f32 0.0036580483, %v2283_v57  ;;  %v2295_v50 = vadd.f32 0.014752088, %v2294_v42  ;;  %v2321_v51 = vmul.f32 2.1237322e-06, %v4004_v16 }
 0xb8e   :  { %v2332_v2 = vmul.f32 3.8918573e-05, %v4004_v16  ;;  %v2361_v58 = vmul.f32 2.1237322e-06, %v4006_v15  ;;  %v2372_v54 = vmul.f32 3.8918573e-05, %v4006_v15  ;;  %2505 = vmatpush.msra.mxu2 %v2439_v47 }
 0xb8f   :  { %v2296_v38 = vmul.f32 %v2295_v50, %v3966_v35  ;;  %v2322_v52 = vadd.f32 0.00028619796, %v2321_v51  ;;  %v2285_v40 = vmul.f32 %v2284_v3, %v3966_v35  ;;  %v2423_v57 = vld [vmem:[%s4141_s19 + $0x90] sm:$0xff]  ;;  %v2422_v50 = vld [vmem:[%s4141_s19 + $0x88] sm:$0xff] }
 0xb90   :  { %v2333_v59 = vadd.f32 0.001143296, %v2332_v2  ;;  %v2362_v28 = vadd.f32 0.00028619796, %v2361_v58  ;;  %v2373_v0 = vadd.f32 0.001143296, %v2372_v54  ;;  %2485 = vmatpush.msra.mxu1 %v2423_v57 }
 0xb91   :  { %v2297_v19 = vadd.f32 0.112945676, %v2296_v38  ;;  %v2323_v7 = vmul.f32 %v2322_v52, %v4004_v16  ;;  %v2286_v26 = vadd.f32 0.05243302, %v2285_v40  ;;  %v2438_v2 = vld [vmem:[%s4141_s19 + $0x108] sm:$0xff]  ;;  %v2437_v52 = vld [vmem:[%s4141_s19 + $0x100] sm:$0xff] }
 0xb92   :  { %v2334_v9 = vmul.f32 %v2333_v59, %v4004_v16  ;;  %v2363_v10 = vmul.f32 %v2362_v28, %v4006_v15  ;;  %v2374_v17 = vmul.f32 %v2373_v0, %v4006_v15  ;;  %2486 = vmatpush.msra.mxu1 %v2422_v50  ;;  %2506 = vmatpush.msra.mxu2 %v2438_v2  ;;  %v2274_v50 = vmul.f32 0.5, %v3968_v30 }
 0xb93   :  { %v2298_v12 = vmul.f32 %v2297_v19, %v3966_v35  ;;  %v2324_v18 = vadd.f32 0.0036580483, %v2323_v7  ;;  %v2287_v11 = vmul.f32 %v2286_v26, %v3966_v35 }
 0xb94   :  { %v2335_v55 = vadd.f32 0.014752088, %v2334_v9  ;;  %v2375_v6 = vadd.f32 0.014752088, %v2374_v17  ;;  %v2364_v62 = vadd.f32 0.0036580483, %v2363_v10  ;;  %2487 = vmatpush.msra.mxu1 %v2421_v4  ;;  %2507 = vmatpush.msra.mxu2 %v2437_v52 }
 0xb95   :  { %v2299_v27 = vadd.f32 0.4994258, %v2298_v12  ;;  %v2325_v61 = vmul.f32 %v2324_v18, %v4004_v16  ;;  %v2288_v51 = vadd.f32 0.18741608, %v2287_v11 }
 0xb96   :  { %v2336_v20 = vmul.f32 %v2335_v55, %v4004_v16  ;;  %v2376_v31 = vmul.f32 %v2375_v6, %v4006_v15  ;;  %v2365_v22 = vmul.f32 %v2364_v62, %v4006_v15 }
 0xb97   :  { %v2300_v8 = vmul.f32 %v2299_v27, %v3966_v35  ;;  %v2326_v42 = vadd.f32 0.05243302, %v2325_v61  ;;  %v2289_v19 = vmul.f32 %v2288_v51, %v3966_v35 }
 0xb98   :  { %v2337_v33 = vadd.f32 0.112945676, %v2336_v20  ;;  %v2377_v44 = vadd.f32 0.112945676, %v2376_v31  ;;  %v2366_v38 = vadd.f32 0.05243302, %v2365_v22 }
 0xb99   :  { %v2301_v37 = vadd.f32 1.0, %v2300_v8  ;;  %v2327_v63 = vmul.f32 %v2326_v42, %v4004_v16  ;;  %v2290_v29 = vadd.f32 1.1283791, %v2289_v19 }
 0xb9a   :  { %v2338_v45 = vmul.f32 %v2337_v33, %v4004_v16  ;;  %v2378_v3 = vmul.f32 %v2377_v44, %v4006_v15  ;;  %v2367_v7 = vmul.f32 %v2366_v38, %v4006_v15 }
 0xb9b   :  { %2677 = vrcp.f32 %v2301_v37  ;;  %v2328_v9 = vadd.f32 0.18741608, %v2327_v63  ;;  %v2311_v46 = vand.u32 2147483647, %v2301_v37  ;;  %v2313_v12 = vand.u32 2147483648, %v2301_v37 }
 0xb9c   :  { %v2339_v1 = vadd.f32 0.4994258, %v2338_v45  ;;  %v2379_v54 = vadd.f32 0.4994258, %v2378_v3  ;;  %v2368_v5 = vadd.f32 0.18741608, %v2367_v7  ;;  %vm2307_vm2 = vweird.f32 %v2301_v37 }
 0xb9d   :  { %v2329_v14 = vmul.f32 %v2328_v9, %v4004_v16  ;;  %v2314_v18 = vor.u32 1.1754944e-38, %v2313_v12  ;;  %v2291_v26 = vmul.f32 %v2290_v29, %v3950_v60  ;;  %vm2312_vm4 = vcmp.eq.f32.partialorder %v2311_v46, 8.507059e+37 }
 0xb9e   :  { %v2340_v58 = vmul.f32 %v2339_v1, %v4004_v16  ;;  %v2380_v28 = vmul.f32 %v2379_v54, %v4006_v15  ;;  %v2369_v6 = vmul.f32 %v2368_v5, %v4006_v15  ;;  %v2275_v54 = vmul.f32 0.5, %v3970_v32 }
 0xb9f   :  { %v2330_v62 = vadd.f32 1.1283791, %v2329_v14 }
 0xba0   :  { %v2341_v59 = vadd.f32 1.0, %v2340_v58  ;;  %v2381_v13 = vadd.f32 1.0, %v2380_v28  ;;  %v2370_v41 = vadd.f32 1.1283791, %v2369_v6 }
 0xba1   :  { %v2678_v40 = vpop.eup %2677  ;;  %v2331_v60 = vmul.f32 %v2330_v62, %v3981_v34 }
 0xba2   :  { %v2303_v0 = vmul.f32 %v2678_v40, %v2301_v37  ;;  %2679 = vrcp.f32 %v2341_v59  ;;  %vm2308_vm1 = vweird.f32 %v2678_v40  ;;  %v2351_v8 = vand.u32 2147483647, %v2341_v59 }
 0xba3   :  { %2681 = vrcp.f32 %v2381_v13  ;;  %vm2309_vm3 = vmor %vm2307_vm2, %vm2308_vm1  ;;  %v2353_v61 = vand.u32 2147483648, %v2341_v59  ;;  %vm2347_vm7 = vweird.f32 %v2341_v59  ;;  %v2393_v44 = vand.u32 2147483648, %v2381_v13 }
 0xba4   :  { %v2304_v10 = vsub.f32 1.0, %v2303_v0  ;;  %vm2352_vm9 = vcmp.eq.f32.partialorder %v2351_v8, 8.507059e+37  ;;  %v2391_v22 = vand.u32 2147483647, %v2381_v13  ;;  %vm2387_vm11 = vweird.f32 %v2381_v13 }
 0xba5   :  { %v2354_v37 = vor.u32 1.1754944e-38, %v2353_v61  ;;  %v2394_v42 = vor.u32 1.1754944e-38, %v2393_v44  ;;  %v2371_v47 = vmul.f32 %v2370_v41, %v3984_v36  ;;  %v2634_v36 = vld [vmem:[%s4162_s21] ss:$0 sm:$0xff] }
 0xba6   :  { %v2305_v17 = vmul.f32 %v2678_v40, %v2304_v10  ;;  %vm2392_vm13 = vcmp.eq.f32.partialorder %v2391_v22, 8.507059e+37 }
 0xba8   :  { %v2680_v25 = vpop.eup %2679  ;;  %v2306_v35 = vadd.f32 %v2678_v40, %v2305_v17 }
 0xba9   :  { %v2343_v55 = vmul.f32 %v2680_v25, %v2341_v59  ;;  %v2682_v24 = vpop.eup %2681  ;;  %vm2348_vm5 = vweird.f32 %v2680_v25 }
 0xbaa   :  { %v2310_v27 = vsel %vm2309_vm3, %v2678_v40, %v2306_v35  ;;  %v2383_v31 = vmul.f32 %v2682_v24, %v2381_v13  ;;  %vm2349_vm8 = vmor %vm2347_vm7, %vm2348_vm5  ;;  %vm2388_vm10 = vweird.f32 %v2682_v24 }
 0xbab   :  { %v2315_v20 = vsel %vm2312_vm4, %v2314_v18, %v2310_v27  ;;  %v2344_v48 = vsub.f32 1.0, %v2343_v55  ;;  %vm2389_vm12 = vmor %vm2387_vm11, %vm2388_vm10 }
 0xbac   :  { %v2316_v56 = vmul.f32 %v2315_v20, %v2291_v26  ;;  %v2384_v11 = vsub.f32 1.0, %v2383_v31 }
 0xbad   :  { %v2345_v16 = vmul.f32 %v2680_v25, %v2344_v48 }
 0xbae   :  { %v2589_v49 = vclamps-f32 %v2316_v56, 1.0  ;;  %v2385_v45 = vmul.f32 %v2682_v24, %v2384_v11 }
 0xbaf   :  { %v2346_v33 = vadd.f32 %v2680_v25, %v2345_v16 }
 0xbb0   :  { %v2399_v15 = vadd.f32 1.0, %v2589_v49  ;;  %v2386_v53 = vadd.f32 %v2682_v24, %v2385_v45 }
 0xbb1   :  { %v2350_v43 = vsel %vm2349_vm8, %v2680_v25, %v2346_v33 }
 0xbb2   :  { %v2402_v21 = vmul.f32 %v2399_v15, %v2273_v23  ;;  %v2355_v39 = vsel %vm2352_vm9, %v2354_v37, %v2350_v43  ;;  %v2390_v1 = vsel %vm2389_vm12, %v2682_v24, %v2386_v53 }
 0xbb3   :  { %v2356_v57 = vmul.f32 %v2355_v39, %v2331_v60  ;;  %v2395_v3 = vsel %vm2392_vm13, %v2394_v42, %v2390_v1 }
 0xbb4   :  { %2468 = vmatmul.f32.vlgmr.msra.gmra.mxu0 %v2402_v21  ;;  %v2396_v2 = vmul.f32 %v2395_v3, %v2371_v47 }
 0xbb5   :  { %v2590_v34 = vclamps-f32 %v2356_v57, 1.0 }
 0xbb6   :  { %v2591_v38 = vclamps-f32 %v2396_v2, 1.0 }
 0xbb7   :  { %v2400_v51 = vadd.f32 1.0, %v2590_v34 }
 0xbb8   :  { %v2401_v4 = vadd.f32 1.0, %v2591_v38 }
 0xbb9   :  { %v2403_v58 = vmul.f32 %v2400_v51, %v2274_v50 }
 0xbba   :  { %v2404_v63 = vmul.f32 %v2401_v4, %v2275_v54 }
 0xbbb   :  { %2488 = vmatmul.f32.vlgmr.msra.gmra.mxu1 %v2403_v58 }
 0xbbc   :  { %2592 = vmatmul.msk.f32.vlgmr.msra.gmra.mxu2 %vm322_vm6, %v2404_v63 }
 0xc31   :  { %v2469_v52 = vpop.f32.mrf.mxu0 }
 0xc32   :  { %v2470_v28 = vadd.f32 %v2634_v36, %v2469_v52 }
 0xc38   :  { %v2489_v59 = vpop.f32.mrf.mxu1 }
 0xc39   :  { %v2490_v30 = vadd.f32 %v2489_v59, %v2470_v28 }
 0xc3f   :  { %v2509_v32 = vpop.f32.mrf.mxu2 }
 0xc40   :  { %v2510_v40 = vadd.f32 %v2509_v32, %v2490_v30 }
 0xc42   :  { %2512 = vst [vmem:[#allocation20] sm:$0xff] %v2510_v40 }
 0xc43   :  { %2523 = dma.vmem_to_hbm [thread:$0]  %s2519_s11, 128, %s2521_s0, [#allocation4]  }
 0xc44   :  { %2983 = dma.done.wait [#allocation4], 128  }
 0xc45   :  { %2984 = vsyncadd [#allocation4], 4294967168 }
 0xc46   :  { %2528 = vsyncpa [#allocation3], 1 }
 0xc47   :  { %2529 = vsyncpa [#allocation6], 1 }
 0xc48   :  { %2530 = vsyncpa [#allocation9], 1 }
 0xc49   :  { %2531 = vsyncpa [#allocation12], 1 }
 0xc4a   :  { %2532 = vsyncpa [#allocation15], 1 }
 0xc4b   :  { %2533 = vsyncpa [#allocation18], 1 }
 0xc4c   :  { %2534 = vsyncpa [#allocation4], 1 }

</bundles_post_ra>
